<compile_context>
chip_gen: v7x
topology: tpu7x:2x2x1
jax: 0.10.0
libtpu: 0.0.40
codegen_flags: <defaults>
</compile_context>

<pallas_src>
import functools

import numpy as np
import jax
import jax.numpy as jnp
from jax.experimental import pallas as pl
from jax.experimental.pallas import tpu as pltpu

KW = 4          # conv kernel size
PAD = 1         # conv padding
LRELU_SLOPE = 0.2
BN_EPS = 1e-5


# ----------------------------- layer configuration ----------------------------- #

def layer_configs(input_nc=18, ndf=16, n_layers=3):
    """Mirror of the PyTorch Discriminator layer stack (BatchNorm2d => use_bias=False)."""
    cfg = [dict(cin=input_nc, cout=ndf, stride=2, bias=True, bn=False, act=True)]
    nf = 1
    for n in range(1, n_layers):
        nf_prev, nf = nf, min(2 ** n, 8)
        cfg.append(dict(cin=ndf * nf_prev, cout=ndf * nf, stride=2,
                        bias=False, bn=True, act=True))
    nf_prev, nf = nf, min(2 ** n_layers, 8)
    cfg.append(dict(cin=ndf * nf_prev, cout=ndf * nf, stride=1,
                    bias=False, bn=True, act=True))
    cfg.append(dict(cin=ndf * nf, cout=1, stride=1, bias=True, bn=False, act=False))
    return cfg


def init_params(key, cfg):
    """Deterministic synthetic init matching the PyTorch module's parameter shapes."""
    params = []
    for c in cfg:
        key, kw_key = jax.random.split(key)
        w = jax.random.normal(kw_key, (KW, KW, c["cin"], c["cout"]), jnp.float32) * 0.02
        params.append(dict(
            w=w,                                             # HWIO
            b=jnp.zeros((c["cout"],), jnp.float32),
            gamma=jnp.ones((c["cout"],), jnp.float32),
            beta=jnp.zeros((c["cout"],), jnp.float32),
        ))
    return params


# --------------------- host-built constant matrices (once) --------------------- #

def _row_select(n, hin, oh, stride):
    """R[kh]: (n*oh, n*hin) one-hot picking input row h = oh_i*stride + kh - PAD."""
    r = np.zeros((KW, n * oh, n * hin), np.float32)
    for kh in range(KW):
        for b in range(n):
            for i in range(oh):
                h = i * stride + kh - PAD
                if 0 <= h < hin:
                    r[kh, b * oh + i, b * hin + h] = 1.0
    return r


def _col_weights(w_hwio, win, ow, stride):
    """G[kh]: (win*cin, ow*cout) with G[kh, w*cin+ci, j*cout+co] = W[kh, kw, ci, co]
    for kw = w - j*stride + PAD (conv unrolled along W; padding taps dropped)."""
    _, _, cin, cout = w_hwio.shape
    g = np.zeros((KW, win * cin, ow * cout), np.float32)
    for kh in range(KW):
        for j in range(ow):
            for kw in range(KW):
                w = j * stride + kw - PAD
                if 0 <= w < win:
                    g[kh, w * cin:(w + 1) * cin, j * cout:(j + 1) * cout] = w_hwio[kh, kw]
    return g


def build_operands(params, cfg, n, h, w):
    """Pack every constant operand of the fused kernel (host side, once per param set)."""
    operands = []
    meta = []
    hin, win = h, w
    for idx, (c, p) in enumerate(zip(cfg, params)):
        w_np = np.asarray(p["w"], np.float32)
        oh = (hin + 2 * PAD - KW) // c["stride"] + 1
        ow = (win + 2 * PAD - KW) // c["stride"] + 1
        last = idx == len(cfg) - 1

        operands.append(jnp.asarray(_row_select(n, hin, oh, c["stride"])))
        gmat = _col_weights(w_np, win, ow, c["stride"])
        if last:
            # final Cout=1 layer: transposed (kh, ow*cout, win*cin) f32 for the VPU path
            operands.append(jnp.asarray(np.transpose(gmat, (0, 2, 1))))
        else:
            operands.append(jnp.asarray(gmat, dtype=jnp.bfloat16))

        if c["bn"]:
            count = float(n * oh * ow)
            avg = np.tile(np.eye(c["cout"], dtype=np.float32), (ow, ow)) / count
            operands.append(jnp.asarray(avg))
            operands.append(jnp.asarray(np.tile(np.asarray(p["gamma"]), ow)[None, :]))
            operands.append(jnp.asarray(np.tile(np.asarray(p["beta"]), ow)[None, :]))
        else:
            operands.append(jnp.asarray(np.tile(np.asarray(p["b"]), ow)[None, :]))

        meta.append((bool(c["bn"]), bool(c["act"]), last))
        hin, win = oh, ow
    return operands, tuple(meta), (hin, win)


# ----------------------------------- kernel ----------------------------------- #

def _discriminator_kernel(*refs, meta):
    """Fully fused forward.

    refs = [x] + sum_l([R_l, G_l] + epilogue consts_l) + [out]
    epilogue consts: (bias_row,) for bias layers, (Avg, gamma_row, beta_row) for BN layers.
    """
    x_ref = refs[0]
    out_ref = refs[-1]
    pos = 1

    a = x_ref[...]                                           # (N*H, W*C) f32 activations
    for has_bn, has_act, is_last in meta:
        r_ref, g_ref = refs[pos], refs[pos + 1]
        pos += 2

        # conv, accumulated over the 4 kernel rows: (R_kh @ A) then weight matmul
        xsels = [jnp.dot(r_ref[kh], a, preferred_element_type=jnp.float32)
                 for kh in range(KW)]                        # each (M_out, W_in*C_in) f32

        if is_last:
            # final conv (Cout == 1): VPU multiply + lane reduction, no MXU / no BN
            bias_ref = refs[pos]
            pos += 1
            b_row = bias_ref[...]                            # (1, OW*Cout)
            g_rows = [g_ref[kh] for kh in range(KW)]         # each (OW*Cout, W_in*C_in)
            for j in range(out_ref.shape[1]):
                col = None
                for kh in range(KW):
                    part = jnp.sum(xsels[kh] * g_rows[kh][j:j + 1, :],
                                   axis=-1, keepdims=True)   # (M_out, 1)
                    col = part if col is None else col + part
                out_ref[:, j:j + 1] = col + b_row[:, j:j + 1]
        else:
            acc = None
            for kh in range(KW):
                contrib = jnp.dot(xsels[kh].astype(jnp.bfloat16), g_ref[kh],
                                  preferred_element_type=jnp.float32)
                acc = contrib if acc is None else acc + contrib

            if has_bn:
                avg_ref, gamma_ref, beta_ref = refs[pos], refs[pos + 1], refs[pos + 2]
                pos += 3
                # training-mode BatchNorm2d: biased batch stats over (N, OH, OW)
                col_sum = jnp.sum(acc, axis=0, keepdims=True)
                col_sq = jnp.sum(acc * acc, axis=0, keepdims=True)
                mean = jnp.dot(col_sum, avg_ref[...], preferred_element_type=jnp.float32)
                ex2 = jnp.dot(col_sq, avg_ref[...], preferred_element_type=jnp.float32)
                var = ex2 - mean * mean
                y = (acc - mean) * jax.lax.rsqrt(var + BN_EPS)
                y = y * gamma_ref[...] + beta_ref[...]
            else:
                bias_ref = refs[pos]
                pos += 1
                y = acc + bias_ref[...]

            a = jnp.where(y >= 0, y, LRELU_SLOPE * y) if has_act else y


# ------------------------------- host-side glue -------------------------------- #

def make_forward(params, cfg, batch, height, width):
    operands, meta, (oh_f, ow_f) = build_operands(params, cfg, batch, height, width)
    cin0, cout_f = cfg[0]["cin"], cfg[-1]["cout"]
    in_cols = width * cin0
    out_shape = jax.ShapeDtypeStruct((batch * oh_f, ow_f * cout_f), jnp.float32)

    def full_spec(arr):
        return pl.BlockSpec(tuple(arr.shape), lambda i, nd=arr.ndim: (0,) * nd)

    in_specs = ([pl.BlockSpec((batch * height, in_cols), lambda i: (0, 0))]
                + [full_spec(op) for op in operands])
    out_spec = pl.BlockSpec(tuple(out_shape.shape), lambda i: (0, 0))

    call = pl.pallas_call(
        functools.partial(_discriminator_kernel, meta=meta),
        out_shape=out_shape,
        grid=(1,),
        in_specs=in_specs,
        out_specs=out_spec,
        compiler_params=pltpu.CompilerParams(
            dimension_semantics=("arbitrary",),
            vmem_limit_bytes=32 * 1024 * 1024,
        ),
    )

    def forward(x_nchw):
        # NCHW -> lane-dense (N*H, W*C) activation matrix (channel minor)
        x_mat = jnp.transpose(x_nchw, (0, 2, 3, 1)).reshape(batch * height, in_cols)
        out_mat = call(x_mat, *operands)                     # (N*OH, OW*Cout)
        out = out_mat.reshape(batch, oh_f, ow_f, cout_f)
        return jnp.transpose(out, (0, 3, 1, 2))              # NCHW

    return forward


def reference_forward(x_nchw, params, cfg):
    """Plain-XLA reference of the PyTorch module (training-mode BatchNorm)."""
    x = x_nchw
    for c, p in zip(cfg, params):
        x = jax.lax.conv_general_dilated(
            x, p["w"], window_strides=(c["stride"], c["stride"]),
            padding=((PAD, PAD), (PAD, PAD)),
            dimension_numbers=("NCHW", "HWIO", "NCHW"))
        if c["bias"]:
            x = x + p["b"].reshape(1, -1, 1, 1)
        if c["bn"]:
            mean = jnp.mean(x, axis=(0, 2, 3), keepdims=True)
            var = jnp.mean(jnp.square(x - mean), axis=(0, 2, 3), keepdims=True)
            x = (x - mean) * jax.lax.rsqrt(var + BN_EPS)
            x = x * p["gamma"].reshape(1, -1, 1, 1) + p["beta"].reshape(1, -1, 1, 1)
        if c["act"]:
            x = jnp.where(x >= 0, x, LRELU_SLOPE * x)
    return x


if __name__ == "__main__":
    key = jax.random.PRNGKey(0)
    kx, kp = jax.random.split(key)
    # 32x32 spatial so that all 5 convs (three stride-2, two stride-1, k=4, p=1) are valid.
    batch, height, width = 2, 32, 32
    cfg = layer_configs(input_nc=18, ndf=16, n_layers=3)
    params = init_params(kp, cfg)
    x = jax.random.normal(kx, (batch, cfg[0]["cin"], height, width), jnp.float32)

    fwd = jax.jit(make_forward(params, cfg, batch, height, width))
    out = fwd(x)
    jax.block_until_ready(out)

    assert out.shape == (2, 1, 2, 2), out.shape
    assert out.dtype == jnp.float32

    # numerical sanity check vs. plain-XLA reference (loose tol: bf16 weight matmuls)
    ref = reference_forward(x, params, cfg)
    assert jnp.allclose(out, ref, atol=0.1, rtol=0.1), (out, ref)

    print("KERNEL_OK")
</pallas_src>

<mosaic_0001>
module attributes {stable_mosaic.version = 11 : i64} {
  func.func @_discriminator_kernel(%arg0: i32, %arg1: memref<64x576xf32, #tpu.memory_space<vmem>>, %arg2: memref<4x32x64xf32, #tpu.memory_space<vmem>>, %arg3: memref<4x576x256xbf16, #tpu.memory_space<vmem>>, %arg4: memref<1x256xf32, #tpu.memory_space<vmem>>, %arg5: memref<4x16x32xf32, #tpu.memory_space<vmem>>, %arg6: memref<4x256x256xbf16, #tpu.memory_space<vmem>>, %arg7: memref<256x256xf32, #tpu.memory_space<vmem>>, %arg8: memref<1x256xf32, #tpu.memory_space<vmem>>, %arg9: memref<1x256xf32, #tpu.memory_space<vmem>>, %arg10: memref<4x8x16xf32, #tpu.memory_space<vmem>>, %arg11: memref<4x256x256xbf16, #tpu.memory_space<vmem>>, %arg12: memref<256x256xf32, #tpu.memory_space<vmem>>, %arg13: memref<1x256xf32, #tpu.memory_space<vmem>>, %arg14: memref<1x256xf32, #tpu.memory_space<vmem>>, %arg15: memref<4x6x8xf32, #tpu.memory_space<vmem>>, %arg16: memref<4x256x384xbf16, #tpu.memory_space<vmem>>, %arg17: memref<384x384xf32, #tpu.memory_space<vmem>>, %arg18: memref<1x384xf32, #tpu.memory_space<vmem>>, %arg19: memref<1x384xf32, #tpu.memory_space<vmem>>, %arg20: memref<4x4x6xf32, #tpu.memory_space<vmem>>, %arg21: memref<4x2x384xf32, #tpu.memory_space<vmem>>, %arg22: memref<1x2xf32, #tpu.memory_space<vmem>>, %arg23: memref<4x2xf32, #tpu.memory_space<vmem>>) attributes {dimension_semantics = [#tpu.dimension_semantics<arbitrary>], iteration_bounds = array<i64: 1>, scalar_prefetch = 0 : i64, scratch_operands = 0 : i64, tpu.core_type = #tpu.core_type<tc>, window_params = [{pipeline_mode = #tpu.pipeline_mode<synchronous>, transform_indices = @transform_0, window_bounds = array<i64: 64, 576>}, {pipeline_mode = #tpu.pipeline_mode<synchronous>, transform_indices = @transform_1, window_bounds = array<i64: 4, 32, 64>}, {pipeline_mode = #tpu.pipeline_mode<synchronous>, transform_indices = @transform_2, window_bounds = array<i64: 4, 576, 256>}, {pipeline_mode = #tpu.pipeline_mode<synchronous>, transform_indices = @transform_3, window_bounds = array<i64: 1, 256>}, {pipeline_mode = #tpu.pipeline_mode<synchronous>, transform_indices = @transform_4, window_bounds = array<i64: 4, 16, 32>}, {pipeline_mode = #tpu.pipeline_mode<synchronous>, transform_indices = @transform_5, window_bounds = array<i64: 4, 256, 256>}, {pipeline_mode = #tpu.pipeline_mode<synchronous>, transform_indices = @transform_6, window_bounds = array<i64: 256, 256>}, {pipeline_mode = #tpu.pipeline_mode<synchronous>, transform_indices = @transform_7, window_bounds = array<i64: 1, 256>}, {pipeline_mode = #tpu.pipeline_mode<synchronous>, transform_indices = @transform_8, window_bounds = array<i64: 1, 256>}, {pipeline_mode = #tpu.pipeline_mode<synchronous>, transform_indices = @transform_9, window_bounds = array<i64: 4, 8, 16>}, {pipeline_mode = #tpu.pipeline_mode<synchronous>, transform_indices = @transform_10, window_bounds = array<i64: 4, 256, 256>}, {pipeline_mode = #tpu.pipeline_mode<synchronous>, transform_indices = @transform_11, window_bounds = array<i64: 256, 256>}, {pipeline_mode = #tpu.pipeline_mode<synchronous>, transform_indices = @transform_12, window_bounds = array<i64: 1, 256>}, {pipeline_mode = #tpu.pipeline_mode<synchronous>, transform_indices = @transform_13, window_bounds = array<i64: 1, 256>}, {pipeline_mode = #tpu.pipeline_mode<synchronous>, transform_indices = @transform_14, window_bounds = array<i64: 4, 6, 8>}, {pipeline_mode = #tpu.pipeline_mode<synchronous>, transform_indices = @transform_15, window_bounds = array<i64: 4, 256, 384>}, {pipeline_mode = #tpu.pipeline_mode<synchronous>, transform_indices = @transform_16, window_bounds = array<i64: 384, 384>}, {pipeline_mode = #tpu.pipeline_mode<synchronous>, transform_indices = @transform_17, window_bounds = array<i64: 1, 384>}, {pipeline_mode = #tpu.pipeline_mode<synchronous>, transform_indices = @transform_18, window_bounds = array<i64: 1, 384>}, {pipeline_mode = #tpu.pipeline_mode<synchronous>, transform_indices = @transform_19, window_bounds = array<i64: 4, 4, 6>}, {pipeline_mode = #tpu.pipeline_mode<synchronous>, transform_indices = @transform_20, window_bounds = array<i64: 4, 2, 384>}, {pipeline_mode = #tpu.pipeline_mode<synchronous>, transform_indices = @transform_21, window_bounds = array<i64: 1, 2>}, {pipeline_mode = #tpu.pipeline_mode<synchronous>, transform_indices = @transform_22, window_bounds = array<i64: 4, 2>}]} {
    %c0 = arith.constant 0 : index
    %c0_0 = arith.constant 0 : index
    %0 = vector.load %arg1[%c0, %c0_0] : memref<64x576xf32, #tpu.memory_space<vmem>>, vector<64x576xf32>
    %c0_1 = arith.constant 0 : index
    %c0_2 = arith.constant 0 : index
    %c0_3 = arith.constant 0 : index
    %1 = vector.load %arg2[%c0_1, %c0_2, %c0_3] : memref<4x32x64xf32, #tpu.memory_space<vmem>>, vector<1x32x64xf32>
    %2 = vector.shape_cast %1 : vector<1x32x64xf32> to vector<32x64xf32>
    %cst = arith.constant dense<0.000000e+00> : vector<32x576xf32>
    %3 = tpu.matmul %2, %0, %cst {dimension_numbers = #tpu.dot_dimension_numbers<[1], [0], [0], [1], [0, 0, 1, 1], [], []>} : vector<32x64xf32>, vector<64x576xf32>, vector<32x576xf32> -> vector<32x576xf32>
    %c1 = arith.constant 1 : index
    %c0_4 = arith.constant 0 : index
    %c0_5 = arith.constant 0 : index
    %4 = vector.load %arg2[%c1, %c0_4, %c0_5] : memref<4x32x64xf32, #tpu.memory_space<vmem>>, vector<1x32x64xf32>
    %5 = vector.shape_cast %4 : vector<1x32x64xf32> to vector<32x64xf32>
    %cst_6 = arith.constant dense<0.000000e+00> : vector<32x576xf32>
    %6 = tpu.matmul %5, %0, %cst_6 {dimension_numbers = #tpu.dot_dimension_numbers<[1], [0], [0], [1], [0, 0, 1, 1], [], []>} : vector<32x64xf32>, vector<64x576xf32>, vector<32x576xf32> -> vector<32x576xf32>
    %c2 = arith.constant 2 : index
    %c0_7 = arith.constant 0 : index
    %c0_8 = arith.constant 0 : index
    %7 = vector.load %arg2[%c2, %c0_7, %c0_8] : memref<4x32x64xf32, #tpu.memory_space<vmem>>, vector<1x32x64xf32>
    %8 = vector.shape_cast %7 : vector<1x32x64xf32> to vector<32x64xf32>
    %cst_9 = arith.constant dense<0.000000e+00> : vector<32x576xf32>
    %9 = tpu.matmul %8, %0, %cst_9 {dimension_numbers = #tpu.dot_dimension_numbers<[1], [0], [0], [1], [0, 0, 1, 1], [], []>} : vector<32x64xf32>, vector<64x576xf32>, vector<32x576xf32> -> vector<32x576xf32>
    %c3 = arith.constant 3 : index
    %c0_10 = arith.constant 0 : index
    %c0_11 = arith.constant 0 : index
    %10 = vector.load %arg2[%c3, %c0_10, %c0_11] : memref<4x32x64xf32, #tpu.memory_space<vmem>>, vector<1x32x64xf32>
    %11 = vector.shape_cast %10 : vector<1x32x64xf32> to vector<32x64xf32>
    %cst_12 = arith.constant dense<0.000000e+00> : vector<32x576xf32>
    %12 = tpu.matmul %11, %0, %cst_12 {dimension_numbers = #tpu.dot_dimension_numbers<[1], [0], [0], [1], [0, 0, 1, 1], [], []>} : vector<32x64xf32>, vector<64x576xf32>, vector<32x576xf32> -> vector<32x576xf32>
    %13 = arith.truncf %3 : vector<32x576xf32> to vector<32x576xbf16>
    %c0_13 = arith.constant 0 : index
    %c0_14 = arith.constant 0 : index
    %c0_15 = arith.constant 0 : index
    %14 = vector.load %arg3[%c0_13, %c0_14, %c0_15] : memref<4x576x256xbf16, #tpu.memory_space<vmem>>, vector<1x576x256xbf16>
    %15 = vector.shape_cast %14 : vector<1x576x256xbf16> to vector<576x256xbf16>
    %cst_16 = arith.constant dense<0.000000e+00> : vector<32x256xf32>
    %16 = tpu.matmul %13, %15, %cst_16 {dimension_numbers = #tpu.dot_dimension_numbers<[1], [0], [0], [1], [0, 0, 1, 1], [], []>} : vector<32x576xbf16>, vector<576x256xbf16>, vector<32x256xf32> -> vector<32x256xf32>
    %17 = arith.truncf %6 : vector<32x576xf32> to vector<32x576xbf16>
    %c1_17 = arith.constant 1 : index
    %c0_18 = arith.constant 0 : index
    %c0_19 = arith.constant 0 : index
    %18 = vector.load %arg3[%c1_17, %c0_18, %c0_19] : memref<4x576x256xbf16, #tpu.memory_space<vmem>>, vector<1x576x256xbf16>
    %19 = vector.shape_cast %18 : vector<1x576x256xbf16> to vector<576x256xbf16>
    %cst_20 = arith.constant dense<0.000000e+00> : vector<32x256xf32>
    %20 = tpu.matmul %17, %19, %cst_20 {dimension_numbers = #tpu.dot_dimension_numbers<[1], [0], [0], [1], [0, 0, 1, 1], [], []>} : vector<32x576xbf16>, vector<576x256xbf16>, vector<32x256xf32> -> vector<32x256xf32>
    %21 = arith.addf %16, %20 : vector<32x256xf32>
    %22 = arith.truncf %9 : vector<32x576xf32> to vector<32x576xbf16>
    %c2_21 = arith.constant 2 : index
    %c0_22 = arith.constant 0 : index
    %c0_23 = arith.constant 0 : index
    %23 = vector.load %arg3[%c2_21, %c0_22, %c0_23] : memref<4x576x256xbf16, #tpu.memory_space<vmem>>, vector<1x576x256xbf16>
    %24 = vector.shape_cast %23 : vector<1x576x256xbf16> to vector<576x256xbf16>
    %cst_24 = arith.constant dense<0.000000e+00> : vector<32x256xf32>
    %25 = tpu.matmul %22, %24, %cst_24 {dimension_numbers = #tpu.dot_dimension_numbers<[1], [0], [0], [1], [0, 0, 1, 1], [], []>} : vector<32x576xbf16>, vector<576x256xbf16>, vector<32x256xf32> -> vector<32x256xf32>
    %26 = arith.addf %21, %25 : vector<32x256xf32>
    %27 = arith.truncf %12 : vector<32x576xf32> to vector<32x576xbf16>
    %c3_25 = arith.constant 3 : index
    %c0_26 = arith.constant 0 : index
    %c0_27 = arith.constant 0 : index
    %28 = vector.load %arg3[%c3_25, %c0_26, %c0_27] : memref<4x576x256xbf16, #tpu.memory_space<vmem>>, vector<1x576x256xbf16>
    %29 = vector.shape_cast %28 : vector<1x576x256xbf16> to vector<576x256xbf16>
    %cst_28 = arith.constant dense<0.000000e+00> : vector<32x256xf32>
    %30 = tpu.matmul %27, %29, %cst_28 {dimension_numbers = #tpu.dot_dimension_numbers<[1], [0], [0], [1], [0, 0, 1, 1], [], []>} : vector<32x576xbf16>, vector<576x256xbf16>, vector<32x256xf32> -> vector<32x256xf32>
    %31 = arith.addf %26, %30 : vector<32x256xf32>
    %c0_29 = arith.constant 0 : index
    %c0_30 = arith.constant 0 : index
    %32 = vector.load %arg4[%c0_29, %c0_30] : memref<1x256xf32, #tpu.memory_space<vmem>>, vector<1x256xf32>
    %33 = vector.broadcast %32 : vector<1x256xf32> to vector<32x256xf32>
    %34 = arith.addf %31, %33 : vector<32x256xf32>
    %cst_31 = arith.constant 0.000000e+00 : f32
    %35 = vector.broadcast %cst_31 : f32 to vector<32x256xf32>
    %36 = arith.cmpf oge, %34, %35 : vector<32x256xf32>
    %cst_32 = arith.constant 2.000000e-01 : f32
    %37 = vector.broadcast %cst_32 : f32 to vector<32x256xf32>
    %38 = arith.mulf %37, %34 : vector<32x256xf32>
    %39 = arith.select %36, %34, %38 : vector<32x256xi1>, vector<32x256xf32>
    %c0_33 = arith.constant 0 : index
    %c0_34 = arith.constant 0 : index
    %c0_35 = arith.constant 0 : index
    %40 = vector.load %arg5[%c0_33, %c0_34, %c0_35] : memref<4x16x32xf32, #tpu.memory_space<vmem>>, vector<1x16x32xf32>
    %41 = vector.shape_cast %40 : vector<1x16x32xf32> to vector<16x32xf32>
    %cst_36 = arith.constant dense<0.000000e+00> : vector<16x256xf32>
    %42 = tpu.matmul %41, %39, %cst_36 {dimension_numbers = #tpu.dot_dimension_numbers<[1], [0], [0], [1], [0, 0, 1, 1], [], []>} : vector<16x32xf32>, vector<32x256xf32>, vector<16x256xf32> -> vector<16x256xf32>
    %c1_37 = arith.constant 1 : index
    %c0_38 = arith.constant 0 : index
    %c0_39 = arith.constant 0 : index
    %43 = vector.load %arg5[%c1_37, %c0_38, %c0_39] : memref<4x16x32xf32, #tpu.memory_space<vmem>>, vector<1x16x32xf32>
    %44 = vector.shape_cast %43 : vector<1x16x32xf32> to vector<16x32xf32>
    %cst_40 = arith.constant dense<0.000000e+00> : vector<16x256xf32>
    %45 = tpu.matmul %44, %39, %cst_40 {dimension_numbers = #tpu.dot_dimension_numbers<[1], [0], [0], [1], [0, 0, 1, 1], [], []>} : vector<16x32xf32>, vector<32x256xf32>, vector<16x256xf32> -> vector<16x256xf32>
    %c2_41 = arith.constant 2 : index
    %c0_42 = arith.constant 0 : index
    %c0_43 = arith.constant 0 : index
    %46 = vector.load %arg5[%c2_41, %c0_42, %c0_43] : memref<4x16x32xf32, #tpu.memory_space<vmem>>, vector<1x16x32xf32>
    %47 = vector.shape_cast %46 : vector<1x16x32xf32> to vector<16x32xf32>
    %cst_44 = arith.constant dense<0.000000e+00> : vector<16x256xf32>
    %48 = tpu.matmul %47, %39, %cst_44 {dimension_numbers = #tpu.dot_dimension_numbers<[1], [0], [0], [1], [0, 0, 1, 1], [], []>} : vector<16x32xf32>, vector<32x256xf32>, vector<16x256xf32> -> vector<16x256xf32>
    %c3_45 = arith.constant 3 : index
    %c0_46 = arith.constant 0 : index
    %c0_47 = arith.constant 0 : index
    %49 = vector.load %arg5[%c3_45, %c0_46, %c0_47] : memref<4x16x32xf32, #tpu.memory_space<vmem>>, vector<1x16x32xf32>
    %50 = vector.shape_cast %49 : vector<1x16x32xf32> to vector<16x32xf32>
    %cst_48 = arith.constant dense<0.000000e+00> : vector<16x256xf32>
    %51 = tpu.matmul %50, %39, %cst_48 {dimension_numbers = #tpu.dot_dimension_numbers<[1], [0], [0], [1], [0, 0, 1, 1], [], []>} : vector<16x32xf32>, vector<32x256xf32>, vector<16x256xf32> -> vector<16x256xf32>
    %52 = arith.truncf %42 : vector<16x256xf32> to vector<16x256xbf16>
    %c0_49 = arith.constant 0 : index
    %c0_50 = arith.constant 0 : index
    %c0_51 = arith.constant 0 : index
    %53 = vector.load %arg6[%c0_49, %c0_50, %c0_51] : memref<4x256x256xbf16, #tpu.memory_space<vmem>>, vector<1x256x256xbf16>
    %54 = vector.shape_cast %53 : vector<1x256x256xbf16> to vector<256x256xbf16>
    %cst_52 = arith.constant dense<0.000000e+00> : vector<16x256xf32>
    %55 = tpu.matmul %52, %54, %cst_52 {dimension_numbers = #tpu.dot_dimension_numbers<[1], [0], [0], [1], [0, 0, 1, 1], [], []>} : vector<16x256xbf16>, vector<256x256xbf16>, vector<16x256xf32> -> vector<16x256xf32>
    %56 = arith.truncf %45 : vector<16x256xf32> to vector<16x256xbf16>
    %c1_53 = arith.constant 1 : index
    %c0_54 = arith.constant 0 : index
    %c0_55 = arith.constant 0 : index
    %57 = vector.load %arg6[%c1_53, %c0_54, %c0_55] : memref<4x256x256xbf16, #tpu.memory_space<vmem>>, vector<1x256x256xbf16>
    %58 = vector.shape_cast %57 : vector<1x256x256xbf16> to vector<256x256xbf16>
    %cst_56 = arith.constant dense<0.000000e+00> : vector<16x256xf32>
    %59 = tpu.matmul %56, %58, %cst_56 {dimension_numbers = #tpu.dot_dimension_numbers<[1], [0], [0], [1], [0, 0, 1, 1], [], []>} : vector<16x256xbf16>, vector<256x256xbf16>, vector<16x256xf32> -> vector<16x256xf32>
    %60 = arith.addf %55, %59 : vector<16x256xf32>
    %61 = arith.truncf %48 : vector<16x256xf32> to vector<16x256xbf16>
    %c2_57 = arith.constant 2 : index
    %c0_58 = arith.constant 0 : index
    %c0_59 = arith.constant 0 : index
    %62 = vector.load %arg6[%c2_57, %c0_58, %c0_59] : memref<4x256x256xbf16, #tpu.memory_space<vmem>>, vector<1x256x256xbf16>
    %63 = vector.shape_cast %62 : vector<1x256x256xbf16> to vector<256x256xbf16>
    %cst_60 = arith.constant dense<0.000000e+00> : vector<16x256xf32>
    %64 = tpu.matmul %61, %63, %cst_60 {dimension_numbers = #tpu.dot_dimension_numbers<[1], [0], [0], [1], [0, 0, 1, 1], [], []>} : vector<16x256xbf16>, vector<256x256xbf16>, vector<16x256xf32> -> vector<16x256xf32>
    %65 = arith.addf %60, %64 : vector<16x256xf32>
    %66 = arith.truncf %51 : vector<16x256xf32> to vector<16x256xbf16>
    %c3_61 = arith.constant 3 : index
    %c0_62 = arith.constant 0 : index
    %c0_63 = arith.constant 0 : index
    %67 = vector.load %arg6[%c3_61, %c0_62, %c0_63] : memref<4x256x256xbf16, #tpu.memory_space<vmem>>, vector<1x256x256xbf16>
    %68 = vector.shape_cast %67 : vector<1x256x256xbf16> to vector<256x256xbf16>
    %cst_64 = arith.constant dense<0.000000e+00> : vector<16x256xf32>
    %69 = tpu.matmul %66, %68, %cst_64 {dimension_numbers = #tpu.dot_dimension_numbers<[1], [0], [0], [1], [0, 0, 1, 1], [], []>} : vector<16x256xbf16>, vector<256x256xbf16>, vector<16x256xf32> -> vector<16x256xf32>
    %70 = arith.addf %65, %69 : vector<16x256xf32>
    %cst_65 = arith.constant dense<0.000000e+00> : vector<256xf32>
    %71 = vector.multi_reduction <add>, %70, %cst_65 [0] : vector<16x256xf32> to vector<256xf32>
    %72 = vector.shape_cast %71 : vector<256xf32> to vector<1x256xf32>
    %73 = arith.mulf %70, %70 : vector<16x256xf32>
    %cst_66 = arith.constant dense<0.000000e+00> : vector<256xf32>
    %74 = vector.multi_reduction <add>, %73, %cst_66 [0] : vector<16x256xf32> to vector<256xf32>
    %75 = vector.shape_cast %74 : vector<256xf32> to vector<1x256xf32>
    %c0_67 = arith.constant 0 : index
    %c0_68 = arith.constant 0 : index
    %76 = vector.load %arg7[%c0_67, %c0_68] : memref<256x256xf32, #tpu.memory_space<vmem>>, vector<256x256xf32>
    %cst_69 = arith.constant dense<0.000000e+00> : vector<1x256xf32>
    %77 = tpu.matmul %72, %76, %cst_69 {dimension_numbers = #tpu.dot_dimension_numbers<[1], [0], [0], [1], [0, 0, 1, 1], [], []>} : vector<1x256xf32>, vector<256x256xf32>, vector<1x256xf32> -> vector<1x256xf32>
    %c0_70 = arith.constant 0 : index
    %c0_71 = arith.constant 0 : index
    %78 = vector.load %arg7[%c0_70, %c0_71] : memref<256x256xf32, #tpu.memory_space<vmem>>, vector<256x256xf32>
    %cst_72 = arith.constant dense<0.000000e+00> : vector<1x256xf32>
    %79 = tpu.matmul %75, %78, %cst_72 {dimension_numbers = #tpu.dot_dimension_numbers<[1], [0], [0], [1], [0, 0, 1, 1], [], []>} : vector<1x256xf32>, vector<256x256xf32>, vector<1x256xf32> -> vector<1x256xf32>
    %80 = arith.mulf %77, %77 : vector<1x256xf32>
    %81 = arith.subf %79, %80 : vector<1x256xf32>
    %82 = vector.broadcast %77 : vector<1x256xf32> to vector<16x256xf32>
    %83 = arith.subf %70, %82 : vector<16x256xf32>
    %cst_73 = arith.constant 9.99999974E-6 : f32
    %84 = vector.broadcast %cst_73 : f32 to vector<1x256xf32>
    %85 = arith.addf %81, %84 : vector<1x256xf32>
    %86 = math.rsqrt %85 : vector<1x256xf32>
    %87 = vector.broadcast %86 : vector<1x256xf32> to vector<16x256xf32>
    %88 = arith.mulf %83, %87 : vector<16x256xf32>
    %c0_74 = arith.constant 0 : index
    %c0_75 = arith.constant 0 : index
    %89 = vector.load %arg8[%c0_74, %c0_75] : memref<1x256xf32, #tpu.memory_space<vmem>>, vector<1x256xf32>
    %90 = vector.broadcast %89 : vector<1x256xf32> to vector<16x256xf32>
    %91 = arith.mulf %88, %90 : vector<16x256xf32>
    %c0_76 = arith.constant 0 : index
    %c0_77 = arith.constant 0 : index
    %92 = vector.load %arg9[%c0_76, %c0_77] : memref<1x256xf32, #tpu.memory_space<vmem>>, vector<1x256xf32>
    %93 = vector.broadcast %92 : vector<1x256xf32> to vector<16x256xf32>
    %94 = arith.addf %91, %93 : vector<16x256xf32>
    %cst_78 = arith.constant 0.000000e+00 : f32
    %95 = vector.broadcast %cst_78 : f32 to vector<16x256xf32>
    %96 = arith.cmpf oge, %94, %95 : vector<16x256xf32>
    %cst_79 = arith.constant 2.000000e-01 : f32
    %97 = vector.broadcast %cst_79 : f32 to vector<16x256xf32>
    %98 = arith.mulf %97, %94 : vector<16x256xf32>
    %99 = arith.select %96, %94, %98 : vector<16x256xi1>, vector<16x256xf32>
    %c0_80 = arith.constant 0 : index
    %c0_81 = arith.constant 0 : index
    %c0_82 = arith.constant 0 : index
    %100 = vector.load %arg10[%c0_80, %c0_81, %c0_82] : memref<4x8x16xf32, #tpu.memory_space<vmem>>, vector<1x8x16xf32>
    %101 = vector.shape_cast %100 : vector<1x8x16xf32> to vector<8x16xf32>
    %cst_83 = arith.constant dense<0.000000e+00> : vector<8x256xf32>
    %102 = tpu.matmul %101, %99, %cst_83 {dimension_numbers = #tpu.dot_dimension_numbers<[1], [0], [0], [1], [0, 0, 1, 1], [], []>} : vector<8x16xf32>, vector<16x256xf32>, vector<8x256xf32> -> vector<8x256xf32>
    %c1_84 = arith.constant 1 : index
    %c0_85 = arith.constant 0 : index
    %c0_86 = arith.constant 0 : index
    %103 = vector.load %arg10[%c1_84, %c0_85, %c0_86] : memref<4x8x16xf32, #tpu.memory_space<vmem>>, vector<1x8x16xf32>
    %104 = vector.shape_cast %103 : vector<1x8x16xf32> to vector<8x16xf32>
    %cst_87 = arith.constant dense<0.000000e+00> : vector<8x256xf32>
    %105 = tpu.matmul %104, %99, %cst_87 {dimension_numbers = #tpu.dot_dimension_numbers<[1], [0], [0], [1], [0, 0, 1, 1], [], []>} : vector<8x16xf32>, vector<16x256xf32>, vector<8x256xf32> -> vector<8x256xf32>
    %c2_88 = arith.constant 2 : index
    %c0_89 = arith.constant 0 : index
    %c0_90 = arith.constant 0 : index
    %106 = vector.load %arg10[%c2_88, %c0_89, %c0_90] : memref<4x8x16xf32, #tpu.memory_space<vmem>>, vector<1x8x16xf32>
    %107 = vector.shape_cast %106 : vector<1x8x16xf32> to vector<8x16xf32>
    %cst_91 = arith.constant dense<0.000000e+00> : vector<8x256xf32>
    %108 = tpu.matmul %107, %99, %cst_91 {dimension_numbers = #tpu.dot_dimension_numbers<[1], [0], [0], [1], [0, 0, 1, 1], [], []>} : vector<8x16xf32>, vector<16x256xf32>, vector<8x256xf32> -> vector<8x256xf32>
    %c3_92 = arith.constant 3 : index
    %c0_93 = arith.constant 0 : index
    %c0_94 = arith.constant 0 : index
    %109 = vector.load %arg10[%c3_92, %c0_93, %c0_94] : memref<4x8x16xf32, #tpu.memory_space<vmem>>, vector<1x8x16xf32>
    %110 = vector.shape_cast %109 : vector<1x8x16xf32> to vector<8x16xf32>
    %cst_95 = arith.constant dense<0.000000e+00> : vector<8x256xf32>
    %111 = tpu.matmul %110, %99, %cst_95 {dimension_numbers = #tpu.dot_dimension_numbers<[1], [0], [0], [1], [0, 0, 1, 1], [], []>} : vector<8x16xf32>, vector<16x256xf32>, vector<8x256xf32> -> vector<8x256xf32>
    %112 = arith.truncf %102 : vector<8x256xf32> to vector<8x256xbf16>
    %c0_96 = arith.constant 0 : index
    %c0_97 = arith.constant 0 : index
    %c0_98 = arith.constant 0 : index
    %113 = vector.load %arg11[%c0_96, %c0_97, %c0_98] : memref<4x256x256xbf16, #tpu.memory_space<vmem>>, vector<1x256x256xbf16>
    %114 = vector.shape_cast %113 : vector<1x256x256xbf16> to vector<256x256xbf16>
    %cst_99 = arith.constant dense<0.000000e+00> : vector<8x256xf32>
    %115 = tpu.matmul %112, %114, %cst_99 {dimension_numbers = #tpu.dot_dimension_numbers<[1], [0], [0], [1], [0, 0, 1, 1], [], []>} : vector<8x256xbf16>, vector<256x256xbf16>, vector<8x256xf32> -> vector<8x256xf32>
    %116 = arith.truncf %105 : vector<8x256xf32> to vector<8x256xbf16>
    %c1_100 = arith.constant 1 : index
    %c0_101 = arith.constant 0 : index
    %c0_102 = arith.constant 0 : index
    %117 = vector.load %arg11[%c1_100, %c0_101, %c0_102] : memref<4x256x256xbf16, #tpu.memory_space<vmem>>, vector<1x256x256xbf16>
    %118 = vector.shape_cast %117 : vector<1x256x256xbf16> to vector<256x256xbf16>
    %cst_103 = arith.constant dense<0.000000e+00> : vector<8x256xf32>
    %119 = tpu.matmul %116, %118, %cst_103 {dimension_numbers = #tpu.dot_dimension_numbers<[1], [0], [0], [1], [0, 0, 1, 1], [], []>} : vector<8x256xbf16>, vector<256x256xbf16>, vector<8x256xf32> -> vector<8x256xf32>
    %120 = arith.addf %115, %119 : vector<8x256xf32>
    %121 = arith.truncf %108 : vector<8x256xf32> to vector<8x256xbf16>
    %c2_104 = arith.constant 2 : index
    %c0_105 = arith.constant 0 : index
    %c0_106 = arith.constant 0 : index
    %122 = vector.load %arg11[%c2_104, %c0_105, %c0_106] : memref<4x256x256xbf16, #tpu.memory_space<vmem>>, vector<1x256x256xbf16>
    %123 = vector.shape_cast %122 : vector<1x256x256xbf16> to vector<256x256xbf16>
    %cst_107 = arith.constant dense<0.000000e+00> : vector<8x256xf32>
    %124 = tpu.matmul %121, %123, %cst_107 {dimension_numbers = #tpu.dot_dimension_numbers<[1], [0], [0], [1], [0, 0, 1, 1], [], []>} : vector<8x256xbf16>, vector<256x256xbf16>, vector<8x256xf32> -> vector<8x256xf32>
    %125 = arith.addf %120, %124 : vector<8x256xf32>
    %126 = arith.truncf %111 : vector<8x256xf32> to vector<8x256xbf16>
    %c3_108 = arith.constant 3 : index
    %c0_109 = arith.constant 0 : index
    %c0_110 = arith.constant 0 : index
    %127 = vector.load %arg11[%c3_108, %c0_109, %c0_110] : memref<4x256x256xbf16, #tpu.memory_space<vmem>>, vector<1x256x256xbf16>
    %128 = vector.shape_cast %127 : vector<1x256x256xbf16> to vector<256x256xbf16>
    %cst_111 = arith.constant dense<0.000000e+00> : vector<8x256xf32>
    %129 = tpu.matmul %126, %128, %cst_111 {dimension_numbers = #tpu.dot_dimension_numbers<[1], [0], [0], [1], [0, 0, 1, 1], [], []>} : vector<8x256xbf16>, vector<256x256xbf16>, vector<8x256xf32> -> vector<8x256xf32>
    %130 = arith.addf %125, %129 : vector<8x256xf32>
    %cst_112 = arith.constant dense<0.000000e+00> : vector<256xf32>
    %131 = vector.multi_reduction <add>, %130, %cst_112 [0] : vector<8x256xf32> to vector<256xf32>
    %132 = vector.shape_cast %131 : vector<256xf32> to vector<1x256xf32>
    %133 = arith.mulf %130, %130 : vector<8x256xf32>
    %cst_113 = arith.constant dense<0.000000e+00> : vector<256xf32>
    %134 = vector.multi_reduction <add>, %133, %cst_113 [0] : vector<8x256xf32> to vector<256xf32>
    %135 = vector.shape_cast %134 : vector<256xf32> to vector<1x256xf32>
    %c0_114 = arith.constant 0 : index
    %c0_115 = arith.constant 0 : index
    %136 = vector.load %arg12[%c0_114, %c0_115] : memref<256x256xf32, #tpu.memory_space<vmem>>, vector<256x256xf32>
    %cst_116 = arith.constant dense<0.000000e+00> : vector<1x256xf32>
    %137 = tpu.matmul %132, %136, %cst_116 {dimension_numbers = #tpu.dot_dimension_numbers<[1], [0], [0], [1], [0, 0, 1, 1], [], []>} : vector<1x256xf32>, vector<256x256xf32>, vector<1x256xf32> -> vector<1x256xf32>
    %c0_117 = arith.constant 0 : index
    %c0_118 = arith.constant 0 : index
    %138 = vector.load %arg12[%c0_117, %c0_118] : memref<256x256xf32, #tpu.memory_space<vmem>>, vector<256x256xf32>
    %cst_119 = arith.constant dense<0.000000e+00> : vector<1x256xf32>
    %139 = tpu.matmul %135, %138, %cst_119 {dimension_numbers = #tpu.dot_dimension_numbers<[1], [0], [0], [1], [0, 0, 1, 1], [], []>} : vector<1x256xf32>, vector<256x256xf32>, vector<1x256xf32> -> vector<1x256xf32>
    %140 = arith.mulf %137, %137 : vector<1x256xf32>
    %141 = arith.subf %139, %140 : vector<1x256xf32>
    %142 = vector.broadcast %137 : vector<1x256xf32> to vector<8x256xf32>
    %143 = arith.subf %130, %142 : vector<8x256xf32>
    %cst_120 = arith.constant 9.99999974E-6 : f32
    %144 = vector.broadcast %cst_120 : f32 to vector<1x256xf32>
    %145 = arith.addf %141, %144 : vector<1x256xf32>
    %146 = math.rsqrt %145 : vector<1x256xf32>
    %147 = vector.broadcast %146 : vector<1x256xf32> to vector<8x256xf32>
    %148 = arith.mulf %143, %147 : vector<8x256xf32>
    %c0_121 = arith.constant 0 : index
    %c0_122 = arith.constant 0 : index
    %149 = vector.load %arg13[%c0_121, %c0_122] : memref<1x256xf32, #tpu.memory_space<vmem>>, vector<1x256xf32>
    %150 = vector.broadcast %149 : vector<1x256xf32> to vector<8x256xf32>
    %151 = arith.mulf %148, %150 : vector<8x256xf32>
    %c0_123 = arith.constant 0 : index
    %c0_124 = arith.constant 0 : index
    %152 = vector.load %arg14[%c0_123, %c0_124] : memref<1x256xf32, #tpu.memory_space<vmem>>, vector<1x256xf32>
    %153 = vector.broadcast %152 : vector<1x256xf32> to vector<8x256xf32>
    %154 = arith.addf %151, %153 : vector<8x256xf32>
    %cst_125 = arith.constant 0.000000e+00 : f32
    %155 = vector.broadcast %cst_125 : f32 to vector<8x256xf32>
    %156 = arith.cmpf oge, %154, %155 : vector<8x256xf32>
    %cst_126 = arith.constant 2.000000e-01 : f32
    %157 = vector.broadcast %cst_126 : f32 to vector<8x256xf32>
    %158 = arith.mulf %157, %154 : vector<8x256xf32>
    %159 = arith.select %156, %154, %158 : vector<8x256xi1>, vector<8x256xf32>
    %c0_127 = arith.constant 0 : index
    %c0_128 = arith.constant 0 : index
    %c0_129 = arith.constant 0 : index
    %160 = vector.load %arg15[%c0_127, %c0_128, %c0_129] : memref<4x6x8xf32, #tpu.memory_space<vmem>>, vector<1x6x8xf32>
    %161 = vector.shape_cast %160 : vector<1x6x8xf32> to vector<6x8xf32>
    %cst_130 = arith.constant dense<0.000000e+00> : vector<6x256xf32>
    %162 = tpu.matmul %161, %159, %cst_130 {dimension_numbers = #tpu.dot_dimension_numbers<[1], [0], [0], [1], [0, 0, 1, 1], [], []>} : vector<6x8xf32>, vector<8x256xf32>, vector<6x256xf32> -> vector<6x256xf32>
    %c1_131 = arith.constant 1 : index
    %c0_132 = arith.constant 0 : index
    %c0_133 = arith.constant 0 : index
    %163 = vector.load %arg15[%c1_131, %c0_132, %c0_133] : memref<4x6x8xf32, #tpu.memory_space<vmem>>, vector<1x6x8xf32>
    %164 = vector.shape_cast %163 : vector<1x6x8xf32> to vector<6x8xf32>
    %cst_134 = arith.constant dense<0.000000e+00> : vector<6x256xf32>
    %165 = tpu.matmul %164, %159, %cst_134 {dimension_numbers = #tpu.dot_dimension_numbers<[1], [0], [0], [1], [0, 0, 1, 1], [], []>} : vector<6x8xf32>, vector<8x256xf32>, vector<6x256xf32> -> vector<6x256xf32>
    %c2_135 = arith.constant 2 : index
    %c0_136 = arith.constant 0 : index
    %c0_137 = arith.constant 0 : index
    %166 = vector.load %arg15[%c2_135, %c0_136, %c0_137] : memref<4x6x8xf32, #tpu.memory_space<vmem>>, vector<1x6x8xf32>
    %167 = vector.shape_cast %166 : vector<1x6x8xf32> to vector<6x8xf32>
    %cst_138 = arith.constant dense<0.000000e+00> : vector<6x256xf32>
    %168 = tpu.matmul %167, %159, %cst_138 {dimension_numbers = #tpu.dot_dimension_numbers<[1], [0], [0], [1], [0, 0, 1, 1], [], []>} : vector<6x8xf32>, vector<8x256xf32>, vector<6x256xf32> -> vector<6x256xf32>
    %c3_139 = arith.constant 3 : index
    %c0_140 = arith.constant 0 : index
    %c0_141 = arith.constant 0 : index
    %169 = vector.load %arg15[%c3_139, %c0_140, %c0_141] : memref<4x6x8xf32, #tpu.memory_space<vmem>>, vector<1x6x8xf32>
    %170 = vector.shape_cast %169 : vector<1x6x8xf32> to vector<6x8xf32>
    %cst_142 = arith.constant dense<0.000000e+00> : vector<6x256xf32>
    %171 = tpu.matmul %170, %159, %cst_142 {dimension_numbers = #tpu.dot_dimension_numbers<[1], [0], [0], [1], [0, 0, 1, 1], [], []>} : vector<6x8xf32>, vector<8x256xf32>, vector<6x256xf32> -> vector<6x256xf32>
    %172 = arith.truncf %162 : vector<6x256xf32> to vector<6x256xbf16>
    %c0_143 = arith.constant 0 : index
    %c0_144 = arith.constant 0 : index
    %c0_145 = arith.constant 0 : index
    %173 = vector.load %arg16[%c0_143, %c0_144, %c0_145] : memref<4x256x384xbf16, #tpu.memory_space<vmem>>, vector<1x256x384xbf16>
    %174 = vector.shape_cast %173 : vector<1x256x384xbf16> to vector<256x384xbf16>
    %cst_146 = arith.constant dense<0.000000e+00> : vector<6x384xf32>
    %175 = tpu.matmul %172, %174, %cst_146 {dimension_numbers = #tpu.dot_dimension_numbers<[1], [0], [0], [1], [0, 0, 1, 1], [], []>} : vector<6x256xbf16>, vector<256x384xbf16>, vector<6x384xf32> -> vector<6x384xf32>
    %176 = arith.truncf %165 : vector<6x256xf32> to vector<6x256xbf16>
    %c1_147 = arith.constant 1 : index
    %c0_148 = arith.constant 0 : index
    %c0_149 = arith.constant 0 : index
    %177 = vector.load %arg16[%c1_147, %c0_148, %c0_149] : memref<4x256x384xbf16, #tpu.memory_space<vmem>>, vector<1x256x384xbf16>
    %178 = vector.shape_cast %177 : vector<1x256x384xbf16> to vector<256x384xbf16>
    %cst_150 = arith.constant dense<0.000000e+00> : vector<6x384xf32>
    %179 = tpu.matmul %176, %178, %cst_150 {dimension_numbers = #tpu.dot_dimension_numbers<[1], [0], [0], [1], [0, 0, 1, 1], [], []>} : vector<6x256xbf16>, vector<256x384xbf16>, vector<6x384xf32> -> vector<6x384xf32>
    %180 = arith.addf %175, %179 : vector<6x384xf32>
    %181 = arith.truncf %168 : vector<6x256xf32> to vector<6x256xbf16>
    %c2_151 = arith.constant 2 : index
    %c0_152 = arith.constant 0 : index
    %c0_153 = arith.constant 0 : index
    %182 = vector.load %arg16[%c2_151, %c0_152, %c0_153] : memref<4x256x384xbf16, #tpu.memory_space<vmem>>, vector<1x256x384xbf16>
    %183 = vector.shape_cast %182 : vector<1x256x384xbf16> to vector<256x384xbf16>
    %cst_154 = arith.constant dense<0.000000e+00> : vector<6x384xf32>
    %184 = tpu.matmul %181, %183, %cst_154 {dimension_numbers = #tpu.dot_dimension_numbers<[1], [0], [0], [1], [0, 0, 1, 1], [], []>} : vector<6x256xbf16>, vector<256x384xbf16>, vector<6x384xf32> -> vector<6x384xf32>
    %185 = arith.addf %180, %184 : vector<6x384xf32>
    %186 = arith.truncf %171 : vector<6x256xf32> to vector<6x256xbf16>
    %c3_155 = arith.constant 3 : index
    %c0_156 = arith.constant 0 : index
    %c0_157 = arith.constant 0 : index
    %187 = vector.load %arg16[%c3_155, %c0_156, %c0_157] : memref<4x256x384xbf16, #tpu.memory_space<vmem>>, vector<1x256x384xbf16>
    %188 = vector.shape_cast %187 : vector<1x256x384xbf16> to vector<256x384xbf16>
    %cst_158 = arith.constant dense<0.000000e+00> : vector<6x384xf32>
    %189 = tpu.matmul %186, %188, %cst_158 {dimension_numbers = #tpu.dot_dimension_numbers<[1], [0], [0], [1], [0, 0, 1, 1], [], []>} : vector<6x256xbf16>, vector<256x384xbf16>, vector<6x384xf32> -> vector<6x384xf32>
    %190 = arith.addf %185, %189 : vector<6x384xf32>
    %cst_159 = arith.constant dense<0.000000e+00> : vector<384xf32>
    %191 = vector.multi_reduction <add>, %190, %cst_159 [0] : vector<6x384xf32> to vector<384xf32>
    %192 = vector.shape_cast %191 : vector<384xf32> to vector<1x384xf32>
    %193 = arith.mulf %190, %190 : vector<6x384xf32>
    %cst_160 = arith.constant dense<0.000000e+00> : vector<384xf32>
    %194 = vector.multi_reduction <add>, %193, %cst_160 [0] : vector<6x384xf32> to vector<384xf32>
    %195 = vector.shape_cast %194 : vector<384xf32> to vector<1x384xf32>
    %c0_161 = arith.constant 0 : index
    %c0_162 = arith.constant 0 : index
    %196 = vector.load %arg17[%c0_161, %c0_162] : memref<384x384xf32, #tpu.memory_space<vmem>>, vector<384x384xf32>
    %cst_163 = arith.constant dense<0.000000e+00> : vector<1x384xf32>
    %197 = tpu.matmul %192, %196, %cst_163 {dimension_numbers = #tpu.dot_dimension_numbers<[1], [0], [0], [1], [0, 0, 1, 1], [], []>} : vector<1x384xf32>, vector<384x384xf32>, vector<1x384xf32> -> vector<1x384xf32>
    %c0_164 = arith.constant 0 : index
    %c0_165 = arith.constant 0 : index
    %198 = vector.load %arg17[%c0_164, %c0_165] : memref<384x384xf32, #tpu.memory_space<vmem>>, vector<384x384xf32>
    %cst_166 = arith.constant dense<0.000000e+00> : vector<1x384xf32>
    %199 = tpu.matmul %195, %198, %cst_166 {dimension_numbers = #tpu.dot_dimension_numbers<[1], [0], [0], [1], [0, 0, 1, 1], [], []>} : vector<1x384xf32>, vector<384x384xf32>, vector<1x384xf32> -> vector<1x384xf32>
    %200 = arith.mulf %197, %197 : vector<1x384xf32>
    %201 = arith.subf %199, %200 : vector<1x384xf32>
    %202 = vector.broadcast %197 : vector<1x384xf32> to vector<6x384xf32>
    %203 = arith.subf %190, %202 : vector<6x384xf32>
    %cst_167 = arith.constant 9.99999974E-6 : f32
    %204 = vector.broadcast %cst_167 : f32 to vector<1x384xf32>
    %205 = arith.addf %201, %204 : vector<1x384xf32>
    %206 = math.rsqrt %205 : vector<1x384xf32>
    %207 = vector.broadcast %206 : vector<1x384xf32> to vector<6x384xf32>
    %208 = arith.mulf %203, %207 : vector<6x384xf32>
    %c0_168 = arith.constant 0 : index
    %c0_169 = arith.constant 0 : index
    %209 = vector.load %arg18[%c0_168, %c0_169] : memref<1x384xf32, #tpu.memory_space<vmem>>, vector<1x384xf32>
    %210 = vector.broadcast %209 : vector<1x384xf32> to vector<6x384xf32>
    %211 = arith.mulf %208, %210 : vector<6x384xf32>
    %c0_170 = arith.constant 0 : index
    %c0_171 = arith.constant 0 : index
    %212 = vector.load %arg19[%c0_170, %c0_171] : memref<1x384xf32, #tpu.memory_space<vmem>>, vector<1x384xf32>
    %213 = vector.broadcast %212 : vector<1x384xf32> to vector<6x384xf32>
    %214 = arith.addf %211, %213 : vector<6x384xf32>
    %cst_172 = arith.constant 0.000000e+00 : f32
    %215 = vector.broadcast %cst_172 : f32 to vector<6x384xf32>
    %216 = arith.cmpf oge, %214, %215 : vector<6x384xf32>
    %cst_173 = arith.constant 2.000000e-01 : f32
    %217 = vector.broadcast %cst_173 : f32 to vector<6x384xf32>
    %218 = arith.mulf %217, %214 : vector<6x384xf32>
    %219 = arith.select %216, %214, %218 : vector<6x384xi1>, vector<6x384xf32>
    %c0_174 = arith.constant 0 : index
    %c0_175 = arith.constant 0 : index
    %c0_176 = arith.constant 0 : index
    %220 = vector.load %arg20[%c0_174, %c0_175, %c0_176] : memref<4x4x6xf32, #tpu.memory_space<vmem>>, vector<1x4x6xf32>
    %221 = vector.shape_cast %220 : vector<1x4x6xf32> to vector<4x6xf32>
    %cst_177 = arith.constant dense<0.000000e+00> : vector<4x384xf32>
    %222 = tpu.matmul %221, %219, %cst_177 {dimension_numbers = #tpu.dot_dimension_numbers<[1], [0], [0], [1], [0, 0, 1, 1], [], []>} : vector<4x6xf32>, vector<6x384xf32>, vector<4x384xf32> -> vector<4x384xf32>
    %c1_178 = arith.constant 1 : index
    %c0_179 = arith.constant 0 : index
    %c0_180 = arith.constant 0 : index
    %223 = vector.load %arg20[%c1_178, %c0_179, %c0_180] : memref<4x4x6xf32, #tpu.memory_space<vmem>>, vector<1x4x6xf32>
    %224 = vector.shape_cast %223 : vector<1x4x6xf32> to vector<4x6xf32>
    %cst_181 = arith.constant dense<0.000000e+00> : vector<4x384xf32>
    %225 = tpu.matmul %224, %219, %cst_181 {dimension_numbers = #tpu.dot_dimension_numbers<[1], [0], [0], [1], [0, 0, 1, 1], [], []>} : vector<4x6xf32>, vector<6x384xf32>, vector<4x384xf32> -> vector<4x384xf32>
    %c2_182 = arith.constant 2 : index
    %c0_183 = arith.constant 0 : index
    %c0_184 = arith.constant 0 : index
    %226 = vector.load %arg20[%c2_182, %c0_183, %c0_184] : memref<4x4x6xf32, #tpu.memory_space<vmem>>, vector<1x4x6xf32>
    %227 = vector.shape_cast %226 : vector<1x4x6xf32> to vector<4x6xf32>
    %cst_185 = arith.constant dense<0.000000e+00> : vector<4x384xf32>
    %228 = tpu.matmul %227, %219, %cst_185 {dimension_numbers = #tpu.dot_dimension_numbers<[1], [0], [0], [1], [0, 0, 1, 1], [], []>} : vector<4x6xf32>, vector<6x384xf32>, vector<4x384xf32> -> vector<4x384xf32>
    %c3_186 = arith.constant 3 : index
    %c0_187 = arith.constant 0 : index
    %c0_188 = arith.constant 0 : index
    %229 = vector.load %arg20[%c3_186, %c0_187, %c0_188] : memref<4x4x6xf32, #tpu.memory_space<vmem>>, vector<1x4x6xf32>
    %230 = vector.shape_cast %229 : vector<1x4x6xf32> to vector<4x6xf32>
    %cst_189 = arith.constant dense<0.000000e+00> : vector<4x384xf32>
    %231 = tpu.matmul %230, %219, %cst_189 {dimension_numbers = #tpu.dot_dimension_numbers<[1], [0], [0], [1], [0, 0, 1, 1], [], []>} : vector<4x6xf32>, vector<6x384xf32>, vector<4x384xf32> -> vector<4x384xf32>
    %c0_190 = arith.constant 0 : index
    %c0_191 = arith.constant 0 : index
    %232 = vector.load %arg22[%c0_190, %c0_191] : memref<1x2xf32, #tpu.memory_space<vmem>>, vector<1x2xf32>
    %c0_192 = arith.constant 0 : index
    %c0_193 = arith.constant 0 : index
    %c0_194 = arith.constant 0 : index
    %233 = vector.load %arg21[%c0_192, %c0_193, %c0_194] : memref<4x2x384xf32, #tpu.memory_space<vmem>>, vector<1x2x384xf32>
    %234 = vector.shape_cast %233 : vector<1x2x384xf32> to vector<2x384xf32>
    %c1_195 = arith.constant 1 : index
    %c0_196 = arith.constant 0 : index
    %c0_197 = arith.constant 0 : index
    %235 = vector.load %arg21[%c1_195, %c0_196, %c0_197] : memref<4x2x384xf32, #tpu.memory_space<vmem>>, vector<1x2x384xf32>
    %236 = vector.shape_cast %235 : vector<1x2x384xf32> to vector<2x384xf32>
    %c2_198 = arith.constant 2 : index
    %c0_199 = arith.constant 0 : index
    %c0_200 = arith.constant 0 : index
    %237 = vector.load %arg21[%c2_198, %c0_199, %c0_200] : memref<4x2x384xf32, #tpu.memory_space<vmem>>, vector<1x2x384xf32>
    %238 = vector.shape_cast %237 : vector<1x2x384xf32> to vector<2x384xf32>
    %c3_201 = arith.constant 3 : index
    %c0_202 = arith.constant 0 : index
    %c0_203 = arith.constant 0 : index
    %239 = vector.load %arg21[%c3_201, %c0_202, %c0_203] : memref<4x2x384xf32, #tpu.memory_space<vmem>>, vector<1x2x384xf32>
    %240 = vector.shape_cast %239 : vector<1x2x384xf32> to vector<2x384xf32>
    %241 = vector.extract_strided_slice %234 {offsets = [0, 0], sizes = [1, 384], strides = [1, 1]} : vector<2x384xf32> to vector<1x384xf32>
    %242 = vector.broadcast %241 : vector<1x384xf32> to vector<4x384xf32>
    %243 = arith.mulf %222, %242 : vector<4x384xf32>
    %cst_204 = arith.constant dense<0.000000e+00> : vector<4xf32>
    %244 = vector.multi_reduction <add>, %243, %cst_204 [1] : vector<4x384xf32> to vector<4xf32>
    %245 = vector.shape_cast %244 : vector<4xf32> to vector<4x1xf32>
    %246 = vector.extract_strided_slice %236 {offsets = [0, 0], sizes = [1, 384], strides = [1, 1]} : vector<2x384xf32> to vector<1x384xf32>
    %247 = vector.broadcast %246 : vector<1x384xf32> to vector<4x384xf32>
    %248 = arith.mulf %225, %247 : vector<4x384xf32>
    %cst_205 = arith.constant dense<0.000000e+00> : vector<4xf32>
    %249 = vector.multi_reduction <add>, %248, %cst_205 [1] : vector<4x384xf32> to vector<4xf32>
    %250 = vector.shape_cast %249 : vector<4xf32> to vector<4x1xf32>
    %251 = arith.addf %245, %250 : vector<4x1xf32>
    %252 = vector.extract_strided_slice %238 {offsets = [0, 0], sizes = [1, 384], strides = [1, 1]} : vector<2x384xf32> to vector<1x384xf32>
    %253 = vector.broadcast %252 : vector<1x384xf32> to vector<4x384xf32>
    %254 = arith.mulf %228, %253 : vector<4x384xf32>
    %cst_206 = arith.constant dense<0.000000e+00> : vector<4xf32>
    %255 = vector.multi_reduction <add>, %254, %cst_206 [1] : vector<4x384xf32> to vector<4xf32>
    %256 = vector.shape_cast %255 : vector<4xf32> to vector<4x1xf32>
    %257 = arith.addf %251, %256 : vector<4x1xf32>
    %258 = vector.extract_strided_slice %240 {offsets = [0, 0], sizes = [1, 384], strides = [1, 1]} : vector<2x384xf32> to vector<1x384xf32>
    %259 = vector.broadcast %258 : vector<1x384xf32> to vector<4x384xf32>
    %260 = arith.mulf %231, %259 : vector<4x384xf32>
    %cst_207 = arith.constant dense<0.000000e+00> : vector<4xf32>
    %261 = vector.multi_reduction <add>, %260, %cst_207 [1] : vector<4x384xf32> to vector<4xf32>
    %262 = vector.shape_cast %261 : vector<4xf32> to vector<4x1xf32>
    %263 = arith.addf %257, %262 : vector<4x1xf32>
    %264 = vector.extract_strided_slice %232 {offsets = [0, 0], sizes = [1, 1], strides = [1, 1]} : vector<1x2xf32> to vector<1x1xf32>
    %265 = vector.broadcast %264 : vector<1x1xf32> to vector<4x1xf32>
    %266 = arith.addf %263, %265 : vector<4x1xf32>
    %c0_208 = arith.constant 0 : index
    %c0_209 = arith.constant 0 : index
    %267 = vector.load %arg23[%c0_208, %c0_209] : memref<4x2xf32, #tpu.memory_space<vmem>>, vector<4x1xf32>
    tpu.vector_store %arg23[%c0_208, %c0_209], %266 {strides = array<i32>} : memref<4x2xf32, #tpu.memory_space<vmem>>, vector<4x1xf32>,
    %268 = vector.extract_strided_slice %234 {offsets = [1, 0], sizes = [1, 384], strides = [1, 1]} : vector<2x384xf32> to vector<1x384xf32>
    %269 = vector.broadcast %268 : vector<1x384xf32> to vector<4x384xf32>
    %270 = arith.mulf %222, %269 : vector<4x384xf32>
    %cst_210 = arith.constant dense<0.000000e+00> : vector<4xf32>
    %271 = vector.multi_reduction <add>, %270, %cst_210 [1] : vector<4x384xf32> to vector<4xf32>
    %272 = vector.shape_cast %271 : vector<4xf32> to vector<4x1xf32>
    %273 = vector.extract_strided_slice %236 {offsets = [1, 0], sizes = [1, 384], strides = [1, 1]} : vector<2x384xf32> to vector<1x384xf32>
    %274 = vector.broadcast %273 : vector<1x384xf32> to vector<4x384xf32>
    %275 = arith.mulf %225, %274 : vector<4x384xf32>
    %cst_211 = arith.constant dense<0.000000e+00> : vector<4xf32>
    %276 = vector.multi_reduction <add>, %275, %cst_211 [1] : vector<4x384xf32> to vector<4xf32>
    %277 = vector.shape_cast %276 : vector<4xf32> to vector<4x1xf32>
    %278 = arith.addf %272, %277 : vector<4x1xf32>
    %279 = vector.extract_strided_slice %238 {offsets = [1, 0], sizes = [1, 384], strides = [1, 1]} : vector<2x384xf32> to vector<1x384xf32>
    %280 = vector.broadcast %279 : vector<1x384xf32> to vector<4x384xf32>
    %281 = arith.mulf %228, %280 : vector<4x384xf32>
    %cst_212 = arith.constant dense<0.000000e+00> : vector<4xf32>
    %282 = vector.multi_reduction <add>, %281, %cst_212 [1] : vector<4x384xf32> to vector<4xf32>
    %283 = vector.shape_cast %282 : vector<4xf32> to vector<4x1xf32>
    %284 = arith.addf %278, %283 : vector<4x1xf32>
    %285 = vector.extract_strided_slice %240 {offsets = [1, 0], sizes = [1, 384], strides = [1, 1]} : vector<2x384xf32> to vector<1x384xf32>
    %286 = vector.broadcast %285 : vector<1x384xf32> to vector<4x384xf32>
    %287 = arith.mulf %231, %286 : vector<4x384xf32>
    %cst_213 = arith.constant dense<0.000000e+00> : vector<4xf32>
    %288 = vector.multi_reduction <add>, %287, %cst_213 [1] : vector<4x384xf32> to vector<4xf32>
    %289 = vector.shape_cast %288 : vector<4xf32> to vector<4x1xf32>
    %290 = arith.addf %284, %289 : vector<4x1xf32>
    %291 = vector.extract_strided_slice %232 {offsets = [0, 1], sizes = [1, 1], strides = [1, 1]} : vector<1x2xf32> to vector<1x1xf32>
    %292 = vector.broadcast %291 : vector<1x1xf32> to vector<4x1xf32>
    %293 = arith.addf %290, %292 : vector<4x1xf32>
    %c0_214 = arith.constant 0 : index
    %c1_215 = arith.constant 1 : index
    %294 = vector.load %arg23[%c0_214, %c1_215] : memref<4x2xf32, #tpu.memory_space<vmem>>, vector<4x1xf32>
    tpu.vector_store %arg23[%c0_214, %c1_215], %293 {strides = array<i32>} : memref<4x2xf32, #tpu.memory_space<vmem>>, vector<4x1xf32>,
    return
  }
  func.func @transform_0(%arg0: i32) -> (i32, i32) {
    %c0_i32 = arith.constant 0 : i32
    %c0_i32_0 = arith.constant 0 : i32
    %c0_i32_1 = arith.constant 0 : i32
    return %c0_i32, %c0_i32_0 : i32, i32
  }
  func.func @transform_1(%arg0: i32) -> (i32, i32, i32) {
    %c0_i32 = arith.constant 0 : i32
    %c0_i32_0 = arith.constant 0 : i32
    %c0_i32_1 = arith.constant 0 : i32
    %c0_i32_2 = arith.constant 0 : i32
    return %c0_i32, %c0_i32_0, %c0_i32_1 : i32, i32, i32
  }
  func.func @transform_2(%arg0: i32) -> (i32, i32, i32) {
    %c0_i32 = arith.constant 0 : i32
    %c0_i32_0 = arith.constant 0 : i32
    %c0_i32_1 = arith.constant 0 : i32
    %c0_i32_2 = arith.constant 0 : i32
    return %c0_i32, %c0_i32_0, %c0_i32_1 : i32, i32, i32
  }
  func.func @transform_3(%arg0: i32) -> (i32, i32) {
    %c0_i32 = arith.constant 0 : i32
    %c0_i32_0 = arith.constant 0 : i32
    %c0_i32_1 = arith.constant 0 : i32
    return %c0_i32, %c0_i32_0 : i32, i32
  }
  func.func @transform_4(%arg0: i32) -> (i32, i32, i32) {
    %c0_i32 = arith.constant 0 : i32
    %c0_i32_0 = arith.constant 0 : i32
    %c0_i32_1 = arith.constant 0 : i32
    %c0_i32_2 = arith.constant 0 : i32
    return %c0_i32, %c0_i32_0, %c0_i32_1 : i32, i32, i32
  }
  func.func @transform_5(%arg0: i32) -> (i32, i32, i32) {
    %c0_i32 = arith.constant 0 : i32
    %c0_i32_0 = arith.constant 0 : i32
    %c0_i32_1 = arith.constant 0 : i32
    %c0_i32_2 = arith.constant 0 : i32
    return %c0_i32, %c0_i32_0, %c0_i32_1 : i32, i32, i32
  }
  func.func @transform_6(%arg0: i32) -> (i32, i32) {
    %c0_i32 = arith.constant 0 : i32
    %c0_i32_0 = arith.constant 0 : i32
    %c0_i32_1 = arith.constant 0 : i32
    return %c0_i32, %c0_i32_0 : i32, i32
  }
  func.func @transform_7(%arg0: i32) -> (i32, i32) {
    %c0_i32 = arith.constant 0 : i32
    %c0_i32_0 = arith.constant 0 : i32
    %c0_i32_1 = arith.constant 0 : i32
    return %c0_i32, %c0_i32_0 : i32, i32
  }
  func.func @transform_8(%arg0: i32) -> (i32, i32) {
    %c0_i32 = arith.constant 0 : i32
    %c0_i32_0 = arith.constant 0 : i32
    %c0_i32_1 = arith.constant 0 : i32
    return %c0_i32, %c0_i32_0 : i32, i32
  }
  func.func @transform_9(%arg0: i32) -> (i32, i32, i32) {
    %c0_i32 = arith.constant 0 : i32
    %c0_i32_0 = arith.constant 0 : i32
    %c0_i32_1 = arith.constant 0 : i32
    %c0_i32_2 = arith.constant 0 : i32
    return %c0_i32, %c0_i32_0, %c0_i32_1 : i32, i32, i32
  }
  func.func @transform_10(%arg0: i32) -> (i32, i32, i32) {
    %c0_i32 = arith.constant 0 : i32
    %c0_i32_0 = arith.constant 0 : i32
    %c0_i32_1 = arith.constant 0 : i32
    %c0_i32_2 = arith.constant 0 : i32
    return %c0_i32, %c0_i32_0, %c0_i32_1 : i32, i32, i32
  }
  func.func @transform_11(%arg0: i32) -> (i32, i32) {
    %c0_i32 = arith.constant 0 : i32
    %c0_i32_0 = arith.constant 0 : i32
    %c0_i32_1 = arith.constant 0 : i32
    return %c0_i32, %c0_i32_0 : i32, i32
  }
  func.func @transform_12(%arg0: i32) -> (i32, i32) {
    %c0_i32 = arith.constant 0 : i32
    %c0_i32_0 = arith.constant 0 : i32
    %c0_i32_1 = arith.constant 0 : i32
    return %c0_i32, %c0_i32_0 : i32, i32
  }
  func.func @transform_13(%arg0: i32) -> (i32, i32) {
    %c0_i32 = arith.constant 0 : i32
    %c0_i32_0 = arith.constant 0 : i32
    %c0_i32_1 = arith.constant 0 : i32
    return %c0_i32, %c0_i32_0 : i32, i32
  }
  func.func @transform_14(%arg0: i32) -> (i32, i32, i32) {
    %c0_i32 = arith.constant 0 : i32
    %c0_i32_0 = arith.constant 0 : i32
    %c0_i32_1 = arith.constant 0 : i32
    %c0_i32_2 = arith.constant 0 : i32
    return %c0_i32, %c0_i32_0, %c0_i32_1 : i32, i32, i32
  }
  func.func @transform_15(%arg0: i32) -> (i32, i32, i32) {
    %c0_i32 = arith.constant 0 : i32
    %c0_i32_0 = arith.constant 0 : i32
    %c0_i32_1 = arith.constant 0 : i32
    %c0_i32_2 = arith.constant 0 : i32
    return %c0_i32, %c0_i32_0, %c0_i32_1 : i32, i32, i32
  }
  func.func @transform_16(%arg0: i32) -> (i32, i32) {
    %c0_i32 = arith.constant 0 : i32
    %c0_i32_0 = arith.constant 0 : i32
    %c0_i32_1 = arith.constant 0 : i32
    return %c0_i32, %c0_i32_0 : i32, i32
  }
  func.func @transform_17(%arg0: i32) -> (i32, i32) {
    %c0_i32 = arith.constant 0 : i32
    %c0_i32_0 = arith.constant 0 : i32
    %c0_i32_1 = arith.constant 0 : i32
    return %c0_i32, %c0_i32_0 : i32, i32
  }
  func.func @transform_18(%arg0: i32) -> (i32, i32) {
    %c0_i32 = arith.constant 0 : i32
    %c0_i32_0 = arith.constant 0 : i32
    %c0_i32_1 = arith.constant 0 : i32
    return %c0_i32, %c0_i32_0 : i32, i32
  }
  func.func @transform_19(%arg0: i32) -> (i32, i32, i32) {
    %c0_i32 = arith.constant 0 : i32
    %c0_i32_0 = arith.constant 0 : i32
    %c0_i32_1 = arith.constant 0 : i32
    %c0_i32_2 = arith.constant 0 : i32
    return %c0_i32, %c0_i32_0, %c0_i32_1 : i32, i32, i32
  }
  func.func @transform_20(%arg0: i32) -> (i32, i32, i32) {
    %c0_i32 = arith.constant 0 : i32
    %c0_i32_0 = arith.constant 0 : i32
    %c0_i32_1 = arith.constant 0 : i32
    %c0_i32_2 = arith.constant 0 : i32
    return %c0_i32, %c0_i32_0, %c0_i32_1 : i32, i32, i32
  }
  func.func @transform_21(%arg0: i32) -> (i32, i32) {
    %c0_i32 = arith.constant 0 : i32
    %c0_i32_0 = arith.constant 0 : i32
    %c0_i32_1 = arith.constant 0 : i32
    return %c0_i32, %c0_i32_0 : i32, i32
  }
  func.func @transform_22(%arg0: i32) -> (i32, i32) {
    %c0_i32 = arith.constant 0 : i32
    %c0_i32_0 = arith.constant 0 : i32
    %c0_i32_1 = arith.constant 0 : i32
    return %c0_i32, %c0_i32_0 : i32, i32
  }
}

</mosaic_0001>

<bundles_post_ra>
// kernel: forward.1
= control target key start
LH: loop header
LB: loop body
LE: loop exit
PB: predicated region body
PF: predicated region fallthrough
CT: control target
= control target key end

     0   :  { %s19442_s0 = inlined_call_operand.vmem [shape: f32[64,576], index: 0, kind: input, shape index: {}]   ;;  %s19443_s1 = inlined_call_operand.vmem [shape: f32[4,32,64], index: 1, kind: input, shape index: {}]   ;;  %s19444_s2 = inlined_call_operand.vmem [shape: bf16[4,576,256], index: 2, kind: input, shape index: {}]   ;;  %s19445_s3 = inlined_call_operand.vmem [shape: f32[1,256], index: 3, kind: input, shape index: {}, may-alias: {3,8,13}]   ;;  %s19446_s4 = inlined_call_operand.vmem [shape: f32[4,16,32], index: 4, kind: input, shape index: {}]   ;;  %s19447_s5 = inlined_call_operand.vmem [shape: bf16[4,256,256], index: 5, kind: input, shape index: {}]   ;;  %s19448_s6 = inlined_call_operand.vmem [shape: f32[256,256], index: 6, kind: input, shape index: {}]   ;;  %s19449_s7 = inlined_call_operand.vmem [shape: f32[1,256], index: 7, kind: input, shape index: {}, may-alias: {7,12}]   ;;  %s19450_s8 = inlined_call_operand.vmem [shape: f32[1,256], index: 8, kind: input, shape index: {}, may-alias: {3,8,13}]   ;;  %s19451_s9 = inlined_call_operand.vmem [shape: f32[4,8,16], index: 9, kind: input, shape index: {}]   ;;  %s19452_s10 = inlined_call_operand.vmem [shape: bf16[4,256,256], index: 10, kind: input, shape index: {}]   ;;  %s19453_s11 = inlined_call_operand.vmem [shape: f32[256,256], index: 11, kind: input, shape index: {}]   ;;  %s19454_s12 = inlined_call_operand.vmem [shape: f32[1,256], index: 12, kind: input, shape index: {}, may-alias: {7,12}]   ;;  %s19455_s13 = inlined_call_operand.vmem [shape: f32[1,256], index: 13, kind: input, shape index: {}, may-alias: {3,8,13}]   ;;  %s19456_s14 = inlined_call_operand.vmem [shape: f32[4,6,8], index: 14, kind: input, shape index: {}]   ;;  %s19457_s15 = inlined_call_operand.vmem [shape: bf16[4,256,384], index: 15, kind: input, shape index: {}]   ;;  %s19458_s16 = inlined_call_operand.vmem [shape: f32[384,384], index: 16, kind: input, shape index: {}]   ;;  %s19459_s17 = inlined_call_operand.vmem [shape: f32[1,384], index: 17, kind: input, shape index: {}]   ;;  %s19460_s18 = inlined_call_operand.vmem [shape: f32[1,384], index: 18, kind: input, shape index: {}]   ;;  %s19461_s19 = inlined_call_operand.vmem [shape: f32[4,4,6], index: 19, kind: input, shape index: {}]   ;;  %s19462_s20 = inlined_call_operand.vmem [shape: f32[4,2,384], index: 20, kind: input, shape index: {}]   ;;  %s19463_s21 = inlined_call_operand.vmem [shape: f32[1,2], index: 21, kind: input, shape index: {}]   ;;  %s19464_s22 = inlined_call_operand.hbm [shape: f32[4,2], index: 22, kind: output, shape index: {}]  }
   0x1   :  { %19503 = sst [smem:[#allocation30_spill]] %s19442_s0 }
   0x2   :  { %19504 = sst [smem:[#allocation31_spill]] %s19443_s1 }
   0x3   :  { %19505 = sst [smem:[#allocation32_spill]] %s19444_s2 }
   0x4   :  { %19506 = sst [smem:[#allocation33_spill]] %s19445_s3 }
   0x5   :  { %19507 = sst [smem:[#allocation34_spill]] %s19446_s4 }
   0x6   :  { %19508 = sst [smem:[#allocation35_spill]] %s19447_s5 }
   0x7   :  { %19509 = sst [smem:[#allocation36_spill]] %s19448_s6 }
   0x8   :  { %s19510_s29 = sld [smem:[#allocation30_spill]]  ;;  %v19471_v7 = vmov 0.0   ;;  %s19511_s1 = sld [smem:[#allocation31_spill]]  ;;  %vm117_vm0 = vcmask 523264  }
   0x9   :  { %283 = vmatprep.mubr.f32.mxu1 %v19471_v7  ;;  %194 = vmatprep.mubr.f32.mxu0 %v19471_v7  ;;  %s19512_s3 = sld [smem:[#allocation32_spill]] }
   0xe   :  { %v76_v0 = vld [vmem:[%s19510_s29 + $0x18] sm:$0xff]  ;;  %v81_v1 = vld [vmem:[%s19510_s29 + $0x40] sm:$0xff]  ;;  %v75_v2 = vld [vmem:[%s19510_s29 + $0x10] sm:$0xff] }
   0xf   :  { %v14647_v3 = vpack.c.bf16 %v81_v1, %v76_v0  ;;  %v80_v4 = vld [vmem:[%s19510_s29 + $0x38] sm:$0xff]  ;;  %v86_v5 = vld [vmem:[%s19510_s29 + $0x68] sm:$0xff]  ;;  %v91_v6 = vld [vmem:[%s19510_s29 + $0x90] sm:$0xff] }
  0x10   :  { %v14660_v8 = vpack.c.bf16 %v80_v4, %v75_v2  ;;  %v14662_v9 = vpack.c.bf16 %v91_v6, %v86_v5  ;;  %v85_v10 = vld [vmem:[%s19510_s29 + $0x60] sm:$0xff]  ;;  %v90_v11 = vld [vmem:[%s19510_s29 + $0x88] sm:$0xff]  ;;  %v96_v12 = vld [vmem:[%s19510_s29 + $0xb8] sm:$0xff] }
  0x11   :  { %12492 = vmatprep.subr.bf16.mxu1 %v14647_v3  ;;  %v101_v13 = vld [vmem:[%s19510_s29 + $0xe0] sm:$0xff]  ;;  %v14678_v14 = vpack.c.bf16 %v90_v11, %v85_v10  ;;  %v95_v15 = vld [vmem:[%s19510_s29 + $0xb0] sm:$0xff]  ;;  %v100_v16 = vld [vmem:[%s19510_s29 + $0xd8] sm:$0xff] }
  0x12   :  { %12494 = vmatpush1.bf16.msra.mxu1 %v14660_v8  ;;  %v14687_v17 = vpack.c.bf16 %v101_v13, %v96_v12  ;;  %v106_v18 = vld [vmem:[%s19510_s29 + $0x108] sm:$0xff]  ;;  %v111_v19 = vld [vmem:[%s19510_s29 + $0x130] sm:$0xff]  ;;  %v73_v22 = vld [vmem:[%s19510_s29] sm:$0xff]  ;;  %v14716_v27 = vpack.c.bf16 %v100_v16, %v95_v15 }
  0x13   :  { %12496 = vmatprep.subr.bf16.mxu1 %v14662_v9  ;;  %v74_v20 = vld [vmem:[%s19510_s29 + $0x8] sm:$0xff]  ;;  %v79_v21 = vld [vmem:[%s19510_s29 + $0x30] sm:$0xff]  ;;  %v84_v25 = vld [vmem:[%s19510_s29 + $0x58] sm:$0xff]  ;;  %v14724_v30 = vpack.c.bf16 %v111_v19, %v106_v18 }
  0x14   :  { %v78_v23 = vld [vmem:[%s19510_s29 + $0x28] sm:$0xff]  ;;  %v14707_v24 = vpack.c.bf16 %v79_v21, %v74_v20  ;;  %v89_v26 = vld [vmem:[%s19510_s29 + $0x80] sm:$0xff]  ;;  %v83_v33 = vld [vmem:[%s19510_s29 + $0x50] sm:$0xff] }
  0x15   :  { %v105_v28 = vld [vmem:[%s19510_s29 + $0x100] sm:$0xff]  ;;  %v14721_v29 = vpack.c.bf16 %v78_v23, %v73_v22  ;;  %v110_v31 = vld [vmem:[%s19510_s29 + $0x128] sm:$0xff]  ;;  %v14729_v32 = vpack.c.bf16 %v89_v26, %v84_v25  ;;  %v88_v34 = vld [vmem:[%s19510_s29 + $0x78] sm:$0xff] }
  0x16   :  { %12498 = vmatpush1.bf16.msra.mxu1 %v14678_v14  ;;  %12476 = vmatprep.subr.bf16.mxu0 %v14707_v24  ;;  %v94_v35 = vld [vmem:[%s19510_s29 + $0xa8] sm:$0xff]  ;;  %v99_v36 = vld [vmem:[%s19510_s29 + $0xd0] sm:$0xff]  ;;  %v14747_v37 = vpack.c.bf16 %v110_v31, %v105_v28  ;;  %v14749_v38 = vpack.c.bf16 %v88_v34, %v83_v33  ;;  %v93_v40 = vld [vmem:[%s19510_s29 + $0xa0] sm:$0xff] }
  0x17   :  { %12500 = vmatprep.subr.bf16.mxu1 %v14687_v17  ;;  %12478 = vmatpush1.bf16.msra.mxu0 %v14721_v29  ;;  %v14752_v39 = vpack.c.bf16 %v99_v36, %v94_v35  ;;  %v98_v41 = vld [vmem:[%s19510_s29 + $0xc8] sm:$0xff]  ;;  %v104_v42 = vld [vmem:[%s19510_s29 + $0xf8] sm:$0xff]  ;;  %v109_v43 = vld [vmem:[%s19510_s29 + $0x120] sm:$0xff] }
  0x18   :  { %12480 = vmatprep.subr.bf16.mxu0 %v14729_v32  ;;  %v14772_v44 = vld [vmem:[%s19511_s1] sm:$0xff]  ;;  %v14774_v45 = vpack.c.bf16 %v98_v41, %v93_v40  ;;  %v82_v47 = vld [vmem:[%s19510_s29 + $0x48] sm:$0xff]  ;;  %v14783_v48 = vpack.c.bf16 %v109_v43, %v104_v42  ;;  %v103_v49 = vld [vmem:[%s19510_s29 + $0xf0] sm:$0xff] }
  0x19   :  { %v77_v46 = vld [vmem:[%s19510_s29 + $0x20] sm:$0xff]  ;;  %v108_v50 = vld [vmem:[%s19510_s29 + $0x118] sm:$0xff]  ;;  %v114_v51 = vld [vmem:[%s19511_s1 + $0x8] sm:$0xff] }
  0x1a   :  { %12502 = vmatpush1.bf16.msra.mxu1 %v14716_v27  ;;  %v14798_v52 = vpack.c.bf16 %v82_v47, %v77_v46  ;;  %v14802_v53 = vpack.c.bf16 %v108_v50, %v103_v49  ;;  %v87_v54 = vld [vmem:[%s19510_s29 + $0x70] sm:$0xff]  ;;  %v92_v55 = vld [vmem:[%s19510_s29 + $0x98] sm:$0xff]  ;;  %v97_v58 = vld [vmem:[%s19510_s29 + $0xc0] sm:$0xff] }
  0x1b   :  { %12504 = vmatprep.subr.bf16.mxu1 %v14724_v30  ;;  %12482 = vmatpush1.bf16.msra.mxu0 %v14749_v38  ;;  %v115_v56 = vld [vmem:[%s19511_s1 + $0x10] sm:$0xff]  ;;  %v14817_v57 = vpack.c.bf16 %v92_v55, %v87_v54  ;;  %v102_v59 = vld [vmem:[%s19510_s29 + $0xe8] sm:$0xff]  ;;  %v116_v60 = vld [vmem:[%s19511_s1 + $0x18] sm:$0xff] }
  0x1c   :  { %12484 = vmatprep.subr.bf16.mxu0 %v14752_v39  ;;  %v14837_v61 = vpack.c.bf16 %v102_v59, %v97_v58  ;;  %v107_v62 = vld [vmem:[%s19510_s29 + $0x110] sm:$0xff]  ;;  %v112_v63 = vld [vmem:[%s19510_s29 + $0x138] sm:$0xff]  ;;  %v10602_v0 = vld [vmem:[%s19511_s1 + $0x20] sm:$0xff] }
  0x1d   :  { %v14856_v1 = vpack.c.bf16 %v112_v63, %v107_v62  ;;  %v10603_v2 = vld [vmem:[%s19511_s1 + $0x28] sm:$0xff]  ;;  %v10604_v4 = vld [vmem:[%s19511_s1 + $0x30] sm:$0xff]  ;;  %v10605_v5 = vld [vmem:[%s19511_s1 + $0x38] sm:$0xff] }
  0x1e   :  { %12506 = vmatpush1.bf16.msra.mxu1 %v14747_v37  ;;  %v10618_v6 = vld [vmem:[%s19511_s1 + $0x40] sm:$0xff]  ;;  %v10619_v10 = vld [vmem:[%s19511_s1 + $0x48] sm:$0xff]  ;;  %v10620_v11 = vld [vmem:[%s19511_s1 + $0x50] sm:$0xff] }
  0x1f   :  { %12524 = vmatprep.subr.bf16.mxu1 %v14707_v24  ;;  %12486 = vmatpush1.bf16.msra.mxu0 %v14774_v45  ;;  %v10621_v12 = vld [vmem:[%s19511_s1 + $0x58] sm:$0xff]  ;;  %v14971_v13 = vld [vmem:[%s19511_s1 + $0x60] sm:$0xff]  ;;  %v10635_v15 = vld [vmem:[%s19511_s1 + $0x68] sm:$0xff] }
  0x20   :  { %12488 = vmatprep.subr.bf16.mxu0 %v14783_v48  ;;  %v13416_v16 = vld [vmem:[%s19512_s3 + $0x264] ss:$8 sps:$4 sm:$0xff]   ;;  %v13419_v18 = vld [vmem:[%s19512_s3 + $0x274] ss:$8 sps:$4 sm:$0xff]   ;;  %v13417_v19 = vld [vmem:[%s19512_s3 + $0x270] ss:$8 sps:$4 sm:$0xff]  }
  0x21   :  { %10594 = vmatmul.mubr.msk.f32.vlgmr.msra.gmra.mrb[0].mxu1 %vm117_vm0, %v14772_v44  ;;  %v13422_v20 = vld [vmem:[%s19512_s3 + $0x284] ss:$8 sps:$4 sm:$0xff]   ;;  %v10636_v21 = vld [vmem:[%s19511_s1 + $0x70] sm:$0xff]  ;;  %v13420_v22 = vld [vmem:[%s19512_s3 + $0x280] ss:$8 sps:$4 sm:$0xff]  }
  0x22   :  { %12526 = vmatpush1.bf16.msra.mxu1 %v14721_v29  ;;  %289 = vmatprep.mubr.f32.mxu1 %v19471_v7  ;;  %v13425_v23 = vld [vmem:[%s19512_s3 + $0x294] ss:$8 sps:$4 sm:$0xff]   ;;  %v13423_v25 = vld [vmem:[%s19512_s3 + $0x290] ss:$8 sps:$4 sm:$0xff]   ;;  %v13428_v26 = vld [vmem:[%s19512_s3 + $0x2a4] ss:$8 sps:$4 sm:$0xff]  }
  0x23   :  { %12528 = vmatprep.subr.bf16.mxu1 %v14729_v32  ;;  %12490 = vmatpush1.bf16.msra.mxu0 %v14802_v53  ;;  %v13431_v28 = vld [vmem:[%s19512_s3 + $0x2b4] ss:$8 sps:$4 sm:$0xff]   ;;  %v13432_v31 = vld [vmem:[%s19512_s3 + $0x2c0] ss:$8 sps:$4 sm:$0xff]   ;;  %v13435_v33 = vld [vmem:[%s19512_s3 + $0x2d0] ss:$8 sps:$4 sm:$0xff]  }
  0x24   :  { %12508 = vmatprep.subr.bf16.mxu0 %v14798_v52  ;;  %v13440_v34 = vld [vmem:[%s19512_s3 + $0x2e4] ss:$8 sps:$4 sm:$0xff]   ;;  %v13438_v35 = vld [vmem:[%s19512_s3 + $0x2e0] ss:$8 sps:$4 sm:$0xff]   ;;  %v13443_v36 = vld [vmem:[%s19512_s3 + $0x2f4] ss:$8 sps:$4 sm:$0xff]  }
  0x25   :  { %10595 = vmatmul.mubr.msk.f32.gmra.mrb[2].mxu1 %vm117_vm0, %v114_v51  ;;  %v13449_v40 = vld [vmem:[%s19512_s3 + $0x314] ss:$8 sps:$4 sm:$0xff]   ;;  %v13447_v41 = vld [vmem:[%s19512_s3 + $0x310] ss:$8 sps:$4 sm:$0xff]   ;;  %v13452_v42 = vld [vmem:[%s19512_s3 + $0x324] ss:$8 sps:$4 sm:$0xff]  }
  0x26   :  { %12530 = vmatpush1.bf16.msra.mxu1 %v14749_v38  ;;  %295 = vmatprep.mubr.f32.mxu1 %v19471_v7  ;;  %v13450_v43 = vld [vmem:[%s19512_s3 + $0x320] ss:$8 sps:$4 sm:$0xff]   ;;  %v13458_v46 = vld [vmem:[%s19512_s3 + $0x344] ss:$8 sps:$4 sm:$0xff]  }
  0x27   :  { %12532 = vmatprep.subr.bf16.mxu1 %v14752_v39  ;;  %10590 = vmatmul.mubr.msk.f32.vlgmr.msra.gmra.mrb[0].mxu0 %vm117_vm0, %v14772_v44 }
  0x28   :  { %12510 = vmatpush3.bf16.msra.mxu0 %v14798_v52  ;;  %200 = vmatprep.mubr.f32.mxu0 %v19471_v7 }
  0x29   :  { %10596 = vmatmul.mubr.msk.f32.gmra.mrb[4].mxu1 %vm117_vm0, %v115_v56  ;;  %12512 = vmatprep.subr.bf16.mxu0 %v14817_v57 }
  0x2a   :  { %12534 = vmatpush1.bf16.msra.mxu1 %v14774_v45  ;;  %301 = vmatprep.mubr.f32.mxu1 %v19471_v7 }
  0x2b   :  { %12536 = vmatprep.subr.bf16.mxu1 %v14783_v48  ;;  %10591 = vmatmul.mubr.msk.f32.gmra.mrb[2].mxu0 %vm117_vm0, %v114_v51 }
  0x2c   :  { %12514 = vmatpush3.bf16.msra.mxu0 %v14817_v57  ;;  %206 = vmatprep.mubr.f32.mxu0 %v19471_v7 }
  0x2d   :  { %10597 = vmatmul.mubr.msk.f32.gmra.mrb[6].mxu1 %vm117_vm0, %v116_v60  ;;  %12516 = vmatprep.subr.bf16.mxu0 %v14837_v61 }
  0x2e   :  { %12538 = vmatpush1.bf16.msra.mxu1 %v14802_v53  ;;  %474 = vmatprep.mubr.f32.mxu1 %v19471_v7 }
  0x2f   :  { %10592 = vmatmul.mubr.msk.f32.gmra.mrb[4].mxu0 %vm117_vm0, %v115_v56  ;;  %12556 = vmatprep.subr.bf16.mxu1 %v14798_v52 }
  0x30   :  { %12518 = vmatpush3.bf16.msra.mxu0 %v14837_v61  ;;  %212 = vmatprep.mubr.f32.mxu0 %v19471_v7 }
  0x31   :  { %10606 = vmatmul.mubr.msk.f32.vlgmr.msra.gmra.mrb[8].mxu1 %vm117_vm0, %v10602_v0  ;;  %12520 = vmatprep.subr.bf16.mxu0 %v14856_v1 }
  0x32   :  { %480 = vmatprep.mubr.f32.mxu1 %v19471_v7  ;;  %12558 = vmatpush3.bf16.msra.mxu1 %v14798_v52 }
  0x33   :  { %10593 = vmatmul.mubr.msk.f32.gmra.mrb[6].mxu0 %vm117_vm0, %v116_v60  ;;  %12560 = vmatprep.subr.bf16.mxu1 %v14817_v57 }
  0x34   :  { %12522 = vmatpush3.bf16.msra.mxu0 %v14856_v1  ;;  %12313 = vmatprep.mubr.msk.f32.mxu0 %vm117_vm0, %v14772_v44  ;;  %v13455_v44 = vld [vmem:[%s19512_s3 + $0x334] ss:$8 sps:$4 sm:$0xff]  }
  0x35   :  { %10607 = vmatmul.mubr.msk.f32.gmra.mrb[10].mxu1 %vm117_vm0, %v10603_v2  ;;  %12540 = vmatprep.subr.bf16.mxu0 %v14647_v3 }
  0x36   :  { %486 = vmatprep.mubr.f32.mxu1 %v19471_v7  ;;  %12562 = vmatpush3.bf16.msra.mxu1 %v14817_v57 }
  0x37   :  { %12314 = vmatmul.mubr.msk.f32.vlgmr.msra.gmra.mrb[8].mxu0 %vm117_vm0, %v114_v51  ;;  %12564 = vmatprep.subr.bf16.mxu1 %v14837_v61 }
  0x38   :  { %12542 = vmatpush1.bf16.msra.mxu0 %v14660_v8  ;;  %12316 = vmatprep.mubr.msk.f32.mxu0 %vm117_vm0, %v115_v56 }
  0x39   :  { %12544 = vmatprep.subr.bf16.mxu0 %v14662_v9  ;;  %10608 = vmatmul.mubr.msk.f32.gmra.mrb[12].mxu1 %vm117_vm0, %v10604_v4 }
  0x3a   :  { %492 = vmatprep.mubr.f32.mxu1 %v19471_v7  ;;  %12566 = vmatpush3.bf16.msra.mxu1 %v14837_v61 }
  0x3b   :  { %12317 = vmatmul.mubr.msk.f32.gmra.mrb[10].mxu0 %vm117_vm0, %v116_v60  ;;  %12568 = vmatprep.subr.bf16.mxu1 %v14856_v1 }
  0x3c   :  { %12546 = vmatpush1.bf16.msra.mxu0 %v14678_v14  ;;  %563 = vmatprep.mubr.f32.mxu0 %v19471_v7 }
  0x3d   :  { %12548 = vmatprep.subr.bf16.mxu0 %v14687_v17  ;;  %10609 = vmatmul.mubr.msk.f32.gmra.mrb[14].mxu1 %vm117_vm0, %v10605_v5 }
  0x3e   :  { %12570 = vmatpush3.bf16.msra.mxu1 %v14856_v1  ;;  %12335 = vmatprep.mubr.msk.f32.mxu1 %vm117_vm0, %v10602_v0 }
  0x3f   :  { %12588 = vmatprep.subr.bf16.mxu1 %v14647_v3 }
  0x40   :  { %12550 = vmatpush1.bf16.msra.mxu0 %v14716_v27 }
  0x41   :  { %12552 = vmatprep.subr.bf16.mxu0 %v14724_v30  ;;  %12336 = vmatmul.mubr.msk.f32.vlgmr.msra.gmra.mrb[16].mxu1 %vm117_vm0, %v10603_v2 }
  0x42   :  { %12338 = vmatprep.mubr.msk.f32.mxu1 %vm117_vm0, %v10604_v4  ;;  %12590 = vmatpush1.bf16.msra.mxu1 %v14660_v8 }
  0x43   :  { %12592 = vmatprep.subr.bf16.mxu1 %v14662_v9 }
  0x44   :  { %12554 = vmatpush1.bf16.msra.mxu0 %v14747_v37 }
  0x45   :  { %12339 = vmatmul.mubr.msk.f32.gmra.mrb[18].mxu1 %vm117_vm0, %v10605_v5  ;;  %12572 = vmatprep.subr.bf16.mxu0 %v14707_v24 }
  0x46   :  { %12594 = vmatpush1.bf16.msra.mxu1 %v14678_v14  ;;  %843 = vmatprep.mubr.f32.mxu1 %v19471_v7 }
  0x47   :  { %10610 = vmatmul.mubr.msk.f32.vlgmr.msra.gmra.mrb[12].mxu0 %vm117_vm0, %v10602_v0  ;;  %12596 = vmatprep.subr.bf16.mxu1 %v14687_v17 }
  0x48   :  { %569 = vmatprep.mubr.f32.mxu0 %v19471_v7  ;;  %12574 = vmatpush1.bf16.msra.mxu0 %v14721_v29 }
  0x49   :  { %12576 = vmatprep.subr.bf16.mxu0 %v14729_v32 }
  0x4a   :  { %12598 = vmatpush1.bf16.msra.mxu1 %v14716_v27 }
  0x4b   :  { %10611 = vmatmul.mubr.msk.f32.gmra.mrb[14].mxu0 %vm117_vm0, %v10603_v2  ;;  %12600 = vmatprep.subr.bf16.mxu1 %v14724_v30 }
  0x4c   :  { %575 = vmatprep.mubr.f32.mxu0 %v19471_v7  ;;  %12578 = vmatpush1.bf16.msra.mxu0 %v14749_v38 }
  0x4d   :  { %12580 = vmatprep.subr.bf16.mxu0 %v14752_v39 }
  0x4e   :  { %12602 = vmatpush1.bf16.msra.mxu1 %v14747_v37 }
  0x4f   :  { %10612 = vmatmul.mubr.msk.f32.gmra.mrb[16].mxu0 %vm117_vm0, %v10604_v4  ;;  %12620 = vmatprep.subr.bf16.mxu1 %v14707_v24  ;;  %v10637_v24 = vld [vmem:[%s19511_s1 + $0x78] sm:$0xff] }
  0x50   :  { %581 = vmatprep.mubr.f32.mxu0 %v19471_v7  ;;  %12582 = vmatpush1.bf16.msra.mxu0 %v14774_v45 }
  0x51   :  { %12584 = vmatprep.subr.bf16.mxu0 %v14783_v48  ;;  %10626 = vmatmul.mubr.msk.f32.vlgmr.msra.gmra.mrb[20].mxu1 %vm117_vm0, %v10618_v6 }
  0x52   :  { %849 = vmatprep.mubr.f32.mxu1 %v19471_v7  ;;  %12622 = vmatpush1.bf16.msra.mxu1 %v14721_v29  ;;  %v13429_v29 = vld [vmem:[%s19512_s3 + $0x2b0] ss:$8 sps:$4 sm:$0xff]  }
  0x53   :  { %10613 = vmatmul.mubr.msk.f32.gmra.mrb[18].mxu0 %vm117_vm0, %v10605_v5  ;;  %12624 = vmatprep.subr.bf16.mxu1 %v14729_v32  ;;  %v13437_v32 = vld [vmem:[%s19512_s3 + $0x2d4] ss:$8 sps:$4 sm:$0xff]  }
  0x54   :  { %12586 = vmatpush1.bf16.msra.mxu0 %v14802_v53  ;;  %754 = vmatprep.mubr.f32.mxu0 %v19471_v7 }
  0x55   :  { %12604 = vmatprep.subr.bf16.mxu0 %v14798_v52  ;;  %10627 = vmatmul.mubr.msk.f32.gmra.mrb[22].mxu1 %vm117_vm0, %v10619_v10 }
  0x56   :  { %855 = vmatprep.mubr.f32.mxu1 %v19471_v7  ;;  %12626 = vmatpush1.bf16.msra.mxu1 %v14749_v38  ;;  %v13446_v38 = vld [vmem:[%s19512_s3 + $0x304] ss:$8 sps:$4 sm:$0xff]  }
  0x57   :  { %10622 = vmatmul.mubr.msk.f32.vlgmr.msra.gmra.mrb[20].mxu0 %vm117_vm0, %v10618_v6  ;;  %12628 = vmatprep.subr.bf16.mxu1 %v14752_v39  ;;  %v13444_v39 = vld [vmem:[%s19512_s3 + $0x300] ss:$8 sps:$4 sm:$0xff]  }
  0x58   :  { %12606 = vmatpush3.bf16.msra.mxu0 %v14798_v52  ;;  %760 = vmatprep.mubr.f32.mxu0 %v19471_v7 }
  0x59   :  { %12608 = vmatprep.subr.bf16.mxu0 %v14817_v57  ;;  %10628 = vmatmul.mubr.msk.f32.gmra.mrb[24].mxu1 %vm117_vm0, %v10620_v11 }
  0x5a   :  { %861 = vmatprep.mubr.f32.mxu1 %v19471_v7  ;;  %12630 = vmatpush1.bf16.msra.mxu1 %v14774_v45  ;;  %v13453_v45 = vld [vmem:[%s19512_s3 + $0x330] ss:$8 sps:$4 sm:$0xff]  }
  0x5b   :  { %10623 = vmatmul.mubr.msk.f32.gmra.mrb[22].mxu0 %vm117_vm0, %v10619_v10  ;;  %12632 = vmatprep.subr.bf16.mxu1 %v14783_v48 }
  0x5c   :  { %12610 = vmatpush3.bf16.msra.mxu0 %v14817_v57  ;;  %766 = vmatprep.mubr.f32.mxu0 %v19471_v7 }
  0x5d   :  { %12612 = vmatprep.subr.bf16.mxu0 %v14837_v61  ;;  %10629 = vmatmul.mubr.msk.f32.gmra.mrb[26].mxu1 %vm117_vm0, %v10621_v12 }
  0x5e   :  { %12634 = vmatpush1.bf16.msra.mxu1 %v14802_v53  ;;  %1034 = vmatprep.mubr.f32.mxu1 %v19471_v7 }
  0x5f   :  { %10624 = vmatmul.mubr.msk.f32.gmra.mrb[24].mxu0 %vm117_vm0, %v10620_v11  ;;  %12652 = vmatprep.subr.bf16.mxu1 %v14798_v52 }
  0x60   :  { %12614 = vmatpush3.bf16.msra.mxu0 %v14837_v61  ;;  %772 = vmatprep.mubr.f32.mxu0 %v19471_v7 }
  0x61   :  { %12616 = vmatprep.subr.bf16.mxu0 %v14856_v1  ;;  %10638 = vmatmul.mubr.msk.f32.vlgmr.msra.gmra.mrb[28].mxu1 %vm117_vm0, %v14971_v13 }
  0x62   :  { %1040 = vmatprep.mubr.f32.mxu1 %v19471_v7  ;;  %12654 = vmatpush3.bf16.msra.mxu1 %v14798_v52 }
  0x63   :  { %10625 = vmatmul.mubr.msk.f32.gmra.mrb[26].mxu0 %vm117_vm0, %v10621_v12  ;;  %12656 = vmatprep.subr.bf16.mxu1 %v14817_v57 }
  0x64   :  { %12618 = vmatpush3.bf16.msra.mxu0 %v14856_v1  ;;  %12357 = vmatprep.mubr.msk.f32.mxu0 %vm117_vm0, %v10618_v6 }
  0x65   :  { %12636 = vmatprep.subr.bf16.mxu0 %v14647_v3  ;;  %10639 = vmatmul.mubr.msk.f32.gmra.mrb[30].mxu1 %vm117_vm0, %v10635_v15  ;;  %v13410_v3 = vld [vmem:[%s19512_s3 + $0x244] ss:$8 sps:$4 sm:$0xff]  }
  0x66   :  { %1046 = vmatprep.mubr.f32.mxu1 %v19471_v7  ;;  %12658 = vmatpush3.bf16.msra.mxu1 %v14817_v57 }
  0x67   :  { %12358 = vmatmul.mubr.msk.f32.vlgmr.msra.gmra.mrb[28].mxu0 %vm117_vm0, %v10619_v10  ;;  %12660 = vmatprep.subr.bf16.mxu1 %v14837_v61 }
  0x68   :  { %12638 = vmatpush1.bf16.msra.mxu0 %v14660_v8  ;;  %12360 = vmatprep.mubr.msk.f32.mxu0 %vm117_vm0, %v10620_v11  ;;  %v13408_v8 = vld [vmem:[%s19512_s3 + $0x240] ss:$8 sps:$4 sm:$0xff]  }
  0x69   :  { %12640 = vmatprep.subr.bf16.mxu0 %v14662_v9  ;;  %v13413_v9 = vld [vmem:[%s19512_s3 + $0x254] ss:$8 sps:$4 sm:$0xff]   ;;  %10640 = vmatmul.mubr.msk.f32.gmra.mrb[32].mxu1 %vm117_vm0, %v10636_v21 }
  0x6a   :  { %12662 = vmatpush3.bf16.msra.mxu1 %v14837_v61  ;;  %1052 = vmatprep.mubr.f32.mxu1 %v19471_v7 }
  0x6b   :  { %12361 = vmatmul.mubr.msk.f32.gmra.mrb[30].mxu0 %vm117_vm0, %v10621_v12  ;;  %12664 = vmatprep.subr.bf16.mxu1 %v14856_v1 }
  0x6c   :  { %12642 = vmatpush1.bf16.msra.mxu0 %v14678_v14  ;;  %1123 = vmatprep.mubr.f32.mxu0 %v19471_v7  ;;  %v13411_v14 = vld [vmem:[%s19512_s3 + $0x250] ss:$8 sps:$4 sm:$0xff]  }
  0x6d   :  { %12644 = vmatprep.subr.bf16.mxu0 %v14687_v17  ;;  %v13414_v17 = vld [vmem:[%s19512_s3 + $0x260] ss:$8 sps:$4 sm:$0xff]   ;;  %10641 = vmatmul.mubr.msk.f32.gmra.mrb[34].mxu1 %vm117_vm0, %v10637_v24 }
  0x6e   :  { %12666 = vmatpush3.bf16.msra.mxu1 %v14856_v1  ;;  %12379 = vmatprep.mubr.msk.f32.mxu1 %vm117_vm0, %v14971_v13 }
  0x70   :  { %12646 = vmatpush1.bf16.msra.mxu0 %v14716_v27  ;;  %v13426_v27 = vld [vmem:[%s19512_s3 + $0x2a0] ss:$8 sps:$4 sm:$0xff]  }
  0x71   :  { %12648 = vmatprep.subr.bf16.mxu0 %v14724_v30  ;;  %12380 = vmatmul.mubr.msk.f32.vlgmr.msra.gmra.mrb[36].mxu1 %vm117_vm0, %v10635_v15  ;;  %v13434_v30 = vld [vmem:[%s19512_s3 + $0x2c4] ss:$8 sps:$4 sm:$0xff]  }
  0x72   :  { %12382 = vmatprep.mubr.msk.f32.mxu1 %vm117_vm0, %v10636_v21 }
  0x74   :  { %12650 = vmatpush1.bf16.msra.mxu0 %v14747_v37  ;;  %v13441_v37 = vld [vmem:[%s19512_s3 + $0x2f0] ss:$8 sps:$4 sm:$0xff]  }
  0x75   :  { %1764 = vmatprep.subr.bf16.mxu0 %v13410_v3  ;;  %12383 = vmatmul.mubr.msk.f32.gmra.mrb[38].mxu1 %vm117_vm0, %v10637_v24 }
  0x76   :  { %3797 = vmatprep.mubr.f32.mxu1 %v19471_v7 }
  0x77   :  { %10642 = vmatmul.mubr.msk.f32.vlgmr.msra.gmra.mrb[32].mxu0 %vm117_vm0, %v14971_v13 }
  0x78   :  { %1129 = vmatprep.mubr.f32.mxu0 %v19471_v7  ;;  %1765 = vmatpush1.bf16.msra.mxu0 %v13408_v8 }
  0x79   :  { %1766 = vmatprep.subr.bf16.mxu0 %v13413_v9  ;;  %v13456_v9 = vld [vmem:[%s19512_s3 + $0x340] ss:$8 sps:$4 sm:$0xff]  }
  0x7b   :  { %10643 = vmatmul.mubr.msk.f32.gmra.mrb[34].mxu0 %vm117_vm0, %v10635_v15 }
  0x7c   :  { %1767 = vmatpush1.bf16.msra.mxu0 %v13411_v14  ;;  %1135 = vmatprep.mubr.f32.mxu0 %v19471_v7  ;;  %v13461_v14 = vld [vmem:[%s19512_s3 + $0x354] ss:$8 sps:$4 sm:$0xff]  }
  0x7d   :  { %1768 = vmatprep.subr.bf16.mxu0 %v13416_v16 }
  0x7f   :  { %10644 = vmatmul.mubr.msk.f32.gmra.mrb[36].mxu0 %vm117_vm0, %v10636_v21  ;;  %v13459_v21 = vld [vmem:[%s19512_s3 + $0x350] ss:$8 sps:$4 sm:$0xff]  }
  0x80   :  { %1769 = vmatpush1.bf16.msra.mxu0 %v13414_v17  ;;  %1141 = vmatprep.mubr.f32.mxu0 %v19471_v7 }
  0x81   :  { %1770 = vmatprep.subr.bf16.mxu0 %v13419_v18 }
  0x83   :  { %10645 = vmatmul.mubr.msk.f32.gmra.mrb[38].mxu0 %vm117_vm0, %v10637_v24 }
  0x84   :  { %1771 = vmatpush1.bf16.msra.mxu0 %v13417_v19 }
  0x85   :  { %1772 = vmatprep.subr.bf16.mxu0 %v13422_v20 }
  0x88   :  { %1773 = vmatpush1.bf16.msra.mxu0 %v13420_v22  ;;  %v13464_v22 = vld [vmem:[%s19512_s3 + $0x364] ss:$8 sps:$4 sm:$0xff]  }
  0x89   :  { %1774 = vmatprep.subr.bf16.mxu0 %v13425_v23 }
  0x8c   :  { %1775 = vmatpush1.bf16.msra.mxu0 %v13423_v25 }
  0x8d   :  { %1776 = vmatprep.subr.bf16.mxu0 %v13428_v26 }
  0x90   :  { %1777 = vmatpush1.bf16.msra.mxu0 %v13426_v27 }
  0x91   :  { %1778 = vmatprep.subr.bf16.mxu0 %v13431_v28 }
  0x94   :  { %1779 = vmatpush1.bf16.msra.mxu0 %v13429_v29  ;;  %v13462_v29 = vld [vmem:[%s19512_s3 + $0x360] ss:$8 sps:$4 sm:$0xff]  }
  0x95   :  { %1780 = vmatprep.subr.bf16.mxu0 %v13434_v30  ;;  %v13467_v30 = vld [vmem:[%s19512_s3 + $0x374] ss:$8 sps:$4 sm:$0xff]  }
  0x98   :  { %1781 = vmatpush1.bf16.msra.mxu0 %v13432_v31 }
  0x99   :  { %1782 = vmatprep.subr.bf16.mxu0 %v13437_v32 }
  0x9c   :  { %1783 = vmatpush1.bf16.msra.mxu0 %v13435_v33 }
  0x9d   :  { %1784 = vmatprep.subr.bf16.mxu0 %v13440_v34  ;;  %v13465_v34 = vld [vmem:[%s19512_s3 + $0x370] ss:$8 sps:$4 sm:$0xff]  }
  0xa0   :  { %1785 = vmatpush1.bf16.msra.mxu0 %v13438_v35  ;;  %v13470_v35 = vld [vmem:[%s19512_s3 + $0x384] ss:$8 sps:$4 sm:$0xff]  }
  0xa1   :  { %1786 = vmatprep.subr.bf16.mxu0 %v13443_v36 }
  0xa4   :  { %1787 = vmatpush1.bf16.msra.mxu0 %v13441_v37  ;;  %v13468_v37 = vld [vmem:[%s19512_s3 + $0x380] ss:$8 sps:$4 sm:$0xff]  }
  0xa5   :  { %1788 = vmatprep.subr.bf16.mxu0 %v13446_v38 }
  0xa8   :  { %1789 = vmatpush1.bf16.msra.mxu0 %v13444_v39 }
  0xa9   :  { %1790 = vmatprep.subr.bf16.mxu0 %v13449_v40 }
  0xac   :  { %1791 = vmatpush1.bf16.msra.mxu0 %v13447_v41 }
  0xad   :  { %1792 = vmatprep.subr.bf16.mxu0 %v13452_v42  ;;  %v13473_v42 = vld [vmem:[%s19512_s3 + $0x394] ss:$8 sps:$4 sm:$0xff]  }
  0xb0   :  { %1793 = vmatpush1.bf16.msra.mxu0 %v13450_v43 }
  0xb1   :  { %1794 = vmatprep.subr.bf16.mxu0 %v13455_v44  ;;  %v13471_v44 = vld [vmem:[%s19512_s3 + $0x390] ss:$8 sps:$4 sm:$0xff]  }
  0xb4   :  { %1795 = vmatpush1.bf16.msra.mxu0 %v13453_v45  ;;  %v13476_v45 = vld [vmem:[%s19512_s3 + $0x3a4] ss:$8 sps:$4 sm:$0xff]  }
  0xb5   :  { %1817 = vmatprep.subr.bf16.mxu0 %v13458_v46 }
  0xf4   :  { %v15132_v47 = vpop.f32.mrb[0].mxu1 }
  0xf5   :  { %v15134_v48 = vpop.f32.mrb[1].mxu1 }
  0xf8   :  { %v15136_v49 = vpop.f32.mrb[2].mxu1 }
  0xf9   :  { %v1235_v50 = vpack.c.bf16 %v15136_v49, %v15132_v47  ;;  %v15140_v51 = vpop.f32.mrb[3].mxu1 }
  0xfa   :  { %v1236_v52 = vpack.c.bf16 %v15140_v51, %v15134_v48  ;;  %v15144_v53 = vpop.f32.mrb[0].mxu0 }
  0xfb   :  { %v15146_v54 = vpop.f32.mrb[1].mxu0 }
  0xfc   :  { %v15148_v55 = vpop.f32.mrb[4].mxu1 }
  0xfd   :  { %v15150_v56 = vpop.f32.mrb[5].mxu1 }
  0xfe   :  { %v15152_v57 = vpop.f32.mrb[2].mxu0 }
  0xff   :  { %v1233_v58 = vpack.c.bf16 %v15152_v57, %v15144_v53  ;;  %v15156_v59 = vpop.f32.mrb[3].mxu0 }
 0x100   :  { %v15158_v60 = vpop.f32.mrb[6].mxu1  ;;  %v1234_v61 = vpack.c.bf16 %v15156_v59, %v15146_v54 }
 0x101   :  { %v1240_v62 = vpack.c.bf16 %v15158_v60, %v15148_v55  ;;  %v15164_v63 = vpop.f32.mrb[7].mxu1 }
 0x102   :  { %v1241_v0 = vpack.c.bf16 %v15164_v63, %v15150_v56  ;;  %v15168_v1 = vpop.f32.mrb[4].mxu0 }
 0x103   :  { %v15170_v2 = vpop.f32.mrb[5].mxu0 }
 0x104   :  { %v476_v4 = vpop.f32.mrb[8].mxu1 }
 0x105   :  { %v478_v5 = vpop.f32.mrb[9].mxu1 }
 0x106   :  { %v15172_v6 = vpop.f32.mrb[6].mxu0 }
 0x107   :  { %v1238_v10 = vpack.c.bf16 %v15172_v6, %v15168_v1  ;;  %v15176_v11 = vpop.f32.mrb[7].mxu0 }
 0x108   :  { %v482_v12 = vpop.f32.mrb[10].mxu1  ;;  %v1239_v13 = vpack.c.bf16 %v15176_v11, %v15170_v2 }
 0x109   :  { %v1315_v15 = vpack.c.bf16 %v482_v12, %v476_v4  ;;  %v484_v3 = vpop.f32.mrb[11].mxu1  ;;  %v13474_v12 = vld [vmem:[%s19512_s3 + $0x3a0] ss:$8 sps:$4 sm:$0xff]  }
 0x10a   :  { %v1316_v8 = vpack.c.bf16 %v484_v3, %v478_v5  ;;  %v15186_v16 = vpop.f32.mrb[8].mxu0 }
 0x10b   :  { %v15188_v17 = vpop.f32.mrb[9].mxu0 }
 0x10c   :  { %1796 = vmatprep.mubr.bf16.mxu0 %v1316_v8  ;;  %v1237_v18 = vpack.c.bf16 %v15186_v16, %v15188_v17  ;;  %v488_v19 = vpop.f32.mrb[12].mxu1  ;;  %v13479_v8 = vld [vmem:[%s19512_s3 + $0x3b4] ss:$8 sps:$4 sm:$0xff]  }
 0x10d   :  { %1797 = vmatmul.mubr.bf16.vlgmr.msra.gmra.mrb[40].mxu0 %v1315_v15  ;;  %v490_v20 = vpop.f32.mrb[13].mxu1 }
 0x10e   :  { %1818 = vmatpush1.bf16.msra.mxu0 %v13456_v9  ;;  %v15198_v23 = vpop.f32.mrb[10].mxu0 }
 0x10f   :  { %1819 = vmatprep.subr.bf16.mxu0 %v13461_v14  ;;  %v15200_v24 = vpop.f32.mrb[11].mxu0  ;;  %v13477_v14 = vld [vmem:[%s19512_s3 + $0x3b0] ss:$8 sps:$4 sm:$0xff]  }
 0x110   :  { %v494_v25 = vpop.f32.mrb[14].mxu1  ;;  %v1242_v26 = vpack.c.bf16 %v15198_v23, %v15200_v24 }
 0x111   :  { %v1320_v27 = vpack.c.bf16 %v494_v25, %v488_v19  ;;  %v496_v28 = vpop.f32.mrb[15].mxu1  ;;  %v13482_v19 = vld [vmem:[%s19512_s3 + $0x3c4] ss:$8 sps:$4 sm:$0xff]  }
 0x112   :  { %1820 = vmatpush1.bf16.msra.mxu0 %v13459_v21  ;;  %v1321_v31 = vpack.c.bf16 %v496_v28, %v490_v20  ;;  %v13485_v28 = vld [vmem:[%s19512_s3 + $0x3d4] ss:$8 sps:$4 sm:$0xff]  }
 0x113   :  { %1821 = vmatprep.subr.bf16.mxu0 %v13464_v22 }
 0x114   :  { %1806 = vmatprep.mubr.bf16.mxu0 %v1321_v31  ;;  %v15210_v32 = vpop.f32.mrb[16].mxu1  ;;  %v13483_v31 = vld [vmem:[%s19512_s3 + $0x3d0] ss:$8 sps:$4 sm:$0xff]  }
 0x115   :  { %1807 = vmatmul.mubr.bf16.gmra.mrb[44].mxu0 %v1320_v27  ;;  %v15212_v33 = vpop.f32.mrb[17].mxu1  ;;  %v13480_v27 = vld [vmem:[%s19512_s3 + $0x3c0] ss:$8 sps:$4 sm:$0xff]  }
 0x116   :  { %1822 = vmatpush1.bf16.msra.mxu0 %v13462_v29  ;;  %v1319_v36 = vpack.c.bf16 %v15210_v32, %v15212_v33 }
 0x117   :  { %1823 = vmatprep.subr.bf16.mxu0 %v13467_v30 }
 0x118   :  { %v15225_v38 = vpop.f32.mrb[18].mxu1 }
 0x119   :  { %v15227_v39 = vpop.f32.mrb[19].mxu1 }
 0x11a   :  { %1824 = vmatpush1.bf16.msra.mxu0 %v13465_v34  ;;  %v15229_v40 = vpop.f32.mrb[12].mxu0  ;;  %v1324_v41 = vpack.c.bf16 %v15225_v38, %v15227_v39  ;;  %v13488_v34 = vld [vmem:[%s19512_s3 + $0x3e4] ss:$8 sps:$4 sm:$0xff]  }
 0x11b   :  { %1825 = vmatprep.subr.bf16.mxu0 %v13470_v35  ;;  %v567_v43 = vpop.f32.mrb[13].mxu0 }
 0x11e   :  { %1826 = vmatpush1.bf16.msra.mxu0 %v13468_v37  ;;  %v15242_v46 = vpop.f32.mrb[14].mxu0 }
 0x11f   :  { %1827 = vmatprep.subr.bf16.mxu0 %v13473_v42  ;;  %v1317_v4 = vpack.c.bf16 %v15242_v46, %v15229_v40  ;;  %v573_v5 = vpop.f32.mrb[15].mxu0  ;;  %v13510_v46 = vld [vmem:[%s19512_s3 + $0x460] ss:$8 sps:$4 sm:$0xff]  }
 0x120   :  { %v1318_v15 = vpack.c.bf16 %v573_v5, %v567_v43 }
 0x122   :  { %1828 = vmatpush1.bf16.msra.mxu0 %v13471_v44  ;;  %1849 = vmatprep.mubr.bf16.mxu0 %v1318_v15  ;;  %v15249_v3 = vpop.f32.mrb[16].mxu0  ;;  %v13486_v44 = vld [vmem:[%s19512_s3 + $0x3e0] ss:$8 sps:$4 sm:$0xff]   ;;  %v13489_v15 = vld [vmem:[%s19512_s3 + $0x3f0] ss:$8 sps:$4 sm:$0xff]  }
 0x123   :  { %1829 = vmatprep.subr.bf16.mxu0 %v13476_v45  ;;  %v15254_v9 = vpop.f32.mrb[17].mxu0  ;;  %v13491_v45 = vld [vmem:[%s19512_s3 + $0x3f4] ss:$8 sps:$4 sm:$0xff]  }
 0x126   :  { %1830 = vmatpush1.bf16.msra.mxu0 %v13474_v12  ;;  %v15262_v20 = vpop.f32.mrb[18].mxu0 }
 0x127   :  { %1831 = vmatprep.subr.bf16.mxu0 %v13479_v8  ;;  %v1322_v21 = vpack.c.bf16 %v15262_v20, %v15249_v3  ;;  %v585_v22 = vpop.f32.mrb[19].mxu0  ;;  %v13494_v8 = vld [vmem:[%s19512_s3 + $0x404] ss:$8 sps:$4 sm:$0xff]  }
 0x128   :  { %v1323_v25 = vpack.c.bf16 %v585_v22, %v15254_v9  ;;  %v13506_v22 = vld [vmem:[%s19512_s3 + $0x444] ss:$8 sps:$4 sm:$0xff]  }
 0x12a   :  { %1832 = vmatpush1.bf16.msra.mxu0 %v13477_v14  ;;  %v15273_v29 = vpop.f32.mrb[20].mxu0 }
 0x12b   :  { %1833 = vmatprep.subr.bf16.mxu0 %v13482_v19  ;;  %v15275_v30 = vpop.f32.mrb[21].mxu0 }
 0x12e   :  { %1834 = vmatpush1.bf16.msra.mxu0 %v13480_v27  ;;  %v15283_v35 = vpop.f32.mrb[22].mxu0  ;;  %v13492_v27 = vld [vmem:[%s19512_s3 + $0x400] ss:$8 sps:$4 sm:$0xff]  }
 0x12f   :  { %1835 = vmatprep.subr.bf16.mxu0 %v13485_v28  ;;  %v15287_v42 = vpop.f32.mrb[23].mxu0  ;;  %v13497_v28 = vld [vmem:[%s19512_s3 + $0x414] ss:$8 sps:$4 sm:$0xff]  }
 0x132   :  { %1836 = vmatpush1.bf16.msra.mxu0 %v13483_v31  ;;  %v15297_v5 = vpop.f32.mrb[24].mxu0 }
 0x133   :  { %1837 = vmatprep.subr.bf16.mxu0 %v13488_v34  ;;  %v15299_v12 = vpop.f32.mrb[25].mxu0 }
 0x136   :  { %1838 = vmatpush1.bf16.msra.mxu0 %v13486_v44  ;;  %v15307_v9 = vpop.f32.mrb[26].mxu0  ;;  %v13503_v44 = vld [vmem:[%s19512_s3 + $0x434] ss:$8 sps:$4 sm:$0xff]  }
 0x137   :  { %1839 = vmatprep.subr.bf16.mxu0 %v13491_v45  ;;  %v15311_v19 = vpop.f32.mrb[27].mxu0  ;;  %v13495_v45 = vld [vmem:[%s19512_s3 + $0x410] ss:$8 sps:$4 sm:$0xff]  }
 0x13a   :  { %1840 = vmatpush1.bf16.msra.mxu0 %v13489_v15  ;;  %v15321_v31 = vpop.f32.mrb[28].mxu0  ;;  %v13500_v15 = vld [vmem:[%s19512_s3 + $0x424] ss:$8 sps:$4 sm:$0xff]  }
 0x13b   :  { %1841 = vmatprep.subr.bf16.mxu0 %v13494_v8  ;;  %v15323_v34 = vpop.f32.mrb[29].mxu0  ;;  %v13509_v8 = vld [vmem:[%s19512_s3 + $0x454] ss:$8 sps:$4 sm:$0xff]  }
 0x13e   :  { %1842 = vmatpush1.bf16.msra.mxu0 %v13492_v27  ;;  %v15333_v7 = vpop.f32.mrb[30].mxu0  ;;  %v13498_v27 = vld [vmem:[%s19512_s3 + $0x420] ss:$8 sps:$4 sm:$0xff]  }
 0x13f   :  { %1843 = vmatprep.subr.bf16.mxu0 %v13497_v28  ;;  %v15335_v14 = vpop.f32.mrb[31].mxu0  ;;  %v13501_v28 = vld [vmem:[%s19512_s3 + $0x430] ss:$8 sps:$4 sm:$0xff]  }
 0x142   :  { %1844 = vmatpush1.bf16.msra.mxu0 %v13495_v45  ;;  %v13504_v45 = vld [vmem:[%s19512_s3 + $0x440] ss:$8 sps:$4 sm:$0xff]  }
 0x143   :  { %1845 = vmatprep.subr.bf16.mxu0 %v13500_v15 }
 0x146   :  { %1846 = vmatpush1.bf16.msra.mxu0 %v13498_v27 }
 0x147   :  { %1847 = vmatprep.subr.bf16.mxu0 %v13503_v44  ;;  %v13507_v44 = vld [vmem:[%s19512_s3 + $0x450] ss:$8 sps:$4 sm:$0xff]  }
 0x14a   :  { %1848 = vmatpush1.bf16.msra.mxu0 %v13501_v28  ;;  %v15357_v15 = vpop.f32.mrb[32].mxu0  ;;  %v13512_v28 = vld [vmem:[%s19512_s3 + $0x464] ss:$8 sps:$4 sm:$0xff]  }
 0x14b   :  { %1870 = vmatprep.subr.bf16.mxu0 %v13506_v22  ;;  %v15359_v27 = vpop.f32.mrb[33].mxu0 }
 0x14d   :  { %1850 = vmatmul.mubr.bf16.vlgmr.msra.gmra.mrb[40].mxu0 %v1317_v4  ;;  %v13515_v4 = vld [vmem:[%s19512_s3 + $0x474] ss:$8 sps:$4 sm:$0xff]  }
 0x14e   :  { %1871 = vmatpush1.bf16.msra.mxu0 %v13504_v45  ;;  %1859 = vmatprep.mubr.bf16.mxu0 %v1323_v25  ;;  %v15370_v37 = vpop.f32.mrb[34].mxu0  ;;  %v14519_v45 = vmov 0  }
 0x14f   :  { %1872 = vmatprep.subr.bf16.mxu0 %v13509_v8  ;;  %v15374_v43 = vpop.f32.mrb[35].mxu0  ;;  %v13513_v8 = vld [vmem:[%s19512_s3 + $0x470] ss:$8 sps:$4 sm:$0xff]  }
 0x150   :  { %v3067_v40 = vpack.c.bf16 %v15374_v43, %v15359_v27 }
 0x152   :  { %1873 = vmatpush1.bf16.msra.mxu0 %v13507_v44  ;;  %v15384_v25 = vpop.f32.mrb[36].mxu0  ;;  %v13518_v44 = vld [vmem:[%s19512_s3 + $0x4] ss:$8 sps:$4 sm:$0xff]  }
 0x153   :  { %1874 = vmatprep.subr.bf16.mxu0 %v13512_v28  ;;  %v15396_v22 = vpop.f32.mrb[37].mxu0 }
 0x155   :  { %1860 = vmatmul.mubr.bf16.gmra.mrb[44].mxu0 %v1322_v21 }
 0x156   :  { %1875 = vmatpush1.bf16.msra.mxu0 %v13510_v46  ;;  %1902 = vmatprep.mubr.bf16.mxu0 %v14519_v45  ;;  %v15398_v28 = vpop.f32.mrb[38].mxu0 }
 0x157   :  { %1876 = vmatprep.subr.bf16.mxu0 %v13515_v4 }
 0x158   :  { %27 = vsyncpa [#allocation3], 0  ;;  %v15402_v20 = vpop.f32.mrb[39].mxu0  ;;  %v13516_v21 = vld [vmem:[%s19512_s3] ss:$8 sps:$4 sm:$0xff]   ;;  %s19523_s24 = sld [smem:[#allocation33_spill]] }
 0x159   :  { %v3072_v46 = vpack.c.bf16 %v15402_v20, %v15396_v22  ;;  %v13521_v4 = vld [vmem:[%s19512_s3 + $0x14] ss:$8 sps:$4 sm:$0xff]   ;;  %v13522_v3 = vld [vmem:[%s19512_s3 + $0x20] ss:$8 sps:$4 sm:$0xff]   ;;  %v13525_v33 = vld [vmem:[%s19512_s3 + $0x30] ss:$8 sps:$4 sm:$0xff]   ;;  %v19520_v22 = vpack.c.bf16 %v15398_v28, %v15384_v25  ;;  %v3682_v25 = vlaneseq }
 0x15a   :  { %1877 = vmatpush1.bf16.msra.mxu0 %v13513_v8  ;;  %v13519_v8 = vld [vmem:[%s19512_s3 + $0x10] ss:$8 sps:$4 sm:$0xff]   ;;  %v13527_v32 = vld [vmem:[%s19512_s3 + $0x34] ss:$8 sps:$4 sm:$0xff]   ;;  %v13528_v38 = vld [vmem:[%s19512_s3 + $0x40] ss:$8 sps:$4 sm:$0xff]  }
 0x15b   :  { %2289 = vmatprep.subr.bf16.mxu0 %v13518_v44  ;;  %v13524_v44 = vld [vmem:[%s19512_s3 + $0x24] ss:$8 sps:$4 sm:$0xff]   ;;  %v13533_v54 = vld [vmem:[%s19512_s3 + $0x54] ss:$8 sps:$4 sm:$0xff]   ;;  %v13531_v59 = vld [vmem:[%s19512_s3 + $0x50] ss:$8 sps:$4 sm:$0xff]  }
 0x15c   :  { %v13534_v39 = vld [vmem:[%s19512_s3 + $0x60] ss:$8 sps:$4 sm:$0xff]   ;;  %v13575_v57 = vld [vmem:[%s19512_s3 + $0x134] ss:$8 sps:$4 sm:$0xff]   ;;  %v13578_v2 = vld [vmem:[%s19512_s3 + $0x144] ss:$8 sps:$4 sm:$0xff]  }
 0x15d   :  { %10794 = vmatmul.mubr.msk.bf16.vlgmr.msra.gmra.mrb[40].mxu0 %vm117_vm0, %v1319_v36  ;;  %v13530_v36 = vld [vmem:[%s19512_s3 + $0x44] ss:$8 sps:$4 sm:$0xff]   ;;  %v13570_v53 = vld [vmem:[%s19512_s3 + $0x120] ss:$8 sps:$4 sm:$0xff]   ;;  %v13581_v48 = vld [vmem:[%s19512_s3 + $0x154] ss:$8 sps:$4 sm:$0xff]  }
 0x15e   :  { %2290 = vmatpush1.bf16.msra.mxu0 %v13516_v21  ;;  %1912 = vmatprep.mubr.bf16.mxu0 %v14519_v45  ;;  %v13542_v21 = vld [vmem:[%s19512_s3 + $0x84] ss:$8 sps:$4 sm:$0xff]   ;;  %v13576_v1 = vld [vmem:[%s19512_s3 + $0x140] ss:$8 sps:$4 sm:$0xff]   ;;  %v13579_v51 = vld [vmem:[%s19512_s3 + $0x150] ss:$8 sps:$4 sm:$0xff]  }
 0x15f   :  { %2291 = vmatprep.subr.bf16.mxu0 %v13521_v4  ;;  %v13540_v4 = vld [vmem:[%s19512_s3 + $0x80] ss:$8 sps:$4 sm:$0xff]   ;;  %v13585_v11 = vld [vmem:[%s19512_s3 + $0x170] ss:$8 sps:$4 sm:$0xff]   ;;  %v13635_v17 = vld [vmem:[%s19512_s3 + $0x4b4] ss:$8 sps:$4 sm:$0xff]  }
 0x160   :  { %v13582_v6 = vld [vmem:[%s19512_s3 + $0x160] ss:$8 sps:$4 sm:$0xff]   ;;  %v13641_v24 = vld [vmem:[%s19512_s3 + $0x4d4] ss:$8 sps:$4 sm:$0xff]   ;;  %v13795_v27 = vld [vmem:[%s19512_s3 + $0x810] ss:$8 sps:$4 sm:$0xff]  }
 0x161   :  { %v13618_v47 = vld [vmem:[%s19512_s3 + $0x220] ss:$8 sps:$4 sm:$0xff]   ;;  %v13797_v43 = vld [vmem:[%s19512_s3 + $0x814] ss:$8 sps:$4 sm:$0xff]   ;;  %v13837_v20 = vld [vmem:[%s19512_s3 + $0x8f0] ss:$8 sps:$4 sm:$0xff]  }
 0x162   :  { %2292 = vmatpush1.bf16.msra.mxu0 %v13519_v8  ;;  %v13545_v8 = vld [vmem:[%s19512_s3 + $0x94] ss:$8 sps:$4 sm:$0xff]   ;;  %v13624_v55 = vld [vmem:[%s19512_s3 + $0x480] ss:$8 sps:$4 sm:$0xff]   ;;  %v16222_v28 = vshrl.u32 %v3682_v25, 7  ;;  %s19525_s25 = sld [smem:[#allocation34_spill]] }
 0x163   :  { %2293 = vmatprep.subr.bf16.mxu0 %v13524_v44  ;;  %v13543_v44 = vld [vmem:[%s19512_s3 + $0x90] ss:$8 sps:$4 sm:$0xff]   ;;  %v13630_v16 = vld [vmem:[%s19512_s3 + $0x4a0] ss:$8 sps:$4 sm:$0xff]   ;;  %vm3726_vm9 = vcmask 261120   ;;  %s19527_s29 = sld [smem:[#allocation35_spill]] }
 0x164   :  { %v13636_v23 = vld [vmem:[%s19512_s3 + $0x4c0] ss:$8 sps:$4 sm:$0xff]   ;;  %19521 = vst [vmem:[#allocation5_spill] sm:$0xff] %v16222_v28  ;;  %s19528_s1 = sld [smem:[#allocation36_spill]]  ;;  %vm5342_vm14 = vcmask 130048   ;;  %s14522_s0 = smov [#allocation2]  }
 0x165   :  { %10795 = vmatmul.mubr.msk.bf16.gmra.mrb[44].mxu0 %vm117_vm0, %v1324_v41  ;;  %v13539_v41 = vld [vmem:[%s19512_s3 + $0x74] ss:$8 sps:$4 sm:$0xff]  }
 0x166   :  { %2294 = vmatpush1.bf16.msra.mxu0 %v13522_v3  ;;  %2321 = vmatprep.mubr.bf16.mxu0 %v1234_v61  ;;  %v13536_v61 = vld [vmem:[%s19512_s3 + $0x64] ss:$8 sps:$4 sm:$0xff]   ;;  %v13537_v3 = vld [vmem:[%s19512_s3 + $0x70] ss:$8 sps:$4 sm:$0xff]  }
 0x167   :  { %2295 = vmatprep.subr.bf16.mxu0 %v13527_v32  ;;  %v13548_v32 = vld [vmem:[%s19512_s3 + $0xa4] ss:$8 sps:$4 sm:$0xff]  }
 0x169   :  { %v13860_v25 = vld [vmem:[%s19527_s29 + $0x164] ss:$8 sps:$4 sm:$0xff]  }
 0x16a   :  { %2296 = vmatpush1.bf16.msra.mxu0 %v13525_v33  ;;  %v13546_v33 = vld [vmem:[%s19512_s3 + $0xa0] ss:$8 sps:$4 sm:$0xff]  }
 0x16b   :  { %2297 = vmatprep.subr.bf16.mxu0 %v13530_v36  ;;  %v13551_v36 = vld [vmem:[%s19512_s3 + $0xb4] ss:$8 sps:$4 sm:$0xff]  }
 0x16e   :  { %2298 = vmatpush1.bf16.msra.mxu0 %v13528_v38  ;;  %v13549_v38 = vld [vmem:[%s19512_s3 + $0xb0] ss:$8 sps:$4 sm:$0xff]  }
 0x16f   :  { %2299 = vmatprep.subr.bf16.mxu0 %v13533_v54  ;;  %v13554_v54 = vld [vmem:[%s19512_s3 + $0xc4] ss:$8 sps:$4 sm:$0xff]  }
 0x172   :  { %2300 = vmatpush1.bf16.msra.mxu0 %v13531_v59  ;;  %v13552_v59 = vld [vmem:[%s19512_s3 + $0xc0] ss:$8 sps:$4 sm:$0xff]  }
 0x173   :  { %2301 = vmatprep.subr.bf16.mxu0 %v13536_v61  ;;  %v13557_v61 = vld [vmem:[%s19512_s3 + $0xd4] ss:$8 sps:$4 sm:$0xff]  }
 0x176   :  { %2302 = vmatpush1.bf16.msra.mxu0 %v13534_v39  ;;  %v13555_v39 = vld [vmem:[%s19512_s3 + $0xd0] ss:$8 sps:$4 sm:$0xff]  }
 0x177   :  { %2303 = vmatprep.subr.bf16.mxu0 %v13539_v41  ;;  %v13560_v41 = vld [vmem:[%s19512_s3 + $0xe4] ss:$8 sps:$4 sm:$0xff]  }
 0x17a   :  { %2304 = vmatpush1.bf16.msra.mxu0 %v13537_v3  ;;  %v13558_v3 = vld [vmem:[%s19512_s3 + $0xe0] ss:$8 sps:$4 sm:$0xff]  }
 0x17b   :  { %2305 = vmatprep.subr.bf16.mxu0 %v13542_v21  ;;  %v13563_v21 = vld [vmem:[%s19512_s3 + $0xf4] ss:$8 sps:$4 sm:$0xff]  }
 0x17e   :  { %2306 = vmatpush1.bf16.msra.mxu0 %v13540_v4  ;;  %v13561_v4 = vld [vmem:[%s19512_s3 + $0xf0] ss:$8 sps:$4 sm:$0xff]  }
 0x17f   :  { %2307 = vmatprep.subr.bf16.mxu0 %v13545_v8  ;;  %v13566_v8 = vld [vmem:[%s19512_s3 + $0x104] ss:$8 sps:$4 sm:$0xff]  }
 0x182   :  { %2308 = vmatpush1.bf16.msra.mxu0 %v13543_v44  ;;  %v13564_v44 = vld [vmem:[%s19512_s3 + $0x100] ss:$8 sps:$4 sm:$0xff]  }
 0x183   :  { %2309 = vmatprep.subr.bf16.mxu0 %v13548_v32  ;;  %v13569_v32 = vld [vmem:[%s19512_s3 + $0x114] ss:$8 sps:$4 sm:$0xff]  }
 0x186   :  { %2310 = vmatpush1.bf16.msra.mxu0 %v13546_v33  ;;  %v13567_v33 = vld [vmem:[%s19512_s3 + $0x110] ss:$8 sps:$4 sm:$0xff]  }
 0x187   :  { %2311 = vmatprep.subr.bf16.mxu0 %v13551_v36  ;;  %v13572_v36 = vld [vmem:[%s19512_s3 + $0x124] ss:$8 sps:$4 sm:$0xff]  }
 0x18a   :  { %2312 = vmatpush1.bf16.msra.mxu0 %v13549_v38  ;;  %v13588_v38 = vld [vmem:[%s19512_s3 + $0x180] ss:$8 sps:$4 sm:$0xff]  }
 0x18b   :  { %2313 = vmatprep.subr.bf16.mxu0 %v13554_v54  ;;  %v13593_v54 = vld [vmem:[%s19512_s3 + $0x194] ss:$8 sps:$4 sm:$0xff]  }
 0x18e   :  { %2314 = vmatpush1.bf16.msra.mxu0 %v13552_v59  ;;  %v13591_v59 = vld [vmem:[%s19512_s3 + $0x190] ss:$8 sps:$4 sm:$0xff]  }
 0x18f   :  { %2315 = vmatprep.subr.bf16.mxu0 %v13557_v61  ;;  %v13596_v61 = vld [vmem:[%s19512_s3 + $0x1a4] ss:$8 sps:$4 sm:$0xff]  }
 0x192   :  { %2316 = vmatpush1.bf16.msra.mxu0 %v13555_v39  ;;  %v13594_v39 = vld [vmem:[%s19512_s3 + $0x1a0] ss:$8 sps:$4 sm:$0xff]  }
 0x193   :  { %2317 = vmatprep.subr.bf16.mxu0 %v13560_v41  ;;  %v13599_v41 = vld [vmem:[%s19512_s3 + $0x1b4] ss:$8 sps:$4 sm:$0xff]  }
 0x196   :  { %2318 = vmatpush1.bf16.msra.mxu0 %v13558_v3  ;;  %v13597_v3 = vld [vmem:[%s19512_s3 + $0x1b0] ss:$8 sps:$4 sm:$0xff]  }
 0x197   :  { %2319 = vmatprep.subr.bf16.mxu0 %v13563_v21  ;;  %v13602_v21 = vld [vmem:[%s19512_s3 + $0x1c4] ss:$8 sps:$4 sm:$0xff]  }
 0x19a   :  { %2320 = vmatpush1.bf16.msra.mxu0 %v13561_v4  ;;  %v13600_v4 = vld [vmem:[%s19512_s3 + $0x1c0] ss:$8 sps:$4 sm:$0xff]  }
 0x19b   :  { %2342 = vmatprep.subr.bf16.mxu0 %v13566_v8  ;;  %v13605_v8 = vld [vmem:[%s19512_s3 + $0x1d4] ss:$8 sps:$4 sm:$0xff]  }
 0x19d   :  { %2322 = vmatmul.mubr.bf16.vlgmr.msra.gmra.mrb[40].mxu0 %v1233_v58  ;;  %v13573_v58 = vld [vmem:[%s19512_s3 + $0x130] ss:$8 sps:$4 sm:$0xff]  }
 0x19e   :  { %2331 = vmatprep.mubr.bf16.mxu0 %v1239_v13  ;;  %2343 = vmatpush1.bf16.msra.mxu0 %v13564_v44  ;;  %v13590_v13 = vld [vmem:[%s19512_s3 + $0x184] ss:$8 sps:$4 sm:$0xff]   ;;  %v13603_v44 = vld [vmem:[%s19512_s3 + $0x1d0] ss:$8 sps:$4 sm:$0xff]  }
 0x19f   :  { %2344 = vmatprep.subr.bf16.mxu0 %v13569_v32  ;;  %v13608_v32 = vld [vmem:[%s19512_s3 + $0x1e4] ss:$8 sps:$4 sm:$0xff]  }
 0x1a2   :  { %2345 = vmatpush1.bf16.msra.mxu0 %v13567_v33  ;;  %v13606_v33 = vld [vmem:[%s19512_s3 + $0x1e0] ss:$8 sps:$4 sm:$0xff]  }
 0x1a3   :  { %2346 = vmatprep.subr.bf16.mxu0 %v13572_v36  ;;  %v13611_v36 = vld [vmem:[%s19512_s3 + $0x1f4] ss:$8 sps:$4 sm:$0xff]  }
 0x1a5   :  { %2332 = vmatmul.mubr.bf16.gmra.mrb[44].mxu0 %v1238_v10  ;;  %v13587_v10 = vld [vmem:[%s19512_s3 + $0x174] ss:$8 sps:$4 sm:$0xff]  }
 0x1a6   :  { %2347 = vmatpush1.bf16.msra.mxu0 %v13570_v53  ;;  %2374 = vmatprep.mubr.bf16.mxu0 %v1236_v52  ;;  %v13584_v52 = vld [vmem:[%s19512_s3 + $0x164] ss:$8 sps:$4 sm:$0xff]   ;;  %v13609_v53 = vld [vmem:[%s19512_s3 + $0x1f0] ss:$8 sps:$4 sm:$0xff]  }
 0x1a7   :  { %2348 = vmatprep.subr.bf16.mxu0 %v13575_v57  ;;  %v13614_v57 = vld [vmem:[%s19512_s3 + $0x204] ss:$8 sps:$4 sm:$0xff]  }
 0x1aa   :  { %2349 = vmatpush1.bf16.msra.mxu0 %v13573_v58  ;;  %v13612_v58 = vld [vmem:[%s19512_s3 + $0x200] ss:$8 sps:$4 sm:$0xff]  }
 0x1ab   :  { %2350 = vmatprep.subr.bf16.mxu0 %v13578_v2  ;;  %v13617_v2 = vld [vmem:[%s19512_s3 + $0x214] ss:$8 sps:$4 sm:$0xff]  }
 0x1ae   :  { %2351 = vmatpush1.bf16.msra.mxu0 %v13576_v1  ;;  %v13615_v1 = vld [vmem:[%s19512_s3 + $0x210] ss:$8 sps:$4 sm:$0xff]  }
 0x1af   :  { %2352 = vmatprep.subr.bf16.mxu0 %v13581_v48  ;;  %v13620_v48 = vld [vmem:[%s19512_s3 + $0x224] ss:$8 sps:$4 sm:$0xff]  }
 0x1b2   :  { %2353 = vmatpush1.bf16.msra.mxu0 %v13579_v51  ;;  %v15640_v51 = vpop.f32.mrb[20].mxu1 }
 0x1b3   :  { %2354 = vmatprep.subr.bf16.mxu0 %v13584_v52  ;;  %v15645_v49 = vpop.f32.mrb[21].mxu1 }
 0x1b4   :  { %v15650_v56 = vpop.f32.mrb[22].mxu1 }
 0x1b5   :  { %v2450_v63 = vpack.c.bf16 %v15650_v56, %v15640_v51  ;;  %v13726_v51 = vld [vmem:[%s19512_s3 + $0x6a0] ss:$8 sps:$4 sm:$0xff]   ;;  %v13731_v56 = vld [vmem:[%s19512_s3 + $0x6b4] ss:$8 sps:$4 sm:$0xff]  }
 0x1b6   :  { %2355 = vmatpush1.bf16.msra.mxu0 %v13582_v6  ;;  %v13621_v6 = vld [vmem:[%s19512_s3 + $0x230] ss:$8 sps:$4 sm:$0xff]  }
 0x1b7   :  { %2356 = vmatprep.subr.bf16.mxu0 %v13587_v10  ;;  %v13626_v10 = vld [vmem:[%s19512_s3 + $0x484] ss:$8 sps:$4 sm:$0xff]  }
 0x1ba   :  { %2357 = vmatpush1.bf16.msra.mxu0 %v13585_v11 }
 0x1bb   :  { %2358 = vmatprep.subr.bf16.mxu0 %v13590_v13 }
 0x1be   :  { %2359 = vmatpush1.bf16.msra.mxu0 %v13588_v38 }
 0x1bf   :  { %2360 = vmatprep.subr.bf16.mxu0 %v13593_v54 }
 0x1c2   :  { %2361 = vmatpush1.bf16.msra.mxu0 %v13591_v59 }
 0x1c3   :  { %2362 = vmatprep.subr.bf16.mxu0 %v13596_v61  ;;  %v13627_v61 = vld [vmem:[%s19512_s3 + $0x490] ss:$8 sps:$4 sm:$0xff]  }
 0x1c6   :  { %2363 = vmatpush1.bf16.msra.mxu0 %v13594_v39  ;;  %v13632_v39 = vld [vmem:[%s19512_s3 + $0x4a4] ss:$8 sps:$4 sm:$0xff]  }
 0x1c7   :  { %2364 = vmatprep.subr.bf16.mxu0 %v13599_v41  ;;  %v13633_v41 = vld [vmem:[%s19512_s3 + $0x4b0] ss:$8 sps:$4 sm:$0xff]  }
 0x1ca   :  { %2365 = vmatpush1.bf16.msra.mxu0 %v13597_v3  ;;  %v13638_v3 = vld [vmem:[%s19512_s3 + $0x4c4] ss:$8 sps:$4 sm:$0xff]  }
 0x1cb   :  { %2366 = vmatprep.subr.bf16.mxu0 %v13602_v21  ;;  %v13647_v21 = vld [vmem:[%s19512_s3 + $0x4f4] ss:$8 sps:$4 sm:$0xff]  }
 0x1ce   :  { %2367 = vmatpush1.bf16.msra.mxu0 %v13600_v4  ;;  %v13645_v4 = vld [vmem:[%s19512_s3 + $0x4f0] ss:$8 sps:$4 sm:$0xff]  }
 0x1cf   :  { %2368 = vmatprep.subr.bf16.mxu0 %v13605_v8  ;;  %v13650_v8 = vld [vmem:[%s19512_s3 + $0x504] ss:$8 sps:$4 sm:$0xff]  }
 0x1d2   :  { %2369 = vmatpush1.bf16.msra.mxu0 %v13603_v44  ;;  %v13648_v44 = vld [vmem:[%s19512_s3 + $0x500] ss:$8 sps:$4 sm:$0xff]  }
 0x1d3   :  { %2370 = vmatprep.subr.bf16.mxu0 %v13608_v32  ;;  %v13653_v32 = vld [vmem:[%s19512_s3 + $0x514] ss:$8 sps:$4 sm:$0xff]  }
 0x1d6   :  { %2371 = vmatpush1.bf16.msra.mxu0 %v13606_v33  ;;  %v13651_v33 = vld [vmem:[%s19512_s3 + $0x510] ss:$8 sps:$4 sm:$0xff]  }
 0x1d7   :  { %2372 = vmatprep.subr.bf16.mxu0 %v13611_v36  ;;  %v13656_v36 = vld [vmem:[%s19512_s3 + $0x524] ss:$8 sps:$4 sm:$0xff]  }
 0x1da   :  { %2373 = vmatpush1.bf16.msra.mxu0 %v13609_v53  ;;  %v13654_v53 = vld [vmem:[%s19512_s3 + $0x520] ss:$8 sps:$4 sm:$0xff]  }
 0x1db   :  { %2395 = vmatprep.subr.bf16.mxu0 %v13614_v57  ;;  %v13659_v57 = vld [vmem:[%s19512_s3 + $0x534] ss:$8 sps:$4 sm:$0xff]  }
 0x1dd   :  { %2375 = vmatmul.mubr.bf16.vlgmr.msra.gmra.mrb[40].mxu0 %v1235_v50  ;;  %v13623_v50 = vld [vmem:[%s19512_s3 + $0x234] ss:$8 sps:$4 sm:$0xff]  }
 0x1de   :  { %2384 = vmatprep.mubr.bf16.mxu0 %v1241_v0  ;;  %2396 = vmatpush1.bf16.msra.mxu0 %v13612_v58  ;;  %v15654_v0 = vpop.f32.mrb[23].mxu1  ;;  %v13657_v58 = vld [vmem:[%s19512_s3 + $0x530] ss:$8 sps:$4 sm:$0xff]  }
 0x1df   :  { %2397 = vmatprep.subr.bf16.mxu0 %v13617_v2  ;;  %v2451_v52 = vpack.c.bf16 %v15654_v0, %v15645_v49  ;;  %v15668_v11 = vpop.f32.mrb[24].mxu1  ;;  %v13662_v2 = vld [vmem:[%s19512_s3 + $0x544] ss:$8 sps:$4 sm:$0xff]   ;;  %v13687_v49 = vld [vmem:[%s19512_s3 + $0x5d0] ss:$8 sps:$4 sm:$0xff]  }
 0x1e0   :  { %v15673_v60 = vpop.f32.mrb[25].mxu1 }
 0x1e1   :  { %v15678_v13 = vpop.f32.mrb[26].mxu1 }
 0x1e2   :  { %2398 = vmatpush1.bf16.msra.mxu0 %v13615_v1  ;;  %v2455_v38 = vpack.c.bf16 %v15678_v13, %v15668_v11  ;;  %v15682_v54 = vpop.f32.mrb[27].mxu1  ;;  %v13660_v1 = vld [vmem:[%s19512_s3 + $0x540] ss:$8 sps:$4 sm:$0xff]   ;;  %v13737_v11 = vld [vmem:[%s19512_s3 + $0x6d4] ss:$8 sps:$4 sm:$0xff]   ;;  %v19517_v13 = vpack.c.bf16 %v15321_v31, %v15323_v34  ;;  %v19518_v34 = vpack.c.bf16 %v15333_v7, %v15335_v14 }
 0x1e3   :  { %2399 = vmatprep.subr.bf16.mxu0 %v13620_v48  ;;  %v2456_v59 = vpack.c.bf16 %v15682_v54, %v15673_v60  ;;  %v13665_v48 = vld [vmem:[%s19512_s3 + $0x554] ss:$8 sps:$4 sm:$0xff]   ;;  %v13734_v60 = vld [vmem:[%s19512_s3 + $0x6c4] ss:$8 sps:$4 sm:$0xff]   ;;  %v13732_v54 = vld [vmem:[%s19512_s3 + $0x6c0] ss:$8 sps:$4 sm:$0xff]  }
 0x1e4   :  { %v13743_v31 = vld [vmem:[%s19512_s3 + $0x6f4] ss:$8 sps:$4 sm:$0xff]   ;;  %v13744_v14 = vld [vmem:[%s19512_s3 + $0x700] ss:$8 sps:$4 sm:$0xff]  }
 0x1e5   :  { %2385 = vmatmul.mubr.bf16.gmra.mrb[44].mxu0 %v1240_v62  ;;  %v13629_v62 = vld [vmem:[%s19512_s3 + $0x494] ss:$8 sps:$4 sm:$0xff]  }
 0x1e6   :  { %2400 = vmatpush1.bf16.msra.mxu0 %v13618_v47  ;;  %2427 = vmatprep.mubr.bf16.mxu0 %v14519_v45  ;;  %v13663_v47 = vld [vmem:[%s19512_s3 + $0x550] ss:$8 sps:$4 sm:$0xff]  }
 0x1e7   :  { %2401 = vmatprep.subr.bf16.mxu0 %v13623_v50  ;;  %v13668_v50 = vld [vmem:[%s19512_s3 + $0x564] ss:$8 sps:$4 sm:$0xff]  }
 0x1ea   :  { %2402 = vmatpush1.bf16.msra.mxu0 %v13621_v6  ;;  %v13666_v6 = vld [vmem:[%s19512_s3 + $0x560] ss:$8 sps:$4 sm:$0xff]  }
 0x1eb   :  { %2897 = vmatprep.subr.bf16.mxu0 %v13626_v10  ;;  %v13671_v10 = vld [vmem:[%s19512_s3 + $0x574] ss:$8 sps:$4 sm:$0xff]  }
 0x1ed   :  { %10868 = vmatmul.mubr.msk.bf16.vlgmr.msra.gmra.mrb[40].mxu0 %vm117_vm0, %v1237_v18  ;;  %v19513_v18 = vpack.c.bf16 %v15287_v42, %v15275_v30  ;;  %v13644_v30 = vld [vmem:[%s19512_s3 + $0x4e4] ss:$8 sps:$4 sm:$0xff]   ;;  %v13642_v42 = vld [vmem:[%s19512_s3 + $0x4e0] ss:$8 sps:$4 sm:$0xff]  }
 0x1ee   :  { %2898 = vmatpush1.bf16.msra.mxu0 %v13624_v55  ;;  %2437 = vmatprep.mubr.bf16.mxu0 %v14519_v45  ;;  %v13669_v55 = vld [vmem:[%s19512_s3 + $0x570] ss:$8 sps:$4 sm:$0xff]  }
 0x1ef   :  { %2899 = vmatprep.subr.bf16.mxu0 %v13629_v62  ;;  %v13674_v62 = vld [vmem:[%s19512_s3 + $0x584] ss:$8 sps:$4 sm:$0xff]  }
 0x1f2   :  { %2900 = vmatpush1.bf16.msra.mxu0 %v13627_v61  ;;  %v13672_v61 = vld [vmem:[%s19512_s3 + $0x580] ss:$8 sps:$4 sm:$0xff]  }
 0x1f3   :  { %2901 = vmatprep.subr.bf16.mxu0 %v13632_v39  ;;  %v13677_v39 = vld [vmem:[%s19512_s3 + $0x594] ss:$8 sps:$4 sm:$0xff]  }
 0x1f5   :  { %10869 = vmatmul.mubr.msk.bf16.gmra.mrb[44].mxu0 %vm117_vm0, %v1242_v26  ;;  %v13639_v26 = vld [vmem:[%s19512_s3 + $0x4d0] ss:$8 sps:$4 sm:$0xff]  }
 0x1f6   :  { %2902 = vmatpush1.bf16.msra.mxu0 %v13630_v16  ;;  %2929 = vmatprep.mubr.bf16.mxu0 %v19513_v18  ;;  %v19514_v16 = vpack.c.bf16 %v15283_v35, %v15273_v29  ;;  %v13675_v18 = vld [vmem:[%s19512_s3 + $0x590] ss:$8 sps:$4 sm:$0xff]   ;;  %v13678_v29 = vld [vmem:[%s19512_s3 + $0x5a0] ss:$8 sps:$4 sm:$0xff]  }
 0x1f7   :  { %2903 = vmatprep.subr.bf16.mxu0 %v13635_v17  ;;  %v19515_v17 = vpack.c.bf16 %v15311_v19, %v15299_v12  ;;  %v13683_v12 = vld [vmem:[%s19512_s3 + $0x5b4] ss:$8 sps:$4 sm:$0xff]  }
 0x1fa   :  { %2904 = vmatpush1.bf16.msra.mxu0 %v13633_v41  ;;  %v13680_v41 = vld [vmem:[%s19512_s3 + $0x5a4] ss:$8 sps:$4 sm:$0xff]  }
 0x1fb   :  { %2905 = vmatprep.subr.bf16.mxu0 %v13638_v3  ;;  %v15806_v3 = vpop.f32.mrb[28].mxu1 }
 0x1fc   :  { %v15811_v35 = vpop.f32.mrb[29].mxu1 }
 0x1fd   :  { %v15816_v19 = vpop.f32.mrb[30].mxu1 }
 0x1fe   :  { %2906 = vmatpush1.bf16.msra.mxu0 %v13636_v23  ;;  %v3064_v23 = vpack.c.bf16 %v15816_v19, %v15806_v3  ;;  %v13786_v3 = vld [vmem:[%s19512_s3 + $0x7e0] ss:$8 sps:$4 sm:$0xff]   ;;  %v13791_v19 = vld [vmem:[%s19512_s3 + $0x7f4] ss:$8 sps:$4 sm:$0xff]  }
 0x1ff   :  { %2907 = vmatprep.subr.bf16.mxu0 %v13641_v24  ;;  %v15820_v24 = vpop.f32.mrb[31].mxu1 }
 0x202   :  { %2908 = vmatpush1.bf16.msra.mxu0 %v13639_v26  ;;  %v19516_v26 = vpack.c.bf16 %v15307_v9, %v15297_v5  ;;  %v13684_v5 = vld [vmem:[%s19512_s3 + $0x5c0] ss:$8 sps:$4 sm:$0xff]   ;;  %v13689_v9 = vld [vmem:[%s19512_s3 + $0x5d4] ss:$8 sps:$4 sm:$0xff]  }
 0x203   :  { %2909 = vmatprep.subr.bf16.mxu0 %v13644_v30  ;;  %v3065_v30 = vpack.c.bf16 %v15820_v24, %v15811_v35  ;;  %v13749_v35 = vld [vmem:[%s19512_s3 + $0x714] ss:$8 sps:$4 sm:$0xff]  }
 0x206   :  { %2910 = vmatpush1.bf16.msra.mxu0 %v13642_v42  ;;  %v13681_v42 = vld [vmem:[%s19512_s3 + $0x5b0] ss:$8 sps:$4 sm:$0xff]  }
 0x207   :  { %2911 = vmatprep.subr.bf16.mxu0 %v13647_v21  ;;  %v13686_v21 = vld [vmem:[%s19512_s3 + $0x5c4] ss:$8 sps:$4 sm:$0xff]  }
 0x20a   :  { %2912 = vmatpush1.bf16.msra.mxu0 %v13645_v4  ;;  %v15842_v4 = vpop.f32.mrb[32].mxu1 }
 0x20b   :  { %2913 = vmatprep.subr.bf16.mxu0 %v13650_v8  ;;  %v15847_v0 = vpop.f32.mrb[33].mxu1 }
 0x20c   :  { %v15852_v8 = vpop.f32.mrb[34].mxu1 }
 0x20e   :  { %2914 = vmatpush1.bf16.msra.mxu0 %v13648_v44  ;;  %v3069_v44 = vpack.c.bf16 %v15852_v8, %v15842_v4  ;;  %v13792_v4 = vld [vmem:[%s19512_s3 + $0x800] ss:$8 sps:$4 sm:$0xff]  }
 0x20f   :  { %2915 = vmatprep.subr.bf16.mxu0 %v13653_v32  ;;  %v15856_v32 = vpop.f32.mrb[35].mxu1  ;;  %v13798_v8 = vld [vmem:[%s19512_s3 + $0x820] ss:$8 sps:$4 sm:$0xff]  }
 0x212   :  { %2916 = vmatpush1.bf16.msra.mxu0 %v13651_v33  ;;  %v3070_v33 = vpack.c.bf16 %v15856_v32, %v15847_v0  ;;  %v13794_v0 = vld [vmem:[%s19512_s3 + $0x804] ss:$8 sps:$4 sm:$0xff]   ;;  %v13801_v32 = vld [vmem:[%s19512_s3 + $0x830] ss:$8 sps:$4 sm:$0xff]  }
 0x213   :  { %2917 = vmatprep.subr.bf16.mxu0 %v13656_v36  ;;  %v13690_v36 = vld [vmem:[%s19512_s3 + $0x5e0] ss:$8 sps:$4 sm:$0xff]  }
 0x216   :  { %2918 = vmatpush1.bf16.msra.mxu0 %v13654_v53  ;;  %v13695_v53 = vld [vmem:[%s19512_s3 + $0x5f4] ss:$8 sps:$4 sm:$0xff]  }
 0x217   :  { %2919 = vmatprep.subr.bf16.mxu0 %v13659_v57  ;;  %v13693_v57 = vld [vmem:[%s19512_s3 + $0x5f0] ss:$8 sps:$4 sm:$0xff]  }
 0x21a   :  { %2920 = vmatpush1.bf16.msra.mxu0 %v13657_v58  ;;  %v13698_v58 = vld [vmem:[%s19512_s3 + $0x604] ss:$8 sps:$4 sm:$0xff]  }
 0x21b   :  { %2921 = vmatprep.subr.bf16.mxu0 %v13662_v2  ;;  %v13696_v2 = vld [vmem:[%s19512_s3 + $0x600] ss:$8 sps:$4 sm:$0xff]  }
 0x21e   :  { %2922 = vmatpush1.bf16.msra.mxu0 %v13660_v1  ;;  %v13701_v1 = vld [vmem:[%s19512_s3 + $0x614] ss:$8 sps:$4 sm:$0xff]  }
 0x21f   :  { %2923 = vmatprep.subr.bf16.mxu0 %v13665_v48  ;;  %v13699_v48 = vld [vmem:[%s19512_s3 + $0x610] ss:$8 sps:$4 sm:$0xff]  }
 0x222   :  { %2924 = vmatpush1.bf16.msra.mxu0 %v13663_v47  ;;  %v13704_v47 = vld [vmem:[%s19512_s3 + $0x624] ss:$8 sps:$4 sm:$0xff]  }
 0x223   :  { %2925 = vmatprep.subr.bf16.mxu0 %v13668_v50  ;;  %v13702_v50 = vld [vmem:[%s19512_s3 + $0x620] ss:$8 sps:$4 sm:$0xff]  }
 0x226   :  { %2926 = vmatpush1.bf16.msra.mxu0 %v13666_v6  ;;  %v13707_v6 = vld [vmem:[%s19512_s3 + $0x634] ss:$8 sps:$4 sm:$0xff]  }
 0x227   :  { %2927 = vmatprep.subr.bf16.mxu0 %v13671_v10  ;;  %v13705_v10 = vld [vmem:[%s19512_s3 + $0x630] ss:$8 sps:$4 sm:$0xff]  }
 0x22a   :  { %2928 = vmatpush1.bf16.msra.mxu0 %v13669_v55  ;;  %v13710_v55 = vld [vmem:[%s19512_s3 + $0x644] ss:$8 sps:$4 sm:$0xff]  }
 0x22b   :  { %2950 = vmatprep.subr.bf16.mxu0 %v13674_v62  ;;  %v13708_v62 = vld [vmem:[%s19512_s3 + $0x640] ss:$8 sps:$4 sm:$0xff]  }
 0x22d   :  { %2930 = vmatmul.mubr.bf16.vlgmr.msra.gmra.mrb[40].mxu0 %v19514_v16  ;;  %v13716_v16 = vld [vmem:[%s19512_s3 + $0x664] ss:$8 sps:$4 sm:$0xff]  }
 0x22e   :  { %2939 = vmatprep.mubr.bf16.mxu0 %v19515_v17  ;;  %2951 = vmatpush1.bf16.msra.mxu0 %v13672_v61  ;;  %v13713_v61 = vld [vmem:[%s19512_s3 + $0x654] ss:$8 sps:$4 sm:$0xff]   ;;  %v13714_v17 = vld [vmem:[%s19512_s3 + $0x660] ss:$8 sps:$4 sm:$0xff]  }
 0x22f   :  { %2952 = vmatprep.subr.bf16.mxu0 %v13677_v39  ;;  %v13711_v39 = vld [vmem:[%s19512_s3 + $0x650] ss:$8 sps:$4 sm:$0xff]  }
 0x232   :  { %2953 = vmatpush1.bf16.msra.mxu0 %v13675_v18  ;;  %v13719_v18 = vld [vmem:[%s19512_s3 + $0x674] ss:$8 sps:$4 sm:$0xff]  }
 0x233   :  { %2954 = vmatprep.subr.bf16.mxu0 %v13680_v41  ;;  %v13717_v41 = vld [vmem:[%s19512_s3 + $0x670] ss:$8 sps:$4 sm:$0xff]  }
 0x235   :  { %2940 = vmatmul.mubr.bf16.gmra.mrb[44].mxu0 %v19516_v26  ;;  %v13725_v26 = vld [vmem:[%s19512_s3 + $0x694] ss:$8 sps:$4 sm:$0xff]  }
 0x236   :  { %2955 = vmatpush1.bf16.msra.mxu0 %v13678_v29  ;;  %2982 = vmatprep.mubr.bf16.mxu0 %v2451_v52  ;;  %v13692_v52 = vld [vmem:[%s19512_s3 + $0x5e4] ss:$8 sps:$4 sm:$0xff]  }
 0x237   :  { %2956 = vmatprep.subr.bf16.mxu0 %v13683_v12  ;;  %v13722_v29 = vld [vmem:[%s19512_s3 + $0x684] ss:$8 sps:$4 sm:$0xff]   ;;  %v13720_v12 = vld [vmem:[%s19512_s3 + $0x680] ss:$8 sps:$4 sm:$0xff]  }
 0x23a   :  { %2957 = vmatpush1.bf16.msra.mxu0 %v13681_v42  ;;  %v13723_v42 = vld [vmem:[%s19512_s3 + $0x690] ss:$8 sps:$4 sm:$0xff]  }
 0x23b   :  { %2958 = vmatprep.subr.bf16.mxu0 %v13686_v21  ;;  %v13728_v21 = vld [vmem:[%s19512_s3 + $0x6a4] ss:$8 sps:$4 sm:$0xff]  }
 0x23e   :  { %2959 = vmatpush1.bf16.msra.mxu0 %v13684_v5  ;;  %v13738_v5 = vld [vmem:[%s19512_s3 + $0x6e0] ss:$8 sps:$4 sm:$0xff]  }
 0x23f   :  { %2960 = vmatprep.subr.bf16.mxu0 %v13689_v9  ;;  %v13741_v9 = vld [vmem:[%s19512_s3 + $0x6f0] ss:$8 sps:$4 sm:$0xff]  }
 0x242   :  { %2961 = vmatpush1.bf16.msra.mxu0 %v13687_v49  ;;  %v15987_v49 = vpop.f32.mrb[36].mxu1 }
 0x243   :  { %2962 = vmatprep.subr.bf16.mxu0 %v13692_v52  ;;  %v13746_v52 = vld [vmem:[%s19512_s3 + $0x704] ss:$8 sps:$4 sm:$0xff]  }
 0x246   :  { %2963 = vmatpush1.bf16.msra.mxu0 %v13690_v36  ;;  %v15992_v36 = vpop.f32.mrb[37].mxu1 }
 0x247   :  { %2964 = vmatprep.subr.bf16.mxu0 %v13695_v53  ;;  %v3068_v7 = vpack.c.bf16 %v15987_v49, %v15992_v36  ;;  %v16002_v24 = vpop.f32.mrb[38].mxu1  ;;  %v16231_v49 = vsub.s32 1, %v16222_v28 }
 0x248   :  { %v16007_v53 = vpop.f32.mrb[39].mxu1 }
 0x249   :  { %19524 = vst [vmem:[#allocation7_spill] sm:$0xff] %v16231_v49 }
 0x24a   :  { %2965 = vmatpush1.bf16.msra.mxu0 %v13693_v57  ;;  %v13752_v57 = vld [vmem:[%s19512_s3 + $0x724] ss:$8 sps:$4 sm:$0xff]  }
 0x24b   :  { %2966 = vmatprep.subr.bf16.mxu0 %v13698_v58  ;;  %v3073_v58 = vpack.c.bf16 %v16002_v24, %v16007_v53 }
 0x24e   :  { %2967 = vmatpush1.bf16.msra.mxu0 %v13696_v2  ;;  %v13750_v2 = vld [vmem:[%s19512_s3 + $0x720] ss:$8 sps:$4 sm:$0xff]  }
 0x24f   :  { %2968 = vmatprep.subr.bf16.mxu0 %v13701_v1  ;;  %v13755_v1 = vld [vmem:[%s19512_s3 + $0x734] ss:$8 sps:$4 sm:$0xff]  }
 0x252   :  { %2969 = vmatpush1.bf16.msra.mxu0 %v13699_v48  ;;  %v13753_v48 = vld [vmem:[%s19512_s3 + $0x730] ss:$8 sps:$4 sm:$0xff]  }
 0x253   :  { %2970 = vmatprep.subr.bf16.mxu0 %v13704_v47  ;;  %v13758_v47 = vld [vmem:[%s19512_s3 + $0x744] ss:$8 sps:$4 sm:$0xff]  }
 0x256   :  { %2971 = vmatpush1.bf16.msra.mxu0 %v13702_v50  ;;  %v13756_v50 = vld [vmem:[%s19512_s3 + $0x740] ss:$8 sps:$4 sm:$0xff]  }
 0x257   :  { %2972 = vmatprep.subr.bf16.mxu0 %v13707_v6  ;;  %v13761_v6 = vld [vmem:[%s19512_s3 + $0x754] ss:$8 sps:$4 sm:$0xff]  }
 0x25a   :  { %2973 = vmatpush1.bf16.msra.mxu0 %v13705_v10  ;;  %v13759_v10 = vld [vmem:[%s19512_s3 + $0x750] ss:$8 sps:$4 sm:$0xff]  }
 0x25b   :  { %2974 = vmatprep.subr.bf16.mxu0 %v13710_v55  ;;  %v13764_v55 = vld [vmem:[%s19512_s3 + $0x764] ss:$8 sps:$4 sm:$0xff]  }
 0x25e   :  { %2975 = vmatpush1.bf16.msra.mxu0 %v13708_v62  ;;  %v13762_v62 = vld [vmem:[%s19512_s3 + $0x760] ss:$8 sps:$4 sm:$0xff]  }
 0x25f   :  { %2976 = vmatprep.subr.bf16.mxu0 %v13713_v61  ;;  %v13767_v61 = vld [vmem:[%s19512_s3 + $0x774] ss:$8 sps:$4 sm:$0xff]  }
 0x262   :  { %2977 = vmatpush1.bf16.msra.mxu0 %v13711_v39  ;;  %v13765_v39 = vld [vmem:[%s19512_s3 + $0x770] ss:$8 sps:$4 sm:$0xff]  }
 0x263   :  { %2978 = vmatprep.subr.bf16.mxu0 %v13716_v16  ;;  %v13770_v16 = vld [vmem:[%s19512_s3 + $0x784] ss:$8 sps:$4 sm:$0xff]  }
 0x266   :  { %2979 = vmatpush1.bf16.msra.mxu0 %v13714_v17  ;;  %v13768_v17 = vld [vmem:[%s19512_s3 + $0x780] ss:$8 sps:$4 sm:$0xff]  }
 0x267   :  { %2980 = vmatprep.subr.bf16.mxu0 %v13719_v18  ;;  %v13773_v18 = vld [vmem:[%s19512_s3 + $0x794] ss:$8 sps:$4 sm:$0xff]  }
 0x26a   :  { %2981 = vmatpush1.bf16.msra.mxu0 %v13717_v41  ;;  %v13771_v41 = vld [vmem:[%s19512_s3 + $0x790] ss:$8 sps:$4 sm:$0xff]  }
 0x26b   :  { %3003 = vmatprep.subr.bf16.mxu0 %v13722_v29  ;;  %v13776_v29 = vld [vmem:[%s19512_s3 + $0x7a4] ss:$8 sps:$4 sm:$0xff]  }
 0x26d   :  { %2983 = vmatmul.mubr.bf16.vlgmr.msra.gmra.mrb[40].mxu0 %v2450_v63  ;;  %v13729_v63 = vld [vmem:[%s19512_s3 + $0x6b0] ss:$8 sps:$4 sm:$0xff]  }
 0x26e   :  { %3004 = vmatpush1.bf16.msra.mxu0 %v13720_v12  ;;  %2992 = vmatprep.mubr.bf16.mxu0 %v2456_v59  ;;  %v13740_v59 = vld [vmem:[%s19512_s3 + $0x6e4] ss:$8 sps:$4 sm:$0xff]   ;;  %v13774_v12 = vld [vmem:[%s19512_s3 + $0x7a0] ss:$8 sps:$4 sm:$0xff]  }
 0x26f   :  { %3005 = vmatprep.subr.bf16.mxu0 %v13725_v26  ;;  %v13779_v26 = vld [vmem:[%s19512_s3 + $0x7b4] ss:$8 sps:$4 sm:$0xff]  }
 0x272   :  { %3006 = vmatpush1.bf16.msra.mxu0 %v13723_v42  ;;  %v13777_v42 = vld [vmem:[%s19512_s3 + $0x7b0] ss:$8 sps:$4 sm:$0xff]  }
 0x273   :  { %3007 = vmatprep.subr.bf16.mxu0 %v13728_v21  ;;  %v13782_v21 = vld [vmem:[%s19512_s3 + $0x7c4] ss:$8 sps:$4 sm:$0xff]  }
 0x275   :  { %2993 = vmatmul.mubr.bf16.gmra.mrb[44].mxu0 %v2455_v38  ;;  %v13735_v38 = vld [vmem:[%s19512_s3 + $0x6d0] ss:$8 sps:$4 sm:$0xff]  }
 0x276   :  { %3008 = vmatpush1.bf16.msra.mxu0 %v13726_v51  ;;  %3035 = vmatprep.mubr.bf16.mxu0 %v14519_v45  ;;  %v13780_v51 = vld [vmem:[%s19512_s3 + $0x7c0] ss:$8 sps:$4 sm:$0xff]  }
 0x277   :  { %3009 = vmatprep.subr.bf16.mxu0 %v13731_v56  ;;  %v13785_v56 = vld [vmem:[%s19512_s3 + $0x7d4] ss:$8 sps:$4 sm:$0xff]  }
 0x27a   :  { %3010 = vmatpush1.bf16.msra.mxu0 %v13729_v63  ;;  %v13783_v63 = vld [vmem:[%s19512_s3 + $0x7d0] ss:$8 sps:$4 sm:$0xff]  }
 0x27b   :  { %3513 = vmatprep.subr.bf16.mxu0 %v13734_v60  ;;  %v13788_v60 = vld [vmem:[%s19512_s3 + $0x7e4] ss:$8 sps:$4 sm:$0xff]  }
 0x27d   :  { %11014 = vmatmul.mubr.msk.bf16.vlgmr.msra.gmra.mrb[40].mxu0 %vm117_vm0, %v19517_v13  ;;  %v13807_v13 = vld [vmem:[%s19512_s3 + $0x850] ss:$8 sps:$4 sm:$0xff]  }
 0x27e   :  { %3514 = vmatpush1.bf16.msra.mxu0 %v13732_v54  ;;  %3045 = vmatprep.mubr.bf16.mxu0 %v14519_v45  ;;  %v13804_v54 = vld [vmem:[%s19512_s3 + $0x840] ss:$8 sps:$4 sm:$0xff]  }
 0x27f   :  { %3515 = vmatprep.subr.bf16.mxu0 %v13737_v11  ;;  %v13809_v11 = vld [vmem:[%s19512_s3 + $0x854] ss:$8 sps:$4 sm:$0xff]  }
 0x282   :  { %3516 = vmatpush1.bf16.msra.mxu0 %v13735_v38  ;;  %v13812_v38 = vld [vmem:[%s19512_s3 + $0x864] ss:$8 sps:$4 sm:$0xff]  }
 0x283   :  { %3517 = vmatprep.subr.bf16.mxu0 %v13740_v59  ;;  %v13810_v59 = vld [vmem:[%s19512_s3 + $0x860] ss:$8 sps:$4 sm:$0xff]  }
 0x285   :  { %11015 = vmatmul.mubr.msk.bf16.gmra.mrb[44].mxu0 %vm117_vm0, %v19518_v34  ;;  %v13818_v34 = vld [vmem:[%s19512_s3 + $0x884] ss:$8 sps:$4 sm:$0xff]  }
 0x286   :  { %3518 = vmatpush1.bf16.msra.mxu0 %v13738_v5  ;;  %3545 = vmatprep.mubr.bf16.mxu0 %v3065_v30  ;;  %v13747_v30 = vld [vmem:[%s19512_s3 + $0x710] ss:$8 sps:$4 sm:$0xff]   ;;  %v13815_v5 = vld [vmem:[%s19512_s3 + $0x874] ss:$8 sps:$4 sm:$0xff]  }
 0x287   :  { %3519 = vmatprep.subr.bf16.mxu0 %v13743_v31  ;;  %v13813_v31 = vld [vmem:[%s19512_s3 + $0x870] ss:$8 sps:$4 sm:$0xff]  }
 0x28a   :  { %3520 = vmatpush1.bf16.msra.mxu0 %v13741_v9  ;;  %v13816_v9 = vld [vmem:[%s19512_s3 + $0x880] ss:$8 sps:$4 sm:$0xff]  }
 0x28b   :  { %3521 = vmatprep.subr.bf16.mxu0 %v13746_v52  ;;  %v13821_v52 = vld [vmem:[%s19512_s3 + $0x894] ss:$8 sps:$4 sm:$0xff]  }
 0x28e   :  { %3522 = vmatpush1.bf16.msra.mxu0 %v13744_v14  ;;  %v13819_v14 = vld [vmem:[%s19512_s3 + $0x890] ss:$8 sps:$4 sm:$0xff]  }
 0x28f   :  { %3523 = vmatprep.subr.bf16.mxu0 %v13749_v35  ;;  %v13824_v35 = vld [vmem:[%s19512_s3 + $0x8a4] ss:$8 sps:$4 sm:$0xff]  }
 0x292   :  { %3524 = vmatpush1.bf16.msra.mxu0 %v13747_v30  ;;  %v13822_v30 = vld [vmem:[%s19512_s3 + $0x8a0] ss:$8 sps:$4 sm:$0xff]  }
 0x293   :  { %3525 = vmatprep.subr.bf16.mxu0 %v13752_v57  ;;  %v13827_v57 = vld [vmem:[%s19512_s3 + $0x8b4] ss:$8 sps:$4 sm:$0xff]  }
 0x296   :  { %3526 = vmatpush1.bf16.msra.mxu0 %v13750_v2  ;;  %v13825_v2 = vld [vmem:[%s19512_s3 + $0x8b0] ss:$8 sps:$4 sm:$0xff]  }
 0x297   :  { %3527 = vmatprep.subr.bf16.mxu0 %v13755_v1  ;;  %v13830_v1 = vld [vmem:[%s19512_s3 + $0x8c4] ss:$8 sps:$4 sm:$0xff]  }
 0x29a   :  { %3528 = vmatpush1.bf16.msra.mxu0 %v13753_v48  ;;  %v13828_v48 = vld [vmem:[%s19512_s3 + $0x8c0] ss:$8 sps:$4 sm:$0xff]  }
 0x29b   :  { %3529 = vmatprep.subr.bf16.mxu0 %v13758_v47  ;;  %v13833_v47 = vld [vmem:[%s19512_s3 + $0x8d4] ss:$8 sps:$4 sm:$0xff]  }
 0x29e   :  { %3530 = vmatpush1.bf16.msra.mxu0 %v13756_v50  ;;  %v19519_v50 = vpack.c.bf16 %v15370_v37, %v15357_v15  ;;  %v13834_v37 = vld [vmem:[%s19512_s3 + $0x8e0] ss:$8 sps:$4 sm:$0xff]   ;;  %v13839_v15 = vld [vmem:[%s19512_s3 + $0x8f4] ss:$8 sps:$4 sm:$0xff]  }
 0x29f   :  { %3531 = vmatprep.subr.bf16.mxu0 %v13761_v6  ;;  %v13831_v6 = vld [vmem:[%s19512_s3 + $0x8d0] ss:$8 sps:$4 sm:$0xff]  }
 0x2a2   :  { %3532 = vmatpush1.bf16.msra.mxu0 %v13759_v10  ;;  %v13836_v10 = vld [vmem:[%s19512_s3 + $0x8e4] ss:$8 sps:$4 sm:$0xff]  }
 0x2a3   :  { %3533 = vmatprep.subr.bf16.mxu0 %v13764_v55  ;;  %v3680_v55 = vld [vmem:[%s19523_s24] sm:$0x3] }
 0x2a4   :  { %v3689_v36 = vrot.slane %v3680_v55, %v16231_v49 }
 0x2a6   :  { %3534 = vmatpush1.bf16.msra.mxu0 %v13762_v62 }
 0x2a7   :  { %3535 = vmatprep.subr.bf16.mxu0 %v13767_v61 }
 0x2aa   :  { %3536 = vmatpush1.bf16.msra.mxu0 %v13765_v39 }
 0x2ab   :  { %3537 = vmatprep.subr.bf16.mxu0 %v13770_v16 }
 0x2ae   :  { %3538 = vmatpush1.bf16.msra.mxu0 %v13768_v17 }
 0x2af   :  { %3539 = vmatprep.subr.bf16.mxu0 %v13773_v18 }
 0x2b2   :  { %3540 = vmatpush1.bf16.msra.mxu0 %v13771_v41 }
 0x2b3   :  { %3541 = vmatprep.subr.bf16.mxu0 %v13776_v29 }
 0x2b6   :  { %3542 = vmatpush1.bf16.msra.mxu0 %v13774_v12 }
 0x2b7   :  { %3543 = vmatprep.subr.bf16.mxu0 %v13779_v26 }
 0x2ba   :  { %3544 = vmatpush1.bf16.msra.mxu0 %v13777_v42 }
 0x2bb   :  { %3566 = vmatprep.subr.bf16.mxu0 %v13782_v21 }
 0x2bd   :  { %3546 = vmatmul.mubr.bf16.vlgmr.msra.gmra.mrb[40].mxu0 %v3064_v23  ;;  %v13789_v23 = vld [vmem:[%s19512_s3 + $0x7f0] ss:$8 sps:$4 sm:$0xff]  }
 0x2be   :  { %3567 = vmatpush1.bf16.msra.mxu0 %v13780_v51  ;;  %3555 = vmatprep.mubr.bf16.mxu0 %v3070_v33  ;;  %v13806_v33 = vld [vmem:[%s19512_s3 + $0x844] ss:$8 sps:$4 sm:$0xff]  }
 0x2bf   :  { %3568 = vmatprep.subr.bf16.mxu0 %v13785_v56 }
 0x2c2   :  { %3569 = vmatpush1.bf16.msra.mxu0 %v13783_v63 }
 0x2c3   :  { %3570 = vmatprep.subr.bf16.mxu0 %v13788_v60 }
 0x2c5   :  { %3556 = vmatmul.mubr.bf16.gmra.mrb[44].mxu0 %v3069_v44  ;;  %v13803_v44 = vld [vmem:[%s19512_s3 + $0x834] ss:$8 sps:$4 sm:$0xff]  }
 0x2c6   :  { %3571 = vmatpush1.bf16.msra.mxu0 %v13786_v3  ;;  %3598 = vmatprep.mubr.bf16.mxu0 %v3067_v40  ;;  %v13800_v40 = vld [vmem:[%s19512_s3 + $0x824] ss:$8 sps:$4 sm:$0xff]  }
 0x2c7   :  { %3572 = vmatprep.subr.bf16.mxu0 %v13791_v19 }
 0x2ca   :  { %3573 = vmatpush1.bf16.msra.mxu0 %v13789_v23 }
 0x2cb   :  { %3574 = vmatprep.subr.bf16.mxu0 %v13794_v0 }
 0x2ce   :  { %3575 = vmatpush1.bf16.msra.mxu0 %v13792_v4 }
 0x2cf   :  { %3576 = vmatprep.subr.bf16.mxu0 %v13797_v43 }
 0x2d2   :  { %3577 = vmatpush1.bf16.msra.mxu0 %v13795_v27 }
 0x2d3   :  { %3578 = vmatprep.subr.bf16.mxu0 %v13800_v40 }
 0x2d6   :  { %3579 = vmatpush1.bf16.msra.mxu0 %v13798_v8 }
 0x2d7   :  { %3580 = vmatprep.subr.bf16.mxu0 %v13803_v44 }
 0x2da   :  { %3581 = vmatpush1.bf16.msra.mxu0 %v13801_v32 }
 0x2db   :  { %3582 = vmatprep.subr.bf16.mxu0 %v13806_v33 }
 0x2de   :  { %3583 = vmatpush1.bf16.msra.mxu0 %v13804_v54 }
 0x2df   :  { %3584 = vmatprep.subr.bf16.mxu0 %v13809_v11 }
 0x2e2   :  { %3585 = vmatpush1.bf16.msra.mxu0 %v13807_v13 }
 0x2e3   :  { %3586 = vmatprep.subr.bf16.mxu0 %v13812_v38 }
 0x2e6   :  { %3587 = vmatpush1.bf16.msra.mxu0 %v13810_v59  ;;  %v3724_v59 = vld [vmem:[%s19525_s25] sm:$0xff] }
 0x2e7   :  { %3588 = vmatprep.subr.bf16.mxu0 %v13815_v5  ;;  %v19526_v5 = vmov 0.0  }
 0x2ea   :  { %3589 = vmatpush1.bf16.msra.mxu0 %v13813_v31  ;;  %v3725_v31 = vld [vmem:[%s19525_s25 + $0x8] sm:$0xff] }
 0x2eb   :  { %3590 = vmatprep.subr.bf16.mxu0 %v13818_v34  ;;  %v11164_v34 = vld [vmem:[%s19525_s25 + $0x10] sm:$0xff] }
 0x2ee   :  { %3591 = vmatpush1.bf16.msra.mxu0 %v13816_v9  ;;  %v11165_v9 = vld [vmem:[%s19525_s25 + $0x18] sm:$0xff] }
 0x2ef   :  { %3592 = vmatprep.subr.bf16.mxu0 %v13821_v52  ;;  %v11168_v52 = vld [vmem:[%s19525_s25 + $0x20] sm:$0xff] }
 0x2f2   :  { %3593 = vmatpush1.bf16.msra.mxu0 %v13819_v14  ;;  %v11169_v14 = vld [vmem:[%s19525_s25 + $0x28] sm:$0xff] }
 0x2f3   :  { %3594 = vmatprep.subr.bf16.mxu0 %v13824_v35  ;;  %v13842_v35 = vld [vmem:[%s19527_s29 + $0x104] ss:$8 sps:$4 sm:$0xff]  }
 0x2f6   :  { %3595 = vmatpush1.bf16.msra.mxu0 %v13822_v30  ;;  %v11172_v30 = vld [vmem:[%s19525_s25 + $0x30] sm:$0xff] }
 0x2f7   :  { %3596 = vmatprep.subr.bf16.mxu0 %v13827_v57  ;;  %v13840_v57 = vld [vmem:[%s19527_s29 + $0x100] ss:$8 sps:$4 sm:$0xff]  }
 0x2fa   :  { %3597 = vmatpush1.bf16.msra.mxu0 %v13825_v2  ;;  %v13845_v2 = vld [vmem:[%s19527_s29 + $0x114] ss:$8 sps:$4 sm:$0xff]  }
 0x2fb   :  { %3619 = vmatprep.subr.bf16.mxu0 %v13830_v1  ;;  %v11173_v1 = vld [vmem:[%s19525_s25 + $0x38] sm:$0xff] }
 0x2fd   :  { %3599 = vmatmul.mubr.bf16.vlgmr.msra.gmra.mrb[40].mxu0 %v19519_v50  ;;  %v13846_v50 = vld [vmem:[%s19527_s29 + $0x120] ss:$8 sps:$4 sm:$0xff]  }
 0x2fe   :  { %3608 = vmatprep.mubr.bf16.mxu0 %v3072_v46  ;;  %3620 = vmatpush1.bf16.msra.mxu0 %v13828_v48  ;;  %v16225_v46 = vsub.s32 0, %v16222_v28  ;;  %v13843_v48 = vld [vmem:[%s19527_s29 + $0x110] ss:$8 sps:$4 sm:$0xff]  }
 0x2ff   :  { %3621 = vmatprep.subr.bf16.mxu0 %v13833_v47  ;;  %v13848_v47 = vld [vmem:[%s19527_s29 + $0x124] ss:$8 sps:$4 sm:$0xff]  }
 0x300   :  { %19522 = vst [vmem:[#allocation6_spill] sm:$0xff] %v16225_v46 }
 0x302   :  { %3622 = vmatpush1.bf16.msra.mxu0 %v13831_v6  ;;  %v13851_v6 = vld [vmem:[%s19527_s29 + $0x134] ss:$8 sps:$4 sm:$0xff]  }
 0x303   :  { %3623 = vmatprep.subr.bf16.mxu0 %v13836_v10  ;;  %v13849_v10 = vld [vmem:[%s19527_s29 + $0x130] ss:$8 sps:$4 sm:$0xff]  }
 0x305   :  { %3609 = vmatmul.mubr.bf16.gmra.mrb[44].mxu0 %v19520_v22  ;;  %v13857_v22 = vld [vmem:[%s19527_s29 + $0x154] ss:$8 sps:$4 sm:$0xff]  }
 0x306   :  { %3624 = vmatpush1.bf16.msra.mxu0 %v13834_v37  ;;  %3651 = vmatprep.mubr.bf16.mxu0 %v14519_v45  ;;  %v13854_v37 = vld [vmem:[%s19527_s29 + $0x144] ss:$8 sps:$4 sm:$0xff]  }
 0x307   :  { %3625 = vmatprep.subr.bf16.mxu0 %v13839_v15  ;;  %v13852_v15 = vld [vmem:[%s19527_s29 + $0x140] ss:$8 sps:$4 sm:$0xff]  }
 0x30a   :  { %3626 = vmatpush1.bf16.msra.mxu0 %v13837_v20  ;;  %v13855_v20 = vld [vmem:[%s19527_s29 + $0x150] ss:$8 sps:$4 sm:$0xff]  }
 0x30d   :  { %11160 = vmatmul.mubr.msk.bf16.vlgmr.msra.gmra.mrb[40].mxu0 %vm117_vm0, %v3068_v7 }
 0x30e   :  { %3661 = vmatprep.mubr.bf16.mxu0 %v14519_v45  ;;  %v3685_v45 = vrot.slane %v3680_v55, %v16225_v46  ;;  %v13858_v55 = vld [vmem:[%s19527_s29 + $0x160] ss:$8 sps:$4 sm:$0xff]  }
 0x315   :  { %11161 = vmatmul.mubr.msk.bf16.gmra.mrb[44].mxu0 %vm117_vm0, %v3073_v58 }
 0x3e0   :  { %v3653_v7 = vpop.f32.mrb[40].mxu0 }
 0x3e1   :  { %v3692_v24 = vadd.f32 %v3685_v45, %v3653_v7  ;;  %v3655_v53 = vpop.f32.mrb[41].mxu0  ;;  %v13866_v7 = vld [vmem:[%s19527_s29 + $0x184] ss:$8 sps:$4 sm:$0xff]  }
 0x3e2   :  { %v3693_v58 = vadd.f32 %v3689_v36, %v3655_v53  ;;  %v3657_v62 = vpop.f32.mrb[42].mxu0  ;;  %v13869_v53 = vld [vmem:[%s19527_s29 + $0x194] ss:$8 sps:$4 sm:$0xff]  }
 0x3e3   :  { %v3708_v61 = vmul.f32 0.2, %v3692_v24  ;;  %v3694_v39 = vadd.f32 %v3685_v45, %v3657_v62  ;;  %v3659_v16 = vpop.f32.mrb[43].mxu0  ;;  %vm3700_vm1 = vcmp.ge.f32.partialorder %v3692_v24, 0.0  ;;  %v13872_v62 = vld [vmem:[%s19527_s29 + $0x1a4] ss:$8 sps:$4 sm:$0xff]  }
 0x3e4   :  { %v3709_v17 = vmul.f32 0.2, %v3693_v58  ;;  %v3695_v18 = vadd.f32 %v3689_v36, %v3659_v16  ;;  %vm3701_vm2 = vcmp.ge.f32.partialorder %v3693_v58, 0.0  ;;  %v13873_v16 = vld [vmem:[%s19527_s29 + $0x1b0] ss:$8 sps:$4 sm:$0xff]  }
 0x3e5   :  { %vm3702_vm3 = vcmp.ge.f32.partialorder %v3694_v39, 0.0  ;;  %v3710_v41 = vmul.f32 0.2, %v3694_v39  ;;  %v3716_v12 = vsel %vm3700_vm1, %v3692_v24, %v3708_v61  ;;  %v13864_v24 = vld [vmem:[%s19527_s29 + $0x180] ss:$8 sps:$4 sm:$0xff]   ;;  %vm6887_vm1 = vcmask 64512  }
 0x3e6   :  { %vm3703_vm4 = vcmp.ge.f32.partialorder %v3695_v18, 0.0  ;;  %v3711_v29 = vmul.f32 0.2, %v3695_v18  ;;  %v3717_v42 = vsel %vm3701_vm2, %v3693_v58, %v3709_v17  ;;  %v13867_v58 = vld [vmem:[%s19527_s29 + $0x190] ss:$8 sps:$4 sm:$0xff]   ;;  %vm14521_vm2 = vmmov 0  }
 0x3e7   :  { %v3718_v26 = vsel %vm3702_vm3, %v3694_v39, %v3710_v41  ;;  %v13870_v61 = vld [vmem:[%s19527_s29 + $0x1a0] ss:$8 sps:$4 sm:$0xff]   ;;  %v13875_v39 = vld [vmem:[%s19527_s29 + $0x1b4] ss:$8 sps:$4 sm:$0xff]   ;;  %v13878_v17 = vld [vmem:[%s19527_s29 + $0x1c4] ss:$8 sps:$4 sm:$0xff]  }
 0x3e8   :  { %v12669_v21 = vpack.c.bf16 %v3718_v26, %v3716_v12  ;;  %v3719_v51 = vsel %vm3703_vm4, %v3695_v18, %v3711_v29  ;;  %v3663_v56 = vpop.f32.mrb[44].mxu0  ;;  %v13876_v18 = vld [vmem:[%s19527_s29 + $0x1c0] ss:$8 sps:$4 sm:$0xff]   ;;  %v13881_v41 = vld [vmem:[%s19527_s29 + $0x1d4] ss:$8 sps:$4 sm:$0xff]   ;;  %vm8811_vm3 = vcmask 1045504  }
 0x3e9   :  { %v12667_v63 = vpack.c.bf16 %v3719_v51, %v3717_v42  ;;  %v3696_v60 = vadd.f32 %v3685_v45, %v3663_v56  ;;  %v3665_v3 = vpop.f32.mrb[45].mxu0  ;;  %v13879_v29 = vld [vmem:[%s19527_s29 + $0x1d0] ss:$8 sps:$4 sm:$0xff]   ;;  %v13884_v12 = vld [vmem:[%s19527_s29 + $0x1e4] ss:$8 sps:$4 sm:$0xff]  }
 0x3ea   :  { %v3697_v19 = vadd.f32 %v3689_v36, %v3665_v3  ;;  %v3667_v23 = vpop.f32.mrb[46].mxu0  ;;  %v13882_v26 = vld [vmem:[%s19527_s29 + $0x1e0] ss:$8 sps:$4 sm:$0xff]   ;;  %v13887_v42 = vld [vmem:[%s19527_s29 + $0x1f4] ss:$8 sps:$4 sm:$0xff]  }
 0x3eb   :  { %v3712_v0 = vmul.f32 0.2, %v3696_v60  ;;  %v3698_v4 = vadd.f32 %v3685_v45, %v3667_v23  ;;  %v3669_v43 = vpop.f32.mrb[47].mxu0  ;;  %12668 = vmatprep.subr.bf16.mxu1 %v12667_v63  ;;  %vm3704_vm5 = vcmp.ge.f32.partialorder %v3696_v60, 0.0  ;;  %v13863_v45 = vld [vmem:[%s19527_s29 + $0x174] ss:$8 sps:$4 sm:$0xff]  }
 0x3ec   :  { %v3713_v27 = vmul.f32 0.2, %v3697_v19  ;;  %v3699_v40 = vadd.f32 %v3689_v36, %v3669_v43  ;;  %12670 = vmatpush1.bf16.msra.mxu1 %v12669_v21  ;;  %vm3705_vm6 = vcmp.ge.f32.partialorder %v3697_v19, 0.0  ;;  %v13861_v36 = vld [vmem:[%s19527_s29 + $0x170] ss:$8 sps:$4 sm:$0xff]  }
 0x3ed   :  { %vm3706_vm7 = vcmp.ge.f32.partialorder %v3698_v4, 0.0  ;;  %v3714_v8 = vmul.f32 0.2, %v3698_v4  ;;  %v3720_v32 = vsel %vm3704_vm5, %v3696_v60, %v3712_v0  ;;  %v13890_v51 = vld [vmem:[%s19527_s29 + $0x4] ss:$8 sps:$4 sm:$0xff]   ;;  %vm9657_vm5 = vcmask 48128  }
 0x3ee   :  { %vm3707_vm8 = vcmp.ge.f32.partialorder %v3699_v40, 0.0  ;;  %v3715_v44 = vmul.f32 0.2, %v3699_v40  ;;  %v3721_v54 = vsel %vm3705_vm6, %v3697_v19, %v3713_v27 }
 0x3ef   :  { %v3722_v33 = vsel %vm3706_vm7, %v3698_v4, %v3714_v8 }
 0x3f0   :  { %v12673_v11 = vpack.c.bf16 %v3722_v33, %v3720_v32  ;;  %v3723_v13 = vsel %vm3707_vm8, %v3699_v40, %v3715_v44  ;;  %v13888_v44 = vld [vmem:[%s19527_s29] ss:$8 sps:$4 sm:$0xff]   ;;  %v13893_v32 = vld [vmem:[%s19527_s29 + $0x14] ss:$8 sps:$4 sm:$0xff]   ;;  %vm10288_vm8 = vcmask 1043456  }
 0x3f1   :  { %v12671_v38 = vpack.c.bf16 %v3723_v13, %v3721_v54  ;;  %v13896_v13 = vld [vmem:[%s19527_s29 + $0x24] ss:$8 sps:$4 sm:$0xff]  }
 0x3f3   :  { %12672 = vmatprep.subr.bf16.mxu1 %v12671_v38 }
 0x3f4   :  { %12674 = vmatpush1.bf16.msra.mxu1 %v12673_v11 }
 0x3f5   :  { %12676 = vmatprep.subr.bf16.mxu1 %v12667_v63 }
 0x3f7   :  { %11162 = vmatmul.mubr.msk.f32.vlgmr.msra.gmra.mrb[40].mxu1 %vm3726_vm9, %v3724_v59 }
 0x3f8   :  { %12678 = vmatpush1.bf16.msra.mxu1 %v12669_v21  ;;  %3803 = vmatprep.mubr.f32.mxu1 %v19526_v5 }
 0x3f9   :  { %12680 = vmatprep.subr.bf16.mxu1 %v12671_v38 }
 0x3fb   :  { %11163 = vmatmul.mubr.msk.f32.gmra.mrb[42].mxu1 %vm3726_vm9, %v3725_v31 }
 0x3fc   :  { %12682 = vmatpush1.bf16.msra.mxu1 %v12673_v11  ;;  %3883 = vmatprep.mubr.f32.mxu1 %v19526_v5 }
 0x3fd   :  { %12684 = vmatprep.subr.bf16.mxu1 %v12667_v63 }
 0x3ff   :  { %11166 = vmatmul.mubr.msk.f32.vlgmr.msra.gmra.mrb[44].mxu1 %vm3726_vm9, %v11164_v34  ;;  %v13894_v34 = vld [vmem:[%s19527_s29 + $0x20] ss:$8 sps:$4 sm:$0xff]  }
 0x400   :  { %12686 = vmatpush1.bf16.msra.mxu1 %v12669_v21  ;;  %3889 = vmatprep.mubr.f32.mxu1 %v19526_v5 }
 0x401   :  { %12688 = vmatprep.subr.bf16.mxu1 %v12671_v38 }
 0x403   :  { %11167 = vmatmul.mubr.msk.f32.gmra.mrb[46].mxu1 %vm3726_vm9, %v11165_v9 }
 0x404   :  { %12690 = vmatpush1.bf16.msra.mxu1 %v12673_v11  ;;  %3969 = vmatprep.mubr.f32.mxu1 %v19526_v5 }
 0x405   :  { %12692 = vmatprep.subr.bf16.mxu1 %v12667_v63 }
 0x407   :  { %11170 = vmatmul.mubr.msk.f32.vlgmr.msra.gmra.mrb[48].mxu1 %vm3726_vm9, %v11168_v52  ;;  %v13899_v52 = vld [vmem:[%s19527_s29 + $0x34] ss:$8 sps:$4 sm:$0xff]  }
 0x408   :  { %12694 = vmatpush1.bf16.msra.mxu1 %v12669_v21  ;;  %3975 = vmatprep.mubr.f32.mxu1 %v19526_v5  ;;  %v13885_v21 = vld [vmem:[%s19527_s29 + $0x1f0] ss:$8 sps:$4 sm:$0xff]  }
 0x409   :  { %12696 = vmatprep.subr.bf16.mxu1 %v12671_v38 }
 0x40b   :  { %11171 = vmatmul.mubr.msk.f32.gmra.mrb[50].mxu1 %vm3726_vm9, %v11169_v14  ;;  %v13897_v14 = vld [vmem:[%s19527_s29 + $0x30] ss:$8 sps:$4 sm:$0xff]  }
 0x40c   :  { %12698 = vmatpush1.bf16.msra.mxu1 %v12673_v11  ;;  %4055 = vmatprep.mubr.f32.mxu1 %v19526_v5  ;;  %v13891_v11 = vld [vmem:[%s19527_s29 + $0x10] ss:$8 sps:$4 sm:$0xff]  }
 0x40d   :  { %4297 = vmatprep.subr.bf16.mxu1 %v13842_v35  ;;  %v13902_v35 = vld [vmem:[%s19527_s29 + $0x44] ss:$8 sps:$4 sm:$0xff]  }
 0x40f   :  { %11174 = vmatmul.mubr.msk.f32.vlgmr.msra.gmra.mrb[52].mxu1 %vm3726_vm9, %v11172_v30  ;;  %v13900_v30 = vld [vmem:[%s19527_s29 + $0x40] ss:$8 sps:$4 sm:$0xff]  }
 0x410   :  { %4061 = vmatprep.mubr.f32.mxu1 %v19526_v5  ;;  %4298 = vmatpush1.bf16.msra.mxu1 %v13840_v57  ;;  %v13905_v57 = vld [vmem:[%s19527_s29 + $0x54] ss:$8 sps:$4 sm:$0xff]  }
 0x411   :  { %4299 = vmatprep.subr.bf16.mxu1 %v13845_v2 }
 0x413   :  { %11175 = vmatmul.mubr.msk.f32.gmra.mrb[54].mxu1 %vm3726_vm9, %v11173_v1  ;;  %v13903_v1 = vld [vmem:[%s19527_s29 + $0x50] ss:$8 sps:$4 sm:$0xff]   ;;  %vm10420_vm9 = vcmask 3072  }
 0x414   :  { %4300 = vmatpush1.bf16.msra.mxu1 %v13843_v48 }
 0x415   :  { %4301 = vmatprep.subr.bf16.mxu1 %v13848_v47  ;;  %v13908_v47 = vld [vmem:[%s19527_s29 + $0x64] ss:$8 sps:$4 sm:$0xff]  }
 0x418   :  { %4302 = vmatpush1.bf16.msra.mxu1 %v13846_v50 }
 0x419   :  { %4303 = vmatprep.subr.bf16.mxu1 %v13851_v6 }
 0x41c   :  { %4304 = vmatpush1.bf16.msra.mxu1 %v13849_v10 }
 0x41d   :  { %4305 = vmatprep.subr.bf16.mxu1 %v13854_v37 }
 0x420   :  { %4306 = vmatpush1.bf16.msra.mxu1 %v13852_v15  ;;  %v13906_v15 = vld [vmem:[%s19527_s29 + $0x60] ss:$8 sps:$4 sm:$0xff]  }
 0x421   :  { %4307 = vmatprep.subr.bf16.mxu1 %v13857_v22  ;;  %v13911_v22 = vld [vmem:[%s19527_s29 + $0x74] ss:$8 sps:$4 sm:$0xff]  }
 0x424   :  { %4308 = vmatpush1.bf16.msra.mxu1 %v13855_v20  ;;  %v13909_v20 = vld [vmem:[%s19527_s29 + $0x70] ss:$8 sps:$4 sm:$0xff]  }
 0x425   :  { %4309 = vmatprep.subr.bf16.mxu1 %v13860_v25  ;;  %v13914_v25 = vld [vmem:[%s19527_s29 + $0x84] ss:$8 sps:$4 sm:$0xff]  }
 0x428   :  { %4310 = vmatpush1.bf16.msra.mxu1 %v13858_v55  ;;  %v13912_v55 = vld [vmem:[%s19527_s29 + $0x80] ss:$8 sps:$4 sm:$0xff]  }
 0x429   :  { %4311 = vmatprep.subr.bf16.mxu1 %v13863_v45  ;;  %v13917_v45 = vld [vmem:[%s19527_s29 + $0x94] ss:$8 sps:$4 sm:$0xff]  }
 0x42c   :  { %4312 = vmatpush1.bf16.msra.mxu1 %v13861_v36  ;;  %v13915_v36 = vld [vmem:[%s19527_s29 + $0x90] ss:$8 sps:$4 sm:$0xff]  }
 0x42d   :  { %4313 = vmatprep.subr.bf16.mxu1 %v13866_v7  ;;  %v13920_v7 = vld [vmem:[%s19527_s29 + $0xa4] ss:$8 sps:$4 sm:$0xff]  }
 0x430   :  { %4314 = vmatpush1.bf16.msra.mxu1 %v13864_v24  ;;  %v13918_v24 = vld [vmem:[%s19527_s29 + $0xa0] ss:$8 sps:$4 sm:$0xff]  }
 0x431   :  { %4315 = vmatprep.subr.bf16.mxu1 %v13869_v53  ;;  %v13923_v53 = vld [vmem:[%s19527_s29 + $0xb4] ss:$8 sps:$4 sm:$0xff]  }
 0x434   :  { %4316 = vmatpush1.bf16.msra.mxu1 %v13867_v58  ;;  %v13921_v58 = vld [vmem:[%s19527_s29 + $0xb0] ss:$8 sps:$4 sm:$0xff]  }
 0x435   :  { %4317 = vmatprep.subr.bf16.mxu1 %v13872_v62  ;;  %v13926_v62 = vld [vmem:[%s19527_s29 + $0xc4] ss:$8 sps:$4 sm:$0xff]  }
 0x438   :  { %4318 = vmatpush1.bf16.msra.mxu1 %v13870_v61  ;;  %v13924_v61 = vld [vmem:[%s19527_s29 + $0xc0] ss:$8 sps:$4 sm:$0xff]  }
 0x439   :  { %4319 = vmatprep.subr.bf16.mxu1 %v13875_v39  ;;  %v13929_v39 = vld [vmem:[%s19527_s29 + $0xd4] ss:$8 sps:$4 sm:$0xff]  }
 0x43c   :  { %4320 = vmatpush1.bf16.msra.mxu1 %v13873_v16  ;;  %v13927_v16 = vld [vmem:[%s19527_s29 + $0xd0] ss:$8 sps:$4 sm:$0xff]  }
 0x43d   :  { %4321 = vmatprep.subr.bf16.mxu1 %v13878_v17  ;;  %v13932_v17 = vld [vmem:[%s19527_s29 + $0xe4] ss:$8 sps:$4 sm:$0xff]  }
 0x440   :  { %4322 = vmatpush1.bf16.msra.mxu1 %v13876_v18  ;;  %v13930_v18 = vld [vmem:[%s19527_s29 + $0xe0] ss:$8 sps:$4 sm:$0xff]  }
 0x441   :  { %4323 = vmatprep.subr.bf16.mxu1 %v13881_v41  ;;  %v13935_v41 = vld [vmem:[%s19527_s29 + $0xf4] ss:$8 sps:$4 sm:$0xff]  }
 0x444   :  { %4324 = vmatpush1.bf16.msra.mxu1 %v13879_v29  ;;  %v13933_v29 = vld [vmem:[%s19527_s29 + $0xf0] ss:$8 sps:$4 sm:$0xff]  }
 0x445   :  { %4325 = vmatprep.subr.bf16.mxu1 %v13884_v12  ;;  %v13938_v12 = vld [vmem:[%s19527_s29 + $0x204] ss:$8 sps:$4 sm:$0xff]  }
 0x448   :  { %4326 = vmatpush1.bf16.msra.mxu1 %v13882_v26  ;;  %v13936_v26 = vld [vmem:[%s19527_s29 + $0x200] ss:$8 sps:$4 sm:$0xff]  }
 0x449   :  { %4327 = vmatprep.subr.bf16.mxu1 %v13887_v42  ;;  %v13941_v42 = vld [vmem:[%s19527_s29 + $0x214] ss:$8 sps:$4 sm:$0xff]  }
 0x44c   :  { %4328 = vmatpush1.bf16.msra.mxu1 %v13885_v21  ;;  %v13939_v21 = vld [vmem:[%s19527_s29 + $0x210] ss:$8 sps:$4 sm:$0xff]  }
 0x44d   :  { %4500 = vmatprep.subr.bf16.mxu1 %v13890_v51  ;;  %v13944_v51 = vld [vmem:[%s19527_s29 + $0x224] ss:$8 sps:$4 sm:$0xff]  }
 0x4ca   :  { %v16373_v56 = vpop.f32.mrb[40].mxu1 }
 0x4cb   :  { %v3801_v63 = vpop.f32.mrb[41].mxu1 }
 0x4ce   :  { %v16375_v60 = vpop.f32.mrb[42].mxu1 }
 0x4cf   :  { %v4068_v3 = vpack.c.bf16 %v16375_v60, %v16373_v56  ;;  %v3807_v19 = vpop.f32.mrb[43].mxu1  ;;  %v13942_v56 = vld [vmem:[%s19527_s29 + $0x220] ss:$8 sps:$4 sm:$0xff]   ;;  %v13945_v60 = vld [vmem:[%s19527_s29 + $0x230] ss:$8 sps:$4 sm:$0xff]  }
 0x4d0   :  { %v4069_v23 = vpack.c.bf16 %v3807_v19, %v3801_v63  ;;  %v13947_v63 = vld [vmem:[%s19527_s29 + $0x234] ss:$8 sps:$4 sm:$0xff]   ;;  %v13948_v19 = vld [vmem:[%s19527_s29 + $0x240] ss:$8 sps:$4 sm:$0xff]  }
 0x4d2   :  { %v3885_v0 = vpop.f32.mrb[44].mxu1 }
 0x4d3   :  { %v3887_v4 = vpop.f32.mrb[45].mxu1 }
 0x4d6   :  { %v3891_v43 = vpop.f32.mrb[46].mxu1 }
 0x4d7   :  { %v4102_v27 = vpack.c.bf16 %v3891_v43, %v3885_v0  ;;  %v3893_v40 = vpop.f32.mrb[47].mxu1  ;;  %v13951_v0 = vld [vmem:[%s19527_s29 + $0x250] ss:$8 sps:$4 sm:$0xff]   ;;  %v13954_v43 = vld [vmem:[%s19527_s29 + $0x260] ss:$8 sps:$4 sm:$0xff]  }
 0x4d8   :  { %v4103_v8 = vpack.c.bf16 %v3893_v40, %v3887_v4  ;;  %v13956_v4 = vld [vmem:[%s19527_s29 + $0x264] ss:$8 sps:$4 sm:$0xff]   ;;  %v13957_v40 = vld [vmem:[%s19527_s29 + $0x270] ss:$8 sps:$4 sm:$0xff]  }
 0x4da   :  { %4329 = vmatprep.mubr.bf16.mxu1 %v4103_v8  ;;  %v16385_v33 = vpop.f32.mrb[48].mxu1  ;;  %v13962_v8 = vld [vmem:[%s19527_s29 + $0x284] ss:$8 sps:$4 sm:$0xff]  }
 0x4db   :  { %4330 = vmatmul.mubr.bf16.vlgmr.msra.gmra.mrb[56].mxu1 %v4102_v27  ;;  %v16387_v54 = vpop.f32.mrb[49].mxu1  ;;  %v13959_v27 = vld [vmem:[%s19527_s29 + $0x274] ss:$8 sps:$4 sm:$0xff]  }
 0x4dc   :  { %4501 = vmatpush1.bf16.msra.mxu1 %v13888_v44  ;;  %4532 = vmatprep.mubr.bf16.mxu1 %v4069_v23  ;;  %v13953_v23 = vld [vmem:[%s19527_s29 + $0x254] ss:$8 sps:$4 sm:$0xff]   ;;  %v13960_v44 = vld [vmem:[%s19527_s29 + $0x280] ss:$8 sps:$4 sm:$0xff]  }
 0x4dd   :  { %4502 = vmatprep.subr.bf16.mxu1 %v13893_v32  ;;  %v13965_v32 = vld [vmem:[%s19527_s29 + $0x294] ss:$8 sps:$4 sm:$0xff]  }
 0x4de   :  { %v16395_v38 = vpop.f32.mrb[50].mxu1 }
 0x4df   :  { %v4543_v59 = vpack.c.bf16 %v16395_v38, %v16385_v33  ;;  %v16399_v31 = vpop.f32.mrb[51].mxu1  ;;  %v13990_v33 = vld [vmem:[%s19527_s29 + $0x320] ss:$8 sps:$4 sm:$0xff]   ;;  %v13995_v38 = vld [vmem:[%s19527_s29 + $0x334] ss:$8 sps:$4 sm:$0xff]  }
 0x4e0   :  { %4503 = vmatpush1.bf16.msra.mxu1 %v13891_v11  ;;  %v4544_v9 = vpack.c.bf16 %v16399_v31, %v16387_v54  ;;  %v13963_v54 = vld [vmem:[%s19527_s29 + $0x290] ss:$8 sps:$4 sm:$0xff]   ;;  %v13968_v11 = vld [vmem:[%s19527_s29 + $0x2a4] ss:$8 sps:$4 sm:$0xff]   ;;  %v13971_v31 = vld [vmem:[%s19527_s29 + $0x2b4] ss:$8 sps:$4 sm:$0xff]  }
 0x4e1   :  { %4504 = vmatprep.subr.bf16.mxu1 %v13896_v13  ;;  %v13966_v13 = vld [vmem:[%s19527_s29 + $0x2a0] ss:$8 sps:$4 sm:$0xff]  }
 0x4e2   :  { %v16421_v2 = vpop.f32.mrb[52].mxu1 }
 0x4e3   :  { %v16426_v48 = vpop.f32.mrb[53].mxu1 }
 0x4e4   :  { %4505 = vmatpush1.bf16.msra.mxu1 %v13894_v34  ;;  %v13969_v34 = vld [vmem:[%s19527_s29 + $0x2b0] ss:$8 sps:$4 sm:$0xff]  }
 0x4e5   :  { %4506 = vmatprep.subr.bf16.mxu1 %v13899_v52  ;;  %v13972_v52 = vld [vmem:[%s19527_s29 + $0x2c0] ss:$8 sps:$4 sm:$0xff]  }
 0x4e6   :  { %v16431_v50 = vpop.f32.mrb[54].mxu1 }
 0x4e7   :  { %v4785_v6 = vpack.c.bf16 %v16431_v50, %v16421_v2  ;;  %v16435_v10 = vpop.f32.mrb[55].mxu1  ;;  %v5072_v2 = vld [vmem:[%s19528_s1 + $0x68] sm:$0xff]  ;;  %v5074_v50 = vld [vmem:[%s19528_s1 + $0x78] sm:$0xff] }
 0x4e8   :  { %4507 = vmatpush1.bf16.msra.mxu1 %v13897_v14  ;;  %v4786_v37 = vpack.c.bf16 %v16435_v10, %v16426_v48  ;;  %v13977_v14 = vld [vmem:[%s19527_s29 + $0x2d4] ss:$8 sps:$4 sm:$0xff]   ;;  %v13998_v48 = vld [vmem:[%s19527_s29 + $0x344] ss:$8 sps:$4 sm:$0xff]   ;;  %v13996_v10 = vld [vmem:[%s19527_s29 + $0x340] ss:$8 sps:$4 sm:$0xff]  }
 0x4e9   :  { %4508 = vmatprep.subr.bf16.mxu1 %v13902_v35  ;;  %v13975_v35 = vld [vmem:[%s19527_s29 + $0x2d0] ss:$8 sps:$4 sm:$0xff]  }
 0x4ec   :  { %4509 = vmatpush1.bf16.msra.mxu1 %v13900_v30  ;;  %v13980_v30 = vld [vmem:[%s19527_s29 + $0x2e4] ss:$8 sps:$4 sm:$0xff]  }
 0x4ed   :  { %4510 = vmatprep.subr.bf16.mxu1 %v13905_v57  ;;  %v13978_v57 = vld [vmem:[%s19527_s29 + $0x2e0] ss:$8 sps:$4 sm:$0xff]  }
 0x4f0   :  { %4511 = vmatpush1.bf16.msra.mxu1 %v13903_v1  ;;  %v13983_v1 = vld [vmem:[%s19527_s29 + $0x2f4] ss:$8 sps:$4 sm:$0xff]  }
 0x4f1   :  { %4512 = vmatprep.subr.bf16.mxu1 %v13908_v47  ;;  %v13981_v47 = vld [vmem:[%s19527_s29 + $0x2f0] ss:$8 sps:$4 sm:$0xff]  }
 0x4f4   :  { %4513 = vmatpush1.bf16.msra.mxu1 %v13906_v15  ;;  %v13986_v15 = vld [vmem:[%s19527_s29 + $0x304] ss:$8 sps:$4 sm:$0xff]  }
 0x4f5   :  { %4514 = vmatprep.subr.bf16.mxu1 %v13911_v22  ;;  %v13984_v22 = vld [vmem:[%s19527_s29 + $0x300] ss:$8 sps:$4 sm:$0xff]  }
 0x4f8   :  { %4515 = vmatpush1.bf16.msra.mxu1 %v13909_v20  ;;  %v13989_v20 = vld [vmem:[%s19527_s29 + $0x314] ss:$8 sps:$4 sm:$0xff]  }
 0x4f9   :  { %4516 = vmatprep.subr.bf16.mxu1 %v13914_v25  ;;  %v13987_v25 = vld [vmem:[%s19527_s29 + $0x310] ss:$8 sps:$4 sm:$0xff]  }
 0x4fc   :  { %4517 = vmatpush1.bf16.msra.mxu1 %v13912_v55  ;;  %v13992_v55 = vld [vmem:[%s19527_s29 + $0x324] ss:$8 sps:$4 sm:$0xff]  }
 0x4fd   :  { %4518 = vmatprep.subr.bf16.mxu1 %v13917_v45  ;;  %v13999_v45 = vld [vmem:[%s19527_s29 + $0x350] ss:$8 sps:$4 sm:$0xff]  }
 0x500   :  { %4519 = vmatpush1.bf16.msra.mxu1 %v13915_v36  ;;  %v14004_v36 = vld [vmem:[%s19527_s29 + $0x364] ss:$8 sps:$4 sm:$0xff]  }
 0x501   :  { %4520 = vmatprep.subr.bf16.mxu1 %v13920_v7  ;;  %v14002_v7 = vld [vmem:[%s19527_s29 + $0x360] ss:$8 sps:$4 sm:$0xff]  }
 0x504   :  { %4521 = vmatpush1.bf16.msra.mxu1 %v13918_v24  ;;  %v14007_v24 = vld [vmem:[%s19527_s29 + $0x374] ss:$8 sps:$4 sm:$0xff]  }
 0x505   :  { %4522 = vmatprep.subr.bf16.mxu1 %v13923_v53  ;;  %v14005_v53 = vld [vmem:[%s19527_s29 + $0x370] ss:$8 sps:$4 sm:$0xff]  }
 0x508   :  { %4523 = vmatpush1.bf16.msra.mxu1 %v13921_v58  ;;  %v14010_v58 = vld [vmem:[%s19527_s29 + $0x384] ss:$8 sps:$4 sm:$0xff]  }
 0x509   :  { %4524 = vmatprep.subr.bf16.mxu1 %v13926_v62  ;;  %v14008_v62 = vld [vmem:[%s19527_s29 + $0x380] ss:$8 sps:$4 sm:$0xff]  }
 0x50c   :  { %4525 = vmatpush1.bf16.msra.mxu1 %v13924_v61  ;;  %v14013_v61 = vld [vmem:[%s19527_s29 + $0x394] ss:$8 sps:$4 sm:$0xff]  }
 0x50d   :  { %4526 = vmatprep.subr.bf16.mxu1 %v13929_v39  ;;  %v14011_v39 = vld [vmem:[%s19527_s29 + $0x390] ss:$8 sps:$4 sm:$0xff]  }
 0x510   :  { %4527 = vmatpush1.bf16.msra.mxu1 %v13927_v16  ;;  %v14016_v16 = vld [vmem:[%s19527_s29 + $0x3a4] ss:$8 sps:$4 sm:$0xff]  }
 0x511   :  { %4528 = vmatprep.subr.bf16.mxu1 %v13932_v17  ;;  %v14014_v17 = vld [vmem:[%s19527_s29 + $0x3a0] ss:$8 sps:$4 sm:$0xff]  }
 0x514   :  { %4529 = vmatpush1.bf16.msra.mxu1 %v13930_v18  ;;  %v14019_v18 = vld [vmem:[%s19527_s29 + $0x3b4] ss:$8 sps:$4 sm:$0xff]  }
 0x515   :  { %4530 = vmatprep.subr.bf16.mxu1 %v13935_v41  ;;  %v14017_v41 = vld [vmem:[%s19527_s29 + $0x3b0] ss:$8 sps:$4 sm:$0xff]  }
 0x518   :  { %4531 = vmatpush1.bf16.msra.mxu1 %v13933_v29  ;;  %v14022_v29 = vld [vmem:[%s19527_s29 + $0x3c4] ss:$8 sps:$4 sm:$0xff]  }
 0x519   :  { %4738 = vmatprep.subr.bf16.mxu1 %v13938_v12  ;;  %v14020_v12 = vld [vmem:[%s19527_s29 + $0x3c0] ss:$8 sps:$4 sm:$0xff]  }
 0x51b   :  { %4533 = vmatmul.mubr.bf16.vlgmr.msra.gmra.mrb[56].mxu1 %v4068_v3  ;;  %v13950_v3 = vld [vmem:[%s19527_s29 + $0x244] ss:$8 sps:$4 sm:$0xff]  }
 0x51c   :  { %4739 = vmatpush1.bf16.msra.mxu1 %v13936_v26  ;;  %4770 = vmatprep.mubr.bf16.mxu1 %v4544_v9  ;;  %v13974_v9 = vld [vmem:[%s19527_s29 + $0x2c4] ss:$8 sps:$4 sm:$0xff]   ;;  %v14025_v26 = vld [vmem:[%s19527_s29 + $0x3d4] ss:$8 sps:$4 sm:$0xff]  }
 0x51d   :  { %4740 = vmatprep.subr.bf16.mxu1 %v13941_v42  ;;  %v14023_v42 = vld [vmem:[%s19527_s29 + $0x3d0] ss:$8 sps:$4 sm:$0xff]  }
 0x520   :  { %4741 = vmatpush1.bf16.msra.mxu1 %v13939_v21  ;;  %v14028_v21 = vld [vmem:[%s19527_s29 + $0x3e4] ss:$8 sps:$4 sm:$0xff]  }
 0x521   :  { %4742 = vmatprep.subr.bf16.mxu1 %v13944_v51  ;;  %v14026_v51 = vld [vmem:[%s19527_s29 + $0x3e0] ss:$8 sps:$4 sm:$0xff]  }
 0x524   :  { %4743 = vmatpush1.bf16.msra.mxu1 %v13942_v56  ;;  %v14031_v56 = vld [vmem:[%s19527_s29 + $0x3f4] ss:$8 sps:$4 sm:$0xff]  }
 0x525   :  { %4744 = vmatprep.subr.bf16.mxu1 %v13947_v63  ;;  %v5060_v63 = vld [vmem:[%s19528_s1 + $0x8] sm:$0xff] }
 0x528   :  { %4745 = vmatpush1.bf16.msra.mxu1 %v13945_v60  ;;  %v5062_v60 = vld [vmem:[%s19528_s1 + $0x18] sm:$0xff] }
 0x529   :  { %4746 = vmatprep.subr.bf16.mxu1 %v13950_v3  ;;  %v14029_v3 = vld [vmem:[%s19527_s29 + $0x3f0] ss:$8 sps:$4 sm:$0xff]  }
 0x52c   :  { %4747 = vmatpush1.bf16.msra.mxu1 %v13948_v19  ;;  %v16706_v19 = vpack.c.bf16 %v5062_v60, %v5060_v63  ;;  %v5100_v63 = vld [vmem:[%s19528_s1 + $0x148] sm:$0xff]  ;;  %v5102_v60 = vld [vmem:[%s19528_s1 + $0x158] sm:$0xff] }
 0x52d   :  { %4748 = vmatprep.subr.bf16.mxu1 %v13953_v23  ;;  %v5059_v23 = vld [vmem:[%s19528_s1] sm:$0xff] }
 0x530   :  { %4749 = vmatpush1.bf16.msra.mxu1 %v13951_v0  ;;  %v5061_v0 = vld [vmem:[%s19528_s1 + $0x10] sm:$0xff] }
 0x531   :  { %4750 = vmatprep.subr.bf16.mxu1 %v13956_v4  ;;  %v5064_v4 = vld [vmem:[%s19528_s1 + $0x28] sm:$0xff] }
 0x534   :  { %4751 = vmatpush1.bf16.msra.mxu1 %v13954_v43  ;;  %v5066_v43 = vld [vmem:[%s19528_s1 + $0x38] sm:$0xff] }
 0x535   :  { %4752 = vmatprep.subr.bf16.mxu1 %v13959_v27  ;;  %v16720_v27 = vpack.c.bf16 %v5061_v0, %v5059_v23  ;;  %v16888_v23 = vpack.c.bf16 %v5102_v60, %v5100_v63  ;;  %v5099_v0 = vld [vmem:[%s19528_s1 + $0x140] sm:$0xff] }
 0x538   :  { %4753 = vmatpush1.bf16.msra.mxu1 %v13957_v40  ;;  %v16723_v40 = vpack.c.bf16 %v5066_v43, %v5064_v4  ;;  %v5101_v4 = vld [vmem:[%s19528_s1 + $0x150] sm:$0xff]  ;;  %v5104_v43 = vld [vmem:[%s19528_s1 + $0x168] sm:$0xff] }
 0x539   :  { %4754 = vmatprep.subr.bf16.mxu1 %v13962_v8  ;;  %v5063_v8 = vld [vmem:[%s19528_s1 + $0x20] sm:$0xff] }
 0x53c   :  { %4755 = vmatpush1.bf16.msra.mxu1 %v13960_v44  ;;  %v5065_v44 = vld [vmem:[%s19528_s1 + $0x30] sm:$0xff] }
 0x53d   :  { %4756 = vmatprep.subr.bf16.mxu1 %v13965_v32  ;;  %v5068_v32 = vld [vmem:[%s19528_s1 + $0x48] sm:$0xff] }
 0x540   :  { %4757 = vmatpush1.bf16.msra.mxu1 %v13963_v54  ;;  %v5070_v54 = vld [vmem:[%s19528_s1 + $0x58] sm:$0xff] }
 0x541   :  { %4758 = vmatprep.subr.bf16.mxu1 %v13968_v11  ;;  %v16741_v11 = vpack.c.bf16 %v5065_v44, %v5063_v8  ;;  %v5106_v8 = vld [vmem:[%s19528_s1 + $0x178] sm:$0xff]  ;;  %v16903_v44 = vpack.c.bf16 %v5101_v4, %v5099_v0 }
 0x544   :  { %4759 = vmatpush1.bf16.msra.mxu1 %v13966_v13  ;;  %v16744_v13 = vpack.c.bf16 %v5070_v54, %v5068_v32  ;;  %v16906_v32 = vpack.c.bf16 %v5106_v8, %v5104_v43  ;;  %v5103_v54 = vld [vmem:[%s19528_s1 + $0x160] sm:$0xff] }
 0x545   :  { %4760 = vmatprep.subr.bf16.mxu1 %v13971_v31  ;;  %v5067_v31 = vld [vmem:[%s19528_s1 + $0x40] sm:$0xff] }
 0x548   :  { %4761 = vmatpush1.bf16.msra.mxu1 %v13969_v34  ;;  %v5069_v34 = vld [vmem:[%s19528_s1 + $0x50] sm:$0xff] }
 0x549   :  { %4762 = vmatprep.subr.bf16.mxu1 %v13974_v9  ;;  %v16762_v9 = vpack.c.bf16 %v5074_v50, %v5072_v2  ;;  %v5108_v2 = vld [vmem:[%s19528_s1 + $0x188] sm:$0xff]  ;;  %v5110_v50 = vld [vmem:[%s19528_s1 + $0x198] sm:$0xff] }
 0x54c   :  { %4763 = vmatpush1.bf16.msra.mxu1 %v13972_v52  ;;  %v5071_v52 = vld [vmem:[%s19528_s1 + $0x60] sm:$0xff] }
 0x54d   :  { %4764 = vmatprep.subr.bf16.mxu1 %v13977_v14  ;;  %v5073_v14 = vld [vmem:[%s19528_s1 + $0x70] sm:$0xff] }
 0x550   :  { %4765 = vmatpush1.bf16.msra.mxu1 %v13975_v35  ;;  %v5076_v35 = vld [vmem:[%s19528_s1 + $0x88] sm:$0xff] }
 0x551   :  { %4766 = vmatprep.subr.bf16.mxu1 %v13980_v30  ;;  %v5078_v30 = vld [vmem:[%s19528_s1 + $0x98] sm:$0xff] }
 0x554   :  { %4767 = vmatpush1.bf16.msra.mxu1 %v13978_v57  ;;  %v16777_v57 = vpack.c.bf16 %v5073_v14, %v5071_v52  ;;  %v16925_v52 = vpack.c.bf16 %v5110_v50, %v5108_v2  ;;  %v5107_v14 = vld [vmem:[%s19528_s1 + $0x180] sm:$0xff] }
 0x555   :  { %4768 = vmatprep.subr.bf16.mxu1 %v13983_v1  ;;  %v16780_v1 = vpack.c.bf16 %v5078_v30, %v5076_v35  ;;  %v5109_v35 = vld [vmem:[%s19528_s1 + $0x190] sm:$0xff] }
 0x556   :  { %v16933_v30 = vpack.c.bf16 %v5109_v35, %v5107_v14 }
 0x558   :  { %4769 = vmatpush1.bf16.msra.mxu1 %v13981_v47  ;;  %v5075_v47 = vld [vmem:[%s19528_s1 + $0x80] sm:$0xff] }
 0x559   :  { %4980 = vmatprep.subr.bf16.mxu1 %v13986_v15  ;;  %v5077_v15 = vld [vmem:[%s19528_s1 + $0x90] sm:$0xff] }
 0x55b   :  { %4771 = vmatmul.mubr.bf16.vlgmr.msra.gmra.mrb[56].mxu1 %v4543_v59  ;;  %v13993_v59 = vld [vmem:[%s19527_s29 + $0x330] ss:$8 sps:$4 sm:$0xff]  }
 0x55c   :  { %4981 = vmatpush1.bf16.msra.mxu1 %v13984_v22  ;;  %5012 = vmatprep.mubr.bf16.mxu1 %v4786_v37  ;;  %v14001_v37 = vld [vmem:[%s19527_s29 + $0x354] ss:$8 sps:$4 sm:$0xff]   ;;  %v5080_v22 = vld [vmem:[%s19528_s1 + $0xa8] sm:$0xff] }
 0x55d   :  { %4982 = vmatprep.subr.bf16.mxu1 %v13989_v20  ;;  %v5082_v20 = vld [vmem:[%s19528_s1 + $0xb8] sm:$0xff] }
 0x560   :  { %4983 = vmatpush1.bf16.msra.mxu1 %v13987_v25  ;;  %v16795_v25 = vpack.c.bf16 %v5077_v15, %v5075_v47  ;;  %v5112_v47 = vld [vmem:[%s19528_s1 + $0x1a8] sm:$0xff]  ;;  %v5114_v15 = vld [vmem:[%s19528_s1 + $0x1b8] sm:$0xff] }
 0x561   :  { %4984 = vmatprep.subr.bf16.mxu1 %v13992_v55  ;;  %v16798_v55 = vpack.c.bf16 %v5082_v20, %v5080_v22  ;;  %v16943_v22 = vpack.c.bf16 %v5114_v15, %v5112_v47  ;;  %v5111_v20 = vld [vmem:[%s19528_s1 + $0x1a0] sm:$0xff] }
 0x564   :  { %4985 = vmatpush1.bf16.msra.mxu1 %v13990_v33  ;;  %v5079_v33 = vld [vmem:[%s19528_s1 + $0xa0] sm:$0xff] }
 0x565   :  { %4986 = vmatprep.subr.bf16.mxu1 %v13995_v38  ;;  %v5081_v38 = vld [vmem:[%s19528_s1 + $0xb0] sm:$0xff] }
 0x568   :  { %4987 = vmatpush1.bf16.msra.mxu1 %v13993_v59  ;;  %v5084_v59 = vld [vmem:[%s19528_s1 + $0xc8] sm:$0xff] }
 0x569   :  { %4988 = vmatprep.subr.bf16.mxu1 %v13998_v48  ;;  %v5086_v48 = vld [vmem:[%s19528_s1 + $0xd8] sm:$0xff] }
 0x56c   :  { %4989 = vmatpush1.bf16.msra.mxu1 %v13996_v10  ;;  %v16813_v10 = vpack.c.bf16 %v5081_v38, %v5079_v33  ;;  %v5113_v33 = vld [vmem:[%s19528_s1 + $0x1b0] sm:$0xff] }
 0x56d   :  { %4990 = vmatprep.subr.bf16.mxu1 %v14001_v37  ;;  %v16816_v37 = vpack.c.bf16 %v5086_v48, %v5084_v59  ;;  %v16951_v38 = vpack.c.bf16 %v5113_v33, %v5111_v20  ;;  %v5116_v59 = vld [vmem:[%s19528_s1 + $0x1c8] sm:$0xff]  ;;  %v5118_v48 = vld [vmem:[%s19528_s1 + $0x1d8] sm:$0xff] }
 0x570   :  { %4991 = vmatpush1.bf16.msra.mxu1 %v13999_v45  ;;  %v5083_v45 = vld [vmem:[%s19528_s1 + $0xc0] sm:$0xff] }
 0x571   :  { %4992 = vmatprep.subr.bf16.mxu1 %v14004_v36  ;;  %v5085_v36 = vld [vmem:[%s19528_s1 + $0xd0] sm:$0xff] }
 0x574   :  { %4993 = vmatpush1.bf16.msra.mxu1 %v14002_v7  ;;  %v5088_v7 = vld [vmem:[%s19528_s1 + $0xe8] sm:$0xff] }
 0x575   :  { %4994 = vmatprep.subr.bf16.mxu1 %v14007_v24  ;;  %v5090_v24 = vld [vmem:[%s19528_s1 + $0xf8] sm:$0xff] }
 0x578   :  { %4995 = vmatpush1.bf16.msra.mxu1 %v14005_v53  ;;  %v16831_v53 = vpack.c.bf16 %v5085_v36, %v5083_v45  ;;  %v16961_v45 = vpack.c.bf16 %v5118_v48, %v5116_v59  ;;  %v5115_v36 = vld [vmem:[%s19528_s1 + $0x1c0] sm:$0xff] }
 0x579   :  { %4996 = vmatprep.subr.bf16.mxu1 %v14010_v58  ;;  %v16834_v58 = vpack.c.bf16 %v5090_v24, %v5088_v7  ;;  %v5117_v7 = vld [vmem:[%s19528_s1 + $0x1d0] sm:$0xff] }
 0x57a   :  { %v16969_v24 = vpack.c.bf16 %v5117_v7, %v5115_v36 }
 0x57c   :  { %4997 = vmatpush1.bf16.msra.mxu1 %v14008_v62  ;;  %v5087_v62 = vld [vmem:[%s19528_s1 + $0xe0] sm:$0xff] }
 0x57d   :  { %4998 = vmatprep.subr.bf16.mxu1 %v14013_v61  ;;  %v5089_v61 = vld [vmem:[%s19528_s1 + $0xf0] sm:$0xff] }
 0x580   :  { %4999 = vmatpush1.bf16.msra.mxu1 %v14011_v39  ;;  %v5092_v39 = vld [vmem:[%s19528_s1 + $0x108] sm:$0xff] }
 0x581   :  { %5000 = vmatprep.subr.bf16.mxu1 %v14016_v16  ;;  %v5094_v16 = vld [vmem:[%s19528_s1 + $0x118] sm:$0xff] }
 0x584   :  { %5001 = vmatpush1.bf16.msra.mxu1 %v14014_v17  ;;  %v16849_v17 = vpack.c.bf16 %v5089_v61, %v5087_v62  ;;  %v5120_v62 = vld [vmem:[%s19528_s1 + $0x1e8] sm:$0xff]  ;;  %v5122_v61 = vld [vmem:[%s19528_s1 + $0x1f8] sm:$0xff] }
 0x585   :  { %5002 = vmatprep.subr.bf16.mxu1 %v14019_v18  ;;  %v16852_v18 = vpack.c.bf16 %v5094_v16, %v5092_v39  ;;  %v5119_v39 = vld [vmem:[%s19528_s1 + $0x1e0] sm:$0xff]  ;;  %v16982_v16 = vpack.c.bf16 %v5122_v61, %v5120_v62 }
 0x588   :  { %5003 = vmatpush1.bf16.msra.mxu1 %v14017_v41  ;;  %v5091_v41 = vld [vmem:[%s19528_s1 + $0x100] sm:$0xff] }
 0x589   :  { %5004 = vmatprep.subr.bf16.mxu1 %v14022_v29  ;;  %v5093_v29 = vld [vmem:[%s19528_s1 + $0x110] sm:$0xff] }
 0x58c   :  { %5005 = vmatpush1.bf16.msra.mxu1 %v14020_v12  ;;  %v5096_v12 = vld [vmem:[%s19528_s1 + $0x128] sm:$0xff] }
 0x58d   :  { %5006 = vmatprep.subr.bf16.mxu1 %v14025_v26  ;;  %v5098_v26 = vld [vmem:[%s19528_s1 + $0x138] sm:$0xff] }
 0x590   :  { %5007 = vmatpush1.bf16.msra.mxu1 %v14023_v42  ;;  %v16867_v42 = vpack.c.bf16 %v5093_v29, %v5091_v41  ;;  %v5121_v41 = vld [vmem:[%s19528_s1 + $0x1f0] sm:$0xff] }
 0x591   :  { %5008 = vmatprep.subr.bf16.mxu1 %v14028_v21  ;;  %v16870_v21 = vpack.c.bf16 %v5098_v26, %v5096_v12  ;;  %v16987_v29 = vpack.c.bf16 %v5121_v41, %v5119_v39 }
 0x594   :  { %5009 = vmatpush1.bf16.msra.mxu1 %v14026_v51  ;;  %v5095_v51 = vld [vmem:[%s19528_s1 + $0x120] sm:$0xff] }
 0x595   :  { %5010 = vmatprep.subr.bf16.mxu1 %v14031_v56  ;;  %v5097_v56 = vld [vmem:[%s19528_s1 + $0x130] sm:$0xff] }
 0x598   :  { %5011 = vmatpush1.bf16.msra.mxu1 %v14029_v3  ;;  %v16885_v3 = vpack.c.bf16 %v5097_v56, %v5095_v51 }
 0x599   :  { %12700 = vmatprep.subr.bf16.mxu1 %v16706_v19 }
 0x59b   :  { %5013 = vmatmul.mubr.bf16.vlgmr.msra.gmra.mrb[56].mxu1 %v4785_v6  ;;  %v16759_v6 = vpack.c.bf16 %v5069_v34, %v5067_v31  ;;  %v5105_v31 = vld [vmem:[%s19528_s1 + $0x170] sm:$0xff] }
 0x59c   :  { %12702 = vmatpush1.bf16.msra.mxu1 %v16720_v27  ;;  %v16915_v34 = vpack.c.bf16 %v5105_v31, %v5103_v54 }
 0x59d   :  { %12704 = vmatprep.subr.bf16.mxu1 %v16723_v40 }
 0x5a0   :  { %12706 = vmatpush1.bf16.msra.mxu1 %v16741_v11 }
 0x5a1   :  { %12708 = vmatprep.subr.bf16.mxu1 %v16744_v13 }
 0x5a4   :  { %12710 = vmatpush1.bf16.msra.mxu1 %v16759_v6 }
 0x5a5   :  { %12712 = vmatprep.subr.bf16.mxu1 %v16762_v9 }
 0x5a8   :  { %12714 = vmatpush1.bf16.msra.mxu1 %v16777_v57 }
 0x5a9   :  { %12716 = vmatprep.subr.bf16.mxu1 %v16780_v1 }
 0x5ac   :  { %12718 = vmatpush1.bf16.msra.mxu1 %v16795_v25 }
 0x5ad   :  { %12720 = vmatprep.subr.bf16.mxu1 %v16798_v55 }
 0x5b0   :  { %12722 = vmatpush1.bf16.msra.mxu1 %v16813_v10 }
 0x5b1   :  { %12724 = vmatprep.subr.bf16.mxu1 %v16816_v37 }
 0x5b4   :  { %12726 = vmatpush1.bf16.msra.mxu1 %v16831_v53 }
 0x5b5   :  { %12728 = vmatprep.subr.bf16.mxu1 %v16834_v58 }
 0x5b8   :  { %12730 = vmatpush1.bf16.msra.mxu1 %v16849_v17 }
 0x5b9   :  { %12732 = vmatprep.subr.bf16.mxu1 %v16852_v18 }
 0x5bc   :  { %12734 = vmatpush1.bf16.msra.mxu1 %v16867_v42 }
 0x5bd   :  { %12736 = vmatprep.subr.bf16.mxu1 %v16870_v21 }
 0x5c0   :  { %12738 = vmatpush1.bf16.msra.mxu1 %v16885_v3 }
 0x5c1   :  { %12740 = vmatprep.subr.bf16.mxu1 %v16888_v23 }
 0x5c4   :  { %12742 = vmatpush1.bf16.msra.mxu1 %v16903_v44 }
 0x5c5   :  { %12744 = vmatprep.subr.bf16.mxu1 %v16906_v32 }
 0x5c8   :  { %12746 = vmatpush1.bf16.msra.mxu1 %v16915_v34 }
 0x5c9   :  { %12748 = vmatprep.subr.bf16.mxu1 %v16925_v52 }
 0x5cc   :  { %12750 = vmatpush1.bf16.msra.mxu1 %v16933_v30 }
 0x5cd   :  { %12752 = vmatprep.subr.bf16.mxu1 %v16943_v22 }
 0x5d0   :  { %12754 = vmatpush1.bf16.msra.mxu1 %v16951_v38 }
 0x5d1   :  { %12756 = vmatprep.subr.bf16.mxu1 %v16961_v45 }
 0x5d4   :  { %12758 = vmatpush1.bf16.msra.mxu1 %v16969_v24 }
 0x5d5   :  { %12760 = vmatprep.subr.bf16.mxu1 %v16982_v16 }
 0x5d8   :  { %12762 = vmatpush1.bf16.msra.mxu1 %v16987_v29 }
 0x5d9   :  { %12764 = vmatprep.subr.bf16.mxu1 %v16706_v19 }
 0x66e   :  { %v16992_v12 = vpop.f32.mrb[56].mxu1 }
 0x66f   :  { %v16994_v26 = vpop.f32.mrb[57].mxu1  ;;  %v5041_v56 = vmul.f32 %v16992_v12, %v16992_v12 }
 0x670   :  { %v16996_v51 = vpop.f32.mrb[58].mxu1  ;;  %v5042_v19 = vmul.f32 %v16994_v26, %v16994_v26 }
 0x671   :  { %v5027_v63 = vadd.f32 %v16996_v51, %v16992_v12  ;;  %v5043_v60 = vmul.f32 %v16996_v51, %v16996_v51  ;;  %v17004_v0 = vpop.f32.mrb[59].mxu1 }
 0x672   :  { %v5034_v4 = vadd.f32 %v17004_v0, %v16994_v26  ;;  %v5044_v43 = vmul.f32 %v17004_v0, %v17004_v0 }
 0x673   :  { %v5028_v8 = vrot.slane %v5027_v63, 4  ;;  %v5045_v54 = vadd.f32 %v5043_v60, %v5041_v56 }
 0x674   :  { %v5035_v31 = vrot.slane %v5034_v4, 4  ;;  %v5052_v2 = vadd.f32 %v5044_v43, %v5042_v19 }
 0x675   :  { %v5029_v50 = vadd.f32 %v5028_v8, %v5027_v63 }
 0x676   :  { %v5036_v14 = vadd.f32 %v5035_v31, %v5034_v4  ;;  %v5053_v35 = vrot.slane %v5052_v2, 4 }
 0x677   :  { %v5030_v47 = vrot.slane %v5029_v50, 2 }
 0x678   :  { %v5037_v15 = vrot.slane %v5036_v14, 2  ;;  %v5054_v20 = vadd.f32 %v5053_v35, %v5052_v2 }
 0x679   :  { %v5031_v33 = vadd.f32 %v5030_v47, %v5029_v50 }
 0x67a   :  { %v5038_v59 = vadd.f32 %v5037_v15, %v5036_v14  ;;  %v5055_v48 = vrot.slane %v5054_v20, 2 }
 0x67b   :  { %v5032_v36 = vrot.slane %v5031_v33, 1 }
 0x67c   :  { %v5039_v7 = vrot.slane %v5038_v59, 1  ;;  %v5056_v62 = vadd.f32 %v5055_v48, %v5054_v20  ;;  %v5341_v48 = vld [vmem:[%s19451_s9] sm:$0xff] }
 0x67d   :  { %v5033_v41 = vadd.f32 %v5032_v36, %v5031_v33  ;;  %v11401_v36 = vld [vmem:[%s19451_s9 + $0x8] sm:$0xff] }
 0x67e   :  { %v5040_v61 = vadd.f32 %v5039_v7, %v5038_v59  ;;  %v5057_v39 = vrot.slane %v5056_v62, 1  ;;  %v11403_v7 = vld [vmem:[%s19451_s9 + $0x10] sm:$0xff] }
 0x680   :  { %5187 = vmatprep.mubr.f32.mxu1 %v5040_v61  ;;  %v5058_v28 = vadd.f32 %v5057_v39, %v5056_v62  ;;  %v14034_v62 = vld [vmem:[%s19452_s10 + $0x104] ss:$8 sps:$4 sm:$0xff]   ;;  %v11405_v61 = vld [vmem:[%s19451_s9 + $0x18] sm:$0xff]  ;;  %v14032_v39 = vld [vmem:[%s19452_s10 + $0x100] ss:$8 sps:$4 sm:$0xff]  }
 0x681   :  { %5188 = vmatmul.mubr.f32.vlgmr.msra.gmra.mrb[60].mxu1 %v5033_v41  ;;  %v14037_v41 = vld [vmem:[%s19452_s10 + $0x114] ss:$8 sps:$4 sm:$0xff]  }
 0x682   :  { %12766 = vmatpush1.bf16.msra.mxu1 %v16720_v27  ;;  %5258 = vmatprep.mubr.f32.mxu1 %v5058_v28  ;;  %v5046_v28 = vrot.slane %v5045_v54, 4 }
 0x683   :  { %12768 = vmatprep.subr.bf16.mxu1 %v16723_v40 }
 0x684   :  { %v5047_v27 = vadd.f32 %v5046_v28, %v5045_v54  ;;  %v14035_v28 = vld [vmem:[%s19452_s10 + $0x110] ss:$8 sps:$4 sm:$0xff]  }
 0x686   :  { %12770 = vmatpush1.bf16.msra.mxu1 %v16741_v11  ;;  %v5048_v40 = vrot.slane %v5047_v27, 2 }
 0x687   :  { %12772 = vmatprep.subr.bf16.mxu1 %v16744_v13 }
 0x688   :  { %v5049_v11 = vadd.f32 %v5048_v40, %v5047_v27  ;;  %v14040_v27 = vld [vmem:[%s19452_s10 + $0x124] ss:$8 sps:$4 sm:$0xff]   ;;  %v14038_v40 = vld [vmem:[%s19452_s10 + $0x120] ss:$8 sps:$4 sm:$0xff]  }
 0x68a   :  { %12774 = vmatpush1.bf16.msra.mxu1 %v16759_v6  ;;  %v5050_v13 = vrot.slane %v5049_v11, 1 }
 0x68b   :  { %12776 = vmatprep.subr.bf16.mxu1 %v16762_v9 }
 0x68c   :  { %v5051_v6 = vadd.f32 %v5050_v13, %v5049_v11  ;;  %v14043_v11 = vld [vmem:[%s19452_s10 + $0x134] ss:$8 sps:$4 sm:$0xff]   ;;  %v14041_v13 = vld [vmem:[%s19452_s10 + $0x130] ss:$8 sps:$4 sm:$0xff]  }
 0x68e   :  { %12778 = vmatpush1.bf16.msra.mxu1 %v16777_v57 }
 0x68f   :  { %12780 = vmatprep.subr.bf16.mxu1 %v16780_v1 }
 0x692   :  { %12782 = vmatpush1.bf16.msra.mxu1 %v16795_v25 }
 0x693   :  { %12784 = vmatprep.subr.bf16.mxu1 %v16798_v55 }
 0x696   :  { %12786 = vmatpush1.bf16.msra.mxu1 %v16813_v10 }
 0x697   :  { %12788 = vmatprep.subr.bf16.mxu1 %v16816_v37 }
 0x69a   :  { %12790 = vmatpush1.bf16.msra.mxu1 %v16831_v53 }
 0x69b   :  { %12792 = vmatprep.subr.bf16.mxu1 %v16834_v58 }
 0x69e   :  { %12794 = vmatpush1.bf16.msra.mxu1 %v16849_v17 }
 0x69f   :  { %12796 = vmatprep.subr.bf16.mxu1 %v16852_v18 }
 0x6a2   :  { %12798 = vmatpush1.bf16.msra.mxu1 %v16867_v42 }
 0x6a3   :  { %12800 = vmatprep.subr.bf16.mxu1 %v16870_v21 }
 0x6a6   :  { %12802 = vmatpush1.bf16.msra.mxu1 %v16885_v3 }
 0x6a7   :  { %12804 = vmatprep.subr.bf16.mxu1 %v16888_v23 }
 0x6aa   :  { %12806 = vmatpush1.bf16.msra.mxu1 %v16903_v44 }
 0x6ab   :  { %12808 = vmatprep.subr.bf16.mxu1 %v16906_v32  ;;  %v5297_v32 = vld [vmem:[%s19449_s7] sm:$0x3] }
 0x6ae   :  { %12810 = vmatpush1.bf16.msra.mxu1 %v16915_v34 }
 0x6af   :  { %12812 = vmatprep.subr.bf16.mxu1 %v16925_v52  ;;  %v5313_v52 = vld [vmem:[%s19450_s8] sm:$0x3] }
 0x6b0   :  { %v5322_v56 = vrot.slane %v5313_v52, %v16231_v49 }
 0x6b2   :  { %12814 = vmatpush1.bf16.msra.mxu1 %v16933_v30 }
 0x6b3   :  { %12816 = vmatprep.subr.bf16.mxu1 %v16943_v22 }
 0x6b6   :  { %12818 = vmatpush1.bf16.msra.mxu1 %v16951_v38  ;;  %v5302_v38 = vrot.slane %v5297_v32, %v16225_v46 }
 0x6b7   :  { %12820 = vmatprep.subr.bf16.mxu1 %v16961_v45 }
 0x6ba   :  { %12822 = vmatpush1.bf16.msra.mxu1 %v16969_v24  ;;  %v5306_v24 = vrot.slane %v5297_v32, %v16231_v49  ;;  %v14068_v32 = vld [vmem:[%s19452_s10 + $0x1c0] ss:$8 sps:$4 sm:$0xff]  }
 0x6bb   :  { %12824 = vmatprep.subr.bf16.mxu1 %v16982_v16 }
 0x6be   :  { %12826 = vmatpush1.bf16.msra.mxu1 %v16987_v29 }
 0x6c1   :  { %5259 = vmatmul.mubr.f32.vlgmr.msra.gmra.mrb[62].mxu1 %v5051_v6  ;;  %v14046_v6 = vld [vmem:[%s19452_s10 + $0x144] ss:$8 sps:$4 sm:$0xff]  }
 0x6c2   :  { %5410 = vmatprep.mubr.f32.mxu1 %v19526_v5 }
 0x754   :  { %v5189_v9 = vpop.f32.mrb[60].mxu1 }
 0x755   :  { %v5272_v57 = vrot.slane %v5189_v9, %v16225_v46  ;;  %v5191_v1 = vpop.f32.mrb[61].mxu1  ;;  %v5265_v58 = vmul.f32 %v5189_v9, %v5189_v9  ;;  %v14044_v9 = vld [vmem:[%s19452_s10 + $0x140] ss:$8 sps:$4 sm:$0xff]  }
 0x756   :  { %v5276_v25 = vrot.slane %v5191_v1, %v16225_v46  ;;  %v5266_v17 = vmul.f32 %v5191_v1, %v5191_v1  ;;  %v14047_v1 = vld [vmem:[%s19452_s10 + $0x150] ss:$8 sps:$4 sm:$0xff]  }
 0x757   :  { %v5277_v55 = vsub.f32 %v16992_v12, %v5272_v57  ;;  %v5279_v10 = vsub.f32 %v16996_v51, %v5272_v57  ;;  %v5318_v12 = vrot.slane %v5313_v52, %v16225_v46  ;;  %v14049_v57 = vld [vmem:[%s19452_s10 + $0x154] ss:$8 sps:$4 sm:$0xff]   ;;  %v14071_v52 = vld [vmem:[%s19452_s10 + $0x1d0] ss:$8 sps:$4 sm:$0xff]  }
 0x758   :  { %v5278_v37 = vsub.f32 %v16994_v26, %v5276_v25  ;;  %v5280_v53 = vsub.f32 %v17004_v0, %v5276_v25  ;;  %v14052_v25 = vld [vmem:[%s19452_s10 + $0x164] ss:$8 sps:$4 sm:$0xff]  }
 0x794   :  { %v5260_v18 = vpop.f32.mrb[62].mxu1 }
 0x795   :  { %v5267_v42 = vsub.f32 %v5260_v18, %v5265_v58  ;;  %v5262_v21 = vpop.f32.mrb[63].mxu1  ;;  %v14056_v58 = vld [vmem:[%s19452_s10 + $0x180] ss:$8 sps:$4 sm:$0xff]   ;;  %v14059_v18 = vld [vmem:[%s19452_s10 + $0x190] ss:$8 sps:$4 sm:$0xff]  }
 0x796   :  { %v5268_v3 = vsub.f32 %v5262_v21, %v5266_v17  ;;  %v14061_v17 = vld [vmem:[%s19452_s10 + $0x194] ss:$8 sps:$4 sm:$0xff]   ;;  %v14062_v21 = vld [vmem:[%s19452_s10 + $0x1a0] ss:$8 sps:$4 sm:$0xff]  }
 0x797   :  { %v5281_v23 = vadd.f32 1e-05, %v5267_v42  ;;  %v14064_v42 = vld [vmem:[%s19452_s10 + $0x1a4] ss:$8 sps:$4 sm:$0xff]  }
 0x798   :  { %v5282_v44 = vadd.f32 1e-05, %v5268_v3  ;;  %v14067_v3 = vld [vmem:[%s19452_s10 + $0x1b4] ss:$8 sps:$4 sm:$0xff]  }
 0x799   :  { %14480 = vrsqrt.f32 %v5281_v23  ;;  %v14065_v23 = vld [vmem:[%s19452_s10 + $0x1b0] ss:$8 sps:$4 sm:$0xff]  }
 0x79a   :  { %14482 = vrsqrt.f32 %v5282_v44  ;;  %v14070_v44 = vld [vmem:[%s19452_s10 + $0x1c4] ss:$8 sps:$4 sm:$0xff]  }
 0x7a3   :  { %v14481_v34 = vpop.eup %14480 }
 0x7a4   :  { %v14483_v30 = vpop.eup %14482  ;;  %v5288_v22 = vrot.slane %v14481_v34, %v16225_v46  ;;  %v14073_v34 = vld [vmem:[%s19452_s10 + $0x1d4] ss:$8 sps:$4 sm:$0xff]  }
 0x7a5   :  { %v5292_v45 = vrot.slane %v14483_v30, %v16225_v46  ;;  %v14076_v30 = vld [vmem:[%s19452_s10 + $0x1e4] ss:$8 sps:$4 sm:$0xff]  }
 0x7a6   :  { %v5293_v16 = vmul.f32 %v5288_v22, %v5277_v55  ;;  %v5295_v29 = vmul.f32 %v5288_v22, %v5279_v10  ;;  %v14050_v55 = vld [vmem:[%s19452_s10 + $0x160] ss:$8 sps:$4 sm:$0xff]   ;;  %v14055_v10 = vld [vmem:[%s19452_s10 + $0x174] ss:$8 sps:$4 sm:$0xff]  }
 0x7a7   :  { %v5294_v26 = vmul.f32 %v5292_v45, %v5278_v37  ;;  %v5296_v51 = vmul.f32 %v5292_v45, %v5280_v53  ;;  %v14053_v37 = vld [vmem:[%s19452_s10 + $0x170] ss:$8 sps:$4 sm:$0xff]   ;;  %v14058_v53 = vld [vmem:[%s19452_s10 + $0x184] ss:$8 sps:$4 sm:$0xff]   ;;  %v14074_v22 = vld [vmem:[%s19452_s10 + $0x1e0] ss:$8 sps:$4 sm:$0xff]  }
 0x7a8   :  { %v5309_v63 = vmul.f32 %v5302_v38, %v5293_v16  ;;  %v5311_v60 = vmul.f32 %v5302_v38, %v5295_v29  ;;  %v14079_v38 = vld [vmem:[%s19452_s10 + $0x1f4] ss:$8 sps:$4 sm:$0xff]   ;;  %v14077_v45 = vld [vmem:[%s19452_s10 + $0x1f0] ss:$8 sps:$4 sm:$0xff]  }
 0x7a9   :  { %v5310_v0 = vmul.f32 %v5306_v24, %v5294_v26  ;;  %v5312_v19 = vmul.f32 %v5306_v24, %v5296_v51  ;;  %v14082_v24 = vld [vmem:[%s19452_s10 + $0x4] ss:$8 sps:$4 sm:$0xff]  }
 0x7aa   :  { %v5325_v4 = vadd.f32 %v5318_v12, %v5309_v63  ;;  %v5327_v43 = vadd.f32 %v5318_v12, %v5311_v60  ;;  %v14085_v60 = vld [vmem:[%s19452_s10 + $0x14] ss:$8 sps:$4 sm:$0xff]  }
 0x7ab   :  { %v5326_v8 = vadd.f32 %v5322_v56, %v5310_v0  ;;  %v5328_v54 = vadd.f32 %v5322_v56, %v5312_v19  ;;  %v14080_v56 = vld [vmem:[%s19452_s10] ss:$8 sps:$4 sm:$0xff]  }
 0x7ac   :  { %vm5329_vm10 = vcmp.ge.f32.partialorder %v5325_v4, 0.0  ;;  %vm5331_vm11 = vcmp.ge.f32.partialorder %v5327_v43, 0.0  ;;  %v5333_v31 = vmul.f32 0.2, %v5325_v4  ;;  %v5335_v2 = vmul.f32 0.2, %v5327_v43 }
 0x7ad   :  { %vm5330_vm12 = vcmp.ge.f32.partialorder %v5326_v8, 0.0  ;;  %vm5332_vm13 = vcmp.ge.f32.partialorder %v5328_v54, 0.0  ;;  %v5334_v50 = vmul.f32 0.2, %v5326_v8  ;;  %v5336_v14 = vmul.f32 0.2, %v5328_v54 }
 0x7ae   :  { %v5337_v35 = vsel %vm5329_vm10, %v5325_v4, %v5333_v31  ;;  %v5339_v47 = vsel %vm5331_vm11, %v5327_v43, %v5335_v2  ;;  %v14083_v43 = vld [vmem:[%s19452_s10 + $0x10] ss:$8 sps:$4 sm:$0xff]   ;;  %v14091_v31 = vld [vmem:[%s19452_s10 + $0x34] ss:$8 sps:$4 sm:$0xff]   ;;  %vm10574_vm10 = vcmask 11272  }
 0x7af   :  { %v5338_v15 = vsel %vm5330_vm12, %v5326_v8, %v5334_v50  ;;  %v5340_v20 = vsel %vm5332_vm13, %v5328_v54, %v5336_v14  ;;  %v12829_v33 = vpack.c.bf16 %v5339_v47, %v5337_v35  ;;  %v14088_v8 = vld [vmem:[%s19452_s10 + $0x24] ss:$8 sps:$4 sm:$0xff]   ;;  %v14086_v54 = vld [vmem:[%s19452_s10 + $0x20] ss:$8 sps:$4 sm:$0xff]   ;;  %v14089_v2 = vld [vmem:[%s19452_s10 + $0x30] ss:$8 sps:$4 sm:$0xff]  }
 0x7b0   :  { %v12827_v59 = vpack.c.bf16 %v5340_v20, %v5338_v15  ;;  %v14094_v50 = vld [vmem:[%s19452_s10 + $0x44] ss:$8 sps:$4 sm:$0xff]   ;;  %v14092_v14 = vld [vmem:[%s19452_s10 + $0x40] ss:$8 sps:$4 sm:$0xff]   ;;  %v14097_v35 = vld [vmem:[%s19452_s10 + $0x54] ss:$8 sps:$4 sm:$0xff]  }
 0x7b1   :  { %v14095_v47 = vld [vmem:[%s19452_s10 + $0x50] ss:$8 sps:$4 sm:$0xff]   ;;  %v14100_v20 = vld [vmem:[%s19452_s10 + $0x64] ss:$8 sps:$4 sm:$0xff]  }
 0x7b2   :  { %12828 = vmatprep.subr.bf16.mxu1 %v12827_v59 }
 0x7b3   :  { %12830 = vmatpush1.bf16.msra.mxu1 %v12829_v33 }
 0x7b4   :  { %12832 = vmatprep.subr.bf16.mxu1 %v12827_v59 }
 0x7b6   :  { %11400 = vmatmul.mubr.msk.f32.vlgmr.msra.gmra.mrb[64].mxu1 %vm5342_vm14, %v5341_v48  ;;  %v14103_v48 = vld [vmem:[%s19452_s10 + $0x74] ss:$8 sps:$4 sm:$0xff]  }
 0x7b7   :  { %12834 = vmatpush1.bf16.msra.mxu1 %v12829_v33  ;;  %5486 = vmatprep.mubr.f32.mxu1 %v19526_v5 }
 0x7b8   :  { %12836 = vmatprep.subr.bf16.mxu1 %v12827_v59 }
 0x7ba   :  { %11402 = vmatmul.mubr.msk.f32.vlgmr.msra.gmra.mrb[66].mxu1 %vm5342_vm14, %v11401_v36  ;;  %v14101_v36 = vld [vmem:[%s19452_s10 + $0x70] ss:$8 sps:$4 sm:$0xff]  }
 0x7bb   :  { %12838 = vmatpush1.bf16.msra.mxu1 %v12829_v33  ;;  %5562 = vmatprep.mubr.f32.mxu1 %v19526_v5 }
 0x7bc   :  { %12840 = vmatprep.subr.bf16.mxu1 %v12827_v59  ;;  %v14098_v59 = vld [vmem:[%s19452_s10 + $0x60] ss:$8 sps:$4 sm:$0xff]  }
 0x7be   :  { %11404 = vmatmul.mubr.msk.f32.vlgmr.msra.gmra.mrb[68].mxu1 %vm5342_vm14, %v11403_v7  ;;  %v14106_v7 = vld [vmem:[%s19452_s10 + $0x84] ss:$8 sps:$4 sm:$0xff]  }
 0x7bf   :  { %12842 = vmatpush1.bf16.msra.mxu1 %v12829_v33  ;;  %5638 = vmatprep.mubr.f32.mxu1 %v19526_v5 }
 0x7c0   :  { %5874 = vmatprep.subr.bf16.mxu1 %v14034_v62  ;;  %v14104_v62 = vld [vmem:[%s19452_s10 + $0x80] ss:$8 sps:$4 sm:$0xff]  }
 0x7c2   :  { %11406 = vmatmul.mubr.msk.f32.vlgmr.msra.gmra.mrb[70].mxu1 %vm5342_vm14, %v11405_v61  ;;  %v14109_v61 = vld [vmem:[%s19452_s10 + $0x94] ss:$8 sps:$4 sm:$0xff]  }
 0x7c3   :  { %5875 = vmatpush1.bf16.msra.mxu1 %v14032_v39  ;;  %v14107_v39 = vld [vmem:[%s19452_s10 + $0x90] ss:$8 sps:$4 sm:$0xff]  }
 0x7c4   :  { %5876 = vmatprep.subr.bf16.mxu1 %v14037_v41  ;;  %v14112_v41 = vld [vmem:[%s19452_s10 + $0xa4] ss:$8 sps:$4 sm:$0xff]  }
 0x7c7   :  { %5877 = vmatpush1.bf16.msra.mxu1 %v14035_v28  ;;  %v14110_v28 = vld [vmem:[%s19452_s10 + $0xa0] ss:$8 sps:$4 sm:$0xff]  }
 0x7c8   :  { %5878 = vmatprep.subr.bf16.mxu1 %v14040_v27  ;;  %v14115_v27 = vld [vmem:[%s19452_s10 + $0xb4] ss:$8 sps:$4 sm:$0xff]  }
 0x7cb   :  { %5879 = vmatpush1.bf16.msra.mxu1 %v14038_v40  ;;  %v14113_v40 = vld [vmem:[%s19452_s10 + $0xb0] ss:$8 sps:$4 sm:$0xff]  }
 0x7cc   :  { %5880 = vmatprep.subr.bf16.mxu1 %v14043_v11  ;;  %v14118_v11 = vld [vmem:[%s19452_s10 + $0xc4] ss:$8 sps:$4 sm:$0xff]  }
 0x7cf   :  { %5881 = vmatpush1.bf16.msra.mxu1 %v14041_v13  ;;  %v14116_v13 = vld [vmem:[%s19452_s10 + $0xc0] ss:$8 sps:$4 sm:$0xff]  }
 0x7d0   :  { %5882 = vmatprep.subr.bf16.mxu1 %v14046_v6  ;;  %v14121_v6 = vld [vmem:[%s19452_s10 + $0xd4] ss:$8 sps:$4 sm:$0xff]  }
 0x7d3   :  { %5883 = vmatpush1.bf16.msra.mxu1 %v14044_v9  ;;  %v14119_v9 = vld [vmem:[%s19452_s10 + $0xd0] ss:$8 sps:$4 sm:$0xff]  }
 0x7d4   :  { %5884 = vmatprep.subr.bf16.mxu1 %v14049_v57  ;;  %v14124_v57 = vld [vmem:[%s19452_s10 + $0xe4] ss:$8 sps:$4 sm:$0xff]  }
 0x7d7   :  { %5885 = vmatpush1.bf16.msra.mxu1 %v14047_v1  ;;  %v14122_v1 = vld [vmem:[%s19452_s10 + $0xe0] ss:$8 sps:$4 sm:$0xff]  }
 0x7d8   :  { %5886 = vmatprep.subr.bf16.mxu1 %v14052_v25  ;;  %v14127_v25 = vld [vmem:[%s19452_s10 + $0xf4] ss:$8 sps:$4 sm:$0xff]  }
 0x7db   :  { %5887 = vmatpush1.bf16.msra.mxu1 %v14050_v55  ;;  %v14125_v55 = vld [vmem:[%s19452_s10 + $0xf0] ss:$8 sps:$4 sm:$0xff]  }
 0x7dc   :  { %5888 = vmatprep.subr.bf16.mxu1 %v14055_v10  ;;  %v14130_v10 = vld [vmem:[%s19452_s10 + $0x204] ss:$8 sps:$4 sm:$0xff]  }
 0x7df   :  { %5889 = vmatpush1.bf16.msra.mxu1 %v14053_v37  ;;  %v14128_v37 = vld [vmem:[%s19452_s10 + $0x200] ss:$8 sps:$4 sm:$0xff]  }
 0x7e0   :  { %5890 = vmatprep.subr.bf16.mxu1 %v14058_v53 }
 0x7e3   :  { %5891 = vmatpush1.bf16.msra.mxu1 %v14056_v58 }
 0x7e4   :  { %5892 = vmatprep.subr.bf16.mxu1 %v14061_v17  ;;  %v14133_v17 = vld [vmem:[%s19452_s10 + $0x214] ss:$8 sps:$4 sm:$0xff]  }
 0x7e7   :  { %5893 = vmatpush1.bf16.msra.mxu1 %v14059_v18  ;;  %v14131_v18 = vld [vmem:[%s19452_s10 + $0x210] ss:$8 sps:$4 sm:$0xff]  }
 0x7e8   :  { %5894 = vmatprep.subr.bf16.mxu1 %v14064_v42  ;;  %v14136_v42 = vld [vmem:[%s19452_s10 + $0x224] ss:$8 sps:$4 sm:$0xff]  }
 0x7eb   :  { %5895 = vmatpush1.bf16.msra.mxu1 %v14062_v21  ;;  %v6619_v21 = vld [vmem:[%s19453_s11 + $0x8] sm:$0xff] }
 0x7ec   :  { %5896 = vmatprep.subr.bf16.mxu1 %v14067_v3  ;;  %v6621_v3 = vld [vmem:[%s19453_s11 + $0x18] sm:$0xff] }
 0x7ef   :  { %5897 = vmatpush1.bf16.msra.mxu1 %v14065_v23  ;;  %v6618_v23 = vld [vmem:[%s19453_s11] sm:$0xff] }
 0x7f0   :  { %5898 = vmatprep.subr.bf16.mxu1 %v14070_v44  ;;  %v17311_v44 = vpack.c.bf16 %v6621_v3, %v6619_v21  ;;  %v14154_v21 = vld [vmem:[%s19452_s10 + $0x284] ss:$8 sps:$4 sm:$0xff]  }
 0x7f1   :  { %v6651_v3 = vld [vmem:[%s19453_s11 + $0x108] sm:$0xff] }
 0x7f2   :  { %12844 = vmatprep.subr.bf16.mxu0 %v17311_v44 }
 0x7f3   :  { %5899 = vmatpush1.bf16.msra.mxu1 %v14068_v32  ;;  %v6620_v32 = vld [vmem:[%s19453_s11 + $0x10] sm:$0xff] }
 0x7f4   :  { %5900 = vmatprep.subr.bf16.mxu1 %v14073_v34  ;;  %v6623_v34 = vld [vmem:[%s19453_s11 + $0x28] sm:$0xff] }
 0x7f7   :  { %5901 = vmatpush1.bf16.msra.mxu1 %v14071_v52  ;;  %v6625_v52 = vld [vmem:[%s19453_s11 + $0x38] sm:$0xff] }
 0x7f8   :  { %5902 = vmatprep.subr.bf16.mxu1 %v14076_v30  ;;  %v17322_v30 = vpack.c.bf16 %v6620_v32, %v6618_v23  ;;  %v6653_v23 = vld [vmem:[%s19453_s11 + $0x118] sm:$0xff] }
 0x7fa   :  { %12846 = vmatpush1.bf16.msra.mxu0 %v17322_v30 }
 0x7fb   :  { %5903 = vmatpush1.bf16.msra.mxu1 %v14074_v22  ;;  %v17324_v22 = vpack.c.bf16 %v6625_v52, %v6623_v34  ;;  %v14152_v34 = vld [vmem:[%s19452_s10 + $0x280] ss:$8 sps:$4 sm:$0xff]   ;;  %v17490_v52 = vpack.c.bf16 %v6653_v23, %v6651_v3  ;;  %v14175_v23 = vld [vmem:[%s19452_s10 + $0x2f4] ss:$8 sps:$4 sm:$0xff]  }
 0x7fc   :  { %5904 = vmatprep.subr.bf16.mxu1 %v14079_v38  ;;  %v6622_v38 = vld [vmem:[%s19453_s11 + $0x20] sm:$0xff] }
 0x7fd   :  { %12848 = vmatprep.subr.bf16.mxu0 %v17324_v22  ;;  %v14170_v3 = vld [vmem:[%s19452_s10 + $0x2e0] ss:$8 sps:$4 sm:$0xff]  }
 0x7ff   :  { %5905 = vmatpush1.bf16.msra.mxu1 %v14077_v45  ;;  %v6624_v45 = vld [vmem:[%s19453_s11 + $0x30] sm:$0xff] }
 0x800   :  { %6075 = vmatprep.subr.bf16.mxu1 %v14082_v24  ;;  %v6627_v24 = vld [vmem:[%s19453_s11 + $0x48] sm:$0xff] }
 0x889   :  { %v17180_v16 = vpop.f32.mrb[64].mxu1 }
 0x88a   :  { %v5414_v29 = vpop.f32.mrb[65].mxu1  ;;  %v5645_v58 = vpack.c.bf16 %v17180_v16, %v17180_v16  ;;  %v6629_v16 = vld [vmem:[%s19453_s11 + $0x58] sm:$0xff] }
 0x88b   :  { %v5646_v0 = vpack.c.bf16 %v5414_v29, %v5414_v29  ;;  %v17340_v29 = vpack.c.bf16 %v6624_v45, %v6622_v38  ;;  %v6650_v38 = vld [vmem:[%s19453_s11 + $0x100] sm:$0xff]  ;;  %v6652_v45 = vld [vmem:[%s19453_s11 + $0x110] sm:$0xff] }
 0x88d   :  { %v5488_v12 = vpop.f32.mrb[66].mxu1  ;;  %12850 = vmatpush1.bf16.msra.mxu0 %v17340_v29 }
 0x88e   :  { %v5490_v26 = vpop.f32.mrb[67].mxu1  ;;  %v5679_v63 = vpack.c.bf16 %v5488_v12, %v5488_v12  ;;  %v14134_v12 = vld [vmem:[%s19452_s10 + $0x220] ss:$8 sps:$4 sm:$0xff]  }
 0x88f   :  { %v5680_v51 = vpack.c.bf16 %v5490_v26, %v5490_v26  ;;  %v17346_v26 = vpack.c.bf16 %v6629_v16, %v6627_v24  ;;  %v14157_v24 = vld [vmem:[%s19452_s10 + $0x294] ss:$8 sps:$4 sm:$0xff]   ;;  %v6655_v16 = vld [vmem:[%s19453_s11 + $0x128] sm:$0xff] }
 0x891   :  { %5906 = vmatprep.mubr.bf16.mxu1 %v5680_v51  ;;  %v17188_v19 = vpop.f32.mrb[68].mxu1  ;;  %v6626_v51 = vld [vmem:[%s19453_s11 + $0x40] sm:$0xff]  ;;  %12852 = vmatprep.subr.bf16.mxu0 %v17346_v26 }
 0x892   :  { %5907 = vmatmul.mubr.bf16.vlgmr.msra.gmra.mrb[72].mxu1 %v5679_v63  ;;  %v17190_v4 = vpop.f32.mrb[69].mxu1  ;;  %v14139_v63 = vld [vmem:[%s19452_s10 + $0x234] ss:$8 sps:$4 sm:$0xff]  }
 0x893   :  { %6076 = vmatpush1.bf16.msra.mxu1 %v14080_v56  ;;  %6107 = vmatprep.mubr.bf16.mxu1 %v5646_v0  ;;  %v6117_v53 = vpack.c.bf16 %v17190_v4, %v17190_v4  ;;  %v6628_v56 = vld [vmem:[%s19453_s11 + $0x50] sm:$0xff]  ;;  %v6633_v0 = vld [vmem:[%s19453_s11 + $0x78] sm:$0xff] }
 0x894   :  { %6077 = vmatprep.subr.bf16.mxu1 %v14085_v60  ;;  %v6631_v60 = vld [vmem:[%s19453_s11 + $0x68] sm:$0xff]  ;;  %v17364_v4 = vpack.c.bf16 %v6628_v56, %v6626_v51  ;;  %v17508_v51 = vpack.c.bf16 %v6652_v45, %v6650_v38  ;;  %v14155_v56 = vld [vmem:[%s19452_s10 + $0x290] ss:$8 sps:$4 sm:$0xff]   ;;  %v6116_v45 = vpack.c.bf16 %v17188_v19, %v17188_v19 }
 0x895   :  { %v17219_v15 = vpop.f32.mrb[70].mxu1  ;;  %v14178_v38 = vld [vmem:[%s19452_s10 + $0x304] ss:$8 sps:$4 sm:$0xff]  }
 0x896   :  { %v17224_v33 = vpop.f32.mrb[71].mxu1  ;;  %12854 = vmatpush1.bf16.msra.mxu0 %v17364_v4  ;;  %v14184_v19 = vld [vmem:[%s19452_s10 + $0x324] ss:$8 sps:$4 sm:$0xff]  }
 0x897   :  { %6078 = vmatpush1.bf16.msra.mxu1 %v14083_v43  ;;  %v14137_v43 = vld [vmem:[%s19452_s10 + $0x230] ss:$8 sps:$4 sm:$0xff]  }
 0x898   :  { %6079 = vmatprep.subr.bf16.mxu1 %v14088_v8  ;;  %v17370_v8 = vpack.c.bf16 %v6633_v0, %v6631_v60  ;;  %v6654_v60 = vld [vmem:[%s19453_s11 + $0x120] sm:$0xff]  ;;  %v6656_v0 = vld [vmem:[%s19453_s11 + $0x130] sm:$0xff] }
 0x89a   :  { %12856 = vmatprep.subr.bf16.mxu0 %v17370_v8 }
 0x89b   :  { %6080 = vmatpush1.bf16.msra.mxu1 %v14086_v54  ;;  %v6630_v54 = vld [vmem:[%s19453_s11 + $0x60] sm:$0xff] }
 0x89c   :  { %6081 = vmatprep.subr.bf16.mxu1 %v14091_v31  ;;  %v6632_v31 = vld [vmem:[%s19453_s11 + $0x70] sm:$0xff] }
 0x89f   :  { %6082 = vmatpush1.bf16.msra.mxu1 %v14089_v2  ;;  %v14142_v2 = vld [vmem:[%s19452_s10 + $0x244] ss:$8 sps:$4 sm:$0xff]  }
 0x8a0   :  { %6083 = vmatprep.subr.bf16.mxu1 %v14094_v50  ;;  %v6635_v50 = vld [vmem:[%s19453_s11 + $0x88] sm:$0xff] }
 0x8a3   :  { %6084 = vmatpush1.bf16.msra.mxu1 %v14092_v14  ;;  %v6637_v14 = vld [vmem:[%s19453_s11 + $0x98] sm:$0xff] }
 0x8a4   :  { %6085 = vmatprep.subr.bf16.mxu1 %v14097_v35  ;;  %v17388_v35 = vpack.c.bf16 %v6632_v31, %v6630_v54  ;;  %v6659_v54 = vld [vmem:[%s19453_s11 + $0x148] sm:$0xff]  ;;  %v6661_v31 = vld [vmem:[%s19453_s11 + $0x158] sm:$0xff] }
 0x8a6   :  { %12858 = vmatpush1.bf16.msra.mxu0 %v17388_v35 }
 0x8a7   :  { %6086 = vmatpush1.bf16.msra.mxu1 %v14095_v47  ;;  %v14140_v47 = vld [vmem:[%s19452_s10 + $0x240] ss:$8 sps:$4 sm:$0xff]  }
 0x8a8   :  { %6087 = vmatprep.subr.bf16.mxu1 %v14100_v20  ;;  %v17394_v20 = vpack.c.bf16 %v6637_v14, %v6635_v50  ;;  %v14158_v50 = vld [vmem:[%s19452_s10 + $0x2a0] ss:$8 sps:$4 sm:$0xff]   ;;  %v17538_v14 = vpack.c.bf16 %v6661_v31, %v6659_v54  ;;  %v14193_v31 = vld [vmem:[%s19452_s10 + $0x354] ss:$8 sps:$4 sm:$0xff]  }
 0x8a9   :  { %v14188_v54 = vld [vmem:[%s19452_s10 + $0x340] ss:$8 sps:$4 sm:$0xff]  }
 0x8aa   :  { %12860 = vmatprep.subr.bf16.mxu0 %v17394_v20 }
 0x8ab   :  { %6088 = vmatpush1.bf16.msra.mxu1 %v14098_v59  ;;  %v6634_v59 = vld [vmem:[%s19453_s11 + $0x80] sm:$0xff] }
 0x8ac   :  { %6089 = vmatprep.subr.bf16.mxu1 %v14103_v48  ;;  %v6636_v48 = vld [vmem:[%s19453_s11 + $0x90] sm:$0xff] }
 0x8af   :  { %6090 = vmatpush1.bf16.msra.mxu1 %v14101_v36  ;;  %v14145_v36 = vld [vmem:[%s19452_s10 + $0x254] ss:$8 sps:$4 sm:$0xff]  }
 0x8b0   :  { %6091 = vmatprep.subr.bf16.mxu1 %v14106_v7  ;;  %v6639_v7 = vld [vmem:[%s19453_s11 + $0xa8] sm:$0xff] }
 0x8b3   :  { %6092 = vmatpush1.bf16.msra.mxu1 %v14104_v62  ;;  %v6641_v62 = vld [vmem:[%s19453_s11 + $0xb8] sm:$0xff] }
 0x8b4   :  { %6093 = vmatprep.subr.bf16.mxu1 %v14109_v61  ;;  %v17412_v61 = vpack.c.bf16 %v6636_v48, %v6634_v59  ;;  %v6660_v59 = vld [vmem:[%s19453_s11 + $0x150] sm:$0xff] }
 0x8b5   :  { %v14163_v48 = vld [vmem:[%s19452_s10 + $0x2b4] ss:$8 sps:$4 sm:$0xff]  }
 0x8b6   :  { %12862 = vmatpush1.bf16.msra.mxu0 %v17412_v61 }
 0x8b7   :  { %6094 = vmatpush1.bf16.msra.mxu1 %v14107_v39  ;;  %v14143_v39 = vld [vmem:[%s19452_s10 + $0x250] ss:$8 sps:$4 sm:$0xff]  }
 0x8b8   :  { %6095 = vmatprep.subr.bf16.mxu1 %v14112_v41  ;;  %v17418_v41 = vpack.c.bf16 %v6641_v62, %v6639_v7  ;;  %v6665_v7 = vld [vmem:[%s19453_s11 + $0x178] sm:$0xff] }
 0x8ba   :  { %12864 = vmatprep.subr.bf16.mxu0 %v17418_v41 }
 0x8bb   :  { %6096 = vmatpush1.bf16.msra.mxu1 %v14110_v28  ;;  %v6638_v28 = vld [vmem:[%s19453_s11 + $0xa0] sm:$0xff] }
 0x8bc   :  { %6097 = vmatprep.subr.bf16.mxu1 %v14115_v27  ;;  %v6640_v27 = vld [vmem:[%s19453_s11 + $0xb0] sm:$0xff] }
 0x8bf   :  { %6098 = vmatpush1.bf16.msra.mxu1 %v14113_v40  ;;  %v14148_v40 = vld [vmem:[%s19452_s10 + $0x264] ss:$8 sps:$4 sm:$0xff]  }
 0x8c0   :  { %6099 = vmatprep.subr.bf16.mxu1 %v14118_v11  ;;  %v6643_v11 = vld [vmem:[%s19453_s11 + $0xc8] sm:$0xff] }
 0x8c3   :  { %6100 = vmatpush1.bf16.msra.mxu1 %v14116_v13  ;;  %v6645_v13 = vld [vmem:[%s19453_s11 + $0xd8] sm:$0xff] }
 0x8c4   :  { %6101 = vmatprep.subr.bf16.mxu1 %v14121_v6  ;;  %v17436_v6 = vpack.c.bf16 %v6640_v27, %v6638_v28  ;;  %v6662_v27 = vld [vmem:[%s19453_s11 + $0x160] sm:$0xff] }
 0x8c6   :  { %12866 = vmatpush1.bf16.msra.mxu0 %v17436_v6 }
 0x8c7   :  { %6102 = vmatpush1.bf16.msra.mxu1 %v14119_v9  ;;  %v14146_v9 = vld [vmem:[%s19452_s10 + $0x260] ss:$8 sps:$4 sm:$0xff]  }
 0x8c8   :  { %6103 = vmatprep.subr.bf16.mxu1 %v14124_v57  ;;  %v17442_v57 = vpack.c.bf16 %v6645_v13, %v6643_v11  ;;  %v14166_v11 = vld [vmem:[%s19452_s10 + $0x2c4] ss:$8 sps:$4 sm:$0xff]  }
 0x8c9   :  { %v6667_v13 = vld [vmem:[%s19453_s11 + $0x188] sm:$0xff] }
 0x8ca   :  { %12868 = vmatprep.subr.bf16.mxu0 %v17442_v57 }
 0x8cb   :  { %6104 = vmatpush1.bf16.msra.mxu1 %v14122_v1  ;;  %v6642_v1 = vld [vmem:[%s19453_s11 + $0xc0] sm:$0xff] }
 0x8cc   :  { %6105 = vmatprep.subr.bf16.mxu1 %v14127_v25  ;;  %v6644_v25 = vld [vmem:[%s19453_s11 + $0xd0] sm:$0xff] }
 0x8cf   :  { %6106 = vmatpush1.bf16.msra.mxu1 %v14125_v55  ;;  %v14151_v55 = vld [vmem:[%s19452_s10 + $0x274] ss:$8 sps:$4 sm:$0xff]  }
 0x8d0   :  { %6311 = vmatprep.subr.bf16.mxu1 %v14130_v10  ;;  %v6647_v10 = vld [vmem:[%s19453_s11 + $0xe8] sm:$0xff] }
 0x8d2   :  { %6108 = vmatmul.mubr.bf16.vlgmr.msra.gmra.mrb[72].mxu1 %v5645_v58  ;;  %v14149_v58 = vld [vmem:[%s19452_s10 + $0x270] ss:$8 sps:$4 sm:$0xff]  }
 0x8d3   :  { %6312 = vmatpush1.bf16.msra.mxu1 %v14128_v37  ;;  %6343 = vmatprep.mubr.bf16.mxu1 %v6117_v53  ;;  %v6649_v37 = vld [vmem:[%s19453_s11 + $0xf8] sm:$0xff]  ;;  %v17460_v53 = vpack.c.bf16 %v6644_v25, %v6642_v1  ;;  %v14164_v25 = vld [vmem:[%s19452_s10 + $0x2c0] ss:$8 sps:$4 sm:$0xff]  }
 0x8d4   :  { %6313 = vmatprep.subr.bf16.mxu1 %v14133_v17  ;;  %v17466_v17 = vpack.c.bf16 %v6649_v37, %v6647_v10  ;;  %v6666_v10 = vld [vmem:[%s19453_s11 + $0x180] sm:$0xff]  ;;  %v6668_v37 = vld [vmem:[%s19453_s11 + $0x190] sm:$0xff] }
 0x8d5   :  { %12870 = vmatpush1.bf16.msra.mxu0 %v17460_v53 }
 0x8d6   :  { %12872 = vmatprep.subr.bf16.mxu0 %v17466_v17 }
 0x8d7   :  { %6314 = vmatpush1.bf16.msra.mxu1 %v14131_v18  ;;  %v6646_v18 = vld [vmem:[%s19453_s11 + $0xe0] sm:$0xff] }
 0x8d8   :  { %6315 = vmatprep.subr.bf16.mxu1 %v14136_v42  ;;  %v6648_v42 = vld [vmem:[%s19453_s11 + $0xf0] sm:$0xff] }
 0x8d9   :  { %v17484_v32 = vpack.c.bf16 %v6648_v42, %v6646_v18  ;;  %v17598_v18 = vpack.c.bf16 %v6668_v37, %v6666_v10  ;;  %v14167_v42 = vld [vmem:[%s19452_s10 + $0x2d0] ss:$8 sps:$4 sm:$0xff]   ;;  %v14214_v10 = vld [vmem:[%s19452_s10 + $0x3c4] ss:$8 sps:$4 sm:$0xff]   ;;  %v14212_v37 = vld [vmem:[%s19452_s10 + $0x3c0] ss:$8 sps:$4 sm:$0xff]  }
 0x8db   :  { %6316 = vmatpush1.bf16.msra.mxu1 %v14134_v12  ;;  %v6657_v12 = vld [vmem:[%s19453_s11 + $0x138] sm:$0xff]  ;;  %12874 = vmatpush1.bf16.msra.mxu0 %v17484_v32 }
 0x8dc   :  { %6317 = vmatprep.subr.bf16.mxu1 %v14139_v63  ;;  %12876 = vmatprep.subr.bf16.mxu0 %v17490_v52  ;;  %v17514_v63 = vpack.c.bf16 %v6657_v12, %v6655_v16  ;;  %v6355_v16 = vpack.c.bf16 %v17224_v33, %v17224_v33  ;;  %v14181_v12 = vld [vmem:[%s19452_s10 + $0x314] ss:$8 sps:$4 sm:$0xff]   ;;  %v14182_v33 = vld [vmem:[%s19452_s10 + $0x320] ss:$8 sps:$4 sm:$0xff]  }
 0x8df   :  { %6318 = vmatpush1.bf16.msra.mxu1 %v14137_v43  ;;  %v14160_v43 = vld [vmem:[%s19452_s10 + $0x2a4] ss:$8 sps:$4 sm:$0xff]   ;;  %12878 = vmatpush1.bf16.msra.mxu0 %v17508_v51 }
 0x8e0   :  { %6319 = vmatprep.subr.bf16.mxu1 %v14142_v2  ;;  %v17532_v2 = vpack.c.bf16 %v6656_v0, %v6654_v60  ;;  %12880 = vmatprep.subr.bf16.mxu0 %v17514_v63  ;;  %v14187_v60 = vld [vmem:[%s19452_s10 + $0x334] ss:$8 sps:$4 sm:$0xff]   ;;  %v14185_v0 = vld [vmem:[%s19452_s10 + $0x330] ss:$8 sps:$4 sm:$0xff]  }
 0x8e3   :  { %6320 = vmatpush1.bf16.msra.mxu1 %v14140_v47  ;;  %v6658_v47 = vld [vmem:[%s19453_s11 + $0x140] sm:$0xff]  ;;  %12882 = vmatpush1.bf16.msra.mxu0 %v17532_v2 }
 0x8e4   :  { %6321 = vmatprep.subr.bf16.mxu1 %v14145_v36  ;;  %v6663_v36 = vld [vmem:[%s19453_s11 + $0x168] sm:$0xff]  ;;  %v17556_v62 = vpack.c.bf16 %v6660_v59, %v6658_v47  ;;  %12884 = vmatprep.subr.bf16.mxu0 %v17538_v14 }
 0x8e5   :  { %v17562_v28 = vpack.c.bf16 %v6665_v7, %v6663_v36  ;;  %v14196_v47 = vld [vmem:[%s19452_s10 + $0x364] ss:$8 sps:$4 sm:$0xff]   ;;  %v14194_v59 = vld [vmem:[%s19452_s10 + $0x360] ss:$8 sps:$4 sm:$0xff]   ;;  %v14197_v36 = vld [vmem:[%s19452_s10 + $0x370] ss:$8 sps:$4 sm:$0xff]  }
 0x8e6   :  { %v14202_v7 = vld [vmem:[%s19452_s10 + $0x384] ss:$8 sps:$4 sm:$0xff]  }
 0x8e7   :  { %6322 = vmatpush1.bf16.msra.mxu1 %v14143_v39  ;;  %v14161_v39 = vld [vmem:[%s19452_s10 + $0x2b0] ss:$8 sps:$4 sm:$0xff]   ;;  %12886 = vmatpush1.bf16.msra.mxu0 %v17556_v62 }
 0x8e8   :  { %6323 = vmatprep.subr.bf16.mxu1 %v14148_v40  ;;  %v6664_v40 = vld [vmem:[%s19453_s11 + $0x170] sm:$0xff]  ;;  %12888 = vmatprep.subr.bf16.mxu0 %v17562_v28 }
 0x8e9   :  { %v17580_v1 = vpack.c.bf16 %v6664_v40, %v6662_v27  ;;  %v14205_v27 = vld [vmem:[%s19452_s10 + $0x394] ss:$8 sps:$4 sm:$0xff]   ;;  %v14203_v40 = vld [vmem:[%s19452_s10 + $0x390] ss:$8 sps:$4 sm:$0xff]  }
 0x8eb   :  { %6324 = vmatpush1.bf16.msra.mxu1 %v14146_v9  ;;  %v6669_v9 = vld [vmem:[%s19453_s11 + $0x198] sm:$0xff]  ;;  %12890 = vmatpush1.bf16.msra.mxu0 %v17580_v1 }
 0x8ec   :  { %6325 = vmatprep.subr.bf16.mxu1 %v14151_v55  ;;  %v17586_v55 = vpack.c.bf16 %v6669_v9, %v6667_v13  ;;  %v14206_v13 = vld [vmem:[%s19452_s10 + $0x3a0] ss:$8 sps:$4 sm:$0xff]   ;;  %v14211_v9 = vld [vmem:[%s19452_s10 + $0x3b4] ss:$8 sps:$4 sm:$0xff]  }
 0x8ee   :  { %12892 = vmatprep.subr.bf16.mxu0 %v17586_v55 }
 0x8ef   :  { %6326 = vmatpush1.bf16.msra.mxu1 %v14149_v58  ;;  %v14169_v58 = vld [vmem:[%s19452_s10 + $0x2d4] ss:$8 sps:$4 sm:$0xff]   ;;  %12894 = vmatpush1.bf16.msra.mxu0 %v17598_v18 }
 0x8f0   :  { %6327 = vmatprep.subr.bf16.mxu1 %v14154_v21  ;;  %v14172_v21 = vld [vmem:[%s19452_s10 + $0x2e4] ss:$8 sps:$4 sm:$0xff]  }
 0x8f3   :  { %6328 = vmatpush1.bf16.msra.mxu1 %v14152_v34  ;;  %v14173_v34 = vld [vmem:[%s19452_s10 + $0x2f0] ss:$8 sps:$4 sm:$0xff]  }
 0x8f4   :  { %6329 = vmatprep.subr.bf16.mxu1 %v14157_v24  ;;  %v14176_v24 = vld [vmem:[%s19452_s10 + $0x300] ss:$8 sps:$4 sm:$0xff]  }
 0x8f7   :  { %6330 = vmatpush1.bf16.msra.mxu1 %v14155_v56  ;;  %v14179_v56 = vld [vmem:[%s19452_s10 + $0x310] ss:$8 sps:$4 sm:$0xff]  }
 0x8f8   :  { %6331 = vmatprep.subr.bf16.mxu1 %v14160_v43  ;;  %v14190_v43 = vld [vmem:[%s19452_s10 + $0x344] ss:$8 sps:$4 sm:$0xff]  }
 0x8fb   :  { %6332 = vmatpush1.bf16.msra.mxu1 %v14158_v50  ;;  %v14191_v50 = vld [vmem:[%s19452_s10 + $0x350] ss:$8 sps:$4 sm:$0xff]  }
 0x8fc   :  { %6333 = vmatprep.subr.bf16.mxu1 %v14163_v48  ;;  %v14199_v48 = vld [vmem:[%s19452_s10 + $0x374] ss:$8 sps:$4 sm:$0xff]  }
 0x8ff   :  { %6334 = vmatpush1.bf16.msra.mxu1 %v14161_v39  ;;  %v14200_v39 = vld [vmem:[%s19452_s10 + $0x380] ss:$8 sps:$4 sm:$0xff]  }
 0x900   :  { %6335 = vmatprep.subr.bf16.mxu1 %v14166_v11  ;;  %v14208_v11 = vld [vmem:[%s19452_s10 + $0x3a4] ss:$8 sps:$4 sm:$0xff]  }
 0x903   :  { %6336 = vmatpush1.bf16.msra.mxu1 %v14164_v25  ;;  %v14209_v25 = vld [vmem:[%s19452_s10 + $0x3b0] ss:$8 sps:$4 sm:$0xff]  }
 0x904   :  { %6337 = vmatprep.subr.bf16.mxu1 %v14169_v58  ;;  %v14217_v58 = vld [vmem:[%s19452_s10 + $0x3d4] ss:$8 sps:$4 sm:$0xff]  }
 0x907   :  { %6338 = vmatpush1.bf16.msra.mxu1 %v14167_v42  ;;  %v14215_v42 = vld [vmem:[%s19452_s10 + $0x3d0] ss:$8 sps:$4 sm:$0xff]  }
 0x908   :  { %6339 = vmatprep.subr.bf16.mxu1 %v14172_v21  ;;  %v14220_v21 = vld [vmem:[%s19452_s10 + $0x3e4] ss:$8 sps:$4 sm:$0xff]  }
 0x90b   :  { %6340 = vmatpush1.bf16.msra.mxu1 %v14170_v3  ;;  %v14218_v3 = vld [vmem:[%s19452_s10 + $0x3e0] ss:$8 sps:$4 sm:$0xff]  }
 0x90c   :  { %6341 = vmatprep.subr.bf16.mxu1 %v14175_v23  ;;  %v14223_v23 = vld [vmem:[%s19452_s10 + $0x3f4] ss:$8 sps:$4 sm:$0xff]  }
 0x90f   :  { %6342 = vmatpush1.bf16.msra.mxu1 %v14173_v34  ;;  %v14221_v34 = vld [vmem:[%s19452_s10 + $0x3f0] ss:$8 sps:$4 sm:$0xff]  }
 0x910   :  { %6549 = vmatprep.subr.bf16.mxu1 %v14178_v38  ;;  %v6354_v38 = vpack.c.bf16 %v17219_v15, %v17219_v15  ;;  %v6672_v15 = vld [vmem:[%s19453_s11 + $0x1b0] sm:$0xff] }
 0x912   :  { %6344 = vmatmul.mubr.bf16.vlgmr.msra.gmra.mrb[72].mxu1 %v6116_v45  ;;  %v6671_v45 = vld [vmem:[%s19453_s11 + $0x1a8] sm:$0xff] }
 0x913   :  { %6550 = vmatpush1.bf16.msra.mxu1 %v14176_v24  ;;  %6581 = vmatprep.mubr.bf16.mxu1 %v6355_v16  ;;  %v6673_v24 = vld [vmem:[%s19453_s11 + $0x1b8] sm:$0xff] }
 0x914   :  { %6551 = vmatprep.subr.bf16.mxu1 %v14181_v12  ;;  %v17726_v16 = vpack.c.bf16 %v6673_v24, %v6671_v45  ;;  %v6670_v12 = vld [vmem:[%s19453_s11 + $0x1a0] sm:$0xff] }
 0x916   :  { %12896 = vmatprep.subr.bf16.mxu0 %v17726_v16 }
 0x917   :  { %6552 = vmatpush1.bf16.msra.mxu1 %v14179_v56  ;;  %v17734_v56 = vpack.c.bf16 %v6672_v15, %v6670_v12 }
 0x918   :  { %6553 = vmatprep.subr.bf16.mxu1 %v14184_v19  ;;  %v6675_v19 = vld [vmem:[%s19453_s11 + $0x1c8] sm:$0xff] }
 0x919   :  { %12898 = vmatpush1.bf16.msra.mxu0 %v17734_v56 }
 0x91b   :  { %6554 = vmatpush1.bf16.msra.mxu1 %v14182_v33  ;;  %v6677_v33 = vld [vmem:[%s19453_s11 + $0x1d8] sm:$0xff] }
 0x91c   :  { %6555 = vmatprep.subr.bf16.mxu1 %v14187_v60  ;;  %v17744_v60 = vpack.c.bf16 %v6677_v33, %v6675_v19 }
 0x91e   :  { %12900 = vmatprep.subr.bf16.mxu0 %v17744_v60 }
 0x91f   :  { %6556 = vmatpush1.bf16.msra.mxu1 %v14185_v0  ;;  %v6674_v0 = vld [vmem:[%s19453_s11 + $0x1c0] sm:$0xff] }
 0x920   :  { %6557 = vmatprep.subr.bf16.mxu1 %v14190_v43  ;;  %v6676_v43 = vld [vmem:[%s19453_s11 + $0x1d0] sm:$0xff] }
 0x923   :  { %6558 = vmatpush1.bf16.msra.mxu1 %v14188_v54  ;;  %v17752_v54 = vpack.c.bf16 %v6676_v43, %v6674_v0 }
 0x924   :  { %6559 = vmatprep.subr.bf16.mxu1 %v14193_v31  ;;  %v6679_v31 = vld [vmem:[%s19453_s11 + $0x1e8] sm:$0xff] }
 0x925   :  { %12902 = vmatpush1.bf16.msra.mxu0 %v17752_v54 }
 0x927   :  { %6560 = vmatpush1.bf16.msra.mxu1 %v14191_v50  ;;  %v6681_v50 = vld [vmem:[%s19453_s11 + $0x1f8] sm:$0xff] }
 0x928   :  { %6561 = vmatprep.subr.bf16.mxu1 %v14196_v47  ;;  %v17762_v47 = vpack.c.bf16 %v6681_v50, %v6679_v31 }
 0x92a   :  { %12904 = vmatprep.subr.bf16.mxu0 %v17762_v47 }
 0x92b   :  { %6562 = vmatpush1.bf16.msra.mxu1 %v14194_v59  ;;  %v6678_v59 = vld [vmem:[%s19453_s11 + $0x1e0] sm:$0xff] }
 0x92c   :  { %6563 = vmatprep.subr.bf16.mxu1 %v14199_v48  ;;  %v6680_v48 = vld [vmem:[%s19453_s11 + $0x1f0] sm:$0xff]  ;;  %s10582_s11 = sshll.u32 %s14522_s0, 4  ;;  %s10583_s11 = int_to_ptr.vmem [resolvable:$true] %s10582_s11 }
 0x92d   :  { %s14494_s10 = scalar_lea.vmem %s10583_s11, 64  ;;  %p14499_p1 = scmp.lt.s32.totalorder %s10583_s11, %s10583_s11 }
 0x92e   :  { %p14495_p0 = scmp.ne.s32.totalorder %s10583_s11, %s14494_s10  ;;  %p14500_p2 = scmp.lt.s32.totalorder %s14494_s10, %s14494_s10 }
 0x92f   :  { %6564 = vmatpush1.bf16.msra.mxu1 %v14197_v36  ;;  %v17770_v36 = vpack.c.bf16 %v6680_v48, %v6678_v59 }
 0x930   :  { %6565 = vmatprep.subr.bf16.mxu1 %v14202_v7  ;;  %p14501_p3 = por %p14500_p2, %p14499_p1 }
 0x931   :  { %12906 = vmatpush1.bf16.msra.mxu0 %v17770_v36 }
 0x932   :  { %12908 = vmatprep.subr.bf16.mxu0 %v17311_v44  ;;  %p14502_p4 = pnand %p14501_p3, %p14495_p0 }
 0x933   :  { %6566 = vmatpush1.bf16.msra.mxu1 %v14200_v39 }
 0x934   :  { %6567 = vmatprep.subr.bf16.mxu1 %v14205_v27 }
 0x937   :  { %6568 = vmatpush1.bf16.msra.mxu1 %v14203_v40 }
 0x938   :  { %6569 = vmatprep.subr.bf16.mxu1 %v14208_v11 }
 0x93b   :  { %6570 = vmatpush1.bf16.msra.mxu1 %v14206_v13 }
 0x93c   :  { %6571 = vmatprep.subr.bf16.mxu1 %v14211_v9 }
 0x93f   :  { %6572 = vmatpush1.bf16.msra.mxu1 %v14209_v25 }
 0x940   :  { %6573 = vmatprep.subr.bf16.mxu1 %v14214_v10 }
 0x943   :  { %6574 = vmatpush1.bf16.msra.mxu1 %v14212_v37 }
 0x944   :  { %6575 = vmatprep.subr.bf16.mxu1 %v14217_v58 }
 0x947   :  { %6576 = vmatpush1.bf16.msra.mxu1 %v14215_v42 }
 0x948   :  { %6577 = vmatprep.subr.bf16.mxu1 %v14220_v21 }
 0x94b   :  { %6578 = vmatpush1.bf16.msra.mxu1 %v14218_v3 }
 0x94c   :  { %6579 = vmatprep.subr.bf16.mxu1 %v14223_v23 }
 0x94f   :  { %6580 = vmatpush1.bf16.msra.mxu1 %v14221_v34 }
 0x952   :  { %6582 = vmatmul.mubr.bf16.vlgmr.msra.gmra.mrb[72].mxu1 %v6354_v38 }
 0x953   :  { %6955 = vmatprep.mubr.f32.mxu1 %v19526_v5 }
 0xa25   :  { %v17775_v7 = vpop.f32.mrb[72].mxu1 }
 0xa26   :  { %v6592_v39 = vrot.slane %v17775_v7, 4  ;;  %v17778_v27 = vpop.f32.mrb[73].mxu1 }
 0xa27   :  { %v6598_v40 = vrot.slane %v17778_v27, 4  ;;  %v6605_v11 = vmul.f32 %v17778_v27, %v17778_v27  ;;  %v6587_v13 = vpop.f32.mrb[74].mxu1 }
 0xa28   :  { %v6593_v9 = vadd.f32 %v6592_v39, %v17775_v7  ;;  %v6588_v25 = vpop.f32.mrb[75].mxu1  ;;  %v14251_v13 = vld [vmem:[%s19457_s15 + $0x248] ss:$12 sps:$4 sm:$0xff]  }
 0xa29   :  { %v6599_v10 = vadd.f32 %v6598_v40, %v17778_v27  ;;  %v6612_v37 = vrot.slane %v6605_v11, 4  ;;  %v11632_v25 = vld [vmem:[%s19456_s14 + $0x8] sm:$0x3f] }
 0xa2a   :  { %v6594_v58 = vrot.slane %v6593_v9, 2 }
 0xa2b   :  { %v6600_v44 = vrot.slane %v6599_v10, 2  ;;  %v6613_v42 = vadd.f32 %v6612_v37, %v6605_v11  ;;  %v11636_v11 = vld [vmem:[%s19456_s14 + $0x18] sm:$0x3f]  ;;  %v14256_v37 = vld [vmem:[%s19457_s15 + $0x260] ss:$12 sps:$4 sm:$0xff]  }
 0xa2c   :  { %v6595_v21 = vadd.f32 %v6594_v58, %v6593_v9  ;;  %v14252_v9 = vld [vmem:[%s19457_s15 + $0x188] ss:$12 sps:$4 sm:$0xff]   ;;  %v14257_v58 = vld [vmem:[%s19457_s15 + $0x1a0] ss:$12 sps:$4 sm:$0xff]  }
 0xa2d   :  { %v6601_v3 = vadd.f32 %v6600_v44, %v6599_v10  ;;  %v6614_v23 = vrot.slane %v6613_v42, 2  ;;  %v14226_v10 = vld [vmem:[%s19457_s15 + $0x184] ss:$12 sps:$4 sm:$0xff]  }
 0xa2e   :  { %v6596_v34 = vrot.slane %v6595_v21, 1  ;;  %v11634_v44 = vld [vmem:[%s19456_s14 + $0x10] sm:$0x3f] }
 0xa2f   :  { %v6602_v38 = vrot.slane %v6601_v3, 1  ;;  %v6615_v45 = vadd.f32 %v6614_v23, %v6613_v42  ;;  %v14224_v42 = vld [vmem:[%s19457_s15 + $0x180] ss:$12 sps:$4 sm:$0xff]   ;;  %v14262_v23 = vld [vmem:[%s19457_s15 + $0x1b8] ss:$12 sps:$4 sm:$0xff]  }
 0xa30   :  { %v6597_v15 = vadd.f32 %v6596_v34, %v6595_v21  ;;  %v14261_v21 = vld [vmem:[%s19457_s15 + $0x278] ss:$12 sps:$4 sm:$0xff]  }
 0xa31   :  { %v6603_v24 = vadd.f32 %v6602_v38, %v6601_v3  ;;  %v6616_v12 = vrot.slane %v6615_v45, 1  ;;  %v14229_v3 = vld [vmem:[%s19457_s15 + $0x19c] ss:$12 sps:$4 sm:$0xff]   ;;  %v14227_v34 = vld [vmem:[%s19457_s15 + $0x198] ss:$12 sps:$4 sm:$0xff]  }
 0xa32   :  { %v14266_v38 = vld [vmem:[%s19457_s15 + $0x290] ss:$12 sps:$4 sm:$0xff]  }
 0xa33   :  { %6746 = vmatprep.mubr.f32.mxu0 %v6603_v24  ;;  %v6617_v19 = vadd.f32 %v6616_v12, %v6615_v45  ;;  %v14232_v45 = vld [vmem:[%s19457_s15 + $0x1b4] ss:$12 sps:$4 sm:$0xff]   ;;  %v14267_v24 = vld [vmem:[%s19457_s15 + $0x1d0] ss:$12 sps:$4 sm:$0xff]  }
 0xa34   :  { %6747 = vmatmul.mubr.f32.vlgmr.msra.gmra.mrb[48].mxu0 %v6597_v15  ;;  %v14230_v12 = vld [vmem:[%s19457_s15 + $0x1b0] ss:$12 sps:$4 sm:$0xff]   ;;  %v14271_v15 = vld [vmem:[%s19457_s15 + $0x2a8] ss:$12 sps:$4 sm:$0xff]  }
 0xa35   :  { %12910 = vmatpush1.bf16.msra.mxu0 %v17322_v30  ;;  %6817 = vmatprep.mubr.f32.mxu0 %v6617_v19  ;;  %v6604_v30 = vmul.f32 %v17775_v7, %v17775_v7  ;;  %v14235_v19 = vld [vmem:[%s19457_s15 + $0x1cc] ss:$12 sps:$4 sm:$0xff]  }
 0xa36   :  { %12912 = vmatprep.subr.bf16.mxu0 %v17324_v22 }
 0xa37   :  { %v6606_v22 = vrot.slane %v6604_v30, 4 }
 0xa39   :  { %12914 = vmatpush1.bf16.msra.mxu0 %v17340_v29  ;;  %v6607_v29 = vadd.f32 %v6606_v22, %v6604_v30  ;;  %v14272_v30 = vld [vmem:[%s19457_s15 + $0x1e8] ss:$12 sps:$4 sm:$0xff]  }
 0xa3a   :  { %12916 = vmatprep.subr.bf16.mxu0 %v17346_v26  ;;  %v14233_v22 = vld [vmem:[%s19457_s15 + $0x1c8] ss:$12 sps:$4 sm:$0xff]  }
 0xa3b   :  { %v6608_v26 = vrot.slane %v6607_v29, 2 }
 0xa3d   :  { %12918 = vmatpush1.bf16.msra.mxu0 %v17364_v4  ;;  %v6609_v4 = vadd.f32 %v6608_v26, %v6607_v29  ;;  %v14276_v29 = vld [vmem:[%s19457_s15 + $0x2c0] ss:$12 sps:$4 sm:$0xff]   ;;  %v14238_v26 = vld [vmem:[%s19457_s15 + $0x1e4] ss:$12 sps:$4 sm:$0xff]  }
 0xa3e   :  { %12920 = vmatprep.subr.bf16.mxu0 %v17370_v8 }
 0xa3f   :  { %v6610_v8 = vrot.slane %v6609_v4, 1 }
 0xa41   :  { %12922 = vmatpush1.bf16.msra.mxu0 %v17388_v35  ;;  %v6611_v35 = vadd.f32 %v6610_v8, %v6609_v4  ;;  %v14277_v4 = vld [vmem:[%s19457_s15 + $0x200] ss:$12 sps:$4 sm:$0xff]  }
 0xa42   :  { %12924 = vmatprep.subr.bf16.mxu0 %v17394_v20  ;;  %v14236_v8 = vld [vmem:[%s19457_s15 + $0x1e0] ss:$12 sps:$4 sm:$0xff]  }
 0xa45   :  { %12926 = vmatpush1.bf16.msra.mxu0 %v17412_v61 }
 0xa46   :  { %12928 = vmatprep.subr.bf16.mxu0 %v17418_v41 }
 0xa49   :  { %12930 = vmatpush1.bf16.msra.mxu0 %v17436_v6 }
 0xa4a   :  { %12932 = vmatprep.subr.bf16.mxu0 %v17442_v57 }
 0xa4d   :  { %12934 = vmatpush1.bf16.msra.mxu0 %v17460_v53 }
 0xa4e   :  { %12936 = vmatprep.subr.bf16.mxu0 %v17466_v17 }
 0xa51   :  { %12938 = vmatpush1.bf16.msra.mxu0 %v17484_v32 }
 0xa52   :  { %12940 = vmatprep.subr.bf16.mxu0 %v17490_v52 }
 0xa55   :  { %12942 = vmatpush1.bf16.msra.mxu0 %v17508_v51 }
 0xa56   :  { %12944 = vmatprep.subr.bf16.mxu0 %v17514_v63 }
 0xa59   :  { %12946 = vmatpush1.bf16.msra.mxu0 %v17532_v2 }
 0xa5a   :  { %12948 = vmatprep.subr.bf16.mxu0 %v17538_v14 }
 0xa5d   :  { %12950 = vmatpush1.bf16.msra.mxu0 %v17556_v62 }
 0xa5e   :  { %12952 = vmatprep.subr.bf16.mxu0 %v17562_v28  ;;  %v6852_v28 = vld [vmem:[%s19454_s12] sm:$0x3] }
 0xa61   :  { %12954 = vmatpush1.bf16.msra.mxu0 %v17580_v1 }
 0xa62   :  { %12956 = vmatprep.subr.bf16.mxu0 %v17586_v55  ;;  %v6866_v55 = vld [vmem:[%s19455_s13] sm:$0x3] }
 0xa63   :  { %v6871_v43 = vrot.slane %v6866_v55, %v16225_v46  ;;  %v6875_v31 = vrot.slane %v6866_v55, %v16231_v49  ;;  %v14268_v55 = vld [vmem:[%s19457_s15 + $0x2a0] ss:$12 sps:$4 sm:$0xff]  }
 0xa65   :  { %12958 = vmatpush1.bf16.msra.mxu0 %v17598_v18 }
 0xa66   :  { %12960 = vmatprep.subr.bf16.mxu0 %v17726_v16 }
 0xa69   :  { %12962 = vmatpush1.bf16.msra.mxu0 %v17734_v56  ;;  %v6857_v56 = vrot.slane %v6852_v28, %v16225_v46 }
 0xa6a   :  { %12964 = vmatprep.subr.bf16.mxu0 %v17744_v60  ;;  %v6861_v60 = vrot.slane %v6852_v28, %v16231_v49  ;;  %v14263_v28 = vld [vmem:[%s19457_s15 + $0x288] ss:$12 sps:$4 sm:$0xff]  }
 0xa6b   :  { %v8898_v49 = vld [vmem:[%s19458_s16 + $0x148] sm:$0xff] }
 0xa6d   :  { %12966 = vmatpush1.bf16.msra.mxu0 %v17752_v54 }
 0xa6e   :  { %12968 = vmatprep.subr.bf16.mxu0 %v17762_v47 }
 0xa71   :  { %12970 = vmatpush1.bf16.msra.mxu0 %v17770_v36 }
 0xa74   :  { %6818 = vmatmul.mubr.f32.vlgmr.msra.gmra.mrb[50].mxu0 %v6611_v35  ;;  %v14281_v35 = vld [vmem:[%s19457_s15 + $0x2d8] ss:$12 sps:$4 sm:$0xff]  }
 0xa75   :  { %7183 = vmatprep.mubr.f32.mxu0 %v19526_v5 }
 0xb07   :  { %v6748_v20 = vpop.f32.mrb[48].mxu0 }
 0xb08   :  { %v6831_v61 = vrot.slane %v6748_v20, %v16225_v46  ;;  %v6750_v41 = vpop.f32.mrb[49].mxu0  ;;  %v6824_v17 = vmul.f32 %v6748_v20, %v6748_v20  ;;  %v14241_v20 = vld [vmem:[%s19457_s15 + $0x1fc] ss:$12 sps:$4 sm:$0xff]  }
 0xb09   :  { %v6835_v6 = vrot.slane %v6750_v41, %v16225_v46  ;;  %v6825_v32 = vmul.f32 %v6750_v41, %v6750_v41  ;;  %v14239_v41 = vld [vmem:[%s19457_s15 + $0x1f8] ss:$12 sps:$4 sm:$0xff]  }
 0xb0a   :  { %v6836_v57 = vsub.f32 %v17775_v7, %v6831_v61  ;;  %v14282_v61 = vld [vmem:[%s19457_s15 + $0x218] ss:$12 sps:$4 sm:$0xff]  }
 0xb0b   :  { %v6837_v53 = vsub.f32 %v17778_v27, %v6835_v6  ;;  %v6886_v27 = vld [vmem:[%s19456_s14] sm:$0x3f] }
 0xb0c   :  { %v14244_v6 = vld [vmem:[%s19457_s15 + $0x214] ss:$12 sps:$4 sm:$0xff]  }
 0xb47   :  { %v6819_v52 = vpop.f32.mrb[50].mxu0 }
 0xb48   :  { %v6826_v51 = vsub.f32 %v6819_v52, %v6824_v17  ;;  %v6821_v63 = vpop.f32.mrb[51].mxu0  ;;  %v14245_v17 = vld [vmem:[%s19457_s15 + $0x228] ss:$12 sps:$4 sm:$0xff]   ;;  %v14248_v52 = vld [vmem:[%s19457_s15 + $0x240] ss:$12 sps:$4 sm:$0xff]  }
 0xb49   :  { %v6827_v2 = vsub.f32 %v6821_v63, %v6825_v32  ;;  %v14250_v32 = vld [vmem:[%s19457_s15 + $0x244] ss:$12 sps:$4 sm:$0xff]  }
 0xb4a   :  { %v6838_v14 = vadd.f32 1e-05, %v6826_v51  ;;  %v14255_v51 = vld [vmem:[%s19457_s15 + $0x25c] ss:$12 sps:$4 sm:$0xff]   ;;  %v14253_v63 = vld [vmem:[%s19457_s15 + $0x258] ss:$12 sps:$4 sm:$0xff]  }
 0xb4b   :  { %v6839_v62 = vadd.f32 1e-05, %v6827_v2  ;;  %v14260_v2 = vld [vmem:[%s19457_s15 + $0x274] ss:$12 sps:$4 sm:$0xff]  }
 0xb4c   :  { %14484 = vrsqrt.f32 %v6838_v14  ;;  %v14258_v14 = vld [vmem:[%s19457_s15 + $0x270] ss:$12 sps:$4 sm:$0xff]  }
 0xb4d   :  { %14486 = vrsqrt.f32 %v6839_v62  ;;  %v14265_v62 = vld [vmem:[%s19457_s15 + $0x28c] ss:$12 sps:$4 sm:$0xff]  }
 0xb56   :  { %v14485_v1 = vpop.eup %14484 }
 0xb57   :  { %v14487_v18 = vpop.eup %14486  ;;  %v6845_v16 = vrot.slane %v14485_v1, %v16225_v46  ;;  %v14270_v1 = vld [vmem:[%s19457_s15 + $0x2a4] ss:$12 sps:$4 sm:$0xff]  }
 0xb58   :  { %v6849_v33 = vrot.slane %v14487_v18, %v16225_v46  ;;  %v14275_v18 = vld [vmem:[%s19457_s15 + $0x2bc] ss:$12 sps:$4 sm:$0xff]   ;;  %v8949_v46 = vld [vmem:[%s19458_s16 + $0x2e0] sm:$0xff] }
 0xb59   :  { %v6850_v0 = vmul.f32 %v6845_v16, %v6836_v57  ;;  %v14242_v57 = vld [vmem:[%s19457_s15 + $0x210] ss:$12 sps:$4 sm:$0xff]   ;;  %v14273_v16 = vld [vmem:[%s19457_s15 + $0x2b8] ss:$12 sps:$4 sm:$0xff]  }
 0xb5a   :  { %v6851_v54 = vmul.f32 %v6849_v33, %v6837_v53  ;;  %v14247_v53 = vld [vmem:[%s19457_s15 + $0x22c] ss:$12 sps:$4 sm:$0xff]   ;;  %v14278_v33 = vld [vmem:[%s19457_s15 + $0x2d0] ss:$12 sps:$4 sm:$0xff]  }
 0xb5b   :  { %v6864_v50 = vmul.f32 %v6857_v56, %v6850_v0  ;;  %v14280_v56 = vld [vmem:[%s19457_s15 + $0x2d4] ss:$12 sps:$4 sm:$0xff]   ;;  %v14286_v0 = vld [vmem:[%s19457_s15 + $0x2f0] ss:$12 sps:$4 sm:$0xff]  }
 0xb5c   :  { %v6865_v47 = vmul.f32 %v6861_v60, %v6851_v54  ;;  %v14285_v60 = vld [vmem:[%s19457_s15 + $0x2ec] ss:$12 sps:$4 sm:$0xff]   ;;  %v14287_v54 = vld [vmem:[%s19457_s15 + $0x230] ss:$12 sps:$4 sm:$0xff]  }
 0xb5d   :  { %v6878_v59 = vadd.f32 %v6871_v43, %v6864_v50  ;;  %v14283_v43 = vld [vmem:[%s19457_s15 + $0x2e8] ss:$12 sps:$4 sm:$0xff]  }
 0xb5e   :  { %v6879_v48 = vadd.f32 %v6875_v31, %v6865_v47  ;;  %v14290_v31 = vld [vmem:[%s19457_s15 + $0x4] ss:$12 sps:$4 sm:$0xff]   ;;  %v14291_v50 = vld [vmem:[%s19457_s15 + $0xc8] ss:$12 sps:$4 sm:$0xff]  }
 0xb5f   :  { %v6882_v36 = vmul.f32 0.2, %v6878_v59  ;;  %vm6880_vm0 = vcmp.ge.f32.partialorder %v6878_v59, 0.0 }
 0xb60   :  { %vm6881_vm15 = vcmp.ge.f32.partialorder %v6879_v48, 0.0  ;;  %v6883_v7 = vmul.f32 0.2, %v6879_v48 }
 0xb61   :  { %v6884_v40 = vsel %vm6880_vm0, %v6878_v59, %v6882_v36 }
 0xb62   :  { %v6885_v39 = vsel %vm6881_vm15, %v6879_v48, %v6883_v7 }
 0xb63   :  { %6891 = vmatprep.subr.mxu1 %v6885_v39  ;;  %7119 = vmatprep.subr.mxu0 %v6885_v39 }
 0xb64   :  { %6892 = vmatpush1.msra.mxu1 %v6884_v40  ;;  %7120 = vmatpush1.msra.mxu0 %v6884_v40 }
 0xb65   :  { %11631 = vmatmul.mubr.msk.f32.vlgmr.msra.gmra.mrb[76].mxu1 %vm6887_vm1, %v6886_v27  ;;  %6967 = vmatprep.subr.mxu1 %v6885_v39 }
 0xb66   :  { %6968 = vmatpush1.msra.mxu1 %v6884_v40  ;;  %7031 = vmatprep.mubr.f32.mxu1 %v19526_v5 }
 0xb67   :  { %7043 = vmatprep.subr.mxu1 %v6885_v39  ;;  %11637 = vmatmul.mubr.msk.f32.vlgmr.msra.gmra.mrb[52].mxu0 %vm6887_vm1, %v11636_v11  ;;  %v14292_v11 = vld [vmem:[%s19457_s15 + $0x8] ss:$12 sps:$4 sm:$0xff]  }
 0xb68   :  { %12097 = vmatprep.subr.bf16.mxu0 %v14251_v13 }
 0xb69   :  { %11633 = vmatmul.mubr.msk.f32.vlgmr.msra.gmra.mrb[78].mxu1 %vm6887_vm1, %v11632_v25  ;;  %12098 = vmatpush3.bf16.msra.mxu0 %v14252_v9  ;;  %v14295_v9 = vld [vmem:[%s19457_s15 + $0x1c] ss:$12 sps:$4 sm:$0xff]   ;;  %v14296_v25 = vld [vmem:[%s19457_s15 + $0xe0] ss:$12 sps:$4 sm:$0xff]  }
 0xb6a   :  { %7044 = vmatpush1.msra.mxu1 %v6884_v40  ;;  %7107 = vmatprep.mubr.f32.mxu1 %v19526_v5  ;;  %v14288_v40 = vld [vmem:[%s19457_s15] ss:$12 sps:$4 sm:$0xff]  }
 0xb6b   :  { %7579 = vmatprep.subr.bf16.mxu1 %v14226_v10  ;;  %12099 = vmatprep.subr.bf16.mxu0 %v14256_v37 }
 0xb6d   :  { %11635 = vmatmul.mubr.msk.f32.vlgmr.msra.gmra.mrb[80].mxu1 %vm6887_vm1, %v11634_v44  ;;  %12100 = vmatpush3.bf16.msra.mxu0 %v14257_v58  ;;  %v14293_v44 = vld [vmem:[%s19457_s15 + $0x18] ss:$12 sps:$4 sm:$0xff]  }
 0xb6e   :  { %7580 = vmatpush1.bf16.msra.mxu1 %v14224_v42  ;;  %12101 = vmatprep.subr.bf16.mxu0 %v14261_v21  ;;  %v14297_v42 = vld [vmem:[%s19457_s15 + $0x20] ss:$12 sps:$4 sm:$0xff]  }
 0xb6f   :  { %7581 = vmatprep.subr.bf16.mxu1 %v14229_v3  ;;  %v14300_v21 = vld [vmem:[%s19457_s15 + $0x34] ss:$12 sps:$4 sm:$0xff]   ;;  %v14301_v3 = vld [vmem:[%s19457_s15 + $0xf8] ss:$12 sps:$4 sm:$0xff]  }
 0xb71   :  { %12102 = vmatpush3.bf16.msra.mxu0 %v14262_v23  ;;  %v14298_v23 = vld [vmem:[%s19457_s15 + $0x30] ss:$12 sps:$4 sm:$0xff]  }
 0xb72   :  { %7582 = vmatpush1.bf16.msra.mxu1 %v14227_v34  ;;  %12103 = vmatprep.subr.bf16.mxu0 %v14266_v38  ;;  %v14302_v34 = vld [vmem:[%s19457_s15 + $0x38] ss:$12 sps:$4 sm:$0xff]  }
 0xb73   :  { %7583 = vmatprep.subr.bf16.mxu1 %v14232_v45  ;;  %v14305_v38 = vld [vmem:[%s19457_s15 + $0x4c] ss:$12 sps:$4 sm:$0xff]   ;;  %v14306_v45 = vld [vmem:[%s19457_s15 + $0x110] ss:$12 sps:$4 sm:$0xff]  }
 0xb75   :  { %12104 = vmatpush3.bf16.msra.mxu0 %v14267_v24  ;;  %v14303_v24 = vld [vmem:[%s19457_s15 + $0x48] ss:$12 sps:$4 sm:$0xff]  }
 0xb76   :  { %7584 = vmatpush1.bf16.msra.mxu1 %v14230_v12  ;;  %12105 = vmatprep.subr.bf16.mxu0 %v14271_v15  ;;  %v14307_v12 = vld [vmem:[%s19457_s15 + $0x50] ss:$12 sps:$4 sm:$0xff]  }
 0xb77   :  { %7585 = vmatprep.subr.bf16.mxu1 %v14235_v19  ;;  %v14310_v15 = vld [vmem:[%s19457_s15 + $0x64] ss:$12 sps:$4 sm:$0xff]   ;;  %v14311_v19 = vld [vmem:[%s19457_s15 + $0x128] ss:$12 sps:$4 sm:$0xff]  }
 0xb79   :  { %12106 = vmatpush3.bf16.msra.mxu0 %v14272_v30  ;;  %v14308_v30 = vld [vmem:[%s19457_s15 + $0x60] ss:$12 sps:$4 sm:$0xff]  }
 0xb7a   :  { %7586 = vmatpush1.bf16.msra.mxu1 %v14233_v22  ;;  %12107 = vmatprep.subr.bf16.mxu0 %v14276_v29  ;;  %v14312_v22 = vld [vmem:[%s19457_s15 + $0x68] ss:$12 sps:$4 sm:$0xff]  }
 0xb7b   :  { %7587 = vmatprep.subr.bf16.mxu1 %v14238_v26  ;;  %v14315_v29 = vld [vmem:[%s19457_s15 + $0x7c] ss:$12 sps:$4 sm:$0xff]   ;;  %v14316_v26 = vld [vmem:[%s19457_s15 + $0x140] ss:$12 sps:$4 sm:$0xff]  }
 0xb7d   :  { %12108 = vmatpush3.bf16.msra.mxu0 %v14277_v4  ;;  %v14313_v4 = vld [vmem:[%s19457_s15 + $0x78] ss:$12 sps:$4 sm:$0xff]  }
 0xb7e   :  { %7588 = vmatpush1.bf16.msra.mxu1 %v14236_v8  ;;  %12109 = vmatprep.subr.bf16.mxu0 %v14281_v35  ;;  %v14317_v8 = vld [vmem:[%s19457_s15 + $0x80] ss:$12 sps:$4 sm:$0xff]  }
 0xb7f   :  { %7589 = vmatprep.subr.bf16.mxu1 %v14241_v20  ;;  %v14320_v35 = vld [vmem:[%s19457_s15 + $0x94] ss:$12 sps:$4 sm:$0xff]   ;;  %v14321_v20 = vld [vmem:[%s19457_s15 + $0x158] ss:$12 sps:$4 sm:$0xff]  }
 0xb81   :  { %12110 = vmatpush3.bf16.msra.mxu0 %v14282_v61  ;;  %v14318_v61 = vld [vmem:[%s19457_s15 + $0x90] ss:$12 sps:$4 sm:$0xff]  }
 0xb82   :  { %7590 = vmatpush1.bf16.msra.mxu1 %v14239_v41  ;;  %12111 = vmatprep.subr.bf16.mxu0 %v14286_v0  ;;  %v14322_v41 = vld [vmem:[%s19457_s15 + $0x98] ss:$12 sps:$4 sm:$0xff]   ;;  %v14346_v0 = vld [vmem:[%s19457_s15 + $0x410] ss:$12 sps:$4 sm:$0xff]  }
 0xb83   :  { %7591 = vmatprep.subr.bf16.mxu1 %v14244_v6  ;;  %v14325_v6 = vld [vmem:[%s19457_s15 + $0xac] ss:$12 sps:$4 sm:$0xff]  }
 0xb85   :  { %12112 = vmatpush3.bf16.msra.mxu0 %v14287_v54  ;;  %v14347_v54 = vld [vmem:[%s19457_s15 + $0x350] ss:$12 sps:$4 sm:$0xff]  }
 0xb86   :  { %7592 = vmatpush1.bf16.msra.mxu1 %v14242_v57  ;;  %12119 = vmatprep.subr.bf16.mxu0 %v14291_v50  ;;  %v14326_v57 = vld [vmem:[%s19457_s15 + $0x170] ss:$12 sps:$4 sm:$0xff]   ;;  %v14351_v50 = vld [vmem:[%s19457_s15 + $0x428] ss:$12 sps:$4 sm:$0xff]  }
 0xb87   :  { %7593 = vmatprep.subr.bf16.mxu1 %v14247_v53  ;;  %v14323_v53 = vld [vmem:[%s19457_s15 + $0xa8] ss:$12 sps:$4 sm:$0xff]  }
 0xb8a   :  { %7594 = vmatpush1.bf16.msra.mxu1 %v14245_v17  ;;  %v14327_v17 = vld [vmem:[%s19457_s15 + $0xb0] ss:$12 sps:$4 sm:$0xff]  }
 0xb8b   :  { %7595 = vmatprep.subr.bf16.mxu1 %v14250_v32  ;;  %v14330_v32 = vld [vmem:[%s19457_s15 + $0xc4] ss:$12 sps:$4 sm:$0xff]  }
 0xb8e   :  { %7596 = vmatpush1.bf16.msra.mxu1 %v14248_v52  ;;  %v14331_v52 = vld [vmem:[%s19457_s15 + $0x3c8] ss:$12 sps:$4 sm:$0xff]  }
 0xb8f   :  { %7597 = vmatprep.subr.bf16.mxu1 %v14255_v51  ;;  %v14328_v51 = vld [vmem:[%s19457_s15 + $0xc0] ss:$12 sps:$4 sm:$0xff]  }
 0xb92   :  { %7598 = vmatpush1.bf16.msra.mxu1 %v14253_v63  ;;  %v14332_v63 = vld [vmem:[%s19457_s15 + $0x308] ss:$12 sps:$4 sm:$0xff]  }
 0xb93   :  { %7599 = vmatprep.subr.bf16.mxu1 %v14260_v2 }
 0xb96   :  { %7600 = vmatpush1.bf16.msra.mxu1 %v14258_v14  ;;  %v14335_v14 = vld [vmem:[%s19457_s15 + $0xdc] ss:$12 sps:$4 sm:$0xff]  }
 0xb97   :  { %7601 = vmatprep.subr.bf16.mxu1 %v14265_v62  ;;  %v14336_v62 = vld [vmem:[%s19457_s15 + $0x3e0] ss:$12 sps:$4 sm:$0xff]  }
 0xb9a   :  { %7602 = vmatpush1.bf16.msra.mxu1 %v14263_v28 }
 0xb9b   :  { %7603 = vmatprep.subr.bf16.mxu1 %v14270_v1  ;;  %v14333_v1 = vld [vmem:[%s19457_s15 + $0xd8] ss:$12 sps:$4 sm:$0xff]  }
 0xb9e   :  { %7604 = vmatpush1.bf16.msra.mxu1 %v14268_v55  ;;  %v14337_v55 = vld [vmem:[%s19457_s15 + $0x320] ss:$12 sps:$4 sm:$0xff]  }
 0xb9f   :  { %7605 = vmatprep.subr.bf16.mxu1 %v14275_v18  ;;  %v14340_v18 = vld [vmem:[%s19457_s15 + $0xf4] ss:$12 sps:$4 sm:$0xff]  }
 0xba2   :  { %7606 = vmatpush1.bf16.msra.mxu1 %v14273_v16  ;;  %v14341_v16 = vld [vmem:[%s19457_s15 + $0x3f8] ss:$12 sps:$4 sm:$0xff]  }
 0xba3   :  { %7607 = vmatprep.subr.bf16.mxu1 %v14280_v56  ;;  %v14338_v56 = vld [vmem:[%s19457_s15 + $0xf0] ss:$12 sps:$4 sm:$0xff]  }
 0xba6   :  { %7608 = vmatpush1.bf16.msra.mxu1 %v14278_v33  ;;  %v14342_v33 = vld [vmem:[%s19457_s15 + $0x338] ss:$12 sps:$4 sm:$0xff]  }
 0xba7   :  { %7609 = vmatprep.subr.bf16.mxu1 %v14285_v60  ;;  %v14345_v60 = vld [vmem:[%s19457_s15 + $0x10c] ss:$12 sps:$4 sm:$0xff]  }
 0xbaa   :  { %7610 = vmatpush1.bf16.msra.mxu1 %v14283_v43  ;;  %v14343_v43 = vld [vmem:[%s19457_s15 + $0x108] ss:$12 sps:$4 sm:$0xff]  }
 0xbab   :  { %7916 = vmatprep.subr.bf16.mxu1 %v14290_v31  ;;  %v14350_v31 = vld [vmem:[%s19457_s15 + $0x124] ss:$12 sps:$4 sm:$0xff]  }
 0xc38   :  { %v18003_v47 = vpop.f32.mrb[76].mxu1 }
 0xc39   :  { %v6959_v59 = vpop.f32.mrb[77].mxu1  ;;  %v18117_v2 = vpack.c.bf16 %v18003_v47, %v18003_v47  ;;  %v14348_v47 = vld [vmem:[%s19457_s15 + $0x120] ss:$12 sps:$4 sm:$0xff]  }
 0xc3a   :  { %v18005_v48 = vpop.f32.mrb[52].mxu0  ;;  %v7191_v37 = vpack.c.bf16 %v6959_v59, %v6959_v59  ;;  %v14352_v59 = vld [vmem:[%s19457_s15 + $0x368] ss:$12 sps:$4 sm:$0xff]  }
 0xc3b   :  { %v18007_v36 = vpop.f32.mrb[53].mxu0 }
 0xc3c   :  { %v7033_v7 = vpop.f32.mrb[78].mxu1 }
 0xc3d   :  { %v7035_v39 = vpop.f32.mrb[79].mxu1  ;;  %v7256_v13 = vpack.c.bf16 %v7033_v7, %v7033_v7  ;;  %v14355_v7 = vld [vmem:[%s19457_s15 + $0x13c] ss:$12 sps:$4 sm:$0xff]  }
 0xc3e   :  { %v7257_v27 = vpack.c.bf16 %v7035_v39, %v7035_v39  ;;  %v14356_v39 = vld [vmem:[%s19457_s15 + $0x440] ss:$12 sps:$4 sm:$0xff]  }
 0xc40   :  { %7611 = vmatprep.mubr.bf16.mxu1 %v7257_v27  ;;  %7652 = vmatprep.mubr.bf16.mxu0 %v7257_v27  ;;  %v18021_v10 = vpop.f32.mrb[80].mxu1  ;;  %v14353_v27 = vld [vmem:[%s19457_s15 + $0x138] ss:$12 sps:$4 sm:$0xff]  }
 0xc41   :  { %7612 = vmatmul.mubr.bf16.vlgmr.msra.gmra.mrb[84].mxu1 %v7256_v13  ;;  %7653 = vmatmul.mubr.bf16.vlgmr.msra.gmra.mrb[56].mxu0 %v7256_v13  ;;  %v18023_v58 = vpop.f32.mrb[81].mxu1  ;;  %v14361_v13 = vld [vmem:[%s19457_s15 + $0x458] ss:$12 sps:$4 sm:$0xff]  }
 0xc42   :  { %7917 = vmatpush1.bf16.msra.mxu1 %v14288_v40  ;;  %12120 = vmatpush3.bf16.msra.mxu0 %v14292_v11  ;;  %v18127_v28 = vpack.c.bf16 %v18023_v58, %v18023_v58  ;;  %v14357_v40 = vld [vmem:[%s19457_s15 + $0x380] ss:$12 sps:$4 sm:$0xff]   ;;  %v14366_v58 = vld [vmem:[%s19457_s15 + $0x470] ss:$12 sps:$4 sm:$0xff]  }
 0xc43   :  { %7948 = vmatprep.mubr.bf16.mxu1 %v7191_v37  ;;  %7989 = vmatprep.mubr.bf16.mxu0 %v7191_v37  ;;  %v14360_v11 = vld [vmem:[%s19457_s15 + $0x154] ss:$12 sps:$4 sm:$0xff]   ;;  %v14365_v37 = vld [vmem:[%s19457_s15 + $0x16c] ss:$12 sps:$4 sm:$0xff]  }
 0xc44   :  { %7918 = vmatprep.subr.bf16.mxu1 %v14295_v9  ;;  %12121 = vmatprep.subr.bf16.mxu0 %v14296_v25  ;;  %v14358_v9 = vld [vmem:[%s19457_s15 + $0x150] ss:$12 sps:$4 sm:$0xff]   ;;  %v14362_v25 = vld [vmem:[%s19457_s15 + $0x398] ss:$12 sps:$4 sm:$0xff]  }
 0xc46   :  { %7919 = vmatpush1.bf16.msra.mxu1 %v14293_v44  ;;  %12122 = vmatpush3.bf16.msra.mxu0 %v14297_v42  ;;  %v14363_v44 = vld [vmem:[%s19457_s15 + $0x168] ss:$12 sps:$4 sm:$0xff]   ;;  %v14367_v42 = vld [vmem:[%s19457_s15 + $0x3b0] ss:$12 sps:$4 sm:$0xff]  }
 0xc47   :  { %7920 = vmatprep.subr.bf16.mxu1 %v14300_v21  ;;  %12123 = vmatprep.subr.bf16.mxu0 %v14301_v3  ;;  %v14370_v21 = vld [vmem:[%s19457_s15 + $0x304] ss:$12 sps:$4 sm:$0xff]   ;;  %v14371_v3 = vld [vmem:[%s19457_s15 + $0x548] ss:$12 sps:$4 sm:$0xff]  }
 0xc4a   :  { %7921 = vmatpush1.bf16.msra.mxu1 %v14298_v23  ;;  %12124 = vmatpush3.bf16.msra.mxu0 %v14302_v34  ;;  %v18217_v23 = vpack.c.bf16 %v18021_v10, %v18021_v10  ;;  %v14368_v34 = vld [vmem:[%s19457_s15 + $0x300] ss:$12 sps:$4 sm:$0xff]  }
 0xc4b   :  { %7922 = vmatprep.subr.bf16.mxu1 %v14305_v38  ;;  %12125 = vmatprep.subr.bf16.mxu0 %v14306_v45  ;;  %v14372_v38 = vld [vmem:[%s19457_s15 + $0x488] ss:$12 sps:$4 sm:$0xff]   ;;  %v14376_v10 = vld [vmem:[%s19457_s15 + $0x560] ss:$12 sps:$4 sm:$0xff]  }
 0xc4c   :  { %v14375_v45 = vld [vmem:[%s19457_s15 + $0x31c] ss:$12 sps:$4 sm:$0xff]  }
 0xc4e   :  { %7923 = vmatpush1.bf16.msra.mxu1 %v14303_v24  ;;  %12126 = vmatpush3.bf16.msra.mxu0 %v14307_v12  ;;  %v18233_v24 = vpack.c.bf16 %v18007_v36, %v18007_v36  ;;  %v14373_v12 = vld [vmem:[%s19457_s15 + $0x318] ss:$12 sps:$4 sm:$0xff]   ;;  %v14380_v36 = vld [vmem:[%s19457_s15 + $0x334] ss:$12 sps:$4 sm:$0xff]  }
 0xc4f   :  { %7924 = vmatprep.subr.bf16.mxu1 %v14310_v15  ;;  %12127 = vmatprep.subr.bf16.mxu0 %v14311_v19  ;;  %v14377_v15 = vld [vmem:[%s19457_s15 + $0x4a0] ss:$12 sps:$4 sm:$0xff]   ;;  %v14381_v19 = vld [vmem:[%s19457_s15 + $0x578] ss:$12 sps:$4 sm:$0xff]  }
 0xc52   :  { %7925 = vmatpush1.bf16.msra.mxu1 %v14308_v30  ;;  %12128 = vmatpush3.bf16.msra.mxu0 %v14312_v22  ;;  %v14378_v30 = vld [vmem:[%s19457_s15 + $0x330] ss:$12 sps:$4 sm:$0xff]   ;;  %v14382_v22 = vld [vmem:[%s19457_s15 + $0x4b8] ss:$12 sps:$4 sm:$0xff]  }
 0xc53   :  { %7926 = vmatprep.subr.bf16.mxu1 %v14315_v29  ;;  %12129 = vmatprep.subr.bf16.mxu0 %v14316_v26  ;;  %v14385_v29 = vld [vmem:[%s19457_s15 + $0x34c] ss:$12 sps:$4 sm:$0xff]   ;;  %v14386_v26 = vld [vmem:[%s19457_s15 + $0x590] ss:$12 sps:$4 sm:$0xff]  }
 0xc56   :  { %7927 = vmatpush1.bf16.msra.mxu1 %v14313_v4  ;;  %12130 = vmatpush3.bf16.msra.mxu0 %v14317_v8  ;;  %v14383_v4 = vld [vmem:[%s19457_s15 + $0x348] ss:$12 sps:$4 sm:$0xff]   ;;  %v14387_v8 = vld [vmem:[%s19457_s15 + $0x4d0] ss:$12 sps:$4 sm:$0xff]  }
 0xc57   :  { %7928 = vmatprep.subr.bf16.mxu1 %v14320_v35  ;;  %12131 = vmatprep.subr.bf16.mxu0 %v14321_v20  ;;  %v14390_v35 = vld [vmem:[%s19457_s15 + $0x364] ss:$12 sps:$4 sm:$0xff]   ;;  %v14391_v20 = vld [vmem:[%s19457_s15 + $0x5a8] ss:$12 sps:$4 sm:$0xff]  }
 0xc5a   :  { %7929 = vmatpush1.bf16.msra.mxu1 %v14318_v61  ;;  %12132 = vmatpush3.bf16.msra.mxu0 %v14322_v41  ;;  %v14388_v61 = vld [vmem:[%s19457_s15 + $0x360] ss:$12 sps:$4 sm:$0xff]   ;;  %v14392_v41 = vld [vmem:[%s19457_s15 + $0x4e8] ss:$12 sps:$4 sm:$0xff]  }
 0xc5b   :  { %7930 = vmatprep.subr.bf16.mxu1 %v14325_v6  ;;  %12133 = vmatprep.subr.bf16.mxu0 %v14326_v57  ;;  %v14395_v6 = vld [vmem:[%s19457_s15 + $0x37c] ss:$12 sps:$4 sm:$0xff]   ;;  %v14396_v57 = vld [vmem:[%s19457_s15 + $0x5c0] ss:$12 sps:$4 sm:$0xff]  }
 0xc5e   :  { %7931 = vmatpush1.bf16.msra.mxu1 %v14323_v53  ;;  %12134 = vmatpush3.bf16.msra.mxu0 %v14327_v17  ;;  %v14393_v53 = vld [vmem:[%s19457_s15 + $0x378] ss:$12 sps:$4 sm:$0xff]   ;;  %v14397_v17 = vld [vmem:[%s19457_s15 + $0x500] ss:$12 sps:$4 sm:$0xff]  }
 0xc5f   :  { %7932 = vmatprep.subr.bf16.mxu1 %v14330_v32  ;;  %12141 = vmatprep.subr.bf16.mxu0 %v14331_v52  ;;  %v14400_v32 = vld [vmem:[%s19457_s15 + $0x394] ss:$12 sps:$4 sm:$0xff]   ;;  %v14401_v52 = vld [vmem:[%s19457_s15 + $0x5d8] ss:$12 sps:$4 sm:$0xff]  }
 0xc61   :  { %7990 = vmatmul.mubr.bf16.vlgmr.msra.gmra.mrb[60].mxu0 %v18117_v2 }
 0xc62   :  { %7933 = vmatpush1.bf16.msra.mxu1 %v14328_v51  ;;  %12142 = vmatpush3.bf16.msra.mxu0 %v14332_v63  ;;  %v14398_v51 = vld [vmem:[%s19457_s15 + $0x390] ss:$12 sps:$4 sm:$0xff]   ;;  %v14402_v63 = vld [vmem:[%s19457_s15 + $0x518] ss:$12 sps:$4 sm:$0xff]  }
 0xc63   :  { %7934 = vmatprep.subr.bf16.mxu1 %v14335_v14  ;;  %12143 = vmatprep.subr.bf16.mxu0 %v14336_v62  ;;  %v14406_v14 = vld [vmem:[%s19457_s15 + $0x5f0] ss:$12 sps:$4 sm:$0xff]   ;;  %v14403_v62 = vld [vmem:[%s19457_s15 + $0x3a8] ss:$12 sps:$4 sm:$0xff]  }
 0xc64   :  { %8393 = vmatprep.mubr.bf16.mxu0 %v18127_v28 }
 0xc66   :  { %7935 = vmatpush1.bf16.msra.mxu1 %v14333_v1  ;;  %12144 = vmatpush3.bf16.msra.mxu0 %v14337_v55  ;;  %v14410_v1 = vld [vmem:[%s19457_s15 + $0x3c4] ss:$12 sps:$4 sm:$0xff]   ;;  %v18322_v55 = vpack.c.bf16 %v18005_v48, %v18005_v48  ;;  %v14416_v48 = vld [vmem:[%s19457_s15 + $0x3f4] ss:$12 sps:$4 sm:$0xff]  }
 0xc67   :  { %7936 = vmatprep.subr.bf16.mxu1 %v14340_v18  ;;  %12145 = vmatprep.subr.bf16.mxu0 %v14341_v16  ;;  %v14408_v18 = vld [vmem:[%s19457_s15 + $0x3c0] ss:$12 sps:$4 sm:$0xff]   ;;  %v14413_v16 = vld [vmem:[%s19457_s15 + $0x3dc] ss:$12 sps:$4 sm:$0xff]  }
 0xc6a   :  { %7937 = vmatpush1.bf16.msra.mxu1 %v14338_v56  ;;  %12146 = vmatpush3.bf16.msra.mxu0 %v14342_v33  ;;  %v14411_v56 = vld [vmem:[%s19457_s15 + $0x3d8] ss:$12 sps:$4 sm:$0xff]   ;;  %v14414_v33 = vld [vmem:[%s19457_s15 + $0x3f0] ss:$12 sps:$4 sm:$0xff]  }
 0xc6b   :  { %7938 = vmatprep.subr.bf16.mxu1 %v14345_v60  ;;  %12147 = vmatprep.subr.bf16.mxu0 %v14346_v0  ;;  %v14419_v60 = vld [vmem:[%s19457_s15 + $0x40c] ss:$12 sps:$4 sm:$0xff]   ;;  %v14417_v0 = vld [vmem:[%s19457_s15 + $0x408] ss:$12 sps:$4 sm:$0xff]  }
 0xc6e   :  { %7939 = vmatpush1.bf16.msra.mxu1 %v14343_v43  ;;  %12148 = vmatpush3.bf16.msra.mxu0 %v14347_v54  ;;  %v14422_v43 = vld [vmem:[%s19457_s15 + $0x424] ss:$12 sps:$4 sm:$0xff]   ;;  %v14420_v54 = vld [vmem:[%s19457_s15 + $0x420] ss:$12 sps:$4 sm:$0xff]  }
 0xc6f   :  { %7940 = vmatprep.subr.bf16.mxu1 %v14350_v31  ;;  %12149 = vmatprep.subr.bf16.mxu0 %v14351_v50  ;;  %v14425_v31 = vld [vmem:[%s19457_s15 + $0x43c] ss:$12 sps:$4 sm:$0xff]   ;;  %v14423_v50 = vld [vmem:[%s19457_s15 + $0x438] ss:$12 sps:$4 sm:$0xff]  }
 0xc72   :  { %7941 = vmatpush1.bf16.msra.mxu1 %v14348_v47  ;;  %12150 = vmatpush3.bf16.msra.mxu0 %v14352_v59  ;;  %v14428_v47 = vld [vmem:[%s19457_s15 + $0x454] ss:$12 sps:$4 sm:$0xff]   ;;  %v14426_v59 = vld [vmem:[%s19457_s15 + $0x450] ss:$12 sps:$4 sm:$0xff]  }
 0xc73   :  { %7942 = vmatprep.subr.bf16.mxu1 %v14355_v7  ;;  %12151 = vmatprep.subr.bf16.mxu0 %v14356_v39  ;;  %v14431_v7 = vld [vmem:[%s19457_s15 + $0x46c] ss:$12 sps:$4 sm:$0xff]   ;;  %v14429_v39 = vld [vmem:[%s19457_s15 + $0x468] ss:$12 sps:$4 sm:$0xff]  }
 0xc76   :  { %7943 = vmatpush1.bf16.msra.mxu1 %v14353_v27  ;;  %12152 = vmatpush3.bf16.msra.mxu0 %v14357_v40  ;;  %v14434_v27 = vld [vmem:[%s19457_s15 + $0x484] ss:$12 sps:$4 sm:$0xff]   ;;  %v14432_v40 = vld [vmem:[%s19457_s15 + $0x480] ss:$12 sps:$4 sm:$0xff]  }
 0xc77   :  { %7944 = vmatprep.subr.bf16.mxu1 %v14360_v11  ;;  %12153 = vmatprep.subr.bf16.mxu0 %v14361_v13  ;;  %v14437_v11 = vld [vmem:[%s19457_s15 + $0x49c] ss:$12 sps:$4 sm:$0xff]   ;;  %v14435_v13 = vld [vmem:[%s19457_s15 + $0x498] ss:$12 sps:$4 sm:$0xff]  }
 0xc7a   :  { %7945 = vmatpush1.bf16.msra.mxu1 %v14358_v9  ;;  %12154 = vmatpush3.bf16.msra.mxu0 %v14362_v25  ;;  %v14440_v9 = vld [vmem:[%s19457_s15 + $0x4b4] ss:$12 sps:$4 sm:$0xff]   ;;  %v14438_v25 = vld [vmem:[%s19457_s15 + $0x4b0] ss:$12 sps:$4 sm:$0xff]  }
 0xc7b   :  { %7946 = vmatprep.subr.bf16.mxu1 %v14365_v37  ;;  %12155 = vmatprep.subr.bf16.mxu0 %v14366_v58  ;;  %v14443_v37 = vld [vmem:[%s19457_s15 + $0x4cc] ss:$12 sps:$4 sm:$0xff]   ;;  %v14441_v58 = vld [vmem:[%s19457_s15 + $0x4c8] ss:$12 sps:$4 sm:$0xff]  }
 0xc7e   :  { %7947 = vmatpush1.bf16.msra.mxu1 %v14363_v44  ;;  %12156 = vmatpush3.bf16.msra.mxu0 %v14367_v42  ;;  %v14446_v44 = vld [vmem:[%s19457_s15 + $0x4e4] ss:$12 sps:$4 sm:$0xff]   ;;  %v14444_v42 = vld [vmem:[%s19457_s15 + $0x4e0] ss:$12 sps:$4 sm:$0xff]  }
 0xc7f   :  { %8320 = vmatprep.subr.bf16.mxu1 %v14370_v21  ;;  %12163 = vmatprep.subr.bf16.mxu0 %v14371_v3  ;;  %v14449_v21 = vld [vmem:[%s19457_s15 + $0x4fc] ss:$12 sps:$4 sm:$0xff]   ;;  %v14447_v3 = vld [vmem:[%s19457_s15 + $0x4f8] ss:$12 sps:$4 sm:$0xff]  }
 0xc81   :  { %7949 = vmatmul.mubr.bf16.vlgmr.msra.gmra.mrb[84].mxu1 %v18117_v2  ;;  %8394 = vmatmul.mubr.bf16.vlgmr.msra.gmra.mrb[64].mxu0 %v18217_v23  ;;  %v14405_v2 = vld [vmem:[%s19457_s15 + $0x3ac] ss:$12 sps:$4 sm:$0xff]  }
 0xc82   :  { %8321 = vmatpush1.bf16.msra.mxu1 %v14368_v34  ;;  %12164 = vmatpush3.bf16.msra.mxu0 %v14372_v38  ;;  %v14450_v34 = vld [vmem:[%s19457_s15 + $0x510] ss:$12 sps:$4 sm:$0xff]   ;;  %v14455_v38 = vld [vmem:[%s19457_s15 + $0x52c] ss:$12 sps:$4 sm:$0xff]  }
 0xc83   :  { %8322 = vmatprep.subr.bf16.mxu1 %v14375_v45  ;;  %12165 = vmatprep.subr.bf16.mxu0 %v14376_v10  ;;  %v14453_v45 = vld [vmem:[%s19457_s15 + $0x528] ss:$12 sps:$4 sm:$0xff]   ;;  %v14458_v10 = vld [vmem:[%s19457_s15 + $0x544] ss:$12 sps:$4 sm:$0xff]  }
 0xc84   :  { %8800 = vmatprep.mubr.bf16.mxu0 %v18233_v24  ;;  %8352 = vmatprep.mubr.bf16.mxu1 %v18127_v28  ;;  %v14407_v28 = vld [vmem:[%s19457_s15 + $0x530] ss:$12 sps:$4 sm:$0xff]  }
 0xc86   :  { %8323 = vmatpush1.bf16.msra.mxu1 %v14373_v12  ;;  %12166 = vmatpush3.bf16.msra.mxu0 %v14377_v15  ;;  %v14461_v12 = vld [vmem:[%s19457_s15 + $0x55c] ss:$12 sps:$4 sm:$0xff]   ;;  %v14459_v15 = vld [vmem:[%s19457_s15 + $0x558] ss:$12 sps:$4 sm:$0xff]  }
 0xc87   :  { %8324 = vmatprep.subr.bf16.mxu1 %v14380_v36  ;;  %12167 = vmatprep.subr.bf16.mxu0 %v14381_v19  ;;  %v14464_v36 = vld [vmem:[%s19457_s15 + $0x574] ss:$12 sps:$4 sm:$0xff]   ;;  %v14462_v19 = vld [vmem:[%s19457_s15 + $0x570] ss:$12 sps:$4 sm:$0xff]  }
 0xc8a   :  { %8325 = vmatpush1.bf16.msra.mxu1 %v14378_v30  ;;  %12168 = vmatpush3.bf16.msra.mxu0 %v14382_v22  ;;  %v14467_v30 = vld [vmem:[%s19457_s15 + $0x58c] ss:$12 sps:$4 sm:$0xff]   ;;  %v14465_v22 = vld [vmem:[%s19457_s15 + $0x588] ss:$12 sps:$4 sm:$0xff]  }
 0xc8b   :  { %8326 = vmatprep.subr.bf16.mxu1 %v14385_v29  ;;  %12169 = vmatprep.subr.bf16.mxu0 %v14386_v26  ;;  %v14470_v29 = vld [vmem:[%s19457_s15 + $0x5a4] ss:$12 sps:$4 sm:$0xff]   ;;  %v14468_v26 = vld [vmem:[%s19457_s15 + $0x5a0] ss:$12 sps:$4 sm:$0xff]  }
 0xc8e   :  { %8327 = vmatpush1.bf16.msra.mxu1 %v14383_v4  ;;  %12170 = vmatpush3.bf16.msra.mxu0 %v14387_v8  ;;  %v14473_v4 = vld [vmem:[%s19457_s15 + $0x5bc] ss:$12 sps:$4 sm:$0xff]   ;;  %v14471_v8 = vld [vmem:[%s19457_s15 + $0x5b8] ss:$12 sps:$4 sm:$0xff]  }
 0xc8f   :  { %8328 = vmatprep.subr.bf16.mxu1 %v14390_v35  ;;  %12171 = vmatprep.subr.bf16.mxu0 %v14391_v20  ;;  %v14476_v35 = vld [vmem:[%s19457_s15 + $0x5d4] ss:$12 sps:$4 sm:$0xff]   ;;  %v14474_v20 = vld [vmem:[%s19457_s15 + $0x5d0] ss:$12 sps:$4 sm:$0xff]  }
 0xc92   :  { %8329 = vmatpush1.bf16.msra.mxu1 %v14388_v61  ;;  %12172 = vmatpush3.bf16.msra.mxu0 %v14392_v41  ;;  %v14479_v61 = vld [vmem:[%s19457_s15 + $0x5ec] ss:$12 sps:$4 sm:$0xff]   ;;  %v14477_v41 = vld [vmem:[%s19457_s15 + $0x5e8] ss:$12 sps:$4 sm:$0xff]  }
 0xc93   :  { %8330 = vmatprep.subr.bf16.mxu1 %v14395_v6  ;;  %12173 = vmatprep.subr.bf16.mxu0 %v14396_v57  ;;  %v8955_v6 = vld [vmem:[%s19458_s16 + $0x310] sm:$0xff]  ;;  %v8958_v57 = vld [vmem:[%s19458_s16 + $0x328] sm:$0xff] }
 0xc96   :  { %8331 = vmatpush1.bf16.msra.mxu1 %v14393_v53  ;;  %12174 = vmatpush3.bf16.msra.mxu0 %v14397_v17  ;;  %v18474_v53 = vpack.c.bf16 %v8958_v57, %v8955_v6  ;;  %v19475_v17 = vmov 0.0|0.0   ;;  %v8887_v6 = vld [vmem:[%s19458_s16 + $0xf0] sm:$0xff] }
 0xc97   :  { %8332 = vmatprep.subr.bf16.mxu1 %v14400_v32  ;;  %12175 = vmatprep.subr.bf16.mxu0 %v14401_v52  ;;  %v8961_v32 = vld [vmem:[%s19458_s16 + $0x340] sm:$0xff]  ;;  %v8964_v52 = vld [vmem:[%s19458_s16 + $0x358] sm:$0xff] }
 0xc9a   :  { %8333 = vmatpush1.bf16.msra.mxu1 %v14398_v51  ;;  %12176 = vmatpush3.bf16.msra.mxu0 %v14402_v63  ;;  %v18485_v51 = vpack.c.bf16 %v8964_v52, %v8961_v32  ;;  %v8967_v63 = vld [vmem:[%s19458_s16 + $0x370] sm:$0xff]  ;;  %v8890_v32 = vld [vmem:[%s19458_s16 + $0x108] sm:$0xff] }
 0xc9b   :  { %8334 = vmatprep.subr.bf16.mxu1 %v14405_v2  ;;  %12177 = vmatprep.subr.bf16.mxu0 %v14406_v14  ;;  %v8970_v2 = vld [vmem:[%s19458_s16 + $0x388] sm:$0xff]  ;;  %v8907_v52 = vld [vmem:[%s19458_s16 + $0x190] sm:$0xff] }
 0xc9c   :  { %v18497_v14 = vpack.c.bf16 %v8970_v2, %v8967_v63  ;;  %v8910_v63 = vld [vmem:[%s19458_s16 + $0x1a8] sm:$0xff] }
 0xc9d   :  { %v8894_v2 = vld [vmem:[%s19458_s16 + $0x128] sm:$0xff] }
 0xc9e   :  { %8335 = vmatpush1.bf16.msra.mxu1 %v14403_v62  ;;  %12178 = vmatpush3.bf16.msra.mxu0 %v14407_v28  ;;  %v8973_v62 = vld [vmem:[%s19458_s16 + $0x3a0] sm:$0xff]  ;;  %v8976_v28 = vld [vmem:[%s19458_s16 + $0x3b8] sm:$0xff] }
 0xc9f   :  { %8336 = vmatprep.subr.bf16.mxu1 %v14410_v1  ;;  %v8858_v1 = vld [vmem:[%s19458_s16 + $0x8] sm:$0xff] }
 0xca1   :  { %8801 = vmatmul.mubr.bf16.vlgmr.msra.gmra.mrb[68].mxu0 %v18322_v55 }
 0xca2   :  { %8337 = vmatpush1.bf16.msra.mxu1 %v14408_v18  ;;  %v8857_v18 = vld [vmem:[%s19458_s16] sm:$0xff] }
 0xca3   :  { %8338 = vmatprep.subr.bf16.mxu1 %v14413_v16 }
 0xca6   :  { %8339 = vmatpush1.bf16.msra.mxu1 %v14411_v56  ;;  %v8860_v56 = vld [vmem:[%s19458_s16 + $0x18] sm:$0xff] }
 0xca7   :  { %8340 = vmatprep.subr.bf16.mxu1 %v14416_v48  ;;  %v8864_v48 = vld [vmem:[%s19458_s16 + $0x38] sm:$0xff] }
 0xcaa   :  { %8341 = vmatpush1.bf16.msra.mxu1 %v14414_v33  ;;  %v8867_v33 = vld [vmem:[%s19458_s16 + $0x50] sm:$0xff] }
 0xcab   :  { %8342 = vmatprep.subr.bf16.mxu1 %v14419_v60  ;;  %v18526_v60 = vpack.c.bf16 %v8860_v56, %v8857_v18  ;;  %v8893_v56 = vld [vmem:[%s19458_s16 + $0x120] sm:$0xff] }
 0xcae   :  { %8343 = vmatpush1.bf16.msra.mxu1 %v14417_v0  ;;  %v18528_v0 = vpack.c.bf16 %v8867_v33, %v8864_v48  ;;  %v8896_v48 = vld [vmem:[%s19458_s16 + $0x138] sm:$0xff] }
 0xcaf   :  { %8344 = vmatprep.subr.bf16.mxu1 %v14422_v43  ;;  %v8863_v43 = vld [vmem:[%s19458_s16 + $0x30] sm:$0xff]  ;;  %v8900_v33 = vld [vmem:[%s19458_s16 + $0x158] sm:$0xff] }
 0xcb2   :  { %8345 = vmatpush1.bf16.msra.mxu1 %v14420_v54  ;;  %v8866_v54 = vld [vmem:[%s19458_s16 + $0x48] sm:$0xff] }
 0xcb3   :  { %8346 = vmatprep.subr.bf16.mxu1 %v14425_v31  ;;  %v8870_v31 = vld [vmem:[%s19458_s16 + $0x68] sm:$0xff] }
 0xcb6   :  { %8347 = vmatpush1.bf16.msra.mxu1 %v14423_v50  ;;  %v18540_v50 = vpack.c.bf16 %v8976_v28, %v8973_v62  ;;  %v8897_v62 = vld [vmem:[%s19458_s16 + $0x140] sm:$0xff] }
 0xcb7   :  { %8348 = vmatprep.subr.bf16.mxu1 %v14428_v47  ;;  %v8873_v47 = vld [vmem:[%s19458_s16 + $0x80] sm:$0xff]  ;;  %v18673_v18 = vpack.c.bf16 %v8897_v62, %v8894_v2 }
 0xcba   :  { %8349 = vmatpush1.bf16.msra.mxu1 %v14426_v59  ;;  %v8979_v59 = vld [vmem:[%s19458_s16 + $0x3d0] sm:$0xff] }
 0xcbb   :  { %8350 = vmatprep.subr.bf16.mxu1 %v14431_v7  ;;  %v8982_v7 = vld [vmem:[%s19458_s16 + $0x3e8] sm:$0xff] }
 0xcbe   :  { %8351 = vmatpush1.bf16.msra.mxu1 %v14429_v39  ;;  %v18554_v39 = vpack.c.bf16 %v8866_v54, %v8863_v43  ;;  %v8903_v43 = vld [vmem:[%s19458_s16 + $0x170] sm:$0xff]  ;;  %v18689_v54 = vpack.c.bf16 %v8896_v48, %v8893_v56 }
 0xcbf   :  { %8727 = vmatprep.subr.bf16.mxu1 %v14434_v27  ;;  %v18557_v27 = vpack.c.bf16 %v8873_v47, %v8870_v31  ;;  %v18693_v31 = vpack.c.bf16 %v8903_v43, %v8900_v33  ;;  %v8899_v47 = vld [vmem:[%s19458_s16 + $0x150] sm:$0xff] }
 0xcc0   :  { %19529 = vst [vmem:[#allocation8_spill] sm:$0xff] %v18689_v54 }
 0xcc1   :  { %8353 = vmatmul.mubr.bf16.vlgmr.msra.gmra.mrb[84].mxu1 %v18217_v23  ;;  %v14452_v23 = vld [vmem:[%s19457_s15 + $0x514] ss:$12 sps:$4 sm:$0xff]   ;;  %19530 = vst [vmem:[#allocation9_spill] sm:$0xff] %v18693_v31 }
 0xcc2   :  { %8728 = vmatpush1.bf16.msra.mxu1 %v14432_v40  ;;  %8759 = vmatprep.mubr.bf16.mxu1 %v18233_v24  ;;  %v14456_v24 = vld [vmem:[%s19457_s15 + $0x540] ss:$12 sps:$4 sm:$0xff]  }
 0xcc3   :  { %8729 = vmatprep.subr.bf16.mxu1 %v14437_v11  ;;  %v8869_v40 = vld [vmem:[%s19458_s16 + $0x60] sm:$0xff]  ;;  %v8872_v11 = vld [vmem:[%s19458_s16 + $0x78] sm:$0xff] }
 0xcc6   :  { %8730 = vmatpush1.bf16.msra.mxu1 %v14435_v13  ;;  %v8876_v13 = vld [vmem:[%s19458_s16 + $0x98] sm:$0xff] }
 0xcc7   :  { %8731 = vmatprep.subr.bf16.mxu1 %v14440_v9  ;;  %v8879_v9 = vld [vmem:[%s19458_s16 + $0xb0] sm:$0xff] }
 0xcca   :  { %8732 = vmatpush1.bf16.msra.mxu1 %v14438_v25  ;;  %v18572_v25 = vpack.c.bf16 %v8982_v7, %v8979_v59  ;;  %v8902_v59 = vld [vmem:[%s19458_s16 + $0x168] sm:$0xff] }
 0xccb   :  { %8733 = vmatprep.subr.bf16.mxu1 %v14443_v37  ;;  %v8985_v37 = vld [vmem:[%s19458_s16 + $0x400] sm:$0xff]  ;;  %v8906_v7 = vld [vmem:[%s19458_s16 + $0x188] sm:$0xff] }
 0xcce   :  { %8734 = vmatpush1.bf16.msra.mxu1 %v14441_v58  ;;  %v8988_v58 = vld [vmem:[%s19458_s16 + $0x418] sm:$0xff] }
 0xccf   :  { %8735 = vmatprep.subr.bf16.mxu1 %v14446_v44  ;;  %v18582_v44 = vpack.c.bf16 %v8872_v11, %v8869_v40  ;;  %v8909_v40 = vld [vmem:[%s19458_s16 + $0x1a0] sm:$0xff]  ;;  %v18708_v11 = vpack.c.bf16 %v8902_v59, %v8899_v47 }
 0xcd0   :  { %v8929_v59 = vld [vmem:[%s19458_s16 + $0x240] sm:$0xff] }
 0xcd1   :  { %19531 = vst [vmem:[#allocation10_spill] sm:$0xff] %v18708_v11 }
 0xcd2   :  { %8736 = vmatpush1.bf16.msra.mxu1 %v14444_v42  ;;  %v18585_v42 = vpack.c.bf16 %v8879_v9, %v8876_v13  ;;  %v18711_v13 = vpack.c.bf16 %v8909_v40, %v8906_v7  ;;  %v8905_v9 = vld [vmem:[%s19458_s16 + $0x180] sm:$0xff]  ;;  %v8932_v7 = vld [vmem:[%s19458_s16 + $0x258] sm:$0xff] }
 0xcd3   :  { %8737 = vmatprep.subr.bf16.mxu1 %v14449_v21  ;;  %v8875_v21 = vld [vmem:[%s19458_s16 + $0x90] sm:$0xff]  ;;  %v18794_v40 = vpack.c.bf16 %v8932_v7, %v8929_v59  ;;  %v8954_v7 = vld [vmem:[%s19458_s16 + $0x308] sm:$0xff] }
 0xcd4   :  { %19532 = vst [vmem:[#allocation11_spill] sm:$0xff] %v18711_v13 }
 0xcd5   :  { %19541 = vst [vmem:[#allocation20_spill] sm:$0xff] %v18794_v40 }
 0xcd6   :  { %8738 = vmatpush1.bf16.msra.mxu1 %v14447_v3  ;;  %v8878_v3 = vld [vmem:[%s19458_s16 + $0xa8] sm:$0xff] }
 0xcd7   :  { %8739 = vmatprep.subr.bf16.mxu1 %v14452_v23  ;;  %v8882_v23 = vld [vmem:[%s19458_s16 + $0xc8] sm:$0xff] }
 0xcda   :  { %8740 = vmatpush1.bf16.msra.mxu1 %v14450_v34  ;;  %v8885_v34 = vld [vmem:[%s19458_s16 + $0xe0] sm:$0xff] }
 0xcdb   :  { %8741 = vmatprep.subr.bf16.mxu1 %v14455_v38  ;;  %v18600_v38 = vpack.c.bf16 %v8988_v58, %v8985_v37  ;;  %v8908_v37 = vld [vmem:[%s19458_s16 + $0x198] sm:$0xff] }
 0xcdc   :  { %v8912_v58 = vld [vmem:[%s19458_s16 + $0x1b8] sm:$0xff] }
 0xcde   :  { %8742 = vmatpush1.bf16.msra.mxu1 %v14453_v45  ;;  %v8991_v45 = vld [vmem:[%s19458_s16 + $0x430] sm:$0xff] }
 0xcdf   :  { %8743 = vmatprep.subr.bf16.mxu1 %v14458_v10  ;;  %v8994_v10 = vld [vmem:[%s19458_s16 + $0x448] sm:$0xff] }
 0xce2   :  { %8744 = vmatpush1.bf16.msra.mxu1 %v14456_v24  ;;  %v18610_v24 = vpack.c.bf16 %v8878_v3, %v8875_v21  ;;  %v8915_v21 = vld [vmem:[%s19458_s16 + $0x1d0] sm:$0xff]  ;;  %v18726_v3 = vpack.c.bf16 %v8908_v37, %v8905_v9  ;;  %v8936_v37 = vld [vmem:[%s19458_s16 + $0x278] sm:$0xff] }
 0xce3   :  { %8745 = vmatprep.subr.bf16.mxu1 %v14461_v12 }
 0xce4   :  { %19533 = vst [vmem:[#allocation12_spill] sm:$0xff] %v18726_v3 }
 0xce6   :  { %8746 = vmatpush1.bf16.msra.mxu1 %v14459_v15  ;;  %v18613_v15 = vpack.c.bf16 %v8885_v34, %v8882_v23  ;;  %v18729_v23 = vpack.c.bf16 %v8915_v21, %v8912_v58  ;;  %v8911_v34 = vld [vmem:[%s19458_s16 + $0x1b0] sm:$0xff] }
 0xce7   :  { %8747 = vmatprep.subr.bf16.mxu1 %v14464_v36  ;;  %v8881_v36 = vld [vmem:[%s19458_s16 + $0xc0] sm:$0xff] }
 0xce8   :  { %19534 = vst [vmem:[#allocation13_spill] sm:$0xff] %v18729_v23 }
 0xcea   :  { %8748 = vmatpush1.bf16.msra.mxu1 %v14462_v19  ;;  %v8884_v19 = vld [vmem:[%s19458_s16 + $0xd8] sm:$0xff] }
 0xceb   :  { %8749 = vmatprep.subr.bf16.mxu1 %v14467_v30 }
 0xcee   :  { %8750 = vmatpush1.bf16.msra.mxu1 %v14465_v22  ;;  %v8888_v22 = vld [vmem:[%s19458_s16 + $0xf8] sm:$0xff] }
 0xcef   :  { %8751 = vmatprep.subr.bf16.mxu1 %v14470_v29  ;;  %v8891_v29 = vld [vmem:[%s19458_s16 + $0x110] sm:$0xff] }
 0xcf0   :  { %v18646_v57 = vpack.c.bf16 %v8891_v29, %v8888_v22  ;;  %v8920_v22 = vld [vmem:[%s19458_s16 + $0x1f8] sm:$0xff] }
 0xcf1   :  { %v8924_v29 = vld [vmem:[%s19458_s16 + $0x218] sm:$0xff] }
 0xcf2   :  { %8752 = vmatpush1.bf16.msra.mxu1 %v14468_v26 }
 0xcf3   :  { %8753 = vmatprep.subr.bf16.mxu1 %v14473_v4 }
 0xcf6   :  { %8754 = vmatpush1.bf16.msra.mxu1 %v14471_v8  ;;  %v18630_v8 = vpack.c.bf16 %v8994_v10, %v8991_v45  ;;  %v8914_v45 = vld [vmem:[%s19458_s16 + $0x1c8] sm:$0xff] }
 0xcf7   :  { %8755 = vmatprep.subr.bf16.mxu1 %v14476_v35  ;;  %v8918_v10 = vld [vmem:[%s19458_s16 + $0x1e8] sm:$0xff] }
 0xcfa   :  { %8756 = vmatpush1.bf16.msra.mxu1 %v14474_v20  ;;  %v8997_v20 = vld [vmem:[%s19458_s16 + $0x460] sm:$0xff] }
 0xcfb   :  { %8757 = vmatprep.subr.bf16.mxu1 %v14479_v61  ;;  %v9000_v61 = vld [vmem:[%s19458_s16 + $0x478] sm:$0xff] }
 0xcfc   :  { %v18664_v28 = vpack.c.bf16 %v9000_v61, %v8997_v20  ;;  %v8923_v61 = vld [vmem:[%s19458_s16 + $0x210] sm:$0xff] }
 0xcfe   :  { %8758 = vmatpush1.bf16.msra.mxu1 %v14477_v41  ;;  %v18640_v41 = vpack.c.bf16 %v8884_v19, %v8881_v36  ;;  %v18744_v36 = vpack.c.bf16 %v8914_v45, %v8911_v34  ;;  %v8935_v34 = vld [vmem:[%s19458_s16 + $0x270] sm:$0xff]  ;;  %v8938_v45 = vld [vmem:[%s19458_s16 + $0x288] sm:$0xff] }
 0xcff   :  { %13099 = vmatprep.subr.bf16.mxu1 %v19475_v17 }
 0xd00   :  { %19535 = vst [vmem:[#allocation14_spill] sm:$0xff] %v18744_v36 }
 0xd01   :  { %8760 = vmatmul.mubr.bf16.vlgmr.msra.gmra.mrb[84].mxu1 %v18322_v55  ;;  %v8861_v55 = vld [vmem:[%s19458_s16 + $0x20] sm:$0xff] }
 0xd02   :  { %13101 = vmatpush3.bf16.msra.mxu1 %v18474_v53  ;;  %12417 = vmatprep.mubr.msk.f32.mxu1 %vm14521_vm2, %v19526_v5  ;;  %v18515_v16 = vpack.c.bf16 %v8861_v55, %v8858_v1  ;;  %v18668_v1 = vpack.c.bf16 %v8890_v32, %v8887_v6  ;;  %v18670_v55 = vpack.c.bf16 %v8910_v63, %v8907_v52  ;;  %v8926_v6 = vld [vmem:[%s19458_s16 + $0x228] sm:$0xff]  ;;  %v8933_v52 = vld [vmem:[%s19458_s16 + $0x260] sm:$0xff] }
 0xd03   :  { %13102 = vmatprep.subr.bf16.mxu1 %v19475_v17  ;;  %v8930_v32 = vld [vmem:[%s19458_s16 + $0x248] sm:$0xff]  ;;  %v18780_v63 = vpack.c.bf16 %v8926_v6, %v8923_v61  ;;  %v8945_v61 = vld [vmem:[%s19458_s16 + $0x2c0] sm:$0xff] }
 0xd04   :  { %12972 = vmatprep.subr.bf16.mxu0 %v18515_v16  ;;  %v18783_v62 = vpack.c.bf16 %v8933_v52, %v8930_v32  ;;  %v8941_v32 = vld [vmem:[%s19458_s16 + $0x2a0] sm:$0xff]  ;;  %v8944_v52 = vld [vmem:[%s19458_s16 + $0x2b8] sm:$0xff] }
 0xd05   :  { %12974 = vmatpush1.bf16.msra.mxu0 %v18526_v60  ;;  %19539 = vst [vmem:[#allocation18_spill] sm:$0xff] %v18780_v63 }
 0xd06   :  { %13104 = vmatpush3.bf16.msra.mxu1 %v18485_v51  ;;  %12976 = vmatprep.subr.bf16.mxu0 %v18528_v0  ;;  %19540 = vst [vmem:[#allocation19_spill] sm:$0xff] %v18783_v62 }
 0xd07   :  { %13105 = vmatprep.subr.bf16.mxu1 %v19475_v17 }
 0xd09   :  { %12978 = vmatpush1.bf16.msra.mxu0 %v18554_v39 }
 0xd0a   :  { %13107 = vmatpush3.bf16.msra.mxu1 %v18497_v14  ;;  %12980 = vmatprep.subr.bf16.mxu0 %v18557_v27 }
 0xd0b   :  { %13108 = vmatprep.subr.bf16.mxu1 %v19475_v17 }
 0xd0d   :  { %12982 = vmatpush1.bf16.msra.mxu0 %v18582_v44 }
 0xd0e   :  { %13110 = vmatpush3.bf16.msra.mxu1 %v18540_v50  ;;  %12984 = vmatprep.subr.bf16.mxu0 %v18585_v42 }
 0xd0f   :  { %13111 = vmatprep.subr.bf16.mxu1 %v19475_v17 }
 0xd11   :  { %12986 = vmatpush1.bf16.msra.mxu0 %v18610_v24 }
 0xd12   :  { %13113 = vmatpush3.bf16.msra.mxu1 %v18572_v25  ;;  %12988 = vmatprep.subr.bf16.mxu0 %v18613_v15 }
 0xd13   :  { %13114 = vmatprep.subr.bf16.mxu1 %v19475_v17 }
 0xd14   :  { %v12113_v12 = vpop.f32.mrb[56].mxu0 }
 0xd15   :  { %v12114_v30 = vpop.f32.mrb[57].mxu0  ;;  %12990 = vmatpush1.bf16.msra.mxu0 %v18640_v41 }
 0xd16   :  { %v18627_v26 = vadd.f32 %v12114_v30, %v12113_v12  ;;  %v12116_v4 = vpop.f32.mrb[58].mxu0  ;;  %13116 = vmatpush3.bf16.msra.mxu1 %v18600_v38  ;;  %12992 = vmatprep.subr.bf16.mxu0 %v18646_v57  ;;  %v8921_v12 = vld [vmem:[%s19458_s16 + $0x200] sm:$0xff] }
 0xd17   :  { %v12117_v35 = vpop.f32.mrb[59].mxu0  ;;  %13117 = vmatprep.subr.bf16.mxu1 %v19475_v17  ;;  %v18747_v19 = vpack.c.bf16 %v8921_v12, %v8918_v10  ;;  %v8917_v30 = vld [vmem:[%s19458_s16 + $0x1e0] sm:$0xff]  ;;  %v8927_v4 = vld [vmem:[%s19458_s16 + $0x230] sm:$0xff] }
 0xd18   :  { %v18762_v35 = vpack.c.bf16 %v8920_v22, %v8917_v30  ;;  %v18765_v20 = vpack.c.bf16 %v8927_v4, %v8924_v29  ;;  %v18811_v30 = vpack.c.bf16 %v8938_v45, %v8935_v34  ;;  %v8942_v4 = vld [vmem:[%s19458_s16 + $0x2a8] sm:$0xff] }
 0xd19   :  { %12994 = vmatpush1.bf16.msra.mxu0 %v18668_v1  ;;  %19536 = vst [vmem:[#allocation15_spill] sm:$0xff] %v18747_v19  ;;  %v18821_v6 = vpack.c.bf16 %v8945_v61, %v8942_v4 }
 0xd1a   :  { %13119 = vmatpush3.bf16.msra.mxu1 %v18630_v8  ;;  %12996 = vmatprep.subr.bf16.mxu0 %v18673_v18  ;;  %19537 = vst [vmem:[#allocation16_spill] sm:$0xff] %v18762_v35  ;;  %19538 = vst [vmem:[#allocation17_spill] sm:$0xff] %v18765_v20 }
 0xd1b   :  { %13120 = vmatprep.subr.bf16.mxu1 %v19475_v17  ;;  %19543 = vst [vmem:[#allocation22_spill] sm:$0xff] %v18811_v30  ;;  %19544 = vst [vmem:[#allocation23_spill] sm:$0xff] %v18821_v6  ;;  %v8943_v17 = vld [vmem:[%s19458_s16 + $0x2b0] sm:$0xff] }
 0xd1d   :  { %12998 = vmatpush1.bf16.msra.mxu0 %v18689_v54 }
 0xd1e   :  { %13122 = vmatpush3.bf16.msra.mxu1 %v18664_v28  ;;  %13000 = vmatprep.subr.bf16.mxu0 %v18693_v31 }
 0xd1f   :  { %13220 = vmatprep.subr.bf16.mxu1 %v18670_v55 }
 0xd21   :  { %13002 = vmatpush1.bf16.msra.mxu0 %v18708_v11 }
 0xd22   :  { %13004 = vmatprep.subr.bf16.mxu0 %v18711_v13 }
 0xd25   :  { %13006 = vmatpush1.bf16.msra.mxu0 %v18726_v3 }
 0xd26   :  { %13008 = vmatprep.subr.bf16.mxu0 %v18729_v23 }
 0xd29   :  { %13010 = vmatpush1.bf16.msra.mxu0 %v18744_v36 }
 0xd2a   :  { %13012 = vmatprep.subr.bf16.mxu0 %v18747_v19 }
 0xd2d   :  { %13014 = vmatpush1.bf16.msra.mxu0 %v18762_v35 }
 0xd2e   :  { %13016 = vmatprep.subr.bf16.mxu0 %v18765_v20 }
 0xd31   :  { %13018 = vmatpush1.bf16.msra.mxu0 %v18780_v63 }
 0xd32   :  { %13020 = vmatprep.subr.bf16.mxu0 %v18783_v62 }
 0xd34   :  { %v12135_v2 = vpop.f32.mrb[60].mxu0 }
 0xd35   :  { %v12136_v56 = vpop.f32.mrb[61].mxu0  ;;  %13022 = vmatpush1.bf16.msra.mxu0 %v18794_v40 }
 0xd36   :  { %v12137_v48 = vadd.f32 %v12136_v56, %v12135_v2  ;;  %v12138_v33 = vpop.f32.mrb[62].mxu0  ;;  %v18829_v2 = vpack.c.bf16 %v8944_v52, %v8941_v32  ;;  %v8948_v56 = vld [vmem:[%s19458_s16 + $0x2d8] sm:$0xff] }
 0xd37   :  { %v12139_v43 = vpop.f32.mrb[63].mxu0 }
 0xd38   :  { %v7992_v47 = vadd.f32 %v12137_v48, %v18627_v26  ;;  %v8939_v26 = vld [vmem:[%s19458_s16 + $0x290] sm:$0xff]  ;;  %19545 = vst [vmem:[#allocation24_spill] sm:$0xff] %v18829_v2 }
 0xd39   :  { %v18803_v21 = vpack.c.bf16 %v8939_v26, %v8936_v37  ;;  %v8951_v48 = vld [vmem:[%s19458_s16 + $0x2f0] sm:$0xff] }
 0xd3a   :  { %v18839_v33 = vpack.c.bf16 %v8951_v48, %v8948_v56  ;;  %v8947_v43 = vld [vmem:[%s19458_s16 + $0x2d0] sm:$0xff]  ;;  %v8862_v48 = vld [vmem:[%s19458_s16 + $0x28] sm:$0xff] }
 0xd3b   :  { %19542 = vst [vmem:[#allocation21_spill] sm:$0xff] %v18803_v21  ;;  %13024 = vmatprep.subr.bf16.mxu0 %v18803_v21  ;;  %v8859_v56 = vld [vmem:[%s19458_s16 + $0x10] sm:$0xff] }
 0xd3c   :  { %13026 = vmatpush1.bf16.msra.mxu0 %v18811_v30  ;;  %19546 = vst [vmem:[#allocation25_spill] sm:$0xff] %v18839_v33 }
 0xd3d   :  { %13028 = vmatprep.subr.bf16.mxu0 %v18821_v6 }
 0xd40   :  { %13030 = vmatpush1.bf16.msra.mxu0 %v18829_v2 }
 0xd41   :  { %13032 = vmatprep.subr.bf16.mxu0 %v18839_v33 }
 0xd54   :  { %v12157_v9 = vpop.f32.mrb[64].mxu0 }
 0xd55   :  { %v12158_v58 = vpop.f32.mrb[65].mxu0 }
 0xd56   :  { %v12159_v10 = vadd.f32 %v12158_v58, %v12157_v9  ;;  %v12160_v12 = vpop.f32.mrb[66].mxu0  ;;  %v8957_v9 = vld [vmem:[%s19458_s16 + $0x320] sm:$0xff] }
 0xd57   :  { %v12161_v22 = vpop.f32.mrb[67].mxu0  ;;  %v18857_v37 = vpack.c.bf16 %v8957_v9, %v8954_v7  ;;  %v18876_v7 = vpack.c.bf16 %v8862_v48, %v8859_v56  ;;  %v8928_v56 = vld [vmem:[%s19458_s16 + $0x238] sm:$0xff] }
 0xd58   :  { %v8403_v29 = vadd.f32 %v12159_v10, %v7992_v47  ;;  %v8950_v47 = vld [vmem:[%s19458_s16 + $0x2e8] sm:$0xff] }
 0xd59   :  { %v18847_v59 = vpack.c.bf16 %v8950_v47, %v8947_v43  ;;  %19548 = vst [vmem:[#allocation27_spill] sm:$0xff] %v18857_v37  ;;  %v8916_v43 = vld [vmem:[%s19458_s16 + $0x1d8] sm:$0xff] }
 0xd5b   :  { %19547 = vst [vmem:[#allocation26_spill] sm:$0xff] %v18847_v59  ;;  %13034 = vmatpush1.bf16.msra.mxu0 %v18847_v59 }
 0xd5c   :  { %13036 = vmatprep.subr.bf16.mxu0 %v18857_v37  ;;  %v8904_v37 = vld [vmem:[%s19458_s16 + $0x178] sm:$0xff] }
 0xd74   :  { %v12179_v26 = vpop.f32.mrb[68].mxu0 }
 0xd75   :  { %v12180_v58 = vpop.f32.mrb[69].mxu0 }
 0xd76   :  { %v12181_v34 = vadd.f32 %v12180_v58, %v12179_v26  ;;  %v12182_v45 = vpop.f32.mrb[70].mxu0  ;;  %v8865_v58 = vld [vmem:[%s19458_s16 + $0x40] sm:$0xff] }
 0xd77   :  { %v12183_v10 = vpop.f32.mrb[71].mxu0  ;;  %v8919_v45 = vld [vmem:[%s19458_s16 + $0x1f0] sm:$0xff] }
 0xd78   :  { %v18860_v12 = vadd.f32 %v12181_v34, %v8403_v29  ;;  %v8913_v29 = vld [vmem:[%s19458_s16 + $0x1c0] sm:$0xff]  ;;  %v8868_v34 = vld [vmem:[%s19458_s16 + $0x58] sm:$0xff]  ;;  %v8922_v10 = vld [vmem:[%s19458_s16 + $0x208] sm:$0xff] }
 0xd79   :  { %v18880_v26 = vpack.c.bf16 %v8916_v43, %v8913_v29  ;;  %v8877_v43 = vld [vmem:[%s19458_s16 + $0xa0] sm:$0xff] }
 0xd7a   :  { %v8826_v22 = vsel %vm8811_vm3, %v18860_v12, 0.0 }
 0xd7b   :  { %v8827_v4 = vrot.slane %v8826_v22, 4 }
 0xd7d   :  { %v8828_v61 = vadd.f32 %v8827_v4, %v8826_v22  ;;  %v18896_v22 = vpack.c.bf16 %v8868_v34, %v8865_v58  ;;  %v18899_v4 = vpack.c.bf16 %v8922_v10, %v8919_v45  ;;  %v8931_v58 = vld [vmem:[%s19458_s16 + $0x250] sm:$0xff]  ;;  %v8934_v34 = vld [vmem:[%s19458_s16 + $0x268] sm:$0xff] }
 0xd7e   :  { %v18935_v10 = vpack.c.bf16 %v8934_v34, %v8931_v58  ;;  %v8889_v58 = vld [vmem:[%s19458_s16 + $0x100] sm:$0xff]  ;;  %v8892_v34 = vld [vmem:[%s19458_s16 + $0x118] sm:$0xff] }
 0xd7f   :  { %v8829_v32 = vrot.slane %v8828_v61, 2 }
 0xd81   :  { %v8830_v52 = vadd.f32 %v8829_v32, %v8828_v61  ;;  %v8871_v61 = vld [vmem:[%s19458_s16 + $0x70] sm:$0xff]  ;;  %v8874_v32 = vld [vmem:[%s19458_s16 + $0x88] sm:$0xff] }
 0xd82   :  { %v18914_v48 = vpack.c.bf16 %v8874_v32, %v8871_v61  ;;  %v8883_v61 = vld [vmem:[%s19458_s16 + $0xd0] sm:$0xff]  ;;  %v8886_v32 = vld [vmem:[%s19458_s16 + $0xe8] sm:$0xff] }
 0xd83   :  { %v8831_v47 = vrot.slane %v8830_v52, 1 }
 0xd85   :  { %v18878_v9 = vadd.f32 %v8831_v47, %v8830_v52  ;;  %v8925_v52 = vld [vmem:[%s19458_s16 + $0x220] sm:$0xff]  ;;  %v8880_v47 = vld [vmem:[%s19458_s16 + $0xb8] sm:$0xff] }
 0xd86   :  { %v18917_v29 = vpack.c.bf16 %v8928_v56, %v8925_v52  ;;  %v18932_v45 = vpack.c.bf16 %v8880_v47, %v8877_v43  ;;  %v8937_v52 = vld [vmem:[%s19458_s16 + $0x280] sm:$0xff]  ;;  %v8940_v56 = vld [vmem:[%s19458_s16 + $0x298] sm:$0xff]  ;;  %v18950_v43 = vpack.c.bf16 %v8886_v32, %v8883_v61  ;;  %v8946_v61 = vld [vmem:[%s19458_s16 + $0x2c8] sm:$0xff]  ;;  %v18968_v32 = vpack.c.bf16 %v8892_v34, %v8889_v58 }
 0xd87   :  { %12418 = vmatmul.mubr.f32.vlgmr.msra.gmra.mrb[82].mxu1 %v18878_v9  ;;  %v18953_v47 = vpack.c.bf16 %v8940_v56, %v8937_v52  ;;  %v18971_v52 = vpack.c.bf16 %v8946_v61, %v8943_v17  ;;  %v8895_v56 = vld [vmem:[%s19458_s16 + $0x130] sm:$0xff]  ;;  %v8952_v58 = vld [vmem:[%s19458_s16 + $0x2f8] sm:$0xff]  ;;  %v8901_v61 = vld [vmem:[%s19458_s16 + $0x160] sm:$0xff] }
 0xd88   :  { %13222 = vmatpush3.bf16.msra.mxu1 %v18876_v7  ;;  %v18986_v17 = vpack.c.bf16 %v8898_v49, %v8895_v56  ;;  %v18989_v34 = vpack.c.bf16 %v8952_v58, %v8949_v46  ;;  %v18998_v59 = vpack.c.bf16 %v8904_v37, %v8901_v61  ;;  %v19549_v49 = vmov 0.0|0.0  }
 0xd89   :  { %13224 = vmatprep.subr.bf16.mxu1 %v18880_v26 }
 0xd8c   :  { %13226 = vmatpush3.bf16.msra.mxu1 %v18896_v22 }
 0xd8d   :  { %13228 = vmatprep.subr.bf16.mxu1 %v18899_v4 }
 0xd90   :  { %13230 = vmatpush3.bf16.msra.mxu1 %v18914_v48 }
 0xd91   :  { %13232 = vmatprep.subr.bf16.mxu1 %v18917_v29 }
 0xd94   :  { %13234 = vmatpush3.bf16.msra.mxu1 %v18932_v45 }
 0xd95   :  { %13236 = vmatprep.subr.bf16.mxu1 %v18935_v10 }
 0xd98   :  { %13238 = vmatpush3.bf16.msra.mxu1 %v18950_v43 }
 0xd99   :  { %13240 = vmatprep.subr.bf16.mxu1 %v18953_v47 }
 0xd9c   :  { %13242 = vmatpush3.bf16.msra.mxu1 %v18968_v32 }
 0xd9d   :  { %13244 = vmatprep.subr.bf16.mxu1 %v18971_v52 }
 0xda0   :  { %13246 = vmatpush3.bf16.msra.mxu1 %v18986_v17 }
 0xda1   :  { %13248 = vmatprep.subr.bf16.mxu1 %v18989_v34 }
 0xda4   :  { %13250 = vmatpush3.bf16.msra.mxu1 %v18998_v59 }
 0xda5   :  { %13251 = vmatprep.subr.bf16.mxu1 %v19549_v49 }
 0xdd4   :  { %v19003_v46 = vpop.f32.mrb[84].mxu1 }
 0xdd5   :  { %19550 = vst [vmem:[#allocation28_spill] sm:$0xff] %v19003_v46  ;;  %v8812_v56 = vsel %vm8811_vm3, %v19003_v46, 0.0  ;;  %v8833_v58 = vmul.f32 %v19003_v46, %v19003_v46  ;;  %v19009_v33 = vpop.f32.mrb[85].mxu1 }
 0xdd6   :  { %19551 = vst [vmem:[#allocation29_spill] sm:$0xff] %v19009_v33  ;;  %v8813_v2 = vrot.slane %v8812_v56, 4  ;;  %v8819_v37 = vsel %vm8811_vm3, %v19009_v33, 0.0  ;;  %v8834_v61 = vmul.f32 %v19009_v33, %v19009_v33  ;;  %v8765_v6 = vpop.f32.mrb[86].mxu1 }
 0xdd7   :  { %v8836_v30 = vsel %vm8811_vm3, %v8833_v58, 0.0  ;;  %v8820_v21 = vrot.slane %v8819_v37, 4  ;;  %v8766_v40 = vpop.f32.mrb[87].mxu1 }
 0xdd8   :  { %v8814_v62 = vadd.f32 %v8813_v2, %v8812_v56  ;;  %v8837_v63 = vrot.slane %v8836_v30, 4  ;;  %v8843_v20 = vsel %vm8811_vm3, %v8834_v61, 0.0  ;;  %v8953_v40 = vld [vmem:[%s19458_s16 + $0x300] sm:$0xff]  ;;  %v8956_v2 = vld [vmem:[%s19458_s16 + $0x318] sm:$0xff] }
 0xdd9   :  { %v8821_v35 = vadd.f32 %v8820_v21, %v8819_v37  ;;  %v8844_v46 = vrot.slane %v8843_v20, 4  ;;  %v8965_v37 = vld [vmem:[%s19458_s16 + $0x360] sm:$0xff]  ;;  %v8968_v61 = vld [vmem:[%s19458_s16 + $0x378] sm:$0xff] }
 0xdda   :  { %v8815_v19 = vrot.slane %v8814_v62, 2  ;;  %v8838_v36 = vadd.f32 %v8837_v63, %v8836_v30 }
 0xddb   :  { %v8822_v23 = vrot.slane %v8821_v35, 2  ;;  %v8845_v3 = vadd.f32 %v8844_v46, %v8843_v20  ;;  %v8960_v20 = vld [vmem:[%s19458_s16 + $0x338] sm:$0xff] }
 0xddc   :  { %v8816_v13 = vadd.f32 %v8815_v19, %v8814_v62  ;;  %v8839_v11 = vrot.slane %v8838_v36, 2 }
 0xddd   :  { %v8823_v31 = vadd.f32 %v8822_v23, %v8821_v35  ;;  %v8846_v54 = vrot.slane %v8845_v3, 2  ;;  %v8963_v23 = vld [vmem:[%s19458_s16 + $0x350] sm:$0xff] }
 0xdde   :  { %v8817_v33 = vrot.slane %v8816_v13, 1  ;;  %v8840_v6 = vadd.f32 %v8839_v11, %v8838_v36  ;;  %v19031_v36 = vpack.c.bf16 %v8956_v2, %v8953_v40  ;;  %v19035_v62 = vpack.c.bf16 %v8963_v23, %v8960_v20  ;;  %v8975_v40 = vld [vmem:[%s19458_s16 + $0x3b0] sm:$0xff]  ;;  %v8974_v20 = vld [vmem:[%s19458_s16 + $0x3a8] sm:$0xff] }
 0xddf   :  { %v8824_v21 = vrot.slane %v8823_v31, 1  ;;  %v8847_v56 = vadd.f32 %v8846_v54, %v8845_v3  ;;  %v8959_v54 = vld [vmem:[%s19458_s16 + $0x330] sm:$0xff]  ;;  %v8962_v3 = vld [vmem:[%s19458_s16 + $0x348] sm:$0xff]  ;;  %v8835_v2 = vmul.f32 %v18860_v12, %v18860_v12 }
 0xde0   :  { %v8841_v19 = vrot.slane %v8840_v6, 1  ;;  %v19033_v63 = vadd.f32 %v8817_v33, %v8816_v13  ;;  %v8969_v13 = vld [vmem:[%s19458_s16 + $0x380] sm:$0xff]  ;;  %v19057_v46 = vpack.c.bf16 %v8962_v3, %v8959_v54  ;;  %v8978_v23 = vld [vmem:[%s19458_s16 + $0x3c8] sm:$0xff] }
 0xde1   :  { %v19029_v11 = vadd.f32 %v8824_v21, %v8823_v31  ;;  %v8848_v35 = vrot.slane %v8847_v56, 1  ;;  %v8966_v31 = vld [vmem:[%s19458_s16 + $0x368] sm:$0xff] }
 0xde2   :  { %v19053_v33 = vadd.f32 %v8841_v19, %v8840_v6  ;;  %v19061_v58 = vpack.c.bf16 %v8969_v13, %v8966_v31  ;;  %v8972_v6 = vld [vmem:[%s19458_s16 + $0x398] sm:$0xff]  ;;  %v8981_v19 = vld [vmem:[%s19458_s16 + $0x3e0] sm:$0xff] }
 0xde3   :  { %9065 = vmatprep.mubr.f32.mxu0 %v19029_v11  ;;  %v19044_v30 = vadd.f32 %v8848_v35, %v8847_v56  ;;  %v19086_v21 = vpack.c.bf16 %v8975_v40, %v8972_v6  ;;  %v8971_v56 = vld [vmem:[%s19458_s16 + $0x390] sm:$0xff]  ;;  %v8850_v35 = vsel %vm8811_vm3, %v8835_v2, 0.0  ;;  %v19107_v3 = vpack.c.bf16 %v8981_v19, %v8978_v23  ;;  %v8980_v31 = vld [vmem:[%s19458_s16 + $0x3d8] sm:$0xff]  ;;  %v8986_v2 = vld [vmem:[%s19458_s16 + $0x408] sm:$0xff] }
 0xde4   :  { %9066 = vmatmul.mubr.f32.vlgmr.msra.gmra.mrb[54].mxu0 %v19033_v63  ;;  %v19104_v54 = vpack.c.bf16 %v8974_v20, %v8971_v56  ;;  %v8984_v13 = vld [vmem:[%s19458_s16 + $0x3f8] sm:$0xff]  ;;  %v8990_v56 = vld [vmem:[%s19458_s16 + $0x428] sm:$0xff]  ;;  %v8993_v20 = vld [vmem:[%s19458_s16 + $0x440] sm:$0xff] }
 0xde5   :  { %13038 = vmatpush1.bf16.msra.mxu0 %v19031_v36  ;;  %9489 = vmatprep.mubr.f32.mxu1 %v19044_v30 }
 0xde6   :  { %9490 = vmatmul.mubr.f32.vlgmr.msra.gmra.mrb[88].mxu1 %v19053_v33  ;;  %13040 = vmatprep.subr.bf16.mxu0 %v19035_v62 }
 0xde7   :  { %13253 = vmatpush3.bf16.msra.mxu1 %v18474_v53  ;;  %9136 = vmatprep.mubr.f32.mxu0 %v19526_v5  ;;  %v19083_v53 = vpack.c.bf16 %v8968_v61, %v8965_v37  ;;  %v8987_v37 = vld [vmem:[%s19458_s16 + $0x410] sm:$0xff]  ;;  %v8851_v61 = vrot.slane %v8850_v35, 4 }
 0xde8   :  { %13254 = vmatprep.subr.bf16.mxu1 %v19549_v49  ;;  %12452 = vmatprep.mubr.msk.f32.mxu1 %vm14521_vm2, %v19526_v5  ;;  %v19127_v40 = vpack.c.bf16 %v8987_v37, %v8984_v13  ;;  %v8999_v13 = vld [vmem:[%s19458_s16 + $0x470] sm:$0xff] }
 0xde9   :  { %13042 = vmatpush1.bf16.msra.mxu0 %v19057_v46  ;;  %v8852_v23 = vadd.f32 %v8851_v61, %v8850_v35  ;;  %v8996_v35 = vld [vmem:[%s19458_s16 + $0x458] sm:$0xff] }
 0xdea   :  { %13044 = vmatprep.subr.bf16.mxu0 %v19061_v58 }
 0xdeb   :  { %13256 = vmatpush3.bf16.msra.mxu1 %v18485_v51  ;;  %v8977_v51 = vld [vmem:[%s19458_s16 + $0x3c0] sm:$0xff]  ;;  %v8853_v37 = vrot.slane %v8852_v23, 2 }
 0xdec   :  { %13257 = vmatprep.subr.bf16.mxu1 %v19549_v49  ;;  %v19124_v6 = vpack.c.bf16 %v8980_v31, %v8977_v51  ;;  %v19147_v51 = vpack.c.bf16 %v8993_v20, %v8990_v56  ;;  %v8992_v31 = vld [vmem:[%s19458_s16 + $0x438] sm:$0xff] }
 0xded   :  { %13046 = vmatpush1.bf16.msra.mxu0 %v19083_v53  ;;  %v8854_v56 = vadd.f32 %v8853_v37, %v8852_v23  ;;  %v9607_v23 = vld [vmem:[%s19459_s17] sm:$0x7] }
 0xdee   :  { %13048 = vmatprep.subr.bf16.mxu0 %v19086_v21 }
 0xdef   :  { %13259 = vmatpush3.bf16.msra.mxu1 %v18497_v14  ;;  %v8983_v14 = vld [vmem:[%s19458_s16 + $0x3f0] sm:$0xff] }
 0xdf0   :  { %13260 = vmatprep.subr.bf16.mxu1 %v19549_v49  ;;  %v19144_v19 = vpack.c.bf16 %v8986_v2, %v8983_v14  ;;  %v19167_v14 = vpack.c.bf16 %v8999_v13, %v8996_v35  ;;  %v8998_v2 = vld [vmem:[%s19458_s16 + $0x468] sm:$0xff] }
 0xdf1   :  { %13050 = vmatpush1.bf16.msra.mxu0 %v19104_v54 }
 0xdf2   :  { %13052 = vmatprep.subr.bf16.mxu0 %v19107_v3 }
 0xdf3   :  { %13262 = vmatpush3.bf16.msra.mxu1 %v18540_v50  ;;  %v8989_v50 = vld [vmem:[%s19458_s16 + $0x420] sm:$0xff] }
 0xdf4   :  { %13263 = vmatprep.subr.bf16.mxu1 %v19549_v49  ;;  %v19164_v61 = vpack.c.bf16 %v8992_v31, %v8989_v50  ;;  %v8855_v50 = vrot.slane %v8854_v56, 1 }
 0xdf5   :  { %13054 = vmatpush1.bf16.msra.mxu0 %v19124_v6 }
 0xdf6   :  { %13056 = vmatprep.subr.bf16.mxu0 %v19127_v40 }
 0xdf7   :  { %13265 = vmatpush3.bf16.msra.mxu1 %v18572_v25  ;;  %v8995_v25 = vld [vmem:[%s19458_s16 + $0x450] sm:$0xff] }
 0xdf8   :  { %13266 = vmatprep.subr.bf16.mxu1 %v19549_v49  ;;  %v19178_v20 = vpack.c.bf16 %v8998_v2, %v8995_v25 }
 0xdf9   :  { %13058 = vmatpush1.bf16.msra.mxu0 %v19144_v19 }
 0xdfa   :  { %13060 = vmatprep.subr.bf16.mxu0 %v19147_v51 }
 0xdfb   :  { %13268 = vmatpush3.bf16.msra.mxu1 %v18600_v38  ;;  %v19187_v38 = vadd.f32 %v8855_v50, %v8854_v56  ;;  %v9656_v56 = vld [vmem:[%s19461_s19] sm:$0xf]  ;;  %v12033_v50 = vld [vmem:[%s19461_s19 + $0x8] sm:$0xf] }
 0xdfc   :  { %13269 = vmatprep.subr.bf16.mxu1 %v19549_v49 }
 0xdfd   :  { %13062 = vmatpush1.bf16.msra.mxu0 %v19164_v61 }
 0xdfe   :  { %13064 = vmatprep.subr.bf16.mxu0 %v19167_v14 }
 0xdff   :  { %13271 = vmatpush3.bf16.msra.mxu1 %v18630_v8  ;;  %v19561_v8 = vld [vmem:[#allocation17_spill] sm:$0xff] }
 0xe00   :  { %13272 = vmatprep.subr.bf16.mxu1 %v19549_v49 }
 0xe01   :  { %13066 = vmatpush1.bf16.msra.mxu0 %v19178_v20 }
 0xe02   :  { %13068 = vmatprep.subr.bf16.mxu0 %v18670_v55  ;;  %v19566_v55 = vld [vmem:[#allocation22_spill] sm:$0xff] }
 0xe03   :  { %13274 = vmatpush3.bf16.msra.mxu1 %v18664_v28  ;;  %v19564_v28 = vld [vmem:[#allocation20_spill] sm:$0xff] }
 0xe04   :  { %9137 = vmatmul.mubr.f32.vlgmr.msra.gmra.mrb[54].mxu0 %v18878_v9  ;;  %v19568_v9 = vld [vmem:[#allocation24_spill] sm:$0xff] }
 0xe05   :  { %13070 = vmatpush3.bf16.msra.mxu0 %v18876_v7  ;;  %9207 = vmatprep.mubr.f32.mxu0 %v19029_v11 }
 0xe06   :  { %12453 = vmatmul.mubr.f32.vlgmr.msra.gmra.mrb[90].mxu1 %v19187_v38  ;;  %13072 = vmatprep.subr.bf16.mxu0 %v18880_v26  ;;  %v19569_v26 = vld [vmem:[#allocation25_spill] sm:$0xff] }
 0xe07   :  { %9734 = vmatprep.mubr.f32.mxu1 %v19526_v5 }
 0xe09   :  { %13074 = vmatpush3.bf16.msra.mxu0 %v18896_v22  ;;  %v19570_v22 = vld [vmem:[#allocation26_spill] sm:$0xff] }
 0xe0a   :  { %13076 = vmatprep.subr.bf16.mxu0 %v18899_v4  ;;  %v19571_v4 = vld [vmem:[#allocation27_spill] sm:$0xff] }
 0xe0d   :  { %13078 = vmatpush3.bf16.msra.mxu0 %v18914_v48 }
 0xe0e   :  { %13080 = vmatprep.subr.bf16.mxu0 %v18917_v29 }
 0xe11   :  { %13082 = vmatpush3.bf16.msra.mxu0 %v18932_v45 }
 0xe12   :  { %13084 = vmatprep.subr.bf16.mxu0 %v18935_v10 }
 0xe15   :  { %13086 = vmatpush3.bf16.msra.mxu0 %v18950_v43  ;;  %v19572_v43 = vld [vmem:[#allocation6_spill] sm:$0xff] }
 0xe16   :  { %13088 = vmatprep.subr.bf16.mxu0 %v18953_v47 }
 0xe19   :  { %13090 = vmatpush3.bf16.msra.mxu0 %v18968_v32 }
 0xe1a   :  { %13092 = vmatprep.subr.bf16.mxu0 %v18971_v52 }
 0xe1d   :  { %13094 = vmatpush3.bf16.msra.mxu0 %v18986_v17 }
 0xe1e   :  { %13096 = vmatprep.subr.bf16.mxu0 %v18989_v34  ;;  %v19573_v34 = vld [vmem:[#allocation28_spill] sm:$0xff] }
 0xe21   :  { %13098 = vmatpush3.bf16.msra.mxu0 %v18998_v59  ;;  %v19567_v59 = vld [vmem:[#allocation23_spill] sm:$0xff] }
 0xe22   :  { %13124 = vmatprep.subr.bf16.mxu0 %v18515_v16  ;;  %v19552_v16 = vld [vmem:[#allocation8_spill] sm:$0xff] }
 0xe24   :  { %9208 = vmatmul.mubr.f32.vlgmr.msra.gmra.mrb[72].mxu0 %v19033_v63  ;;  %v19574_v63 = vld [vmem:[#allocation29_spill] sm:$0xff] }
 0xe25   :  { %13126 = vmatpush1.bf16.msra.mxu0 %v18526_v60  ;;  %9347 = vmatprep.mubr.f32.mxu0 %v19044_v30  ;;  %v19553_v60 = vld [vmem:[#allocation9_spill] sm:$0xff] }
 0xe26   :  { %13128 = vmatprep.subr.bf16.mxu0 %v18528_v0  ;;  %v19554_v0 = vld [vmem:[#allocation10_spill] sm:$0xff] }
 0xe29   :  { %13130 = vmatpush1.bf16.msra.mxu0 %v18554_v39  ;;  %v19555_v39 = vld [vmem:[#allocation11_spill] sm:$0xff] }
 0xe2a   :  { %13132 = vmatprep.subr.bf16.mxu0 %v18557_v27  ;;  %v19556_v27 = vld [vmem:[#allocation12_spill] sm:$0xff] }
 0xe2d   :  { %13134 = vmatpush1.bf16.msra.mxu0 %v18582_v44  ;;  %v19557_v44 = vld [vmem:[#allocation13_spill] sm:$0xff] }
 0xe2e   :  { %13136 = vmatprep.subr.bf16.mxu0 %v18585_v42  ;;  %v19558_v42 = vld [vmem:[#allocation14_spill] sm:$0xff] }
 0xe31   :  { %13138 = vmatpush1.bf16.msra.mxu0 %v18610_v24  ;;  %v19559_v24 = vld [vmem:[#allocation15_spill] sm:$0xff] }
 0xe32   :  { %13140 = vmatprep.subr.bf16.mxu0 %v18613_v15  ;;  %v19560_v15 = vld [vmem:[#allocation16_spill] sm:$0xff] }
 0xe35   :  { %13142 = vmatpush1.bf16.msra.mxu0 %v18640_v41  ;;  %v19562_v41 = vld [vmem:[#allocation18_spill] sm:$0xff] }
 0xe36   :  { %13144 = vmatprep.subr.bf16.mxu0 %v18646_v57  ;;  %v19563_v57 = vld [vmem:[#allocation19_spill] sm:$0xff] }
 0xe39   :  { %13146 = vmatpush1.bf16.msra.mxu0 %v18668_v1  ;;  %v19565_v1 = vld [vmem:[#allocation21_spill] sm:$0xff] }
 0xe3a   :  { %13148 = vmatprep.subr.bf16.mxu0 %v18673_v18 }
 0xe3d   :  { %13150 = vmatpush1.bf16.msra.mxu0 %v19552_v16 }
 0xe3e   :  { %13152 = vmatprep.subr.bf16.mxu0 %v19553_v60 }
 0xe41   :  { %13154 = vmatpush1.bf16.msra.mxu0 %v19554_v0 }
 0xe42   :  { %13156 = vmatprep.subr.bf16.mxu0 %v19555_v39 }
 0xe45   :  { %13158 = vmatpush1.bf16.msra.mxu0 %v19556_v27 }
 0xe46   :  { %13160 = vmatprep.subr.bf16.mxu0 %v19557_v44 }
 0xe49   :  { %13162 = vmatpush1.bf16.msra.mxu0 %v19558_v42 }
 0xe4a   :  { %13164 = vmatprep.subr.bf16.mxu0 %v19559_v24 }
 0xe4d   :  { %13166 = vmatpush1.bf16.msra.mxu0 %v19560_v15 }
 0xe4e   :  { %13168 = vmatprep.subr.bf16.mxu0 %v19561_v8 }
 0xe51   :  { %13170 = vmatpush1.bf16.msra.mxu0 %v19562_v41 }
 0xe52   :  { %13172 = vmatprep.subr.bf16.mxu0 %v19563_v57  ;;  %v9612_v57 = vrot.slane %v9607_v23, %v19572_v43 }
 0xe55   :  { %13174 = vmatpush1.bf16.msra.mxu0 %v19564_v28 }
 0xe56   :  { %13176 = vmatprep.subr.bf16.mxu0 %v19565_v1  ;;  %v19576_v1 = vld [vmem:[#allocation7_spill] sm:$0xff] }
 0xe59   :  { %13178 = vmatpush1.bf16.msra.mxu0 %v19566_v55  ;;  %v9616_v55 = vrot.slane %v9607_v23, %v19576_v1 }
 0xe5a   :  { %v9279_v18 = vpop.f32.mrb[82].mxu1  ;;  %13180 = vmatprep.subr.bf16.mxu0 %v19567_v59 }
 0xe5b   :  { %v12419_v7 = vpop.f32.mrb[83].mxu1 }
 0xe5d   :  { %13182 = vmatpush1.bf16.msra.mxu0 %v19568_v9 }
 0xe5e   :  { %13184 = vmatprep.subr.bf16.mxu0 %v19569_v26 }
 0xe61   :  { %13186 = vmatpush1.bf16.msra.mxu0 %v19570_v22 }
 0xe62   :  { %13188 = vmatprep.subr.bf16.mxu0 %v19571_v4 }
 0xe64   :  { %9348 = vmatmul.mubr.f32.vlgmr.msra.gmra.mrb[74].mxu0 %v19053_v33 }
 0xe65   :  { %13190 = vmatpush1.bf16.msra.mxu0 %v19031_v36  ;;  %9418 = vmatprep.mubr.f32.mxu0 %v19526_v5 }
 0xe66   :  { %13192 = vmatprep.subr.bf16.mxu0 %v19035_v62 }
 0xe69   :  { %13194 = vmatpush1.bf16.msra.mxu0 %v19057_v46 }
 0xe6a   :  { %13196 = vmatprep.subr.bf16.mxu0 %v19061_v58 }
 0xe6d   :  { %13198 = vmatpush1.bf16.msra.mxu0 %v19083_v53 }
 0xe6e   :  { %13200 = vmatprep.subr.bf16.mxu0 %v19086_v21 }
 0xe71   :  { %13202 = vmatpush1.bf16.msra.mxu0 %v19104_v54 }
 0xe72   :  { %13204 = vmatprep.subr.bf16.mxu0 %v19107_v3 }
 0xe75   :  { %13206 = vmatpush1.bf16.msra.mxu0 %v19124_v6  ;;  %v19575_v6 = vld [vmem:[#allocation5_spill] sm:$0xff] }
 0xe76   :  { %13208 = vmatprep.subr.bf16.mxu0 %v19127_v40  ;;  %v19269_v40 = vsub.s32 2, %v19575_v6 }
 0xe78   :  { %v9620_v13 = vrot.slane %v9607_v23, %v19269_v40 }
 0xe79   :  { %13210 = vmatpush1.bf16.msra.mxu0 %v19144_v19 }
 0xe7a   :  { %13212 = vmatprep.subr.bf16.mxu0 %v19147_v51  ;;  %v9627_v51 = vld [vmem:[%s19460_s18] sm:$0x7] }
 0xe7b   :  { %v9632_v59 = vrot.slane %v9627_v51, %v19572_v43  ;;  %v9636_v9 = vrot.slane %v9627_v51, %v19576_v1 }
 0xe7d   :  { %13214 = vmatpush1.bf16.msra.mxu0 %v19164_v61  ;;  %v9640_v61 = vrot.slane %v9627_v51, %v19269_v40 }
 0xe7e   :  { %13216 = vmatprep.subr.bf16.mxu0 %v19167_v14 }
 0xe81   :  { %13218 = vmatpush1.bf16.msra.mxu0 %v19178_v20 }
 0xe82   :  { %12455 = vmatprep.subr.mxu0 %v19526_v5 }
 0xe84   :  { %9419 = vmatmul.mubr.f32.vlgmr.msra.gmra.mrb[74].mxu0 %v19187_v38  ;;  %v12039_v38 = vld [vmem:[%s19461_s19 + $0xc] sm:$0xf] }
 0xe85   :  { %12457 = vmatprep.mubr.msk.f32.mxu0 %vm14521_vm2, %v19526_v5 }
 0xeb9   :  { %v12269_v48 = vpop.f32.mrb[88].mxu1 }
 0xeba   :  { %v12270_v29 = vpop.f32.mrb[89].mxu1 }
 0xebb   :  { %v12271_v45 = vadd.f32 %v12270_v29, %v12269_v48 }
 0xed7   :  { %v9138_v10 = vpop.f32.mrb[54].mxu0 }
 0xed8   :  { %v9574_v47 = vrot.slane %v9138_v10, %v19572_v43  ;;  %v9140_v32 = vpop.f32.mrb[55].mxu0  ;;  %v9565_v16 = vmul.f32 %v9138_v10, %v9138_v10 }
 0xed9   :  { %v9578_v52 = vrot.slane %v9140_v32, %v19572_v43  ;;  %v9561_v17 = vpop.f32.mrb[90].mxu1  ;;  %v9566_v60 = vmul.f32 %v9140_v32, %v9140_v32 }
 0xeda   :  { %v9583_v49 = vsub.f32 %v19573_v34, %v9574_v47  ;;  %v9562_v11 = vadd.f32 %v12271_v45, %v9561_v17  ;;  %v12454_v36 = vpop.f32.mrb[91].mxu1 }
 0xedb   :  { %v9584_v62 = vsub.f32 %v19574_v63, %v9578_v52 }
 0xef7   :  { %v12217_v30 = vpop.f32.mrb[72].mxu0 }
 0xef8   :  { %v12218_v33 = vpop.f32.mrb[73].mxu0 }
 0xef9   :  { %v12219_v46 = vadd.f32 %v12218_v33, %v12217_v30  ;;  %v10428_v30 = vsub.s32 3, %v19575_v6  ;;  %v19343_v33 = vsub.s32 5, %v19575_v6 }
 0xefb   :  { %v9280_v58 = vadd.f32 %v12219_v46, %v9279_v18 }
 0xefd   :  { %v9567_v53 = vmul.f32 %v9280_v58, %v9280_v58  ;;  %v9582_v3 = vrot.slane %v9280_v58, %v19572_v43 }
 0xeff   :  { %v9570_v21 = vsub.f32 %v9562_v11, %v9567_v53  ;;  %v9585_v31 = vsub.f32 %v18860_v12, %v9582_v3  ;;  %v12027_v12 = vld [vmem:[%s19461_s19 + $0x4] sm:$0xf] }
 0xf00   :  { %v12045_v53 = vld [vmem:[%s19462_s20 + $0x6] sm:$0x3f] }
 0xf01   :  { %v9588_v54 = vadd.f32 1e-05, %v9570_v21  ;;  %v10462_v51 = vrot.slane %v12045_v53, %v19576_v1 }
 0xf03   :  { %14488 = vrsqrt.f32 %v9588_v54 }
 0xf0d   :  { %v14489_v19 = vpop.eup %14488 }
 0xf0e   :  { %v9603_v35 = vrot.slane %v14489_v19, %v19572_v43  ;;  %v10300_v19 = vrot.slane %v12045_v53, %v19572_v43 }
 0xf10   :  { %v9606_v37 = vmul.f32 %v9603_v35, %v9585_v31  ;;  %v10304_v35 = vrot.slane %v12045_v53, %v19269_v40 }
 0xf12   :  { %v9626_v14 = vmul.f32 %v9620_v13, %v9606_v37  ;;  %v12046_v13 = vld [vmem:[%s19462_s20 + $0xc] sm:$0x3f] }
 0xf14   :  { %v9646_v25 = vadd.f32 %v9640_v61, %v9626_v14 }
 0xf16   :  { %vm9649_vm4 = vcmp.ge.f32.partialorder %v9646_v25, 0.0  ;;  %v9652_v2 = vmul.f32 0.2, %v9646_v25 }
 0xf18   :  { %v9655_v20 = vsel %vm9649_vm4, %v9646_v25, %v9652_v2  ;;  %v10466_v2 = vrot.slane %v12045_v53, %v10428_v30 }
 0xf19   :  { %12456 = vmatpush3.msk.msra.mxu0 %vm8811_vm3, %v9655_v20 }
 0xf1a   :  { %12458 = vmatmul.mubr.msk.f32.vlgmr.msra.gmra.mrb[76].mxu0 %vm9657_vm5, %v9656_v56  ;;  %12460 = vmatprep.subr.mxu0 %v19526_v5 }
 0xf1b   :  { %12461 = vmatpush3.msk.msra.mxu0 %vm8811_vm3, %v9655_v20  ;;  %12462 = vmatprep.mubr.msk.f32.mxu0 %vm14521_vm2, %v19526_v5 }
 0xf1c   :  { %12465 = vmatprep.subr.mxu0 %v19526_v5 }
 0xf1e   :  { %12463 = vmatmul.mubr.msk.f32.vlgmr.msra.gmra.mrb[78].mxu0 %vm9657_vm5, %v12027_v12 }
 0xf1f   :  { %12466 = vmatpush3.msk.msra.mxu0 %vm8811_vm3, %v9655_v20  ;;  %12467 = vmatprep.mubr.msk.f32.mxu0 %vm14521_vm2, %v19526_v5 }
 0xf20   :  { %12470 = vmatprep.subr.mxu0 %v19526_v5 }
 0xf22   :  { %12468 = vmatmul.mubr.msk.f32.vlgmr.msra.gmra.mrb[80].mxu0 %vm9657_vm5, %v12033_v50 }
 0xf23   :  { %12471 = vmatpush3.msk.msra.mxu0 %vm8811_vm3, %v9655_v20  ;;  %12472 = vmatprep.mubr.msk.f32.mxu0 %vm14521_vm2, %v19526_v5  ;;  %v10470_v20 = vrot.slane %v12045_v53, %v19343_v33 }
 0xf26   :  { %12473 = vmatmul.mubr.msk.f32.vlgmr.msra.gmra.mrb[82].mxu0 %vm9657_vm5, %v12039_v38 }
 0xf57   :  { %v9420_v0 = vpop.f32.mrb[74].mxu0 }
 0xf58   :  { %v9568_v39 = vsub.f32 %v9420_v0, %v9565_v16  ;;  %v9422_v27 = vpop.f32.mrb[75].mxu0  ;;  %v10339_v16 = vrot.slane %v12046_v13, %v19572_v43  ;;  %v10319_v0 = vrot.slane %v10304_v35, %v19572_v43 }
 0xf59   :  { %v9569_v44 = vsub.f32 %v9422_v27, %v9566_v60  ;;  %v10500_v60 = vrot.slane %v12046_v13, %v19576_v1  ;;  %v10504_v27 = vrot.slane %v12046_v13, %v10428_v30 }
 0xf5a   :  { %v9586_v42 = vadd.f32 1e-05, %v9568_v39  ;;  %v10343_v39 = vrot.slane %v12046_v13, %v19269_v40 }
 0xf5b   :  { %v9587_v24 = vadd.f32 1e-05, %v9569_v44 }
 0xf5c   :  { %14490 = vrsqrt.f32 %v9586_v42  ;;  %v10508_v42 = vrot.slane %v12046_v13, %v19343_v33 }
 0xf5d   :  { %14492 = vrsqrt.f32 %v9587_v24 }
 0xf66   :  { %v14491_v15 = vpop.eup %14490 }
 0xf67   :  { %v14493_v8 = vpop.eup %14492  ;;  %v9595_v41 = vrot.slane %v14491_v15, %v19572_v43 }
 0xf68   :  { %v9599_v28 = vrot.slane %v14493_v8, %v19572_v43 }
 0xf69   :  { %v9604_v18 = vmul.f32 %v9595_v41, %v9583_v49  ;;  %v10481_v41 = vrot.slane %v10466_v2, %v19576_v1 }
 0xf6a   :  { %v9605_v7 = vmul.f32 %v9599_v28, %v9584_v62  ;;  %v10250_v62 = vld [vmem:[%s19462_s20] sm:$0x3f]  ;;  %v10485_v28 = vrot.slane %v10470_v20, %v19576_v1 }
 0xf6b   :  { %v9624_v26 = vmul.f32 %v9612_v57, %v9604_v18  ;;  %v10261_v46 = vrot.slane %v10250_v62, %v19572_v43  ;;  %v10425_v58 = vrot.slane %v10250_v62, %v19576_v1  ;;  %v10265_v21 = vrot.slane %v10250_v62, %v19269_v40 }
 0xf6c   :  { %v9625_v22 = vmul.f32 %v9616_v55, %v9605_v7  ;;  %v10429_v54 = vrot.slane %v10250_v62, %v10428_v30  ;;  %v10433_v23 = vrot.slane %v10250_v62, %v19343_v33  ;;  %v10515_v7 = vrot.slane %v10500_v60, %v19576_v1 }
 0xf6d   :  { %v9644_v4 = vadd.f32 %v9632_v59, %v9624_v26  ;;  %v10440_v31 = vrot.slane %v10425_v58, %v19576_v1  ;;  %v10280_v37 = vrot.slane %v10265_v21, %v19572_v43  ;;  %v10354_v59 = vrot.slane %v10339_v16, %v19572_v43 }
 0xf6e   :  { %v9645_v48 = vadd.f32 %v9636_v9, %v9625_v22  ;;  %v10444_v61 = vrot.slane %v10429_v54, %v19576_v1  ;;  %v10448_v25 = vrot.slane %v10433_v23, %v19576_v1  ;;  %v10358_v22 = vrot.slane %v10343_v39, %v19572_v43 }
 0xf6f   :  { %v9650_v29 = vmul.f32 0.2, %v9644_v4  ;;  %vm9647_vm7 = vcmp.ge.f32.partialorder %v9644_v4, 0.0 }
 0xf70   :  { %vm9648_vm6 = vcmp.ge.f32.partialorder %v9645_v48, 0.0  ;;  %v9651_v45 = vmul.f32 0.2, %v9645_v48 }
 0xf71   :  { %v9653_v47 = vsel %vm9647_vm7, %v9644_v4, %v9650_v29  ;;  %v10519_v4 = vrot.slane %v10504_v27, %v19576_v1  ;;  %v10523_v29 = vrot.slane %v10508_v42, %v19576_v1 }
 0xf72   :  { %v9654_v10 = vsel %vm9648_vm6, %v9645_v48, %v9651_v45 }
 0xf73   :  { %12022 = vmatprep.subr.msk.mxu1 %vm8811_vm3, %v9654_v10 }
 0xf74   :  { %12023 = vmatpush1.msk.msra.mxu1 %vm8811_vm3, %v9653_v47 }
 0xf75   :  { %12024 = vmatmul.mubr.msk.f32.vlgmr.msra.gmra.mrb[92].mxu1 %vm9657_vm5, %v9656_v56  ;;  %12028 = vmatprep.subr.msk.mxu1 %vm8811_vm3, %v9654_v10 }
 0xf76   :  { %12029 = vmatpush1.msk.msra.mxu1 %vm8811_vm3, %v9653_v47  ;;  %9880 = vmatprep.mubr.f32.mxu1 %v19526_v5 }
 0xf77   :  { %12034 = vmatprep.subr.msk.mxu1 %vm8811_vm3, %v9654_v10 }
 0xf79   :  { %12030 = vmatmul.mubr.msk.f32.vlgmr.msra.gmra.mrb[94].mxu1 %vm9657_vm5, %v12027_v12  ;;  %v12047_v12 = vld [vmem:[%s19462_s20 + $0x12] sm:$0x3f] }
 0xf7a   :  { %12035 = vmatpush1.msk.msra.mxu1 %vm8811_vm3, %v9653_v47  ;;  %10026 = vmatprep.mubr.f32.mxu1 %v19526_v5  ;;  %v10378_v24 = vrot.slane %v12047_v12, %v19572_v43  ;;  %v10538_v15 = vrot.slane %v12047_v12, %v19576_v1  ;;  %v10382_v8 = vrot.slane %v12047_v12, %v19269_v40 }
 0xf7b   :  { %12040 = vmatprep.subr.msk.mxu1 %vm8811_vm3, %v9654_v10  ;;  %v10542_v55 = vrot.slane %v12047_v12, %v10428_v30 }
 0xf7c   :  { %v10393_v45 = vrot.slane %v10378_v24, %v19572_v43  ;;  %v10553_v10 = vrot.slane %v10538_v15, %v19576_v1 }
 0xf7d   :  { %12036 = vmatmul.mubr.msk.f32.vlgmr.msra.gmra.mrb[96].mxu1 %vm9657_vm5, %v12033_v50  ;;  %v10315_v50 = vrot.slane %v10300_v19, %v19572_v43 }
 0xf7e   :  { %12041 = vmatpush1.msk.msra.mxu1 %vm8811_vm3, %v9653_v47  ;;  %10172 = vmatprep.mubr.f32.mxu1 %v19526_v5  ;;  %v10268_v5 = vsub.s32 4, %v19575_v6  ;;  %v10276_v6 = vrot.slane %v10261_v46, %v19572_v43  ;;  %v19390_v47 = vrot.slane %v10382_v8, %v19572_v43 }
 0xf80   :  { %v10269_v3 = vrot.slane %v10250_v62, %v10268_v5  ;;  %v10308_v56 = vrot.slane %v12045_v53, %v10268_v5  ;;  %v10347_v44 = vrot.slane %v12046_v13, %v10268_v5  ;;  %v10386_v9 = vrot.slane %v12047_v12, %v10268_v5 }
 0xf81   :  { %12042 = vmatmul.mubr.msk.f32.vlgmr.msra.gmra.mrb[98].mxu1 %vm9657_vm5, %v12039_v38  ;;  %v10477_v38 = vrot.slane %v10462_v51, %v19576_v1 }
 0xf82   :  { %v10284_v14 = vrot.slane %v10269_v3, %v19572_v43  ;;  %v10323_v57 = vrot.slane %v10308_v56, %v19572_v43  ;;  %v10362_v40 = vrot.slane %v10347_v44, %v19572_v43  ;;  %v10401_v46 = vrot.slane %v10386_v9, %v19572_v43 }
 0xfed   :  { %v9807_v32 = vpop.f32.mrb[76].mxu0 }
 0xfee   :  { %v12459_v52 = vpop.f32.mrb[77].mxu0  ;;  %v10451_v18 = vmul.f32 %v10448_v25, %v9807_v32  ;;  %v10287_v26 = vmul.f32 %v10284_v14, %v9807_v32  ;;  %v10557_v32 = vrot.slane %v10542_v55, %v19576_v1 }
 0xff0   :  { %v10455_v5 = vsel %vm10288_vm8, %v10451_v18, 0.0  ;;  %v10292_v54 = vsel %vm10288_vm8, %v10287_v26, 0.0 }
 0xff1   :  { %v19331_v17 = vpop.f32.mrb[78].mxu0 }
 0xff2   :  { %v12464_v34 = vpop.f32.mrb[79].mxu0  ;;  %v10326_v58 = vmul.f32 %v10323_v57, %v19331_v17  ;;  %v10488_v23 = vmul.f32 %v10485_v28, %v19331_v17 }
 0xff4   :  { %v10492_v16 = vsel %vm10288_vm8, %v10488_v23, 0.0  ;;  %v10330_v60 = vsel %vm10288_vm8, %v10326_v58, 0.0 }
 0xff5   :  { %v19333_v49 = vpop.f32.mrb[80].mxu0 }
 0xff6   :  { %v12469_v11 = vpop.f32.mrb[81].mxu0  ;;  %v10526_v51 = vmul.f32 %v10523_v29, %v19333_v49  ;;  %v10365_v14 = vmul.f32 %v10362_v40, %v19333_v49 }
 0xff8   :  { %v10530_v27 = vsel %vm10288_vm8, %v10526_v51, 0.0  ;;  %v10369_v15 = vsel %vm10288_vm8, %v10365_v14, 0.0 }
 0xff9   :  { %v19335_v36 = vpop.f32.mrb[82].mxu0 }
 0xffa   :  { %v12474_v63 = vpop.f32.mrb[83].mxu0  ;;  %v10404_v28 = vmul.f32 %v10401_v46, %v19335_v36 }
 0xffb   :  { %v10546_v63 = vrot.slane %v12047_v12, %v19343_v33 }
 0xffd   :  { %v10561_v25 = vrot.slane %v10546_v63, %v19576_v1 }
 0xfff   :  { %v10564_v9 = vmul.f32 %v10561_v25, %v19335_v36 }
0x1048   :  { %v9736_v48 = vpop.f32.mrb[92].mxu1 }
0x1049   :  { %v10285_v52 = vmul.f32 %v10276_v6, %v9736_v48  ;;  %v10449_v34 = vmul.f32 %v10440_v31, %v9736_v48  ;;  %v9738_v11 = vpop.f32.mrb[93].mxu1 }
0x104a   :  { %v10286_v62 = vmul.f32 %v10280_v37, %v9738_v11  ;;  %v10450_v30 = vmul.f32 %v10444_v61, %v9738_v11 }
0x104b   :  { %v10452_v53 = vsel %vm10288_vm8, %v10449_v34, 0.0  ;;  %v10289_v21 = vsel %vm10288_vm8, %v10285_v52, 0.0 }
0x104c   :  { %v9882_v3 = vpop.f32.mrb[94].mxu1  ;;  %v10453_v19 = vsel %vm10288_vm8, %v10450_v30, 0.0  ;;  %v10290_v33 = vsel %vm10288_vm8, %v10286_v62, 0.0 }
0x104d   :  { %v10324_v6 = vmul.f32 %v10315_v50, %v9882_v3  ;;  %v10486_v31 = vmul.f32 %v10477_v38, %v9882_v3  ;;  %v9884_v43 = vpop.f32.mrb[95].mxu1  ;;  %v10454_v35 = vadd.f32 %v10453_v19, %v10452_v53  ;;  %v10291_v13 = vadd.f32 %v10290_v33, %v10289_v21 }
0x104e   :  { %v10325_v37 = vmul.f32 %v10319_v0, %v9884_v43  ;;  %v10487_v61 = vmul.f32 %v10481_v41, %v9884_v43 }
0x104f   :  { %v10327_v2 = vsel %vm10288_vm8, %v10324_v6, 0.0  ;;  %v10489_v17 = vsel %vm10288_vm8, %v10486_v31, 0.0  ;;  %v10456_v56 = vadd.f32 %v10455_v5, %v10454_v35  ;;  %v10293_v20 = vadd.f32 %v10292_v54, %v10291_v13  ;;  %v12048_v31 = vld [vmem:[%s19463_s21] ss:$0 sm:$0xff] }
0x1050   :  { %v10328_v12 = vsel %vm10288_vm8, %v10325_v37, 0.0  ;;  %v10490_v50 = vsel %vm10288_vm8, %v10487_v61, 0.0  ;;  %v10028_v38 = vpop.f32.mrb[96].mxu1 }
0x1051   :  { %v10363_v0 = vmul.f32 %v10354_v59, %v10028_v38  ;;  %v10524_v39 = vmul.f32 %v10515_v7, %v10028_v38  ;;  %v10030_v49 = vpop.f32.mrb[97].mxu1  ;;  %10457 = vadd.xlane.f32.xlu1 %v10456_v56  ;;  %10294 = vadd.xlane.f32.xlu0 %v10293_v20  ;;  %v10491_v1 = vadd.f32 %v10490_v50, %v10489_v17 }
0x1052   :  { %v10364_v44 = vmul.f32 %v10358_v22, %v10030_v49  ;;  %v10525_v42 = vmul.f32 %v10519_v4, %v10030_v49  ;;  %v10329_v24 = vadd.f32 %v10328_v12, %v10327_v2 }
0x1053   :  { %v10366_v8 = vsel %vm10288_vm8, %v10363_v0, 0.0  ;;  %v10527_v41 = vsel %vm10288_vm8, %v10524_v39, 0.0  ;;  %v10493_v57 = vadd.f32 %v10492_v16, %v10491_v1 }
0x1054   :  { %v10367_v55 = vsel %vm10288_vm8, %v10364_v44, 0.0  ;;  %v10528_v18 = vsel %vm10288_vm8, %v10525_v42, 0.0  ;;  %v10174_v59 = vpop.f32.mrb[98].mxu1  ;;  %v10331_v7 = vadd.f32 %v10330_v60, %v10329_v24 }
0x1055   :  { %v10402_v26 = vmul.f32 %v10393_v45, %v10174_v59  ;;  %v10562_v22 = vmul.f32 %v10553_v10, %v10174_v59  ;;  %v10176_v4 = vpop.f32.mrb[99].mxu1  ;;  %10494 = vadd.xlane.f32.xlu1 %v10493_v57  ;;  %v10529_v40 = vadd.f32 %v10528_v18, %v10527_v41  ;;  %v10368_v48 = vadd.f32 %v10367_v55, %v10366_v8 }
0x1056   :  { %v10403_v29 = vmul.f32 %v19390_v47, %v10176_v4  ;;  %v10563_v52 = vmul.f32 %v10557_v32, %v10176_v4  ;;  %10332 = vadd.xlane.f32.xlu0 %v10331_v7  ;;  %v10568_v45 = vsel %vm10288_vm8, %v10564_v9, 0.0  ;;  %v10408_v10 = vsel %vm10288_vm8, %v10404_v28, 0.0 }
0x1057   :  { %v10405_v34 = vsel %vm10288_vm8, %v10402_v26, 0.0  ;;  %v10565_v11 = vsel %vm10288_vm8, %v10562_v22, 0.0  ;;  %v10531_v63 = vadd.f32 %v10530_v27, %v10529_v40  ;;  %v10370_v62 = vadd.f32 %v10369_v15, %v10368_v48 }
0x1058   :  { %v10406_v30 = vsel %vm10288_vm8, %v10403_v29, 0.0  ;;  %v10566_v36 = vsel %vm10288_vm8, %v10563_v52, 0.0 }
0x1059   :  { %10532 = vadd.xlane.f32.xlu1 %v10531_v63  ;;  %v10567_v5 = vadd.f32 %v10566_v36, %v10565_v11  ;;  %v10407_v46 = vadd.f32 %v10406_v30, %v10405_v34 }
0x105a   :  { %10371 = vadd.xlane.f32.xlu0 %v10370_v62 }
0x105b   :  { %v10569_v47 = vadd.f32 %v10568_v45, %v10567_v5  ;;  %v10409_v32 = vadd.f32 %v10408_v10, %v10407_v46 }
0x105d   :  { %10570 = vadd.xlane.f32.xlu1 %v10569_v47 }
0x105e   :  { %10410 = vadd.xlane.f32.xlu0 %v10409_v32 }
0x10de   :  { %v10458_v58 = vpop.xlane.xlu1 %10457  ;;  %v10295_v53 = vpop.xlane.xlu0 %10294 }
0x10e2   :  { %v10495_v21 = vpop.xlane.xlu1 %10494 }
0x10e3   :  { %v10333_v54 = vpop.xlane.xlu0 %10332  ;;  %v10496_v23 = vadd.f32 %v10495_v21, %v10458_v58 }
0x10e4   :  { %v10334_v33 = vadd.f32 %v10333_v54, %v10295_v53 }
0x10e6   :  { %v10533_v3 = vpop.xlane.xlu1 %10532 }
0x10e7   :  { %v10372_v19 = vpop.xlane.xlu0 %10371  ;;  %v10534_v51 = vadd.f32 %v10533_v3, %v10496_v23 }
0x10e8   :  { %v10373_v6 = vadd.f32 %v10372_v19, %v10334_v33 }
0x10ea   :  { %v10571_v43 = vpop.xlane.xlu1 %10570 }
0x10eb   :  { %v10572_v35 = vadd.f32 %v10571_v43, %v10534_v51  ;;  %v10411_v13 = vpop.xlane.xlu0 %10410 }
0x10ec   :  { %v10412_v37 = vadd.f32 %v10411_v13, %v10373_v6 }
0x10ed   :  { %v10573_v61 = vadd.f32 %v12048_v31, %v10572_v35 }
0x10ee   :  { %v10419_v14 = vadd.f32 %v12048_v31, %v10412_v37 }
0x10f0   :  { %10421 = vst.msk [vmem:[#allocation2] sm:$0xf] %vm10420_vm9, %v10419_v14 }
0x10f1   :  { %10575 = vst.msk [vmem:[#allocation2] sm:$0xf] %vm10574_vm10, %v10573_v61 }
0x10f2   :  { %14505 = shalt.err (!%p14502_p4)
}
0x10f3   :  { %s14506_s23 = scalar_lea.hbm %s19464_s22, 64 }
0x10f4   :  { %p14507_p5 = scmp.ne.s32.totalorder %s19464_s22, %s14506_s23  ;;  %p14510_p6 = scmp.lt.u32.totalorder %s14506_s23, %s19464_s22 }
0x10f6   :  { %p14512_p7 = pnand %p14510_p6, %p14507_p5 }
0x10f8   :  { %14515 = shalt.err (!%p14512_p7)
}
0x10f9   :  { %10585 = dma.vmem_to_hbm [thread:$0]  %s10583_s11, 64, %s19464_s22, [#allocation3]  }
0x10fa   :  { %14516 = dma.done.wait [#allocation3], 64  }
0x10fb   :  { %14517 = vsyncadd [#allocation3], 4294967232 }
0x10fc   :  { %10589 = vsyncpa [#allocation3], 1 }

</bundles_post_ra>
